<compile_context>
chip_gen: v7x
topology: tpu7x:2x2x1
jax: 0.10.0
libtpu: 0.0.40
codegen_flags: <defaults>
</compile_context>

<pallas_src>
import functools
import math

import jax
import jax.numpy as jnp
from jax.experimental import pallas as pl
from jax.experimental.pallas import tpu as pltpu


# ----------------------------------------------------------------------------
# Fused Pallas kernel: skewed multi-layer LSTM recurrence + final Linear
# ----------------------------------------------------------------------------
def _lstm_recurrence_fc_kernel(xg_ref, wbig_ref, brest_ref, wfc_ref, bfc_ref,
                               out_ref, *, num_layers, seq_len, batch, hidden):
    """Refs (grid=(1,), full-array blocks, no scratch needed):
      xg_ref    (T, B, 4H)       layer-0 input projection incl. folded bias
      wbig_ref  (L*H, L*4H)      block matrix [[Whh_l^T on diag, Wih_{l+1}^T above]]
      brest_ref (max(L-1,1), 4H) folded biases of layers 1..L-1
      wfc_ref   (H, O), bfc_ref (1, O)
      out_ref   (B, O)
    """
    L, T, B, H = num_layers, seq_len, batch, hidden
    G = 4 * H

    # Folded biases for layers >= 1, read once (tiny, stays in vregs).
    b_rest = [brest_ref[l - 1:l, :] for l in range(1, L)]            # (1, 4H)

    hs = [jnp.zeros((B, H), jnp.float32) for _ in range(L)]
    cs = [jnp.zeros((B, H), jnp.float32) for _ in range(L)]

    n_waves = T + L - 1
    for s in range(n_waves):                       # static, fully unrolled
        # One fused matmul per wave serves every active layer:
        #   big[:, l*G:(l+1)*G] = h_{l-1} @ Wih_l^T + h_l @ Whh_l^T
        # (for l = 0 the Wih part comes from xg_ref instead).
        lhs = hs[0] if L == 1 else jnp.concatenate(hs, axis=-1)      # (B, L*H)
        big = jnp.dot(lhs, wbig_ref[...],          # RHS streamed from VMEM,
                      preferred_element_type=jnp.float32)            # not pinned
        new_hs, new_cs = list(hs), list(cs)
        for l in range(L):
            t = s - l                              # timestep this layer handles
            if t < 0 or t >= T:
                continue                           # layer idle this wave
            gates = big[:, l * G:(l + 1) * G]
            gates = gates + (xg_ref[t] if l == 0 else b_rest[l - 1])  # (B, 4H)
            # sigmoid(x) = 0.5*(1 + tanh(0.5 x)): 1 EUP pass + VPU fma
            # instead of exp + reciprocal (2 EUP passes).
            sig = 0.5 * (jnp.tanh(0.5 * gates) + 1.0)
            th = jnp.tanh(gates)
            i_g = sig[:, 0 * H:1 * H]
            f_g = sig[:, 1 * H:2 * H]
            g_g = th[:, 2 * H:3 * H]
            o_g = sig[:, 3 * H:4 * H]
            c_new = f_g * cs[l] + i_g * g_g
            new_cs[l] = c_new
            new_hs[l] = o_g * jnp.tanh(c_new)
        hs, cs = new_hs, new_cs

    # Final Linear on the last layer's last-timestep hidden state.
    out_ref[...] = (jnp.dot(hs[L - 1], wfc_ref[...],
                            preferred_element_type=jnp.float32)
                    + bfc_ref[...])


# ----------------------------------------------------------------------------
# Wrapper
# ----------------------------------------------------------------------------
def _full_spec(shape):
    zeros = (0,) * len(shape)
    return pl.BlockSpec(shape, lambda i: zeros)


def lstm_model_forward(x_btd, prep):
    """LSTMModel.forward.  x_btd: (B, T, input_size) -> (B, output_size)."""
    B, T, D = x_btd.shape
    G = prep["xg_b"].shape[1]                    # 4H
    H = G // 4
    L = prep["w_big"].shape[0] // H
    O = prep["fc_w_t"].shape[1]

    # Layer-0 input projection + folded bias, hoisted to XLA: with D=1 this is
    # an outer product (no MXU work); the kernel then only does the recurrence.
    x_tbd = jnp.transpose(x_btd, (1, 0, 2)).reshape(T * B, D)
    xg0 = (jnp.dot(x_tbd, prep["xg_w"]) + prep["xg_b"]).reshape(T, B, G)

    kernel = functools.partial(_lstm_recurrence_fc_kernel,
                               num_layers=L, seq_len=T, batch=B, hidden=H)

    in_specs = [
        _full_spec((T, B, G)),
        _full_spec(prep["w_big"].shape),
        _full_spec(prep["b_rest"].shape),
        _full_spec((H, O)),
        _full_spec((1, O)),
    ]
    return pl.pallas_call(
        kernel,
        out_shape=jax.ShapeDtypeStruct((B, O), jnp.float32),
        grid_spec=pltpu.PrefetchScalarGridSpec(
            num_scalar_prefetch=0,
            grid=(1,),                           # single invocation, single TC
            in_specs=in_specs,
            out_specs=_full_spec((B, O)),
        ),
        compiler_params=pltpu.CompilerParams(
            dimension_semantics=("arbitrary",),
        ),
    )(xg0, prep["w_big"], prep["b_rest"], prep["fc_w_t"], prep["fc_b"])


# ----------------------------------------------------------------------------
# Parameters: PyTorch-shaped init + one-time preparation
# ----------------------------------------------------------------------------
def init_params(key, input_size, hidden_size, num_layers, output_size):
    params = {"lstm": []}
    bound = 1.0 / math.sqrt(hidden_size)
    for layer in range(num_layers):
        in_sz = input_size if layer == 0 else hidden_size
        key, k1, k2, k3, k4 = jax.random.split(key, 5)
        params["lstm"].append({
            "w_ih": jax.random.uniform(k1, (4 * hidden_size, in_sz),
                                       jnp.float32, -bound, bound),
            "w_hh": jax.random.uniform(k2, (4 * hidden_size, hidden_size),
                                       jnp.float32, -bound, bound),
            "b_ih": jax.random.uniform(k3, (4 * hidden_size,),
                                       jnp.float32, -bound, bound),
            "b_hh": jax.random.uniform(k4, (4 * hidden_size,),
                                       jnp.float32, -bound, bound),
        })
    key, k5, k6 = jax.random.split(key, 3)
    fc_bound = 1.0 / math.sqrt(hidden_size)
    params["fc_w"] = jax.random.uniform(k5, (output_size, hidden_size),
                                        jnp.float32, -fc_bound, fc_bound)
    params["fc_b"] = jax.random.uniform(k6, (output_size,),
                                        jnp.float32, -fc_bound, fc_bound)
    return params


def prepare_params(params):
    """One-time conversion: transpose weights, fold biases, build the block
    matrix for the skewed/fused recurrence (kept off the per-call path)."""
    lstm = params["lstm"]
    L = len(lstm)
    H = lstm[0]["w_hh"].shape[1]
    prep = {
        "xg_w": jnp.transpose(lstm[0]["w_ih"]),                        # (D, 4H)
        "xg_b": (lstm[0]["b_ih"] + lstm[0]["b_hh"]).reshape(1, 4 * H),
    }
    w_big = jnp.zeros((L * H, L * 4 * H), jnp.float32)
    for l in range(L):
        w_big = w_big.at[l * H:(l + 1) * H, 4 * l * H:4 * (l + 1) * H].set(
            jnp.transpose(lstm[l]["w_hh"]))                            # diag
        if l + 1 < L:
            w_big = w_big.at[l * H:(l + 1) * H,
                             4 * (l + 1) * H:4 * (l + 2) * H].set(
                jnp.transpose(lstm[l + 1]["w_ih"]))                    # superdiag
    prep["w_big"] = w_big
    if L > 1:
        prep["b_rest"] = jnp.stack(
            [lstm[l]["b_ih"] + lstm[l]["b_hh"] for l in range(1, L)])  # (L-1,4H)
    else:
        prep["b_rest"] = jnp.zeros((1, 4 * H), jnp.float32)
    prep["fc_w_t"] = jnp.transpose(params["fc_w"])                     # (H, O)
    prep["fc_b"] = params["fc_b"].reshape(1, -1)                       # (1, O)
    return prep


# ----------------------------------------------------------------------------
# Pure-JAX reference (silent correctness check)
# ----------------------------------------------------------------------------
def reference_forward(x_btd, params):
    B, T, _ = x_btd.shape
    seq = x_btd
    for layer in params["lstm"]:
        H = layer["w_hh"].shape[1]
        h = jnp.zeros((B, H), jnp.float32)
        c = jnp.zeros((B, H), jnp.float32)
        outs = []
        for t in range(T):
            g = (seq[:, t, :] @ layer["w_ih"].T + h @ layer["w_hh"].T
                 + layer["b_ih"] + layer["b_hh"])
            i_g = jax.nn.sigmoid(g[:, 0 * H:1 * H])
            f_g = jax.nn.sigmoid(g[:, 1 * H:2 * H])
            g_g = jnp.tanh(g[:, 2 * H:3 * H])
            o_g = jax.nn.sigmoid(g[:, 3 * H:4 * H])
            c = f_g * c + i_g * g_g
            h = o_g * jnp.tanh(c)
            outs.append(h)
        seq = jnp.stack(outs, axis=1)
    return seq[:, -1, :] @ params["fc_w"].T + params["fc_b"]


# ----------------------------------------------------------------------------
if __name__ == "__main__":
    # Make XLA-side matmuls (wrapper projection + reference) true-f32 so the
    # comparison against the kernel's f32 MXU path is apples-to-apples.
    jax.config.update("jax_default_matmul_precision", "highest")

    B, T = 2, 8
    INPUT_SIZE, HIDDEN_SIZE, NUM_LAYERS, OUTPUT_SIZE = 1, 64, 2, 1

    key = jax.random.PRNGKey(0)
    key, kx, kp = jax.random.split(key, 3)
    x = jax.random.normal(kx, (B, T, INPUT_SIZE), jnp.float32)
    params = init_params(kp, INPUT_SIZE, HIDDEN_SIZE, NUM_LAYERS, OUTPUT_SIZE)
    prep = prepare_params(params)        # one-time weight restructuring

    forward = jax.jit(lstm_model_forward)
    out = jax.block_until_ready(forward(x, prep))

    ref = reference_forward(x, params)
    assert out.shape == (B, OUTPUT_SIZE)
    assert jnp.allclose(out, ref, atol=1e-3, rtol=1e-3), (out, ref)

    print("KERNEL_OK")
</pallas_src>

<mosaic_0001>
module attributes {stable_mosaic.version = 11 : i64} {
  func.func @_lstm_recurrence_fc_kernel(%arg0: i32, %arg1: memref<8x2x256xf32, #tpu.memory_space<vmem>>, %arg2: memref<128x512xf32, #tpu.memory_space<vmem>>, %arg3: memref<1x256xf32, #tpu.memory_space<vmem>>, %arg4: memref<64x1xf32, #tpu.memory_space<vmem>>, %arg5: memref<1x1xf32, #tpu.memory_space<vmem>>, %arg6: memref<2x1xf32, #tpu.memory_space<vmem>>) attributes {dimension_semantics = [#tpu.dimension_semantics<arbitrary>], iteration_bounds = array<i64: 1>, scalar_prefetch = 0 : i64, scratch_operands = 0 : i64, tpu.core_type = #tpu.core_type<tc>, window_params = [{pipeline_mode = #tpu.pipeline_mode<synchronous>, transform_indices = @transform_0, window_bounds = array<i64: 8, 2, 256>}, {pipeline_mode = #tpu.pipeline_mode<synchronous>, transform_indices = @transform_1, window_bounds = array<i64: 128, 512>}, {pipeline_mode = #tpu.pipeline_mode<synchronous>, transform_indices = @transform_2, window_bounds = array<i64: 1, 256>}, {pipeline_mode = #tpu.pipeline_mode<synchronous>, transform_indices = @transform_3, window_bounds = array<i64: 64, 1>}, {pipeline_mode = #tpu.pipeline_mode<synchronous>, transform_indices = @transform_4, window_bounds = array<i64: 1, 1>}, {pipeline_mode = #tpu.pipeline_mode<synchronous>, transform_indices = @transform_5, window_bounds = array<i64: 2, 1>}]} {
    %c0 = arith.constant 0 : index
    %c0_0 = arith.constant 0 : index
    %0 = vector.load %arg3[%c0, %c0_0] : memref<1x256xf32, #tpu.memory_space<vmem>>, vector<1x256xf32>
    %cst = arith.constant 0.000000e+00 : f32
    %1 = vector.broadcast %cst : f32 to vector<2x64xf32>
    %cst_1 = arith.constant 0.000000e+00 : f32
    %2 = vector.broadcast %cst_1 : f32 to vector<2x64xf32>
    %cst_2 = arith.constant 0.000000e+00 : f32
    %3 = vector.broadcast %cst_2 : f32 to vector<2x64xf32>
    %cst_3 = arith.constant 0.000000e+00 : f32
    %4 = vector.broadcast %cst_3 : f32 to vector<2x64xf32>
    %5 = tpu.concatenate %1, %2 in 1 : vector<2x64xf32>, vector<2x64xf32> -> vector<2x128xf32>
    %c0_4 = arith.constant 0 : index
    %c0_5 = arith.constant 0 : index
    %6 = vector.load %arg2[%c0_4, %c0_5] : memref<128x512xf32, #tpu.memory_space<vmem>>, vector<128x512xf32>
    %cst_6 = arith.constant dense<0.000000e+00> : vector<2x512xf32>
    %7 = tpu.matmul %5, %6, %cst_6 {dimension_numbers = #tpu.dot_dimension_numbers<[1], [0], [0], [1], [0, 0, 1, 1], [], []>, precision = #tpu.contract_precision<fp32>} : vector<2x128xf32>, vector<128x512xf32>, vector<2x512xf32> -> vector<2x512xf32>
    %8 = vector.extract_strided_slice %7 {offsets = [0, 0], sizes = [2, 256], strides = [1, 1]} : vector<2x512xf32> to vector<2x256xf32>
    %c0_7 = arith.constant 0 : index
    %c0_8 = arith.constant 0 : index
    %c0_9 = arith.constant 0 : index
    %9 = vector.load %arg1[%c0_7, %c0_8, %c0_9] : memref<8x2x256xf32, #tpu.memory_space<vmem>>, vector<1x2x256xf32>
    %10 = vector.shape_cast %9 : vector<1x2x256xf32> to vector<2x256xf32>
    %11 = arith.addf %8, %10 : vector<2x256xf32>
    %cst_10 = arith.constant 5.000000e-01 : f32
    %12 = vector.broadcast %cst_10 : f32 to vector<2x256xf32>
    %13 = arith.mulf %12, %11 : vector<2x256xf32>
    %14 = math.tanh %13 : vector<2x256xf32>
    %cst_11 = arith.constant 1.000000e+00 : f32
    %15 = vector.broadcast %cst_11 : f32 to vector<2x256xf32>
    %16 = arith.addf %14, %15 : vector<2x256xf32>
    %cst_12 = arith.constant 5.000000e-01 : f32
    %17 = vector.broadcast %cst_12 : f32 to vector<2x256xf32>
    %18 = arith.mulf %17, %16 : vector<2x256xf32>
    %19 = math.tanh %11 : vector<2x256xf32>
    %20 = vector.extract_strided_slice %18 {offsets = [0, 0], sizes = [2, 64], strides = [1, 1]} : vector<2x256xf32> to vector<2x64xf32>
    %21 = vector.extract_strided_slice %18 {offsets = [0, 64], sizes = [2, 64], strides = [1, 1]} : vector<2x256xf32> to vector<2x64xf32>
    %22 = vector.extract_strided_slice %19 {offsets = [0, 128], sizes = [2, 64], strides = [1, 1]} : vector<2x256xf32> to vector<2x64xf32>
    %23 = vector.extract_strided_slice %18 {offsets = [0, 192], sizes = [2, 64], strides = [1, 1]} : vector<2x256xf32> to vector<2x64xf32>
    %24 = arith.mulf %21, %3 : vector<2x64xf32>
    %25 = arith.mulf %20, %22 : vector<2x64xf32>
    %26 = arith.addf %24, %25 : vector<2x64xf32>
    %27 = math.tanh %26 : vector<2x64xf32>
    %28 = arith.mulf %23, %27 : vector<2x64xf32>
    %29 = tpu.concatenate %28, %2 in 1 : vector<2x64xf32>, vector<2x64xf32> -> vector<2x128xf32>
    %c0_13 = arith.constant 0 : index
    %c0_14 = arith.constant 0 : index
    %30 = vector.load %arg2[%c0_13, %c0_14] : memref<128x512xf32, #tpu.memory_space<vmem>>, vector<128x512xf32>
    %cst_15 = arith.constant dense<0.000000e+00> : vector<2x512xf32>
    %31 = tpu.matmul %29, %30, %cst_15 {dimension_numbers = #tpu.dot_dimension_numbers<[1], [0], [0], [1], [0, 0, 1, 1], [], []>, precision = #tpu.contract_precision<fp32>} : vector<2x128xf32>, vector<128x512xf32>, vector<2x512xf32> -> vector<2x512xf32>
    %32 = vector.extract_strided_slice %31 {offsets = [0, 0], sizes = [2, 256], strides = [1, 1]} : vector<2x512xf32> to vector<2x256xf32>
    %c1 = arith.constant 1 : index
    %c0_16 = arith.constant 0 : index
    %c0_17 = arith.constant 0 : index
    %33 = vector.load %arg1[%c1, %c0_16, %c0_17] : memref<8x2x256xf32, #tpu.memory_space<vmem>>, vector<1x2x256xf32>
    %34 = vector.shape_cast %33 : vector<1x2x256xf32> to vector<2x256xf32>
    %35 = arith.addf %32, %34 : vector<2x256xf32>
    %cst_18 = arith.constant 5.000000e-01 : f32
    %36 = vector.broadcast %cst_18 : f32 to vector<2x256xf32>
    %37 = arith.mulf %36, %35 : vector<2x256xf32>
    %38 = math.tanh %37 : vector<2x256xf32>
    %cst_19 = arith.constant 1.000000e+00 : f32
    %39 = vector.broadcast %cst_19 : f32 to vector<2x256xf32>
    %40 = arith.addf %38, %39 : vector<2x256xf32>
    %cst_20 = arith.constant 5.000000e-01 : f32
    %41 = vector.broadcast %cst_20 : f32 to vector<2x256xf32>
    %42 = arith.mulf %41, %40 : vector<2x256xf32>
    %43 = math.tanh %35 : vector<2x256xf32>
    %44 = vector.extract_strided_slice %42 {offsets = [0, 0], sizes = [2, 64], strides = [1, 1]} : vector<2x256xf32> to vector<2x64xf32>
    %45 = vector.extract_strided_slice %42 {offsets = [0, 64], sizes = [2, 64], strides = [1, 1]} : vector<2x256xf32> to vector<2x64xf32>
    %46 = vector.extract_strided_slice %43 {offsets = [0, 128], sizes = [2, 64], strides = [1, 1]} : vector<2x256xf32> to vector<2x64xf32>
    %47 = vector.extract_strided_slice %42 {offsets = [0, 192], sizes = [2, 64], strides = [1, 1]} : vector<2x256xf32> to vector<2x64xf32>
    %48 = arith.mulf %45, %26 : vector<2x64xf32>
    %49 = arith.mulf %44, %46 : vector<2x64xf32>
    %50 = arith.addf %48, %49 : vector<2x64xf32>
    %51 = math.tanh %50 : vector<2x64xf32>
    %52 = arith.mulf %47, %51 : vector<2x64xf32>
    %53 = vector.extract_strided_slice %31 {offsets = [0, 256], sizes = [2, 256], strides = [1, 1]} : vector<2x512xf32> to vector<2x256xf32>
    %54 = vector.broadcast %0 : vector<1x256xf32> to vector<2x256xf32>
    %55 = arith.addf %53, %54 : vector<2x256xf32>
    %cst_21 = arith.constant 5.000000e-01 : f32
    %56 = vector.broadcast %cst_21 : f32 to vector<2x256xf32>
    %57 = arith.mulf %56, %55 : vector<2x256xf32>
    %58 = math.tanh %57 : vector<2x256xf32>
    %cst_22 = arith.constant 1.000000e+00 : f32
    %59 = vector.broadcast %cst_22 : f32 to vector<2x256xf32>
    %60 = arith.addf %58, %59 : vector<2x256xf32>
    %cst_23 = arith.constant 5.000000e-01 : f32
    %61 = vector.broadcast %cst_23 : f32 to vector<2x256xf32>
    %62 = arith.mulf %61, %60 : vector<2x256xf32>
    %63 = math.tanh %55 : vector<2x256xf32>
    %64 = vector.extract_strided_slice %62 {offsets = [0, 0], sizes = [2, 64], strides = [1, 1]} : vector<2x256xf32> to vector<2x64xf32>
    %65 = vector.extract_strided_slice %62 {offsets = [0, 64], sizes = [2, 64], strides = [1, 1]} : vector<2x256xf32> to vector<2x64xf32>
    %66 = vector.extract_strided_slice %63 {offsets = [0, 128], sizes = [2, 64], strides = [1, 1]} : vector<2x256xf32> to vector<2x64xf32>
    %67 = vector.extract_strided_slice %62 {offsets = [0, 192], sizes = [2, 64], strides = [1, 1]} : vector<2x256xf32> to vector<2x64xf32>
    %68 = arith.mulf %65, %4 : vector<2x64xf32>
    %69 = arith.mulf %64, %66 : vector<2x64xf32>
    %70 = arith.addf %68, %69 : vector<2x64xf32>
    %71 = math.tanh %70 : vector<2x64xf32>
    %72 = arith.mulf %67, %71 : vector<2x64xf32>
    %73 = tpu.concatenate %52, %72 in 1 : vector<2x64xf32>, vector<2x64xf32> -> vector<2x128xf32>
    %c0_24 = arith.constant 0 : index
    %c0_25 = arith.constant 0 : index
    %74 = vector.load %arg2[%c0_24, %c0_25] : memref<128x512xf32, #tpu.memory_space<vmem>>, vector<128x512xf32>
    %cst_26 = arith.constant dense<0.000000e+00> : vector<2x512xf32>
    %75 = tpu.matmul %73, %74, %cst_26 {dimension_numbers = #tpu.dot_dimension_numbers<[1], [0], [0], [1], [0, 0, 1, 1], [], []>, precision = #tpu.contract_precision<fp32>} : vector<2x128xf32>, vector<128x512xf32>, vector<2x512xf32> -> vector<2x512xf32>
    %76 = vector.extract_strided_slice %75 {offsets = [0, 0], sizes = [2, 256], strides = [1, 1]} : vector<2x512xf32> to vector<2x256xf32>
    %c2 = arith.constant 2 : index
    %c0_27 = arith.constant 0 : index
    %c0_28 = arith.constant 0 : index
    %77 = vector.load %arg1[%c2, %c0_27, %c0_28] : memref<8x2x256xf32, #tpu.memory_space<vmem>>, vector<1x2x256xf32>
    %78 = vector.shape_cast %77 : vector<1x2x256xf32> to vector<2x256xf32>
    %79 = arith.addf %76, %78 : vector<2x256xf32>
    %cst_29 = arith.constant 5.000000e-01 : f32
    %80 = vector.broadcast %cst_29 : f32 to vector<2x256xf32>
    %81 = arith.mulf %80, %79 : vector<2x256xf32>
    %82 = math.tanh %81 : vector<2x256xf32>
    %cst_30 = arith.constant 1.000000e+00 : f32
    %83 = vector.broadcast %cst_30 : f32 to vector<2x256xf32>
    %84 = arith.addf %82, %83 : vector<2x256xf32>
    %cst_31 = arith.constant 5.000000e-01 : f32
    %85 = vector.broadcast %cst_31 : f32 to vector<2x256xf32>
    %86 = arith.mulf %85, %84 : vector<2x256xf32>
    %87 = math.tanh %79 : vector<2x256xf32>
    %88 = vector.extract_strided_slice %86 {offsets = [0, 0], sizes = [2, 64], strides = [1, 1]} : vector<2x256xf32> to vector<2x64xf32>
    %89 = vector.extract_strided_slice %86 {offsets = [0, 64], sizes = [2, 64], strides = [1, 1]} : vector<2x256xf32> to vector<2x64xf32>
    %90 = vector.extract_strided_slice %87 {offsets = [0, 128], sizes = [2, 64], strides = [1, 1]} : vector<2x256xf32> to vector<2x64xf32>
    %91 = vector.extract_strided_slice %86 {offsets = [0, 192], sizes = [2, 64], strides = [1, 1]} : vector<2x256xf32> to vector<2x64xf32>
    %92 = arith.mulf %89, %50 : vector<2x64xf32>
    %93 = arith.mulf %88, %90 : vector<2x64xf32>
    %94 = arith.addf %92, %93 : vector<2x64xf32>
    %95 = math.tanh %94 : vector<2x64xf32>
    %96 = arith.mulf %91, %95 : vector<2x64xf32>
    %97 = vector.extract_strided_slice %75 {offsets = [0, 256], sizes = [2, 256], strides = [1, 1]} : vector<2x512xf32> to vector<2x256xf32>
    %98 = vector.broadcast %0 : vector<1x256xf32> to vector<2x256xf32>
    %99 = arith.addf %97, %98 : vector<2x256xf32>
    %cst_32 = arith.constant 5.000000e-01 : f32
    %100 = vector.broadcast %cst_32 : f32 to vector<2x256xf32>
    %101 = arith.mulf %100, %99 : vector<2x256xf32>
    %102 = math.tanh %101 : vector<2x256xf32>
    %cst_33 = arith.constant 1.000000e+00 : f32
    %103 = vector.broadcast %cst_33 : f32 to vector<2x256xf32>
    %104 = arith.addf %102, %103 : vector<2x256xf32>
    %cst_34 = arith.constant 5.000000e-01 : f32
    %105 = vector.broadcast %cst_34 : f32 to vector<2x256xf32>
    %106 = arith.mulf %105, %104 : vector<2x256xf32>
    %107 = math.tanh %99 : vector<2x256xf32>
    %108 = vector.extract_strided_slice %106 {offsets = [0, 0], sizes = [2, 64], strides = [1, 1]} : vector<2x256xf32> to vector<2x64xf32>
    %109 = vector.extract_strided_slice %106 {offsets = [0, 64], sizes = [2, 64], strides = [1, 1]} : vector<2x256xf32> to vector<2x64xf32>
    %110 = vector.extract_strided_slice %107 {offsets = [0, 128], sizes = [2, 64], strides = [1, 1]} : vector<2x256xf32> to vector<2x64xf32>
    %111 = vector.extract_strided_slice %106 {offsets = [0, 192], sizes = [2, 64], strides = [1, 1]} : vector<2x256xf32> to vector<2x64xf32>
    %112 = arith.mulf %109, %70 : vector<2x64xf32>
    %113 = arith.mulf %108, %110 : vector<2x64xf32>
    %114 = arith.addf %112, %113 : vector<2x64xf32>
    %115 = math.tanh %114 : vector<2x64xf32>
    %116 = arith.mulf %111, %115 : vector<2x64xf32>
    %117 = tpu.concatenate %96, %116 in 1 : vector<2x64xf32>, vector<2x64xf32> -> vector<2x128xf32>
    %c0_35 = arith.constant 0 : index
    %c0_36 = arith.constant 0 : index
    %118 = vector.load %arg2[%c0_35, %c0_36] : memref<128x512xf32, #tpu.memory_space<vmem>>, vector<128x512xf32>
    %cst_37 = arith.constant dense<0.000000e+00> : vector<2x512xf32>
    %119 = tpu.matmul %117, %118, %cst_37 {dimension_numbers = #tpu.dot_dimension_numbers<[1], [0], [0], [1], [0, 0, 1, 1], [], []>, precision = #tpu.contract_precision<fp32>} : vector<2x128xf32>, vector<128x512xf32>, vector<2x512xf32> -> vector<2x512xf32>
    %120 = vector.extract_strided_slice %119 {offsets = [0, 0], sizes = [2, 256], strides = [1, 1]} : vector<2x512xf32> to vector<2x256xf32>
    %c3 = arith.constant 3 : index
    %c0_38 = arith.constant 0 : index
    %c0_39 = arith.constant 0 : index
    %121 = vector.load %arg1[%c3, %c0_38, %c0_39] : memref<8x2x256xf32, #tpu.memory_space<vmem>>, vector<1x2x256xf32>
    %122 = vector.shape_cast %121 : vector<1x2x256xf32> to vector<2x256xf32>
    %123 = arith.addf %120, %122 : vector<2x256xf32>
    %cst_40 = arith.constant 5.000000e-01 : f32
    %124 = vector.broadcast %cst_40 : f32 to vector<2x256xf32>
    %125 = arith.mulf %124, %123 : vector<2x256xf32>
    %126 = math.tanh %125 : vector<2x256xf32>
    %cst_41 = arith.constant 1.000000e+00 : f32
    %127 = vector.broadcast %cst_41 : f32 to vector<2x256xf32>
    %128 = arith.addf %126, %127 : vector<2x256xf32>
    %cst_42 = arith.constant 5.000000e-01 : f32
    %129 = vector.broadcast %cst_42 : f32 to vector<2x256xf32>
    %130 = arith.mulf %129, %128 : vector<2x256xf32>
    %131 = math.tanh %123 : vector<2x256xf32>
    %132 = vector.extract_strided_slice %130 {offsets = [0, 0], sizes = [2, 64], strides = [1, 1]} : vector<2x256xf32> to vector<2x64xf32>
    %133 = vector.extract_strided_slice %130 {offsets = [0, 64], sizes = [2, 64], strides = [1, 1]} : vector<2x256xf32> to vector<2x64xf32>
    %134 = vector.extract_strided_slice %131 {offsets = [0, 128], sizes = [2, 64], strides = [1, 1]} : vector<2x256xf32> to vector<2x64xf32>
    %135 = vector.extract_strided_slice %130 {offsets = [0, 192], sizes = [2, 64], strides = [1, 1]} : vector<2x256xf32> to vector<2x64xf32>
    %136 = arith.mulf %133, %94 : vector<2x64xf32>
    %137 = arith.mulf %132, %134 : vector<2x64xf32>
    %138 = arith.addf %136, %137 : vector<2x64xf32>
    %139 = math.tanh %138 : vector<2x64xf32>
    %140 = arith.mulf %135, %139 : vector<2x64xf32>
    %141 = vector.extract_strided_slice %119 {offsets = [0, 256], sizes = [2, 256], strides = [1, 1]} : vector<2x512xf32> to vector<2x256xf32>
    %142 = vector.broadcast %0 : vector<1x256xf32> to vector<2x256xf32>
    %143 = arith.addf %141, %142 : vector<2x256xf32>
    %cst_43 = arith.constant 5.000000e-01 : f32
    %144 = vector.broadcast %cst_43 : f32 to vector<2x256xf32>
    %145 = arith.mulf %144, %143 : vector<2x256xf32>
    %146 = math.tanh %145 : vector<2x256xf32>
    %cst_44 = arith.constant 1.000000e+00 : f32
    %147 = vector.broadcast %cst_44 : f32 to vector<2x256xf32>
    %148 = arith.addf %146, %147 : vector<2x256xf32>
    %cst_45 = arith.constant 5.000000e-01 : f32
    %149 = vector.broadcast %cst_45 : f32 to vector<2x256xf32>
    %150 = arith.mulf %149, %148 : vector<2x256xf32>
    %151 = math.tanh %143 : vector<2x256xf32>
    %152 = vector.extract_strided_slice %150 {offsets = [0, 0], sizes = [2, 64], strides = [1, 1]} : vector<2x256xf32> to vector<2x64xf32>
    %153 = vector.extract_strided_slice %150 {offsets = [0, 64], sizes = [2, 64], strides = [1, 1]} : vector<2x256xf32> to vector<2x64xf32>
    %154 = vector.extract_strided_slice %151 {offsets = [0, 128], sizes = [2, 64], strides = [1, 1]} : vector<2x256xf32> to vector<2x64xf32>
    %155 = vector.extract_strided_slice %150 {offsets = [0, 192], sizes = [2, 64], strides = [1, 1]} : vector<2x256xf32> to vector<2x64xf32>
    %156 = arith.mulf %153, %114 : vector<2x64xf32>
    %157 = arith.mulf %152, %154 : vector<2x64xf32>
    %158 = arith.addf %156, %157 : vector<2x64xf32>
    %159 = math.tanh %158 : vector<2x64xf32>
    %160 = arith.mulf %155, %159 : vector<2x64xf32>
    %161 = tpu.concatenate %140, %160 in 1 : vector<2x64xf32>, vector<2x64xf32> -> vector<2x128xf32>
    %c0_46 = arith.constant 0 : index
    %c0_47 = arith.constant 0 : index
    %162 = vector.load %arg2[%c0_46, %c0_47] : memref<128x512xf32, #tpu.memory_space<vmem>>, vector<128x512xf32>
    %cst_48 = arith.constant dense<0.000000e+00> : vector<2x512xf32>
    %163 = tpu.matmul %161, %162, %cst_48 {dimension_numbers = #tpu.dot_dimension_numbers<[1], [0], [0], [1], [0, 0, 1, 1], [], []>, precision = #tpu.contract_precision<fp32>} : vector<2x128xf32>, vector<128x512xf32>, vector<2x512xf32> -> vector<2x512xf32>
    %164 = vector.extract_strided_slice %163 {offsets = [0, 0], sizes = [2, 256], strides = [1, 1]} : vector<2x512xf32> to vector<2x256xf32>
    %c4 = arith.constant 4 : index
    %c0_49 = arith.constant 0 : index
    %c0_50 = arith.constant 0 : index
    %165 = vector.load %arg1[%c4, %c0_49, %c0_50] : memref<8x2x256xf32, #tpu.memory_space<vmem>>, vector<1x2x256xf32>
    %166 = vector.shape_cast %165 : vector<1x2x256xf32> to vector<2x256xf32>
    %167 = arith.addf %164, %166 : vector<2x256xf32>
    %cst_51 = arith.constant 5.000000e-01 : f32
    %168 = vector.broadcast %cst_51 : f32 to vector<2x256xf32>
    %169 = arith.mulf %168, %167 : vector<2x256xf32>
    %170 = math.tanh %169 : vector<2x256xf32>
    %cst_52 = arith.constant 1.000000e+00 : f32
    %171 = vector.broadcast %cst_52 : f32 to vector<2x256xf32>
    %172 = arith.addf %170, %171 : vector<2x256xf32>
    %cst_53 = arith.constant 5.000000e-01 : f32
    %173 = vector.broadcast %cst_53 : f32 to vector<2x256xf32>
    %174 = arith.mulf %173, %172 : vector<2x256xf32>
    %175 = math.tanh %167 : vector<2x256xf32>
    %176 = vector.extract_strided_slice %174 {offsets = [0, 0], sizes = [2, 64], strides = [1, 1]} : vector<2x256xf32> to vector<2x64xf32>
    %177 = vector.extract_strided_slice %174 {offsets = [0, 64], sizes = [2, 64], strides = [1, 1]} : vector<2x256xf32> to vector<2x64xf32>
    %178 = vector.extract_strided_slice %175 {offsets = [0, 128], sizes = [2, 64], strides = [1, 1]} : vector<2x256xf32> to vector<2x64xf32>
    %179 = vector.extract_strided_slice %174 {offsets = [0, 192], sizes = [2, 64], strides = [1, 1]} : vector<2x256xf32> to vector<2x64xf32>
    %180 = arith.mulf %177, %138 : vector<2x64xf32>
    %181 = arith.mulf %176, %178 : vector<2x64xf32>
    %182 = arith.addf %180, %181 : vector<2x64xf32>
    %183 = math.tanh %182 : vector<2x64xf32>
    %184 = arith.mulf %179, %183 : vector<2x64xf32>
    %185 = vector.extract_strided_slice %163 {offsets = [0, 256], sizes = [2, 256], strides = [1, 1]} : vector<2x512xf32> to vector<2x256xf32>
    %186 = vector.broadcast %0 : vector<1x256xf32> to vector<2x256xf32>
    %187 = arith.addf %185, %186 : vector<2x256xf32>
    %cst_54 = arith.constant 5.000000e-01 : f32
    %188 = vector.broadcast %cst_54 : f32 to vector<2x256xf32>
    %189 = arith.mulf %188, %187 : vector<2x256xf32>
    %190 = math.tanh %189 : vector<2x256xf32>
    %cst_55 = arith.constant 1.000000e+00 : f32
    %191 = vector.broadcast %cst_55 : f32 to vector<2x256xf32>
    %192 = arith.addf %190, %191 : vector<2x256xf32>
    %cst_56 = arith.constant 5.000000e-01 : f32
    %193 = vector.broadcast %cst_56 : f32 to vector<2x256xf32>
    %194 = arith.mulf %193, %192 : vector<2x256xf32>
    %195 = math.tanh %187 : vector<2x256xf32>
    %196 = vector.extract_strided_slice %194 {offsets = [0, 0], sizes = [2, 64], strides = [1, 1]} : vector<2x256xf32> to vector<2x64xf32>
    %197 = vector.extract_strided_slice %194 {offsets = [0, 64], sizes = [2, 64], strides = [1, 1]} : vector<2x256xf32> to vector<2x64xf32>
    %198 = vector.extract_strided_slice %195 {offsets = [0, 128], sizes = [2, 64], strides = [1, 1]} : vector<2x256xf32> to vector<2x64xf32>
    %199 = vector.extract_strided_slice %194 {offsets = [0, 192], sizes = [2, 64], strides = [1, 1]} : vector<2x256xf32> to vector<2x64xf32>
    %200 = arith.mulf %197, %158 : vector<2x64xf32>
    %201 = arith.mulf %196, %198 : vector<2x64xf32>
    %202 = arith.addf %200, %201 : vector<2x64xf32>
    %203 = math.tanh %202 : vector<2x64xf32>
    %204 = arith.mulf %199, %203 : vector<2x64xf32>
    %205 = tpu.concatenate %184, %204 in 1 : vector<2x64xf32>, vector<2x64xf32> -> vector<2x128xf32>
    %c0_57 = arith.constant 0 : index
    %c0_58 = arith.constant 0 : index
    %206 = vector.load %arg2[%c0_57, %c0_58] : memref<128x512xf32, #tpu.memory_space<vmem>>, vector<128x512xf32>
    %cst_59 = arith.constant dense<0.000000e+00> : vector<2x512xf32>
    %207 = tpu.matmul %205, %206, %cst_59 {dimension_numbers = #tpu.dot_dimension_numbers<[1], [0], [0], [1], [0, 0, 1, 1], [], []>, precision = #tpu.contract_precision<fp32>} : vector<2x128xf32>, vector<128x512xf32>, vector<2x512xf32> -> vector<2x512xf32>
    %208 = vector.extract_strided_slice %207 {offsets = [0, 0], sizes = [2, 256], strides = [1, 1]} : vector<2x512xf32> to vector<2x256xf32>
    %c5 = arith.constant 5 : index
    %c0_60 = arith.constant 0 : index
    %c0_61 = arith.constant 0 : index
    %209 = vector.load %arg1[%c5, %c0_60, %c0_61] : memref<8x2x256xf32, #tpu.memory_space<vmem>>, vector<1x2x256xf32>
    %210 = vector.shape_cast %209 : vector<1x2x256xf32> to vector<2x256xf32>
    %211 = arith.addf %208, %210 : vector<2x256xf32>
    %cst_62 = arith.constant 5.000000e-01 : f32
    %212 = vector.broadcast %cst_62 : f32 to vector<2x256xf32>
    %213 = arith.mulf %212, %211 : vector<2x256xf32>
    %214 = math.tanh %213 : vector<2x256xf32>
    %cst_63 = arith.constant 1.000000e+00 : f32
    %215 = vector.broadcast %cst_63 : f32 to vector<2x256xf32>
    %216 = arith.addf %214, %215 : vector<2x256xf32>
    %cst_64 = arith.constant 5.000000e-01 : f32
    %217 = vector.broadcast %cst_64 : f32 to vector<2x256xf32>
    %218 = arith.mulf %217, %216 : vector<2x256xf32>
    %219 = math.tanh %211 : vector<2x256xf32>
    %220 = vector.extract_strided_slice %218 {offsets = [0, 0], sizes = [2, 64], strides = [1, 1]} : vector<2x256xf32> to vector<2x64xf32>
    %221 = vector.extract_strided_slice %218 {offsets = [0, 64], sizes = [2, 64], strides = [1, 1]} : vector<2x256xf32> to vector<2x64xf32>
    %222 = vector.extract_strided_slice %219 {offsets = [0, 128], sizes = [2, 64], strides = [1, 1]} : vector<2x256xf32> to vector<2x64xf32>
    %223 = vector.extract_strided_slice %218 {offsets = [0, 192], sizes = [2, 64], strides = [1, 1]} : vector<2x256xf32> to vector<2x64xf32>
    %224 = arith.mulf %221, %182 : vector<2x64xf32>
    %225 = arith.mulf %220, %222 : vector<2x64xf32>
    %226 = arith.addf %224, %225 : vector<2x64xf32>
    %227 = math.tanh %226 : vector<2x64xf32>
    %228 = arith.mulf %223, %227 : vector<2x64xf32>
    %229 = vector.extract_strided_slice %207 {offsets = [0, 256], sizes = [2, 256], strides = [1, 1]} : vector<2x512xf32> to vector<2x256xf32>
    %230 = vector.broadcast %0 : vector<1x256xf32> to vector<2x256xf32>
    %231 = arith.addf %229, %230 : vector<2x256xf32>
    %cst_65 = arith.constant 5.000000e-01 : f32
    %232 = vector.broadcast %cst_65 : f32 to vector<2x256xf32>
    %233 = arith.mulf %232, %231 : vector<2x256xf32>
    %234 = math.tanh %233 : vector<2x256xf32>
    %cst_66 = arith.constant 1.000000e+00 : f32
    %235 = vector.broadcast %cst_66 : f32 to vector<2x256xf32>
    %236 = arith.addf %234, %235 : vector<2x256xf32>
    %cst_67 = arith.constant 5.000000e-01 : f32
    %237 = vector.broadcast %cst_67 : f32 to vector<2x256xf32>
    %238 = arith.mulf %237, %236 : vector<2x256xf32>
    %239 = math.tanh %231 : vector<2x256xf32>
    %240 = vector.extract_strided_slice %238 {offsets = [0, 0], sizes = [2, 64], strides = [1, 1]} : vector<2x256xf32> to vector<2x64xf32>
    %241 = vector.extract_strided_slice %238 {offsets = [0, 64], sizes = [2, 64], strides = [1, 1]} : vector<2x256xf32> to vector<2x64xf32>
    %242 = vector.extract_strided_slice %239 {offsets = [0, 128], sizes = [2, 64], strides = [1, 1]} : vector<2x256xf32> to vector<2x64xf32>
    %243 = vector.extract_strided_slice %238 {offsets = [0, 192], sizes = [2, 64], strides = [1, 1]} : vector<2x256xf32> to vector<2x64xf32>
    %244 = arith.mulf %241, %202 : vector<2x64xf32>
    %245 = arith.mulf %240, %242 : vector<2x64xf32>
    %246 = arith.addf %244, %245 : vector<2x64xf32>
    %247 = math.tanh %246 : vector<2x64xf32>
    %248 = arith.mulf %243, %247 : vector<2x64xf32>
    %249 = tpu.concatenate %228, %248 in 1 : vector<2x64xf32>, vector<2x64xf32> -> vector<2x128xf32>
    %c0_68 = arith.constant 0 : index
    %c0_69 = arith.constant 0 : index
    %250 = vector.load %arg2[%c0_68, %c0_69] : memref<128x512xf32, #tpu.memory_space<vmem>>, vector<128x512xf32>
    %cst_70 = arith.constant dense<0.000000e+00> : vector<2x512xf32>
    %251 = tpu.matmul %249, %250, %cst_70 {dimension_numbers = #tpu.dot_dimension_numbers<[1], [0], [0], [1], [0, 0, 1, 1], [], []>, precision = #tpu.contract_precision<fp32>} : vector<2x128xf32>, vector<128x512xf32>, vector<2x512xf32> -> vector<2x512xf32>
    %252 = vector.extract_strided_slice %251 {offsets = [0, 0], sizes = [2, 256], strides = [1, 1]} : vector<2x512xf32> to vector<2x256xf32>
    %c6 = arith.constant 6 : index
    %c0_71 = arith.constant 0 : index
    %c0_72 = arith.constant 0 : index
    %253 = vector.load %arg1[%c6, %c0_71, %c0_72] : memref<8x2x256xf32, #tpu.memory_space<vmem>>, vector<1x2x256xf32>
    %254 = vector.shape_cast %253 : vector<1x2x256xf32> to vector<2x256xf32>
    %255 = arith.addf %252, %254 : vector<2x256xf32>
    %cst_73 = arith.constant 5.000000e-01 : f32
    %256 = vector.broadcast %cst_73 : f32 to vector<2x256xf32>
    %257 = arith.mulf %256, %255 : vector<2x256xf32>
    %258 = math.tanh %257 : vector<2x256xf32>
    %cst_74 = arith.constant 1.000000e+00 : f32
    %259 = vector.broadcast %cst_74 : f32 to vector<2x256xf32>
    %260 = arith.addf %258, %259 : vector<2x256xf32>
    %cst_75 = arith.constant 5.000000e-01 : f32
    %261 = vector.broadcast %cst_75 : f32 to vector<2x256xf32>
    %262 = arith.mulf %261, %260 : vector<2x256xf32>
    %263 = math.tanh %255 : vector<2x256xf32>
    %264 = vector.extract_strided_slice %262 {offsets = [0, 0], sizes = [2, 64], strides = [1, 1]} : vector<2x256xf32> to vector<2x64xf32>
    %265 = vector.extract_strided_slice %262 {offsets = [0, 64], sizes = [2, 64], strides = [1, 1]} : vector<2x256xf32> to vector<2x64xf32>
    %266 = vector.extract_strided_slice %263 {offsets = [0, 128], sizes = [2, 64], strides = [1, 1]} : vector<2x256xf32> to vector<2x64xf32>
    %267 = vector.extract_strided_slice %262 {offsets = [0, 192], sizes = [2, 64], strides = [1, 1]} : vector<2x256xf32> to vector<2x64xf32>
    %268 = arith.mulf %265, %226 : vector<2x64xf32>
    %269 = arith.mulf %264, %266 : vector<2x64xf32>
    %270 = arith.addf %268, %269 : vector<2x64xf32>
    %271 = math.tanh %270 : vector<2x64xf32>
    %272 = arith.mulf %267, %271 : vector<2x64xf32>
    %273 = vector.extract_strided_slice %251 {offsets = [0, 256], sizes = [2, 256], strides = [1, 1]} : vector<2x512xf32> to vector<2x256xf32>
    %274 = vector.broadcast %0 : vector<1x256xf32> to vector<2x256xf32>
    %275 = arith.addf %273, %274 : vector<2x256xf32>
    %cst_76 = arith.constant 5.000000e-01 : f32
    %276 = vector.broadcast %cst_76 : f32 to vector<2x256xf32>
    %277 = arith.mulf %276, %275 : vector<2x256xf32>
    %278 = math.tanh %277 : vector<2x256xf32>
    %cst_77 = arith.constant 1.000000e+00 : f32
    %279 = vector.broadcast %cst_77 : f32 to vector<2x256xf32>
    %280 = arith.addf %278, %279 : vector<2x256xf32>
    %cst_78 = arith.constant 5.000000e-01 : f32
    %281 = vector.broadcast %cst_78 : f32 to vector<2x256xf32>
    %282 = arith.mulf %281, %280 : vector<2x256xf32>
    %283 = math.tanh %275 : vector<2x256xf32>
    %284 = vector.extract_strided_slice %282 {offsets = [0, 0], sizes = [2, 64], strides = [1, 1]} : vector<2x256xf32> to vector<2x64xf32>
    %285 = vector.extract_strided_slice %282 {offsets = [0, 64], sizes = [2, 64], strides = [1, 1]} : vector<2x256xf32> to vector<2x64xf32>
    %286 = vector.extract_strided_slice %283 {offsets = [0, 128], sizes = [2, 64], strides = [1, 1]} : vector<2x256xf32> to vector<2x64xf32>
    %287 = vector.extract_strided_slice %282 {offsets = [0, 192], sizes = [2, 64], strides = [1, 1]} : vector<2x256xf32> to vector<2x64xf32>
    %288 = arith.mulf %285, %246 : vector<2x64xf32>
    %289 = arith.mulf %284, %286 : vector<2x64xf32>
    %290 = arith.addf %288, %289 : vector<2x64xf32>
    %291 = math.tanh %290 : vector<2x64xf32>
    %292 = arith.mulf %287, %291 : vector<2x64xf32>
    %293 = tpu.concatenate %272, %292 in 1 : vector<2x64xf32>, vector<2x64xf32> -> vector<2x128xf32>
    %c0_79 = arith.constant 0 : index
    %c0_80 = arith.constant 0 : index
    %294 = vector.load %arg2[%c0_79, %c0_80] : memref<128x512xf32, #tpu.memory_space<vmem>>, vector<128x512xf32>
    %cst_81 = arith.constant dense<0.000000e+00> : vector<2x512xf32>
    %295 = tpu.matmul %293, %294, %cst_81 {dimension_numbers = #tpu.dot_dimension_numbers<[1], [0], [0], [1], [0, 0, 1, 1], [], []>, precision = #tpu.contract_precision<fp32>} : vector<2x128xf32>, vector<128x512xf32>, vector<2x512xf32> -> vector<2x512xf32>
    %296 = vector.extract_strided_slice %295 {offsets = [0, 0], sizes = [2, 256], strides = [1, 1]} : vector<2x512xf32> to vector<2x256xf32>
    %c7 = arith.constant 7 : index
    %c0_82 = arith.constant 0 : index
    %c0_83 = arith.constant 0 : index
    %297 = vector.load %arg1[%c7, %c0_82, %c0_83] : memref<8x2x256xf32, #tpu.memory_space<vmem>>, vector<1x2x256xf32>
    %298 = vector.shape_cast %297 : vector<1x2x256xf32> to vector<2x256xf32>
    %299 = arith.addf %296, %298 : vector<2x256xf32>
    %cst_84 = arith.constant 5.000000e-01 : f32
    %300 = vector.broadcast %cst_84 : f32 to vector<2x256xf32>
    %301 = arith.mulf %300, %299 : vector<2x256xf32>
    %302 = math.tanh %301 : vector<2x256xf32>
    %cst_85 = arith.constant 1.000000e+00 : f32
    %303 = vector.broadcast %cst_85 : f32 to vector<2x256xf32>
    %304 = arith.addf %302, %303 : vector<2x256xf32>
    %cst_86 = arith.constant 5.000000e-01 : f32
    %305 = vector.broadcast %cst_86 : f32 to vector<2x256xf32>
    %306 = arith.mulf %305, %304 : vector<2x256xf32>
    %307 = math.tanh %299 : vector<2x256xf32>
    %308 = vector.extract_strided_slice %306 {offsets = [0, 0], sizes = [2, 64], strides = [1, 1]} : vector<2x256xf32> to vector<2x64xf32>
    %309 = vector.extract_strided_slice %306 {offsets = [0, 64], sizes = [2, 64], strides = [1, 1]} : vector<2x256xf32> to vector<2x64xf32>
    %310 = vector.extract_strided_slice %307 {offsets = [0, 128], sizes = [2, 64], strides = [1, 1]} : vector<2x256xf32> to vector<2x64xf32>
    %311 = vector.extract_strided_slice %306 {offsets = [0, 192], sizes = [2, 64], strides = [1, 1]} : vector<2x256xf32> to vector<2x64xf32>
    %312 = arith.mulf %309, %270 : vector<2x64xf32>
    %313 = arith.mulf %308, %310 : vector<2x64xf32>
    %314 = arith.addf %312, %313 : vector<2x64xf32>
    %315 = math.tanh %314 : vector<2x64xf32>
    %316 = arith.mulf %311, %315 : vector<2x64xf32>
    %317 = vector.extract_strided_slice %295 {offsets = [0, 256], sizes = [2, 256], strides = [1, 1]} : vector<2x512xf32> to vector<2x256xf32>
    %318 = vector.broadcast %0 : vector<1x256xf32> to vector<2x256xf32>
    %319 = arith.addf %317, %318 : vector<2x256xf32>
    %cst_87 = arith.constant 5.000000e-01 : f32
    %320 = vector.broadcast %cst_87 : f32 to vector<2x256xf32>
    %321 = arith.mulf %320, %319 : vector<2x256xf32>
    %322 = math.tanh %321 : vector<2x256xf32>
    %cst_88 = arith.constant 1.000000e+00 : f32
    %323 = vector.broadcast %cst_88 : f32 to vector<2x256xf32>
    %324 = arith.addf %322, %323 : vector<2x256xf32>
    %cst_89 = arith.constant 5.000000e-01 : f32
    %325 = vector.broadcast %cst_89 : f32 to vector<2x256xf32>
    %326 = arith.mulf %325, %324 : vector<2x256xf32>
    %327 = math.tanh %319 : vector<2x256xf32>
    %328 = vector.extract_strided_slice %326 {offsets = [0, 0], sizes = [2, 64], strides = [1, 1]} : vector<2x256xf32> to vector<2x64xf32>
    %329 = vector.extract_strided_slice %326 {offsets = [0, 64], sizes = [2, 64], strides = [1, 1]} : vector<2x256xf32> to vector<2x64xf32>
    %330 = vector.extract_strided_slice %327 {offsets = [0, 128], sizes = [2, 64], strides = [1, 1]} : vector<2x256xf32> to vector<2x64xf32>
    %331 = vector.extract_strided_slice %326 {offsets = [0, 192], sizes = [2, 64], strides = [1, 1]} : vector<2x256xf32> to vector<2x64xf32>
    %332 = arith.mulf %329, %290 : vector<2x64xf32>
    %333 = arith.mulf %328, %330 : vector<2x64xf32>
    %334 = arith.addf %332, %333 : vector<2x64xf32>
    %335 = math.tanh %334 : vector<2x64xf32>
    %336 = arith.mulf %331, %335 : vector<2x64xf32>
    %337 = tpu.concatenate %316, %336 in 1 : vector<2x64xf32>, vector<2x64xf32> -> vector<2x128xf32>
    %c0_90 = arith.constant 0 : index
    %c0_91 = arith.constant 0 : index
    %338 = vector.load %arg2[%c0_90, %c0_91] : memref<128x512xf32, #tpu.memory_space<vmem>>, vector<128x512xf32>
    %cst_92 = arith.constant dense<0.000000e+00> : vector<2x512xf32>
    %339 = tpu.matmul %337, %338, %cst_92 {dimension_numbers = #tpu.dot_dimension_numbers<[1], [0], [0], [1], [0, 0, 1, 1], [], []>, precision = #tpu.contract_precision<fp32>} : vector<2x128xf32>, vector<128x512xf32>, vector<2x512xf32> -> vector<2x512xf32>
    %340 = vector.extract_strided_slice %339 {offsets = [0, 256], sizes = [2, 256], strides = [1, 1]} : vector<2x512xf32> to vector<2x256xf32>
    %341 = vector.broadcast %0 : vector<1x256xf32> to vector<2x256xf32>
    %342 = arith.addf %340, %341 : vector<2x256xf32>
    %cst_93 = arith.constant 5.000000e-01 : f32
    %343 = vector.broadcast %cst_93 : f32 to vector<2x256xf32>
    %344 = arith.mulf %343, %342 : vector<2x256xf32>
    %345 = math.tanh %344 : vector<2x256xf32>
    %cst_94 = arith.constant 1.000000e+00 : f32
    %346 = vector.broadcast %cst_94 : f32 to vector<2x256xf32>
    %347 = arith.addf %345, %346 : vector<2x256xf32>
    %cst_95 = arith.constant 5.000000e-01 : f32
    %348 = vector.broadcast %cst_95 : f32 to vector<2x256xf32>
    %349 = arith.mulf %348, %347 : vector<2x256xf32>
    %350 = math.tanh %342 : vector<2x256xf32>
    %351 = vector.extract_strided_slice %349 {offsets = [0, 0], sizes = [2, 64], strides = [1, 1]} : vector<2x256xf32> to vector<2x64xf32>
    %352 = vector.extract_strided_slice %349 {offsets = [0, 64], sizes = [2, 64], strides = [1, 1]} : vector<2x256xf32> to vector<2x64xf32>
    %353 = vector.extract_strided_slice %350 {offsets = [0, 128], sizes = [2, 64], strides = [1, 1]} : vector<2x256xf32> to vector<2x64xf32>
    %354 = vector.extract_strided_slice %349 {offsets = [0, 192], sizes = [2, 64], strides = [1, 1]} : vector<2x256xf32> to vector<2x64xf32>
    %355 = arith.mulf %352, %334 : vector<2x64xf32>
    %356 = arith.mulf %351, %353 : vector<2x64xf32>
    %357 = arith.addf %355, %356 : vector<2x64xf32>
    %358 = math.tanh %357 : vector<2x64xf32>
    %359 = arith.mulf %354, %358 : vector<2x64xf32>
    %c0_96 = arith.constant 0 : index
    %c0_97 = arith.constant 0 : index
    %360 = vector.load %arg4[%c0_96, %c0_97] : memref<64x1xf32, #tpu.memory_space<vmem>>, vector<64x1xf32>
    %cst_98 = arith.constant dense<0.000000e+00> : vector<2x1xf32>
    %361 = tpu.matmul %359, %360, %cst_98 {dimension_numbers = #tpu.dot_dimension_numbers<[1], [0], [0], [1], [0, 0, 1, 1], [], []>, precision = #tpu.contract_precision<fp32>} : vector<2x64xf32>, vector<64x1xf32>, vector<2x1xf32> -> vector<2x1xf32>
    %c0_99 = arith.constant 0 : index
    %c0_100 = arith.constant 0 : index
    %362 = vector.load %arg5[%c0_99, %c0_100] : memref<1x1xf32, #tpu.memory_space<vmem>>, vector<1x1xf32>
    %363 = vector.broadcast %362 : vector<1x1xf32> to vector<2x1xf32>
    %364 = arith.addf %361, %363 : vector<2x1xf32>
    %c0_101 = arith.constant 0 : index
    %c0_102 = arith.constant 0 : index
    %365 = vector.load %arg6[%c0_101, %c0_102] : memref<2x1xf32, #tpu.memory_space<vmem>>, vector<2x1xf32>
    tpu.vector_store %arg6[%c0_101, %c0_102], %364 {strides = array<i32>} : memref<2x1xf32, #tpu.memory_space<vmem>>, vector<2x1xf32>,
    return
  }
  func.func @transform_0(%arg0: i32) -> (i32, i32, i32) {
    %c0_i32 = arith.constant 0 : i32
    %c0_i32_0 = arith.constant 0 : i32
    %c0_i32_1 = arith.constant 0 : i32
    %c0_i32_2 = arith.constant 0 : i32
    return %c0_i32, %c0_i32_0, %c0_i32_1 : i32, i32, i32
  }
  func.func @transform_1(%arg0: i32) -> (i32, i32) {
    %c0_i32 = arith.constant 0 : i32
    %c0_i32_0 = arith.constant 0 : i32
    %c0_i32_1 = arith.constant 0 : i32
    return %c0_i32, %c0_i32_0 : i32, i32
  }
  func.func @transform_2(%arg0: i32) -> (i32, i32) {
    %c0_i32 = arith.constant 0 : i32
    %c0_i32_0 = arith.constant 0 : i32
    %c0_i32_1 = arith.constant 0 : i32
    return %c0_i32, %c0_i32_0 : i32, i32
  }
  func.func @transform_3(%arg0: i32) -> (i32, i32) {
    %c0_i32 = arith.constant 0 : i32
    %c0_i32_0 = arith.constant 0 : i32
    %c0_i32_1 = arith.constant 0 : i32
    return %c0_i32, %c0_i32_0 : i32, i32
  }
  func.func @transform_4(%arg0: i32) -> (i32, i32) {
    %c0_i32 = arith.constant 0 : i32
    %c0_i32_0 = arith.constant 0 : i32
    %c0_i32_1 = arith.constant 0 : i32
    return %c0_i32, %c0_i32_0 : i32, i32
  }
  func.func @transform_5(%arg0: i32) -> (i32, i32) {
    %c0_i32 = arith.constant 0 : i32
    %c0_i32_0 = arith.constant 0 : i32
    %c0_i32_1 = arith.constant 0 : i32
    return %c0_i32, %c0_i32_0 : i32, i32
  }
}

</mosaic_0001>

<bundles_post_ra>
// kernel: lstm_model_forward.1
= control target key start
LH: loop header
LB: loop body
LE: loop exit
PB: predicated region body
PF: predicated region fallthrough
CT: control target
= control target key end

     0   :  { %s21638_s0 = inlined_call_operand.vmem [shape: f32[8,2,256], index: 0, kind: input, shape index: {}]   ;;  %s21639_s1 = inlined_call_operand.hbm [shape: f32[128,512], index: 1, kind: input, shape index: {}]   ;;  %s21640_s2 = inlined_call_operand.vmem [shape: f32[1,256], index: 2, kind: input, shape index: {}]   ;;  %s21641_s3 = inlined_call_operand.vmem [shape: f32[64,1], index: 3, kind: input, shape index: {}]   ;;  %s21642_s4 = inlined_call_operand.<no memory space> [shape: f32[1,1], index: 4, kind: input, shape index: {}]   ;;  %s21643_s5 = inlined_call_operand.vmem [shape: f32[2,1], index: 5, kind: output, shape index: {}]  }
   0x1   :  { %v10_v0 = vstv %s21642_s4 }
   0x2   :  { %11 = vst [vmem:[#allocation2] sm:$0x1] %v10_v0 }
   0x3   :  { %12 = vsyncpa [#allocation4], 0  ;;  %s18464_s20 = smov [#allocation3]   ;;  %s18440_s24 = scalar_lea.hbm %s21639_s1, 8192 }
   0x4   :  { %s20_s21 = sshll.u32 %s18464_s20, 4  ;;  %p18441_p0 = scmp.ne.s32.totalorder %s21639_s1, %s18440_s24  ;;  %s21_s21 = int_to_ptr.vmem [resolvable:$true] %s20_s21 }
   0x5   :  { %p18444_p1 = scmp.lt.u32.totalorder %s18440_s24, %s21639_s1 }
   0x7   :  { %p18446_p2 = pnand %p18444_p1, %p18441_p0 }
   0x9   :  { %18449 = shalt.err (!%p18446_p2)
}
   0xa   :  { %s18450_s4 = scalar_lea.vmem %s21_s21, 8192  ;;  %p18455_p4 = scmp.lt.s32.totalorder %s21_s21, %s21_s21 }
   0xb   :  { %p18451_p3 = scmp.ne.s32.totalorder %s21_s21, %s18450_s4  ;;  %p18456_p5 = scmp.lt.s32.totalorder %s18450_s4, %s18450_s4 }
   0xd   :  { %p18457_p6 = por %p18456_p5, %p18455_p4 }
   0xf   :  { %p18458_p7 = pnand %p18457_p6, %p18451_p3 }
  0x11   :  { %18461 = shalt.err (!%p18458_p7)
}
  0x12   :  { %s18465_s29 = smov 512   ;;  %s18466_s30 = smov 32  }
  0x13   :  { %26 = dma.hbm_to_vmem [thread:$0]  %s21639_s1, 8192, %s21_s21, [#allocation4], %s18465_s29, %s18465_s29, %s18466_s30  }
  0x14   :  { %18462 = dma.done.wait [#allocation4], 8192  }
  0x15   :  { %18463 = vsyncadd [#allocation4], 4294959104  ;;  %v21665_v1 = vmov 0.0   ;;  %v38_v2 = vld [vmem:[#allocation3 + $0x8] sm:$0xff]  ;;  %v37_v4 = vld [vmem:[#allocation3] sm:$0xff]  ;;  %s18468_s9 = smov 64  }
  0x16   :  { %428 = vmatprep.mubr.f32.mxu0 %v21665_v1  ;;  %197 = vmatprep.mubr.f32.mxu1 %v21665_v1  ;;  %v42_v3 = vld [vmem:[#allocation3 + $0x28] sm:$0xff]  ;;  %v101_v5 = vand.u32 4294901760, %v38_v2  ;;  %v41_v7 = vld [vmem:[#allocation3 + $0x20] sm:$0xff]  ;;  %v103_v8 = vand.u32 4294901760, %v37_v4  ;;  %vm979_vm0 = vcmask 523264   ;;  %vm18470_vm1 = vmmov 0  }
  0x17   :  { %v105_v6 = vand.u32 4294901760, %v42_v3  ;;  %v46_v9 = vld [vmem:[#allocation3 + $0x48] sm:$0xff]  ;;  %v107_v11 = vand.u32 4294901760, %v41_v7  ;;  %v45_v18 = vld [vmem:[#allocation3 + $0x40] sm:$0xff]  ;;  %vm14800_vm2 = vcmask 1024  }
  0x18   :  { %v50_v10 = vld [vmem:[#allocation3 + $0x68] sm:$0xff]  ;;  %v109_v12 = vand.u32 4294901760, %v46_v9  ;;  %v18520_v15 = vsub.f32 %v38_v2, %v101_v5  ;;  %v18524_v17 = vsub.f32 %v37_v4, %v103_v8  ;;  %v49_v19 = vld [vmem:[#allocation3 + $0x60] sm:$0xff]  ;;  %v111_v30 = vand.u32 4294901760, %v45_v18 }
  0x19   :  { %v113_v13 = vand.u32 4294901760, %v50_v10  ;;  %v18518_v14 = vpack.c.bf16 %v105_v6, %v101_v5  ;;  %v18522_v16 = vsub.f32 %v42_v3, %v105_v6  ;;  %v18526_v20 = vpack.c.bf16 %v107_v11, %v103_v8  ;;  %v54_v40 = vld [vmem:[#allocation3 + $0x88] sm:$0xff]  ;;  %v53_v46 = vld [vmem:[#allocation3 + $0x80] sm:$0xff] }
  0x1a   :  { %v18528_v21 = vsub.f32 %v41_v7, %v107_v11  ;;  %v18532_v23 = vsub.f32 %v46_v9, %v109_v12  ;;  %v21664_v24 = vand.u32 4294901760, %v18520_v15  ;;  %v21660_v26 = vand.u32 4294901760, %v18524_v17  ;;  %v58_v41 = vld [vmem:[#allocation3 + $0xa8] sm:$0xff]  ;;  %v57_v55 = vld [vmem:[#allocation3 + $0xa0] sm:$0xff] }
  0x1b   :  { %22025 = vst [vmem:[#allocation6_spill] sm:$0xff] %v18518_v14  ;;  %22026 = vst [vmem:[#allocation7_spill] sm:$0xff] %v18526_v20  ;;  %v18530_v22 = vpack.c.bf16 %v113_v13, %v109_v12  ;;  %v21663_v25 = vand.u32 4294901760, %v18522_v16  ;;  %v18537_v27 = vsub.f32 %v50_v10, %v113_v13  ;;  %14992 = vmatprep.subr.bf16.mxu1 %v18518_v14  ;;  %v115_v31 = vand.u32 4294901760, %v49_v19  ;;  %v62_v60 = vld [vmem:[#allocation3 + $0xc8] sm:$0xff] }
  0x1c   :  { %v21659_v28 = vand.u32 4294901760, %v18528_v21  ;;  %v21658_v29 = vand.u32 4294901760, %v18532_v23  ;;  %14994 = vmatpush1.bf16.msra.mxu1 %v18526_v20  ;;  %v207_v32 = vsub.f32 %v18520_v15, %v21664_v24  ;;  %v213_v34 = vsub.f32 %v18524_v17, %v21660_v26  ;;  %v66_v61 = vld [vmem:[#allocation3 + $0xe8] sm:$0xff]  ;;  %v89_v24 = vld [vmem:[#allocation3 + $0x1a0] sm:$0xff] }
  0x1d   :  { %22027 = vst [vmem:[#allocation8_spill] sm:$0xff] %v18530_v22  ;;  %v219_v33 = vsub.f32 %v18522_v16, %v21663_v25  ;;  %v21657_v35 = vand.u32 4294901760, %v18537_v27  ;;  %14996 = vmatprep.subr.bf16.mxu1 %v18530_v22  ;;  %v18560_v38 = vpack.c.bf16 %v115_v31, %v111_v30  ;;  %v18562_v39 = vsub.f32 %v45_v18, %v111_v30 }
  0x1e   :  { %v225_v36 = vsub.f32 %v18528_v21, %v21659_v28  ;;  %v231_v37 = vsub.f32 %v18532_v23, %v21658_v29  ;;  %v208_v42 = vand.u32 4294901760, %v207_v32  ;;  %v214_v44 = vand.u32 4294901760, %v213_v34  ;;  %v65_v34 = vld [vmem:[#allocation3 + $0xe0] sm:$0xff]  ;;  %v90_v29 = vld [vmem:[#allocation3 + $0x1a8] sm:$0xff] }
  0x1f   :  { %22028 = vst [vmem:[#allocation9_spill] sm:$0xff] %v18560_v38  ;;  %v220_v43 = vand.u32 4294901760, %v219_v33  ;;  %v243_v45 = vsub.f32 %v18537_v27, %v21657_v35  ;;  %v21654_v49 = vand.u32 4294901760, %v18562_v39  ;;  %v18568_v50 = vsub.f32 %v49_v19, %v115_v31  ;;  %v61_v19 = vld [vmem:[#allocation3 + $0xc0] sm:$0xff] }
  0x20   :  { %v226_v47 = vand.u32 4294901760, %v225_v36  ;;  %v232_v48 = vand.u32 4294901760, %v231_v37  ;;  %14998 = vmatpush1.bf16.msra.mxu1 %v18560_v38  ;;  %v117_v53 = vand.u32 4294901760, %v54_v40  ;;  %v121_v54 = vand.u32 4294901760, %v58_v41 }
  0x21   :  { %v18571_v51 = vpack.c.bf16 %v220_v43, %v208_v42  ;;  %v244_v52 = vand.u32 4294901760, %v243_v45  ;;  %v237_v57 = vsub.f32 %v18562_v39, %v21654_v49  ;;  %v21653_v58 = vand.u32 4294901760, %v18568_v50  ;;  %v70_v42 = vld [vmem:[#allocation3 + $0x108] sm:$0xff] }
  0x22   :  { %v18573_v56 = vpack.c.bf16 %v226_v47, %v214_v44  ;;  %v119_v59 = vand.u32 4294901760, %v53_v46  ;;  %v18582_v63 = vpack.c.bf16 %v121_v54, %v117_v53  ;;  %v18584_v0 = vsub.f32 %v54_v40, %v117_v53 }
  0x23   :  { %22029 = vst [vmem:[#allocation10_spill] sm:$0xff] %v18571_v51  ;;  %15024 = vmatprep.subr.bf16.mxu0 %v18571_v51  ;;  %v18580_v62 = vpack.c.bf16 %v244_v52, %v232_v48  ;;  %v18586_v2 = vsub.f32 %v58_v41, %v121_v54  ;;  %v238_v3 = vand.u32 4294901760, %v237_v57  ;;  %v249_v4 = vsub.f32 %v18568_v50, %v21653_v58  ;;  %v74_v54 = vld [vmem:[#allocation3 + $0x128] sm:$0xff] }
  0x24   :  { %22030 = vst [vmem:[#allocation11_spill] sm:$0xff] %v18573_v56  ;;  %22032 = vst [vmem:[#allocation13_spill] sm:$0xff] %v18582_v63  ;;  %15026 = vmatpush1.bf16.msra.mxu0 %v18573_v56  ;;  %v123_v5 = vand.u32 4294901760, %v57_v55  ;;  %v18592_v6 = vsub.f32 %v53_v46, %v119_v59  ;;  %v21652_v7 = vand.u32 4294901760, %v18584_v0  ;;  %v125_v9 = vand.u32 4294901760, %v62_v60  ;;  %15000 = vmatprep.subr.bf16.mxu1 %v18582_v63 }
  0x25   :  { %22031 = vst [vmem:[#allocation12_spill] sm:$0xff] %v18580_v62  ;;  %15028 = vmatprep.subr.bf16.mxu0 %v18580_v62  ;;  %v21651_v8 = vand.u32 4294901760, %v18586_v2  ;;  %v129_v10 = vand.u32 4294901760, %v66_v61  ;;  %v250_v11 = vand.u32 4294901760, %v249_v4  ;;  %v127_v46 = vand.u32 4294901760, %v61_v19 }
  0x26   :  { %v18598_v12 = vpack.c.bf16 %v123_v5, %v119_v59  ;;  %v21650_v13 = vand.u32 4294901760, %v18592_v6  ;;  %v18601_v18 = vsub.f32 %v57_v55, %v123_v5  ;;  %v255_v30 = vsub.f32 %v18584_v0, %v21652_v7  ;;  %v81_v7 = vld [vmem:[#allocation3 + $0x160] sm:$0xff] }
  0x27   :  { %v267_v31 = vsub.f32 %v18586_v2, %v21651_v8  ;;  %v18609_v32 = vpack.c.bf16 %v129_v10, %v125_v9  ;;  %v18611_v33 = vsub.f32 %v62_v60, %v125_v9  ;;  %v18613_v36 = vpack.c.bf16 %v250_v11, %v238_v3 }
  0x28   :  { %22033 = vst [vmem:[#allocation14_spill] sm:$0xff] %v18598_v12  ;;  %v261_v37 = vsub.f32 %v18592_v6, %v21650_v13  ;;  %v21646_v40 = vand.u32 4294901760, %v18601_v18  ;;  %v18619_v41 = vsub.f32 %v66_v61, %v129_v10  ;;  %15002 = vmatpush1.bf16.msra.mxu1 %v18598_v12  ;;  %v256_v43 = vand.u32 4294901760, %v255_v30  ;;  %v69_v61 = vld [vmem:[#allocation3 + $0x100] sm:$0xff] }
  0x29   :  { %22034 = vst [vmem:[#allocation15_spill] sm:$0xff] %v18609_v32  ;;  %22035 = vst [vmem:[#allocation16_spill] sm:$0xff] %v18613_v36  ;;  %v268_v44 = vand.u32 4294901760, %v267_v31  ;;  %v21645_v45 = vand.u32 4294901760, %v18611_v33  ;;  %15004 = vmatprep.subr.bf16.mxu1 %v18609_v32  ;;  %15030 = vmatpush1.bf16.msra.mxu0 %v18613_v36  ;;  %v131_v53 = vand.u32 4294901760, %v65_v34  ;;  %v18634_v59 = vsub.f32 %v61_v19, %v127_v46  ;;  %v73_v19 = vld [vmem:[#allocation3 + $0x120] sm:$0xff] }
  0x2a   :  { %v262_v47 = vand.u32 4294901760, %v261_v37  ;;  %v273_v48 = vsub.f32 %v18601_v18, %v21646_v40  ;;  %v21644_v52 = vand.u32 4294901760, %v18619_v41  ;;  %v133_v60 = vand.u32 4294901760, %v70_v42  ;;  %v97_v36 = vld [vmem:[#allocation3 + $0x1e0] sm:$0xff] }
  0x2b   :  { %v18629_v55 = vpack.c.bf16 %v268_v44, %v256_v43  ;;  %v279_v57 = vsub.f32 %v18611_v33, %v21645_v45  ;;  %v18639_v5 = vpack.c.bf16 %v131_v53, %v127_v46  ;;  %v18641_v9 = vsub.f32 %v65_v34, %v131_v53  ;;  %v82_v45 = vld [vmem:[#allocation3 + $0x168] sm:$0xff] }
  0x2c   :  { %v274_v3 = vand.u32 4294901760, %v273_v48  ;;  %v291_v4 = vsub.f32 %v18619_v41, %v21644_v52  ;;  %v21647_v11 = vand.u32 4294901760, %v18634_v59  ;;  %v137_v30 = vand.u32 4294901760, %v74_v54  ;;  %v78_v52 = vld [vmem:[#allocation3 + $0x148] sm:$0xff] }
  0x2d   :  { %22036 = vst [vmem:[#allocation17_spill] sm:$0xff] %v18629_v55  ;;  %22037 = vst [vmem:[#allocation18_spill] sm:$0xff] %v18639_v5  ;;  %15032 = vmatprep.subr.bf16.mxu0 %v18629_v55  ;;  %v280_v10 = vand.u32 4294901760, %v279_v57  ;;  %v18645_v31 = vsub.f32 %v70_v42, %v133_v60  ;;  %v21648_v44 = vand.u32 4294901760, %v18641_v9  ;;  %v135_v48 = vand.u32 4294901760, %v69_v61  ;;  %15006 = vmatpush1.bf16.msra.mxu1 %v18639_v5 }
  0x2e   :  { %v18647_v37 = vpack.c.bf16 %v274_v3, %v262_v47  ;;  %v292_v43 = vand.u32 4294901760, %v291_v4  ;;  %v285_v34 = vsub.f32 %v18634_v59, %v21647_v11  ;;  %v18654_v46 = vpack.c.bf16 %v137_v30, %v133_v60  ;;  %v77_v11 = vld [vmem:[#allocation3 + $0x140] sm:$0xff] }
  0x2f   :  { %v21649_v53 = vand.u32 4294901760, %v18645_v31  ;;  %v18657_v42 = vsub.f32 %v74_v54, %v137_v30  ;;  %v297_v57 = vsub.f32 %v18641_v9, %v21648_v44  ;;  %v139_v3 = vand.u32 4294901760, %v73_v19 }
  0x30   :  { %22038 = vst [vmem:[#allocation19_spill] sm:$0xff] %v18647_v37  ;;  %22039 = vst [vmem:[#allocation20_spill] sm:$0xff] %v18654_v46  ;;  %15034 = vmatpush1.bf16.msra.mxu0 %v18647_v37  ;;  %v18660_v47 = vpack.c.bf16 %v292_v43, %v280_v10  ;;  %v18665_v4 = vsub.f32 %v69_v61, %v135_v48  ;;  %v286_v40 = vand.u32 4294901760, %v285_v34  ;;  %v141_v30 = vand.u32 4294901760, %v78_v52 }
  0x31   :  { %v303_v60 = vsub.f32 %v18645_v31, %v21649_v53  ;;  %v21655_v54 = vand.u32 4294901760, %v18657_v42  ;;  %15008 = vmatprep.subr.bf16.mxu1 %v18654_v46  ;;  %v298_v10 = vand.u32 4294901760, %v297_v57  ;;  %v18673_v43 = vpack.c.bf16 %v139_v3, %v135_v48 }
  0x32   :  { %22040 = vst [vmem:[#allocation21_spill] sm:$0xff] %v18660_v47  ;;  %15036 = vmatprep.subr.bf16.mxu0 %v18660_v47  ;;  %v21656_v61 = vand.u32 4294901760, %v18665_v4  ;;  %v18676_v44 = vsub.f32 %v73_v19, %v139_v3  ;;  %v145_v13 = vand.u32 4294901760, %v82_v45  ;;  %v18681_v8 = vsub.f32 %v78_v52, %v141_v30  ;;  %v86_v19 = vld [vmem:[#allocation3 + $0x188] sm:$0xff] }
  0x33   :  { %22041 = vst [vmem:[#allocation22_spill] sm:$0xff] %v18673_v43  ;;  %v304_v34 = vand.u32 4294901760, %v303_v60  ;;  %v315_v53 = vsub.f32 %v18657_v42, %v21655_v54  ;;  %v18683_v58 = vpack.c.bf16 %v298_v10, %v286_v40  ;;  %v143_v49 = vand.u32 4294901760, %v77_v11  ;;  %15010 = vmatpush1.bf16.msra.mxu1 %v18673_v43  ;;  %v98_v47 = vld [vmem:[#allocation3 + $0x1e8] sm:$0xff] }
  0x34   :  { %v309_v48 = vsub.f32 %v18665_v4, %v21656_v61  ;;  %v21661_v57 = vand.u32 4294901760, %v18676_v44  ;;  %v18690_v60 = vpack.c.bf16 %v145_v13, %v141_v30  ;;  %v21662_v54 = vand.u32 4294901760, %v18681_v8  ;;  %v85_v30 = vld [vmem:[#allocation3 + $0x180] sm:$0xff] }
  0x35   :  { %22042 = vst [vmem:[#allocation23_spill] sm:$0xff] %v18683_v58  ;;  %v316_v3 = vand.u32 4294901760, %v315_v53  ;;  %v18693_v52 = vsub.f32 %v82_v45, %v145_v13  ;;  %15038 = vmatpush1.bf16.msra.mxu0 %v18683_v58  ;;  %v147_v61 = vand.u32 4294901760, %v81_v7  ;;  %v18699_v35 = vsub.f32 %v77_v11, %v143_v49 }
  0x36   :  { %22043 = vst [vmem:[#allocation24_spill] sm:$0xff] %v18690_v60  ;;  %v310_v40 = vand.u32 4294901760, %v309_v48  ;;  %v321_v10 = vsub.f32 %v18676_v44, %v21661_v57  ;;  %v327_v53 = vsub.f32 %v18681_v8, %v21662_v54  ;;  %v149_v45 = vand.u32 4294901760, %v86_v19  ;;  %15012 = vmatprep.subr.bf16.mxu1 %v18690_v60 }
  0x37   :  { %v18701_v28 = vpack.c.bf16 %v316_v3, %v304_v34  ;;  %v21669_v13 = vand.u32 4294901760, %v18693_v52  ;;  %v18708_v26 = vpack.c.bf16 %v147_v61, %v143_v49  ;;  %v21670_v57 = vand.u32 4294901760, %v18699_v35 }
  0x38   :  { %v322_v48 = vand.u32 4294901760, %v321_v10  ;;  %v18711_v11 = vsub.f32 %v81_v7, %v147_v61  ;;  %v328_v34 = vand.u32 4294901760, %v327_v53  ;;  %v153_v54 = vand.u32 4294901760, %v90_v29  ;;  %v94_v10 = vld [vmem:[#allocation3 + $0x1c8] sm:$0xff] }
  0x39   :  { %22044 = vst [vmem:[#allocation25_spill] sm:$0xff] %v18701_v28  ;;  %22045 = vst [vmem:[#allocation26_spill] sm:$0xff] %v18708_v26  ;;  %15040 = vmatprep.subr.bf16.mxu0 %v18701_v28  ;;  %v339_v3 = vsub.f32 %v18693_v52, %v21669_v13  ;;  %v18717_v25 = vsub.f32 %v86_v19, %v149_v45  ;;  %v333_v49 = vsub.f32 %v18699_v35, %v21670_v57 }
  0x3a   :  { %v18719_v1 = vpack.c.bf16 %v322_v48, %v310_v40  ;;  %v21679_v7 = vand.u32 4294901760, %v18711_v11  ;;  %v151_v61 = vand.u32 4294901760, %v85_v30  ;;  %15014 = vmatpush1.bf16.msra.mxu1 %v18708_v26  ;;  %v18726_v28 = vpack.c.bf16 %v153_v54, %v149_v45 }
  0x3b   :  { %v340_v53 = vand.u32 4294901760, %v339_v3  ;;  %v21680_v13 = vand.u32 4294901760, %v18717_v25  ;;  %v18729_v19 = vsub.f32 %v90_v29, %v153_v54  ;;  %v334_v40 = vand.u32 4294901760, %v333_v49  ;;  %v93_v3 = vld [vmem:[#allocation3 + $0x1c0] sm:$0xff] }
  0x3c   :  { %22046 = vst [vmem:[#allocation27_spill] sm:$0xff] %v18719_v1  ;;  %22047 = vst [vmem:[#allocation28_spill] sm:$0xff] %v18726_v28  ;;  %15042 = vmatpush1.bf16.msra.mxu0 %v18719_v1  ;;  %v345_v48 = vsub.f32 %v18711_v11, %v21679_v7  ;;  %v155_v57 = vand.u32 4294901760, %v89_v24  ;;  %v18735_v58 = vsub.f32 %v85_v30, %v151_v61  ;;  %v157_v54 = vand.u32 4294901760, %v94_v10 }
  0x3d   :  { %v18737_v37 = vpack.c.bf16 %v340_v53, %v328_v34  ;;  %v351_v45 = vsub.f32 %v18717_v25, %v21680_v13  ;;  %v21687_v29 = vand.u32 4294901760, %v18729_v19  ;;  %15016 = vmatprep.subr.bf16.mxu1 %v18726_v28  ;;  %v161_v13 = vand.u32 4294901760, %v98_v47 }
  0x3e   :  { %v346_v49 = vand.u32 4294901760, %v345_v48  ;;  %v18744_v1 = vpack.c.bf16 %v155_v57, %v151_v61  ;;  %v21692_v7 = vand.u32 4294901760, %v18735_v58  ;;  %v18747_v30 = vsub.f32 %v89_v24, %v155_v57 }
  0x3f   :  { %22048 = vst [vmem:[#allocation29_spill] sm:$0xff] %v18737_v37  ;;  %15044 = vmatprep.subr.bf16.mxu0 %v18737_v37  ;;  %v352_v34 = vand.u32 4294901760, %v351_v45  ;;  %v363_v53 = vsub.f32 %v18729_v19, %v21687_v29  ;;  %v18753_v55 = vsub.f32 %v94_v10, %v157_v54  ;;  %v159_v57 = vand.u32 4294901760, %v93_v3 }
  0x40   :  { %22049 = vst [vmem:[#allocation30_spill] sm:$0xff] %v18744_v1  ;;  %v18755_v62 = vpack.c.bf16 %v346_v49, %v334_v40  ;;  %v357_v61 = vsub.f32 %v18735_v58, %v21692_v7  ;;  %v368_v24 = vand.u32 4294901760, %v18747_v30  ;;  %15018 = vmatpush1.bf16.msra.mxu1 %v18744_v1  ;;  %v18762_v45 = vpack.c.bf16 %v161_v13, %v157_v54 }
  0x41   :  { %v364_v48 = vand.u32 4294901760, %v363_v53  ;;  %v374_v29 = vand.u32 4294901760, %v18753_v55  ;;  %v18765_v37 = vsub.f32 %v98_v47, %v161_v13  ;;  %v163_v49 = vand.u32 4294901760, %v97_v36 }
  0x42   :  { %22050 = vst [vmem:[#allocation31_spill] sm:$0xff] %v18755_v62  ;;  %22051 = vst [vmem:[#allocation32_spill] sm:$0xff] %v18762_v45  ;;  %15046 = vmatpush1.bf16.msra.mxu0 %v18755_v62  ;;  %v358_v10 = vand.u32 4294901760, %v357_v61  ;;  %v369_v40 = vsub.f32 %v18747_v30, %v368_v24  ;;  %v18769_v56 = vsub.f32 %v93_v3, %v159_v57  ;;  %15020 = vmatprep.subr.bf16.mxu1 %v18762_v45 }
  0x43   :  { %v18771_v7 = vpack.c.bf16 %v364_v48, %v352_v34  ;;  %v375_v51 = vsub.f32 %v18753_v55, %v374_v29  ;;  %v386_v53 = vand.u32 4294901760, %v18765_v37  ;;  %v18776_v1 = vpack.c.bf16 %v163_v49, %v159_v57 }
  0x44   :  { %v370_v54 = vand.u32 4294901760, %v369_v40  ;;  %v380_v47 = vand.u32 4294901760, %v18769_v56  ;;  %v18779_v13 = vsub.f32 %v97_v36, %v163_v49 }
  0x45   :  { %22052 = vst [vmem:[#allocation33_spill] sm:$0xff] %v18771_v7  ;;  %22053 = vst [vmem:[#allocation34_spill] sm:$0xff] %v18776_v1  ;;  %15048 = vmatprep.subr.bf16.mxu0 %v18771_v7  ;;  %v376_v61 = vand.u32 4294901760, %v375_v51  ;;  %v387_v3 = vsub.f32 %v18765_v37, %v386_v53  ;;  %15022 = vmatpush1.bf16.msra.mxu1 %v18776_v1  ;;  %v22057_v51 = vmov 0.0  }
  0x46   :  { %22054 = vst [vmem:[#allocation35_spill] sm:$0xff] %v18779_v13  ;;  %v18783_v34 = vpack.c.bf16 %v370_v54, %v358_v10  ;;  %v381_v48 = vsub.f32 %v18769_v56, %v380_v47  ;;  %v392_v62 = vand.u32 4294901760, %v18779_v13  ;;  %15184 = vmatprep.subr.bf16.mxu1 %v18518_v14  ;;  %v18796_v54 = vpack.c.bf16 %v18522_v16, %v18520_v15 }
  0x47   :  { %v388_v40 = vand.u32 4294901760, %v387_v3  ;;  %v18803_v3 = vpack.c.bf16 %v18528_v21, %v18524_v17 }
  0x48   :  { %22055 = vst [vmem:[#allocation36_spill] sm:$0xff] %v18783_v34  ;;  %15050 = vmatpush1.bf16.msra.mxu0 %v18783_v34  ;;  %v382_v36 = vand.u32 4294901760, %v381_v48  ;;  %v393_v57 = vsub.f32 %v18779_v13, %v392_v62  ;;  %198 = vmatmul.mubr.f32.vlgmr.msra.gmra.mrb[0].mxu1 %v22057_v51  ;;  %22058 = vst [vmem:[#allocation38_spill] sm:$0xff] %v18796_v54  ;;  %v22061_v48 = vand.u32 4294901760, %v18522_v16  ;;  %v22064_v34 = vand.u32 4294901760, %v18528_v21 }
  0x49   :  { %v18791_v49 = vpack.c.bf16 %v388_v40, %v376_v61  ;;  %15186 = vmatpush1.bf16.msra.mxu1 %v18526_v20  ;;  %1077 = vmatprep.mubr.f32.mxu1 %v22057_v51  ;;  %22059 = vst [vmem:[#allocation39_spill] sm:$0xff] %v18803_v3  ;;  %v22060_v61 = vand.u32 4294901760, %v18520_v15  ;;  %v22066_v20 = vand.u32 4294901760, %v18532_v23  ;;  %v22070_v15 = vand.u32 4294901760, %v18562_v39 }
  0x4a   :  { %v394_v10 = vand.u32 4294901760, %v393_v57  ;;  %v22063_v57 = vand.u32 4294901760, %v18524_v17  ;;  %v22071_v16 = vand.u32 4294901760, %v18568_v50  ;;  %v22073_v17 = vand.u32 4294901760, %v18584_v0  ;;  %15188 = vmatprep.subr.bf16.mxu1 %v18530_v22 }
  0x4b   :  { %22056 = vst [vmem:[#allocation37_spill] sm:$0xff] %v18791_v49  ;;  %15052 = vmatprep.subr.bf16.mxu0 %v18791_v49  ;;  %v18809_v40 = vpack.c.bf16 %v22061_v48, %v22060_v61  ;;  %v22067_v49 = vand.u32 4294901760, %v18537_v27  ;;  %v22074_v21 = vand.u32 4294901760, %v18586_v2  ;;  %v22076_v48 = vand.u32 4294901760, %v18592_v6 }
  0x4c   :  { %v18815_v7 = vpack.c.bf16 %v22064_v34, %v22063_v57  ;;  %v18823_v13 = vpack.c.bf16 %v394_v10, %v382_v36  ;;  %v18829_v61 = vpack.c.bf16 %v22071_v16, %v22070_v15  ;;  %v22077_v57 = vand.u32 4294901760, %v18601_v18 }
  0x4d   :  { %22062 = vst [vmem:[#allocation40_spill] sm:$0xff] %v18809_v40  ;;  %v18821_v14 = vpack.c.bf16 %v22067_v49, %v22066_v20  ;;  %v18835_v34 = vpack.c.bf16 %v22074_v21, %v22073_v17  ;;  %v22079_v36 = vand.u32 4294901760, %v18611_v33  ;;  %v22080_v49 = vand.u32 4294901760, %v18619_v41  ;;  %15190 = vmatpush1.bf16.msra.mxu1 %v18560_v38 }
  0x4e   :  { %22065 = vst [vmem:[#allocation41_spill] sm:$0xff] %v18815_v7  ;;  %22069 = vst [vmem:[#allocation43_spill] sm:$0xff] %v18823_v13  ;;  %v18841_v20 = vpack.c.bf16 %v22077_v57, %v22076_v48  ;;  %v22082_v15 = vand.u32 4294901760, %v18634_v59  ;;  %v22083_v16 = vand.u32 4294901760, %v18641_v9  ;;  %v22085_v21 = vand.u32 4294901760, %v18645_v31  ;;  %15054 = vmatpush1.bf16.msra.mxu0 %v18823_v13  ;;  %15192 = vmatprep.subr.bf16.mxu1 %v18582_v63 }
  0x4f   :  { %22068 = vst [vmem:[#allocation42_spill] sm:$0xff] %v18821_v14  ;;  %22072 = vst [vmem:[#allocation44_spill] sm:$0xff] %v18829_v61  ;;  %v18848_v10 = vpack.c.bf16 %v22080_v49, %v22079_v36  ;;  %v22088_v57 = vand.u32 4294901760, %v18665_v4  ;;  %v22091_v36 = vand.u32 4294901760, %v18681_v8  ;;  %v22092_v49 = vand.u32 4294901760, %v18693_v52  ;;  %15056 = vmatprep.subr.bf16.mxu0 %v18796_v54 }
  0x50   :  { %22075 = vst [vmem:[#allocation45_spill] sm:$0xff] %v18835_v34  ;;  %22078 = vst [vmem:[#allocation46_spill] sm:$0xff] %v18841_v20  ;;  %v18854_v17 = vpack.c.bf16 %v22083_v16, %v22082_v15  ;;  %v22086_v34 = vand.u32 4294901760, %v18657_v42  ;;  %v22089_v20 = vand.u32 4294901760, %v18676_v44  ;;  %v22094_v16 = vand.u32 4294901760, %v18699_v35 }
  0x51   :  { %22081 = vst [vmem:[#allocation47_spill] sm:$0xff] %v18848_v10  ;;  %v18873_v15 = vpack.c.bf16 %v22092_v49, %v22091_v36  ;;  %v18894_v36 = vpack.c.bf16 %v18537_v27, %v18532_v23  ;;  %v18896_v49 = vpack.c.bf16 %v386_v53, %v374_v29  ;;  %429 = vmatmul.mubr.f32.vlgmr.msra.gmra.mrb[0].mxu0 %v22057_v51 }
  0x52   :  { %22084 = vst [vmem:[#allocation48_spill] sm:$0xff] %v18854_v17  ;;  %v18860_v48 = vpack.c.bf16 %v22086_v34, %v22085_v21  ;;  %v18866_v61 = vpack.c.bf16 %v22089_v20, %v22088_v57  ;;  %v22095_v17 = vand.u32 4294901760, %v18711_v11  ;;  %v22097_v21 = vand.u32 4294901760, %v18717_v25  ;;  %15058 = vmatpush1.bf16.msra.mxu0 %v18803_v3  ;;  %563 = vmatprep.mubr.f32.mxu0 %v22057_v51 }
  0x53   :  { %22093 = vst [vmem:[#allocation51_spill] sm:$0xff] %v18873_v15  ;;  %v22100_v57 = vand.u32 4294901760, %v18735_v58  ;;  %22102 = vst [vmem:[#allocation55_spill] sm:$0xff] %v18894_v36  ;;  %15060 = vmatprep.subr.bf16.mxu0 %v18894_v36  ;;  %v18912_v23 = vpack.c.bf16 %v18586_v2, %v18584_v0  ;;  %15194 = vmatpush1.bf16.msra.mxu1 %v18598_v12  ;;  %v18919_v27 = vpack.c.bf16 %v18601_v18, %v18592_v6 }
  0x54   :  { %22087 = vst [vmem:[#allocation49_spill] sm:$0xff] %v18860_v48  ;;  %22090 = vst [vmem:[#allocation50_spill] sm:$0xff] %v18866_v61  ;;  %v18879_v34 = vpack.c.bf16 %v22095_v17, %v22094_v16  ;;  %v22098_v48 = vand.u32 4294901760, %v18729_v19  ;;  %v18898_v17 = vpack.c.bf16 %v392_v62, %v380_v47  ;;  %15196 = vmatprep.subr.bf16.mxu1 %v18609_v32 }
  0x55   :  { %v18889_v13 = vpack.c.bf16 %v368_v24, %v22100_v57  ;;  %22103 = vst [vmem:[#allocation56_spill] sm:$0xff] %v18896_v49  ;;  %v18906_v24 = vpack.c.bf16 %v18568_v50, %v18562_v39  ;;  %22106 = vst [vmem:[#allocation59_spill] sm:$0xff] %v18912_v23  ;;  %v18924_v39 = vpack.c.bf16 %v18619_v41, %v18611_v33  ;;  %v22115_v33 = vld [vmem:[#allocation30_spill] sm:$0xff]  ;;  %v22119_v41 = vld [vmem:[#allocation35_spill] sm:$0xff] }
  0x56   :  { %22096 = vst [vmem:[#allocation52_spill] sm:$0xff] %v18879_v34  ;;  %v18885_v20 = vpack.c.bf16 %v22098_v48, %v22097_v21  ;;  %22104 = vst [vmem:[#allocation57_spill] sm:$0xff] %v18898_v17  ;;  %v18931_v50 = vpack.c.bf16 %v18641_v9, %v18634_v59  ;;  %v18936_v62 = vpack.c.bf16 %v18657_v42, %v18645_v31 }
  0x57   :  { %22101 = vst [vmem:[#allocation54_spill] sm:$0xff] %v18889_v13  ;;  %22105 = vst [vmem:[#allocation58_spill] sm:$0xff] %v18906_v24  ;;  %15062 = vmatpush1.bf16.msra.mxu0 %v18906_v24  ;;  %15198 = vmatpush1.bf16.msra.mxu1 %v18639_v5  ;;  %v18943_v0 = vpack.c.bf16 %v18676_v44, %v18665_v4  ;;  %v18948_v2 = vpack.c.bf16 %v18693_v52, %v18681_v8  ;;  %v22124_v9 = vld [vmem:[#allocation45_spill] sm:$0xff]  ;;  %v22125_v31 = vld [vmem:[#allocation46_spill] sm:$0xff] }
  0x58   :  { %22099 = vst [vmem:[#allocation53_spill] sm:$0xff] %v18885_v20  ;;  %22107 = vst [vmem:[#allocation60_spill] sm:$0xff] %v18919_v27  ;;  %15064 = vmatprep.subr.bf16.mxu0 %v18912_v23  ;;  %15200 = vmatprep.subr.bf16.mxu1 %v18654_v46  ;;  %v18955_v6 = vpack.c.bf16 %v18711_v11, %v18699_v35  ;;  %v18960_v18 = vpack.c.bf16 %v18729_v19, %v18717_v25  ;;  %v22118_v25 = vld [vmem:[#allocation10_spill] sm:$0xff] }
  0x59   :  { %22108 = vst [vmem:[#allocation61_spill] sm:$0xff] %v18924_v39  ;;  %22109 = vst [vmem:[#allocation62_spill] sm:$0xff] %v18931_v50  ;;  %v18967_v8 = vpack.c.bf16 %v18747_v30, %v18735_v58  ;;  %v18972_v35 = vpack.c.bf16 %v18765_v37, %v18753_v55  ;;  %v18979_v59 = vpack.c.bf16 %v22119_v41, %v18769_v56  ;;  %v22121_v58 = vld [vmem:[#allocation6_spill] sm:$0xff]  ;;  %v22122_v55 = vld [vmem:[#allocation7_spill] sm:$0xff] }
  0x5a   :  { %22110 = vst [vmem:[#allocation63_spill] sm:$0xff] %v18936_v62  ;;  %22111 = vst [vmem:[#allocation64_spill] sm:$0xff] %v18943_v0  ;;  %v22123_v56 = vld [vmem:[#allocation44_spill] sm:$0xff] }
  0x5b   :  { %15066 = vmatpush1.bf16.msra.mxu0 %v18919_v27  ;;  %15202 = vmatpush1.bf16.msra.mxu1 %v18673_v43  ;;  %22112 = vst [vmem:[#allocation65_spill] sm:$0xff] %v18948_v2  ;;  %22113 = vst [vmem:[#allocation66_spill] sm:$0xff] %v18955_v6  ;;  %v22126_v37 = vld [vmem:[#allocation48_spill] sm:$0xff]  ;;  %v22127_v44 = vld [vmem:[#allocation49_spill] sm:$0xff] }
  0x5c   :  { %15068 = vmatprep.subr.bf16.mxu0 %v18924_v39  ;;  %15204 = vmatprep.subr.bf16.mxu1 %v18690_v60  ;;  %22114 = vst [vmem:[#allocation67_spill] sm:$0xff] %v18960_v18  ;;  %22116 = vst [vmem:[#allocation68_spill] sm:$0xff] %v18967_v8  ;;  %v14807_v11 = vld.sshfl [vmem:[%s21638_s0] sm:$0x33 pattern:$0x76325410] }
  0x5d   :  { %22117 = vst [vmem:[#allocation69_spill] sm:$0xff] %v18972_v35  ;;  %22120 = vst [vmem:[#allocation35_spill] sm:$0xff] %v18979_v59  ;;  %v952_v47 = vcombine.high %v14807_v11, %v14807_v11 }
  0x5f   :  { %15070 = vmatpush1.bf16.msra.mxu0 %v18931_v50  ;;  %15206 = vmatpush1.bf16.msra.mxu1 %v18708_v26 }
  0x60   :  { %15072 = vmatprep.subr.bf16.mxu0 %v18936_v62  ;;  %15208 = vmatprep.subr.bf16.mxu1 %v18726_v28 }
  0x63   :  { %15074 = vmatpush1.bf16.msra.mxu0 %v18943_v0  ;;  %15210 = vmatpush1.bf16.msra.mxu1 %v22115_v33 }
  0x64   :  { %15076 = vmatprep.subr.bf16.mxu0 %v18948_v2  ;;  %15212 = vmatprep.subr.bf16.mxu1 %v18762_v45 }
  0x67   :  { %15078 = vmatpush1.bf16.msra.mxu0 %v18955_v6  ;;  %15214 = vmatpush1.bf16.msra.mxu1 %v18776_v1 }
  0x68   :  { %15080 = vmatprep.subr.bf16.mxu0 %v18960_v18  ;;  %15216 = vmatprep.subr.bf16.mxu1 %v22118_v25 }
  0x6b   :  { %15082 = vmatpush1.bf16.msra.mxu0 %v18967_v8 }
  0x6c   :  { %15084 = vmatprep.subr.bf16.mxu0 %v18972_v35 }
  0x6f   :  { %15086 = vmatpush1.bf16.msra.mxu0 %v18979_v59 }
  0x70   :  { %15088 = vmatprep.subr.bf16.mxu0 %v22121_v58 }
  0x72   :  { %564 = vmatmul.mubr.f32.vlgmr.msra.gmra.mrb[0].mxu0 %v22057_v51 }
  0x73   :  { %15090 = vmatpush1.bf16.msra.mxu0 %v22122_v55  ;;  %666 = vmatprep.mubr.f32.mxu0 %v22057_v51 }
  0x74   :  { %15092 = vmatprep.subr.bf16.mxu0 %v18530_v22 }
  0x77   :  { %15094 = vmatpush1.bf16.msra.mxu0 %v18560_v38 }
  0x78   :  { %15096 = vmatprep.subr.bf16.mxu0 %v18582_v63 }
  0x7b   :  { %15098 = vmatpush1.bf16.msra.mxu0 %v18598_v12 }
  0x7c   :  { %15100 = vmatprep.subr.bf16.mxu0 %v18609_v32 }
  0x7f   :  { %15102 = vmatpush1.bf16.msra.mxu0 %v18639_v5 }
  0x80   :  { %15104 = vmatprep.subr.bf16.mxu0 %v18654_v46 }
  0x83   :  { %15106 = vmatpush1.bf16.msra.mxu0 %v18673_v43 }
  0x84   :  { %15108 = vmatprep.subr.bf16.mxu0 %v18690_v60 }
  0x87   :  { %15110 = vmatpush1.bf16.msra.mxu0 %v18708_v26 }
  0x88   :  { %15112 = vmatprep.subr.bf16.mxu0 %v18726_v28 }
  0x8b   :  { %15114 = vmatpush1.bf16.msra.mxu0 %v22115_v33 }
  0x8c   :  { %15116 = vmatprep.subr.bf16.mxu0 %v18762_v45 }
  0x8f   :  { %15118 = vmatpush1.bf16.msra.mxu0 %v18776_v1 }
  0x90   :  { %15120 = vmatprep.subr.bf16.mxu0 %v18809_v40 }
  0x92   :  { %667 = vmatmul.mubr.f32.vlgmr.msra.gmra.mrb[0].mxu0 %v22057_v51 }
  0x93   :  { %15122 = vmatpush1.bf16.msra.mxu0 %v18815_v7  ;;  %833 = vmatprep.mubr.f32.mxu0 %v22057_v51  ;;  %v19124_v7 = vld [vmem:[#allocation3 + $0xd0] sm:$0xff] }
  0x94   :  { %15124 = vmatprep.subr.bf16.mxu0 %v18821_v14  ;;  %v22147_v14 = vand.u32 4294901760, %v19124_v7 }
  0x97   :  { %15126 = vmatpush1.bf16.msra.mxu0 %v22123_v56 }
  0x98   :  { %15128 = vmatprep.subr.bf16.mxu0 %v22124_v9 }
  0x9b   :  { %15130 = vmatpush1.bf16.msra.mxu0 %v22125_v31  ;;  %v19130_v31 = vld [vmem:[#allocation3 + $0x138] sm:$0xff] }
  0x9c   :  { %15132 = vmatprep.subr.bf16.mxu0 %v18848_v10 }
  0x9f   :  { %15134 = vmatpush1.bf16.msra.mxu0 %v22126_v37  ;;  %v19101_v37 = vld [vmem:[#allocation3 + $0xd8] sm:$0xff] }
  0xa0   :  { %15136 = vmatprep.subr.bf16.mxu0 %v22127_v44  ;;  %v21751_v56 = vand.u32 4294901760, %v19101_v37 }
  0xa3   :  { %15138 = vmatpush1.bf16.msra.mxu0 %v18866_v61 }
  0xa4   :  { %15140 = vmatprep.subr.bf16.mxu0 %v18873_v15 }
  0xa7   :  { %15142 = vmatpush1.bf16.msra.mxu0 %v18879_v34  ;;  %v19086_v34 = vld [vmem:[#allocation3 + $0xb0] sm:$0xff] }
  0xa8   :  { %15144 = vmatprep.subr.bf16.mxu0 %v18885_v20  ;;  %v19081_v20 = vld [vmem:[#allocation3 + $0xb8] sm:$0xff]  ;;  %v22143_v40 = vand.u32 4294901760, %v19086_v34 }
  0xab   :  { %15146 = vmatpush1.bf16.msra.mxu0 %v18889_v13 }
  0xac   :  { %15148 = vmatprep.subr.bf16.mxu0 %v18896_v49 }
  0xaf   :  { %15150 = vmatpush1.bf16.msra.mxu0 %v18898_v17 }
  0xb0   :  { %15152 = vmatprep.subr.bf16.mxu0 %v22121_v58 }
  0xb2   :  { %834 = vmatmul.mubr.f32.vlgmr.msra.gmra.mrb[0].mxu0 %v22057_v51 }
  0xb3   :  { %15154 = vmatpush1.bf16.msra.mxu0 %v22122_v55  ;;  %936 = vmatprep.mubr.f32.mxu0 %v22057_v51  ;;  %v99_v55 = vld [vmem:[#allocation3 + $0x1f0] sm:$0xff] }
  0xb4   :  { %15156 = vmatprep.subr.bf16.mxu0 %v18530_v22 }
  0xb7   :  { %15158 = vmatpush1.bf16.msra.mxu0 %v18560_v38  ;;  %v100_v38 = vld [vmem:[#allocation3 + $0x1f8] sm:$0xff] }
  0xb8   :  { %15160 = vmatprep.subr.bf16.mxu0 %v18582_v63  ;;  %v87_v63 = vld [vmem:[#allocation3 + $0x190] sm:$0xff]  ;;  %v1896_v22 = vand.u32 4294901760, %v100_v38 }
  0xbb   :  { %15162 = vmatpush1.bf16.msra.mxu0 %v18598_v12 }
  0xbc   :  { %15164 = vmatprep.subr.bf16.mxu0 %v18609_v32 }
  0xbf   :  { %15166 = vmatpush1.bf16.msra.mxu0 %v18639_v5 }
  0xc0   :  { %15168 = vmatprep.subr.bf16.mxu0 %v18654_v46 }
  0xc3   :  { %15170 = vmatpush1.bf16.msra.mxu0 %v18673_v43  ;;  %v22150_v43 = vand.u32 4294901760, %v19130_v31 }
  0xc4   :  { %15172 = vmatprep.subr.bf16.mxu0 %v18690_v60 }
  0xc7   :  { %15174 = vmatpush1.bf16.msra.mxu0 %v18708_v26  ;;  %v19150_v26 = vld [vmem:[#allocation3 + $0x110] sm:$0xff] }
  0xc8   :  { %15176 = vmatprep.subr.bf16.mxu0 %v18726_v28 }
  0xcb   :  { %15178 = vmatpush1.bf16.msra.mxu0 %v22115_v33 }
  0xcc   :  { %15180 = vmatprep.subr.bf16.mxu0 %v18762_v45 }
  0xcf   :  { %15182 = vmatpush1.bf16.msra.mxu0 %v18776_v1 }
  0xd2   :  { %937 = vmatmul.mubr.f32.vlgmr.msra.gmra.mrb[0].mxu0 %v22057_v51 }
  0xd3   :  { %1932 = vmatprep.mubr.f32.mxu0 %v22057_v51 }
 0x11b   :  { %v199_v42 = vpop.f32.mrb[0].mxu1 }
 0x11c   :  { %v201_v4 = vpop.f32.mrb[1].mxu1 }
 0x1a5   :  { %v938_v52 = vpop.f32.mrb[0].mxu0 }
 0x1a6   :  { %v18135_v19 = vadd.f32 %v938_v52, %v199_v42  ;;  %v940_v29 = vpop.f32.mrb[1].mxu0  ;;  %v19049_v42 = vld [vmem:[#allocation3 + $0x18] sm:$0xff]  ;;  %v19053_v52 = vld [vmem:[#allocation3 + $0x10] sm:$0xff] }
 0x1a7   :  { %v18136_v30 = vadd.f32 %v940_v29, %v201_v4  ;;  %v19051_v4 = vld [vmem:[#allocation3 + $0x38] sm:$0xff]  ;;  %v19057_v29 = vld [vmem:[#allocation3 + $0x30] sm:$0xff]  ;;  %v22131_v15 = vand.u32 4294901760, %v19053_v52 }
 0x1a8   :  { %v955_v53 = vadd.f32 %v18135_v19, %v14807_v11  ;;  %v19071_v11 = vld [vmem:[#allocation3 + $0x98] sm:$0xff]  ;;  %v22128_v19 = vand.u32 4294901760, %v19049_v42  ;;  %v22132_v61 = vand.u32 4294901760, %v19057_v29 }
 0x1a9   :  { %v19042_v16 = vadd.f32 %v18136_v30, %v952_v47  ;;  %v22129_v30 = vand.u32 4294901760, %v19051_v4  ;;  %v19084_v47 = vld [vmem:[#allocation3 + $0x90] sm:$0xff] }
 0x1aa   :  { %v957_v48 = vmul.f32 0.5, %v955_v53  ;;  %v19060_v53 = vld [vmem:[#allocation3 + $0x58] sm:$0xff]  ;;  %v19092_v44 = vpack.c.bf16 %v22132_v61, %v22131_v15 }
 0x1ab   :  { %v19077_v49 = vpack.c.bf16 %v22129_v30, %v22128_v19  ;;  %v22134_v19 = vand.u32 4294901760, %v19060_v53 }
 0x1ac   :  { %18312 = vtanh.f32 %v957_v48  ;;  %22133 = vst [vmem:[#allocation71_spill] sm:$0xff] %v19092_v44  ;;  %v19103_v48 = vld [vmem:[#allocation3 + $0xf8] sm:$0xff] }
 0x1ad   :  { %18314 = vtanh.f32 %v19042_v16  ;;  %22130 = vst [vmem:[#allocation70_spill] sm:$0xff] %v19077_v49  ;;  %15376 = vmatprep.subr.bf16.mxu0 %v19077_v49  ;;  %v22145_v1 = vand.u32 4294901760, %v19103_v48 }
 0x1ae   :  { %15378 = vmatpush1.bf16.msra.mxu0 %v19092_v44  ;;  %v95_v44 = vld [vmem:[#allocation3 + $0x1d0] sm:$0xff] }
 0x1af   :  { %v19146_v45 = vpack.c.bf16 %v22145_v1, %v21751_v56  ;;  %v21766_v56 = vand.u32 4294901760, %v19150_v26 }
 0x1b1   :  { %22146 = vst [vmem:[#allocation76_spill] sm:$0xff] %v19146_v45 }
 0x1b6   :  { %v18313_v21 = vpop.eup %18312 }
 0x1b7   :  { %v961_v57 = vadd.f32 1.0, %v18313_v21  ;;  %v18315_v25 = vpop.eup %18314  ;;  %v19067_v21 = vld [vmem:[#allocation3 + $0x50] sm:$0xff] }
 0x1b8   :  { %v22137_v10 = vand.u32 4294901760, %v19067_v21 }
 0x1b9   :  { %v19045_v41 = vmul.f32 0.5, %v961_v57  ;;  %v19069_v57 = vld [vmem:[#allocation3 + $0x70] sm:$0xff] }
 0x1ba   :  { %v22138_v61 = vand.u32 4294901760, %v19069_v57 }
 0x1bb   :  { %v967_v17 = vmul.f32 %v18315_v25, %v19045_v41  ;;  %v19062_v25 = vld [vmem:[#allocation3 + $0x78] sm:$0xff] }
 0x1bc   :  { %v22135_v30 = vand.u32 4294901760, %v19062_v25  ;;  %v19111_v15 = vpack.c.bf16 %v22138_v61, %v22137_v10  ;;  %v19126_v10 = vld [vmem:[#allocation3 + $0xf0] sm:$0xff]  ;;  %v19128_v61 = vld [vmem:[#allocation3 + $0x118] sm:$0xff] }
 0x1bd   :  { %969 = vrot.lane.b32.xlu0 %v967_v17, %s18468_s9  ;;  %v21739_v17 = vand.u32 4294901760, %v19081_v20  ;;  %v21764_v33 = vand.u32 4294901760, %v19128_v61  ;;  %v22148_v60 = vand.u32 4294901760, %v19126_v10 }
 0x1be   :  { %v19098_v13 = vpack.c.bf16 %v22135_v30, %v22134_v19  ;;  %22139 = vst [vmem:[#allocation73_spill] sm:$0xff] %v19111_v15  ;;  %v22140_v30 = vand.u32 4294901760, %v19071_v11  ;;  %v22142_v19 = vand.u32 4294901760, %v19084_v47 }
 0x1bf   :  { %v19163_v1 = vpack.c.bf16 %v22148_v60, %v22147_v14  ;;  %v19172_v46 = vpack.c.bf16 %v22150_v43, %v21764_v33  ;;  %v19178_v14 = vld [vmem:[#allocation3 + $0x170] sm:$0xff] }
 0x1c0   :  { %22136 = vst [vmem:[#allocation72_spill] sm:$0xff] %v19098_v13  ;;  %15380 = vmatprep.subr.bf16.mxu0 %v19098_v13  ;;  %v19120_v9 = vpack.c.bf16 %v21739_v17, %v22140_v30  ;;  %v19137_v30 = vpack.c.bf16 %v22143_v40, %v22142_v19  ;;  %v19152_v40 = vld [vmem:[#allocation3 + $0x130] sm:$0xff]  ;;  %v19154_v19 = vld [vmem:[#allocation3 + $0x158] sm:$0xff]  ;;  %v21783_v43 = vand.u32 4294901760, %v19178_v14 }
 0x1c1   :  { %15382 = vmatpush1.bf16.msra.mxu0 %v19111_v15  ;;  %v19156_v17 = vld [vmem:[#allocation3 + $0x178] sm:$0xff]  ;;  %22149 = vst [vmem:[#allocation77_spill] sm:$0xff] %v19163_v1  ;;  %v21765_v28 = vand.u32 4294901760, %v19152_v40  ;;  %22151 = vst [vmem:[#allocation78_spill] sm:$0xff] %v19172_v46  ;;  %v21772_v5 = vand.u32 4294901760, %v19154_v19  ;;  %v91_v15 = vld [vmem:[#allocation3 + $0x1b0] sm:$0xff] }
 0x1c2   :  { %22141 = vst [vmem:[#allocation74_spill] sm:$0xff] %v19120_v9  ;;  %22144 = vst [vmem:[#allocation75_spill] sm:$0xff] %v19137_v30  ;;  %15384 = vmatprep.subr.bf16.mxu0 %v19120_v9  ;;  %v21771_v32 = vand.u32 4294901760, %v19156_v17 }
 0x1c3   :  { %v19185_v60 = vpack.c.bf16 %v21765_v28, %v21766_v56  ;;  %v958_v56 = vmul.f32 0.5, %v19042_v16  ;;  %v22157_v16 = vand.u32 4294901760, %v19049_v42 }
 0x1c4   :  { %v19194_v33 = vpack.c.bf16 %v21771_v32, %v21772_v5  ;;  %v88_v32 = vld [vmem:[#allocation3 + $0x198] sm:$0xff] }
 0x1c5   :  { %15386 = vmatpush1.bf16.msra.mxu0 %v19137_v30  ;;  %v19176_v30 = vld [vmem:[#allocation3 + $0x150] sm:$0xff]  ;;  %22152 = vst [vmem:[#allocation79_spill] sm:$0xff] %v19185_v60  ;;  %18316 = vtanh.f32 %v958_v56  ;;  %v92_v5 = vld [vmem:[#allocation3 + $0x1b8] sm:$0xff]  ;;  %v19215_v56 = vsub.f32 %v19049_v42, %v22157_v16  ;;  %v1894_v16 = vand.u32 4294901760, %v95_v44 }
 0x1c6   :  { %15388 = vmatprep.subr.bf16.mxu0 %v19146_v45  ;;  %v21784_v45 = vand.u32 4294901760, %v19176_v30  ;;  %22153 = vst [vmem:[#allocation80_spill] sm:$0xff] %v19194_v33  ;;  %v1888_v9 = vand.u32 4294901760, %v92_v5 }
 0x1c7   :  { %22158 = vst [vmem:[#allocation84_spill] sm:$0xff] %v19215_v56  ;;  %v21818_v49 = vand.u32 4294901760, %v19215_v56 }
 0x1c8   :  { %v19201_v28 = vpack.c.bf16 %v21783_v43, %v21784_v45  ;;  %v1886_v43 = vand.u32 4294901760, %v87_v63  ;;  %v1890_v45 = vand.u32 4294901760, %v91_v15 }
 0x1c9   :  { %15390 = vmatpush1.bf16.msra.mxu0 %v19163_v1  ;;  %v1947_v58 = vsub.f32 %v19215_v56, %v21818_v49 }
 0x1ca   :  { %15392 = vmatprep.subr.bf16.mxu0 %v19172_v46  ;;  %22154 = vst [vmem:[#allocation81_spill] sm:$0xff] %v19201_v28  ;;  %v966_v46 = vmul.f32 0.0, %v19045_v41  ;;  %v22159_v41 = vand.u32 4294901760, %v19051_v4 }
 0x1cb   :  { %v1948_v8 = vand.u32 4294901760, %v1947_v58 }
 0x1cd   :  { %15394 = vmatpush1.bf16.msra.mxu0 %v19185_v60  ;;  %v1884_v60 = vand.u32 4294901760, %v88_v32 }
 0x1ce   :  { %15396 = vmatprep.subr.bf16.mxu0 %v19194_v33 }
 0x1cf   :  { %v19210_v33 = vpack.c.bf16 %v1888_v9, %v1884_v60  ;;  %v18317_v13 = vpop.eup %18316  ;;  %v19244_v0 = vsub.f32 %v88_v32, %v1884_v60  ;;  %v19260_v32 = vsub.f32 %v100_v38, %v1896_v22 }
 0x1d0   :  { %v962_v59 = vadd.f32 1.0, %v18317_v13 }
 0x1d1   :  { %15398 = vmatpush1.bf16.msra.mxu0 %v19201_v28  ;;  %22156 = vst [vmem:[#allocation83_spill] sm:$0xff] %v19210_v33  ;;  %v96_v28 = vld [vmem:[#allocation3 + $0x1d8] sm:$0xff]  ;;  %22165 = vst [vmem:[#allocation90_spill] sm:$0xff] %v19244_v0  ;;  %v21831_v13 = vand.u32 4294901760, %v19244_v0 }
 0x1d2   :  { %15400 = vmatprep.subr.bf16.mxu0 %v19210_v33  ;;  %v964_v6 = vmul.f32 0.5, %v962_v59  ;;  %22170 = vst [vmem:[#allocation95_spill] sm:$0xff] %v19260_v32 }
 0x22f   :  { %v970_v1 = vpop.permute.xlu0 %969 }
 0x230   :  { %v19207_v12 = vadd.f32 %v970_v1, %v966_v46  ;;  %v19220_v46 = vsub.f32 %v19051_v4, %v22159_v41  ;;  %v19222_v1 = vpack.c.bf16 %v1890_v45, %v1886_v43  ;;  %v1898_v4 = vand.u32 4294901760, %v99_v55 }
 0x232   :  { %22155 = vst [vmem:[#allocation82_spill] sm:$0xff] %v19207_v12  ;;  %18318 = vtanh.f32 %v19207_v12  ;;  %22160 = vst [vmem:[#allocation85_spill] sm:$0xff] %v19220_v46  ;;  %v1892_v12 = vand.u32 4294901760, %v96_v28  ;;  %v21821_v42 = vand.u32 4294901760, %v19220_v46  ;;  %15402 = vmatpush1.bf16.msra.mxu0 %v19222_v1  ;;  %v19236_v35 = vpack.c.bf16 %v1898_v4, %v1894_v16 }
 0x233   :  { %22161 = vst [vmem:[#allocation86_spill] sm:$0xff] %v19222_v1 }
 0x234   :  { %v19228_v41 = vpack.c.bf16 %v1896_v22, %v1892_v12  ;;  %v1959_v33 = vsub.f32 %v19220_v46, %v21821_v42  ;;  %22163 = vst [vmem:[#allocation88_spill] sm:$0xff] %v19236_v35  ;;  %v19247_v42 = vsub.f32 %v92_v5, %v1888_v9  ;;  %v19257_v59 = vsub.f32 %v96_v28, %v1892_v12 }
 0x235   :  { %v21826_v28 = vand.u32 4294901760, %v19260_v32  ;;  %v19271_v12 = vsub.f32 %v95_v44, %v1894_v16  ;;  %v19279_v9 = vsub.f32 %v99_v55, %v1898_v4 }
 0x236   :  { %22162 = vst [vmem:[#allocation87_spill] sm:$0xff] %v19228_v41  ;;  %15404 = vmatprep.subr.bf16.mxu0 %v19228_v41  ;;  %v1960_v18 = vand.u32 4294901760, %v1959_v33  ;;  %22166 = vst [vmem:[#allocation91_spill] sm:$0xff] %v19247_v42  ;;  %v19249_v41 = vsub.f32 %v87_v63, %v1886_v43  ;;  %v21830_v33 = vand.u32 4294901760, %v19247_v42 }
 0x237   :  { %15406 = vmatpush1.bf16.msra.mxu0 %v19236_v35  ;;  %22169 = vst [vmem:[#allocation94_spill] sm:$0xff] %v19257_v59  ;;  %22171 = vst [vmem:[#allocation96_spill] sm:$0xff] %v19271_v12  ;;  %v2127_v60 = vsub.f32 %v19260_v32, %v21826_v28  ;;  %v21828_v43 = vand.u32 4294901760, %v19271_v12 }
 0x238   :  { %v19240_v1 = vpack.c.bf16 %v1960_v18, %v1948_v8  ;;  %22167 = vst [vmem:[#allocation92_spill] sm:$0xff] %v19249_v41  ;;  %v2091_v18 = vsub.f32 %v19244_v0, %v21831_v13  ;;  %v19255_v8 = vsub.f32 %v91_v15, %v1890_v45  ;;  %v2103_v63 = vsub.f32 %v19247_v42, %v21830_v33 }
 0x239   :  { %22172 = vst [vmem:[#allocation97_spill] sm:$0xff] %v19279_v9 }
 0x23a   :  { %22164 = vst [vmem:[#allocation89_spill] sm:$0xff] %v19240_v1  ;;  %15408 = vmatprep.subr.bf16.mxu0 %v19240_v1  ;;  %22168 = vst [vmem:[#allocation93_spill] sm:$0xff] %v19255_v8  ;;  %v21824_v5 = vand.u32 4294901760, %v19255_v8  ;;  %v2104_v58 = vand.u32 4294901760, %v2103_v63  ;;  %v21827_v63 = vand.u32 4294901760, %v19279_v9 }
 0x23c   :  { %v18319_v2 = vpop.eup %18318  ;;  %v2109_v22 = vsub.f32 %v19255_v8, %v21824_v5  ;;  %v2128_v5 = vand.u32 4294901760, %v2127_v60  ;;  %v2133_v4 = vsub.f32 %v19279_v9, %v21827_v63  ;;  %v22182_v60 = vand.u32 4294901760, %v19053_v52 }
 0x23d   :  { %v974_v49 = vmul.f32 %v18319_v2, %v964_v6  ;;  %v2092_v2 = vand.u32 4294901760, %v2091_v18  ;;  %v21825_v6 = vand.u32 4294901760, %v19257_v59  ;;  %v22184_v63 = vand.u32 4294901760, %v19060_v53 }
 0x23e   :  { %v2110_v16 = vand.u32 4294901760, %v2109_v22 }
 0x23f   :  { %976 = vrot.lane.b32.xlu0 %v974_v49, %s18468_s9  ;;  %v21829_v49 = vand.u32 4294901760, %v19249_v41  ;;  %v2115_v38 = vsub.f32 %v19257_v59, %v21825_v6  ;;  %v19285_v44 = vpack.c.bf16 %v2104_v58, %v2092_v2  ;;  %v2121_v6 = vsub.f32 %v19271_v12, %v21828_v43 }
 0x240   :  { %v2134_v2 = vand.u32 4294901760, %v2133_v4  ;;  %v19300_v58 = vpack.c.bf16 %v19220_v46, %v19215_v56  ;;  %v19335_v43 = vsub.f32 %v19060_v53, %v22184_v63  ;;  %v22187_v53 = vand.u32 4294901760, %v19069_v57 }
 0x241   :  { %v2097_v45 = vsub.f32 %v19249_v41, %v21829_v49  ;;  %22173 = vst [vmem:[#allocation98_spill] sm:$0xff] %v19285_v44  ;;  %v2116_v18 = vand.u32 4294901760, %v2115_v38  ;;  %v2122_v28 = vand.u32 4294901760, %v2121_v6  ;;  %v19306_v38 = vpack.c.bf16 %v19247_v42, %v19244_v0 }
 0x242   :  { %22176 = vst [vmem:[#allocation101_spill] sm:$0xff] %v19300_v58  ;;  %v19318_v6 = vpack.c.bf16 %v19279_v9, %v19271_v12  ;;  %v22185_v49 = vand.u32 4294901760, %v19062_v25  ;;  %v19356_v63 = vsub.f32 %v19069_v57, %v22187_v53  ;;  %v22193_v9 = vand.u32 4294901760, %v19103_v48 }
 0x243   :  { %v2098_v15 = vand.u32 4294901760, %v2097_v45  ;;  %v19296_v45 = vpack.c.bf16 %v2128_v5, %v2116_v18  ;;  %v19302_v22 = vpack.c.bf16 %v2134_v2, %v2122_v28  ;;  %22178 = vst [vmem:[#allocation103_spill] sm:$0xff] %v19306_v38  ;;  %v19314_v5 = vpack.c.bf16 %v19260_v32, %v19257_v59 }
 0x244   :  { %22181 = vst [vmem:[#allocation106_spill] sm:$0xff] %v19318_v6  ;;  %v19323_v28 = vsub.f32 %v19053_v52, %v22182_v60  ;;  %v19340_v33 = vsub.f32 %v19062_v25, %v22185_v49  ;;  %v22186_v52 = vand.u32 4294901760, %v19067_v21  ;;  %v22188_v25 = vand.u32 4294901760, %v19071_v11 }
 0x245   :  { %v19291_v55 = vpack.c.bf16 %v2110_v16, %v2098_v15  ;;  %22175 = vst [vmem:[#allocation100_spill] sm:$0xff] %v19296_v45  ;;  %22177 = vst [vmem:[#allocation102_spill] sm:$0xff] %v19302_v22  ;;  %v19310_v15 = vpack.c.bf16 %v19255_v8, %v19249_v41  ;;  %v22183_v16 = vand.u32 4294901760, %v19057_v29  ;;  %v22203_v8 = vand.u32 4294901760, %v19128_v61 }
 0x246   :  { %22180 = vst [vmem:[#allocation105_spill] sm:$0xff] %v19314_v5  ;;  %v21833_v4 = vand.u32 4294901760, %v19323_v28  ;;  %v19345_v60 = vsub.f32 %v19067_v21, %v22186_v52  ;;  %v19361_v49 = vsub.f32 %v19071_v11, %v22188_v25  ;;  %v22189_v21 = vand.u32 4294901760, %v19081_v20 }
 0x247   :  { %22174 = vst [vmem:[#allocation99_spill] sm:$0xff] %v19291_v55  ;;  %22179 = vst [vmem:[#allocation104_spill] sm:$0xff] %v19310_v15  ;;  %v19328_v18 = vsub.f32 %v19057_v29, %v22183_v16  ;;  %v22190_v25 = vand.u32 4294901760, %v19084_v47  ;;  %v19392_v11 = vsub.f32 %v19103_v48, %v22193_v9  ;;  %v22197_v48 = vand.u32 4294901760, %v19356_v63 }
 0x248   :  { %v1953_v29 = vsub.f32 %v19323_v28, %v21833_v4  ;;  %v19366_v52 = vsub.f32 %v19081_v20, %v22189_v21  ;;  %v22191_v21 = vand.u32 4294901760, %v19086_v34  ;;  %v22192_v4 = vand.u32 4294901760, %v19101_v37 }
 0x249   :  { %v21832_v2 = vand.u32 4294901760, %v19328_v18  ;;  %v19377_v20 = vsub.f32 %v19084_v47, %v22190_v25  ;;  %v22194_v47 = vand.u32 4294901760, %v19335_v43  ;;  %v1989_v9 = vsub.f32 %v19356_v63, %v22197_v48 }
 0x24a   :  { %v1954_v1 = vand.u32 4294901760, %v1953_v29  ;;  %v19382_v13 = vsub.f32 %v19086_v34, %v22191_v21  ;;  %v19387_v29 = vsub.f32 %v19101_v37, %v22192_v4  ;;  %v22195_v21 = vand.u32 4294901760, %v19345_v60 }
 0x24b   :  { %v1965_v16 = vsub.f32 %v19328_v18, %v21832_v2  ;;  %v21839_v2 = vand.u32 4294901760, %v19340_v33  ;;  %v1971_v25 = vsub.f32 %v19335_v43, %v22194_v47  ;;  %v22199_v32 = vand.u32 4294901760, %v19366_v52 }
 0x24c   :  { %v1977_v37 = vsub.f32 %v19345_v60, %v22195_v21  ;;  %v22201_v48 = vand.u32 4294901760, %v19124_v7  ;;  %v1990_v0 = vand.u32 4294901760, %v1989_v9 }
 0x24d   :  { %v1966_v57 = vand.u32 4294901760, %v1965_v16  ;;  %v1983_v34 = vsub.f32 %v19340_v33, %v21839_v2  ;;  %v2007_v2 = vsub.f32 %v19366_v52, %v22199_v32  ;;  %v1972_v59 = vand.u32 4294901760, %v1971_v25 }
 0x24e   :  { %v19427_v41 = vsub.f32 %v19124_v7, %v22201_v48  ;;  %v1978_v21 = vand.u32 4294901760, %v1977_v37  ;;  %v22205_v7 = vand.u32 4294901760, %v19130_v31  ;;  %v22206_v25 = vand.u32 4294901760, %v19377_v20 }
 0x24f   :  { %v19406_v12 = vpack.c.bf16 %v1966_v57, %v1954_v1  ;;  %v1984_v42 = vand.u32 4294901760, %v1983_v34  ;;  %v22207_v37 = vand.u32 4294901760, %v19382_v13 }
 0x250   :  { %v19445_v48 = vsub.f32 %v19130_v31, %v22205_v7  ;;  %v2001_v34 = vsub.f32 %v19377_v20, %v22206_v25 }
 0x251   :  { %22196 = vst [vmem:[#allocation107_spill] sm:$0xff] %v19406_v12  ;;  %v19463_v25 = vpack.c.bf16 %v1984_v42, %v1972_v59  ;;  %v22214_v59 = vand.u32 4294901760, %v19156_v17 }
 0x252   :  { %v2002_v7 = vand.u32 4294901760, %v2001_v34 }
 0x253   :  { %22210 = vst [vmem:[#allocation110_spill] sm:$0xff] %v19463_v25  ;;  %v19485_v46 = vsub.f32 %v19156_v17, %v22214_v59  ;;  %v22219_v17 = vld [vmem:[#allocation11_spill] sm:$0xff] }
 0x2b1   :  { %v977_v16 = vpop.permute.xlu0 %976 }
 0x2b2   :  { %v980_v53 = vsel %vm979_vm0, %v977_v16, 0.0  ;;  %v22198_v16 = vand.u32 4294901760, %v19361_v49 }
 0x2b3   :  { %v19404_v4 = vand.u32 4294901760, %v980_v53 }
 0x2b4   :  { %v1995_v47 = vsub.f32 %v19361_v49, %v22198_v16  ;;  %v22202_v16 = vand.u32 4294901760, %v19126_v10 }
 0x2b5   :  { %v19421_v1 = vsub.f32 %v980_v53, %v19404_v4  ;;  %v19437_v53 = vsub.f32 %v19128_v61, %v22203_v8  ;;  %v2013_v61 = vsub.f32 %v19382_v13, %v22207_v37  ;;  %v22208_v8 = vand.u32 4294901760, %v19387_v29 }
 0x2b6   :  { %v19432_v32 = vsub.f32 %v19126_v10, %v22202_v16  ;;  %v1996_v35 = vand.u32 4294901760, %v1995_v47  ;;  %v2008_v10 = vand.u32 4294901760, %v2007_v2  ;;  %v22209_v47 = vand.u32 4294901760, %v19392_v11 }
 0x2b7   :  { %22200 = vst [vmem:[#allocation108_spill] sm:$0xff] %v19421_v1  ;;  %v19440_v57 = vand.u32 4294901760, %v19421_v1  ;;  %v2019_v16 = vsub.f32 %v19387_v29, %v22208_v8  ;;  %v22211_v37 = vand.u32 4294901760, %v19150_v26  ;;  %v22212_v8 = vand.u32 4294901760, %v19152_v40 }
 0x2b8   :  { %v2031_v31 = vsub.f32 %v19392_v11, %v22209_v47  ;;  %v22213_v2 = vand.u32 4294901760, %v19154_v19  ;;  %v22217_v47 = vand.u32 4294901760, %v19427_v41 }
 0x2b9   :  { %22204 = vst [vmem:[#allocation109_spill] sm:$0xff] %v19440_v57  ;;  %v1081_v9 = vsub.f32 %v19421_v1, %v19440_v57  ;;  %v19469_v56 = vsub.f32 %v19150_v26, %v22211_v37  ;;  %v19474_v57 = vsub.f32 %v19152_v40, %v22212_v8  ;;  %v19487_v26 = vpack.c.bf16 %v1990_v0, %v1978_v21  ;;  %v22227_v0 = vld [vmem:[#allocation16_spill] sm:$0xff] }
 0x2ba   :  { %v19480_v42 = vsub.f32 %v19154_v19, %v22213_v2  ;;  %v19489_v37 = vpack.c.bf16 %v2008_v10, %v1996_v35  ;;  %v2014_v40 = vand.u32 4294901760, %v2013_v61  ;;  %v2032_v8 = vand.u32 4294901760, %v2031_v31  ;;  %v22222_v61 = vld [vmem:[#allocation12_spill] sm:$0xff] }
 0x2bb   :  { %v1082_v1 = vand.u32 4294901760, %v1081_v9  ;;  %22215 = vst [vmem:[#allocation111_spill] sm:$0xff] %v19487_v26  ;;  %v2020_v9 = vand.u32 4294901760, %v2019_v16  ;;  %v2025_v19 = vsub.f32 %v19427_v41, %v22217_v47  ;;  %v22218_v2 = vand.u32 4294901760, %v19432_v32 }
 0x2bc   :  { %22216 = vst [vmem:[#allocation112_spill] sm:$0xff] %v19489_v37  ;;  %v22220_v21 = vand.u32 4294901760, %v19176_v30  ;;  %v22221_v10 = vand.u32 4294901760, %v19178_v14  ;;  %v22223_v16 = vand.u32 4294901760, %v19437_v53  ;;  %v22224_v47 = vand.u32 4294901760, %v19445_v48 }
 0x2bd   :  { %1083 = vmatmul.mubr.f32.vlgmr.msra.gmra.mrb[2].mxu1 %v1082_v1  ;;  %1938 = vmatmul.mubr.f32.vlgmr.msra.gmra.mrb[2].mxu0 %v1082_v1  ;;  %v2037_v6 = vsub.f32 %v19432_v32, %v22218_v2  ;;  %v22229_v2 = vand.u32 4294901760, %v19474_v57 }
 0x2be   :  { %15218 = vmatpush1.bf16.msra.mxu1 %v22219_v17  ;;  %15410 = vmatpush1.bf16.msra.mxu0 %v19406_v12  ;;  %v19504_v1 = vsub.f32 %v19176_v30, %v22220_v21  ;;  %v19509_v34 = vsub.f32 %v19178_v14, %v22221_v10  ;;  %v2043_v31 = vsub.f32 %v19437_v53, %v22223_v16  ;;  %v2026_v10 = vand.u32 4294901760, %v2025_v19 }
 0x2bf   :  { %15220 = vmatprep.subr.bf16.mxu1 %v22222_v61  ;;  %15412 = vmatprep.subr.bf16.mxu0 %v19463_v25  ;;  %v2055_v59 = vsub.f32 %v19445_v48, %v22224_v47  ;;  %v19523_v14 = vpack.c.bf16 %v2014_v40, %v2002_v7  ;;  %v19525_v21 = vpack.c.bf16 %v2032_v8, %v2020_v9  ;;  %v2038_v35 = vand.u32 4294901760, %v2037_v6  ;;  %v22230_v40 = vld [vmem:[#allocation17_spill] sm:$0xff] }
 0x2c0   :  { %1313 = vmatprep.mubr.f32.mxu1 %v22057_v51  ;;  %2168 = vmatprep.mubr.f32.mxu0 %v22057_v51  ;;  %v22228_v16 = vand.u32 4294901760, %v19469_v56  ;;  %v2061_v30 = vsub.f32 %v19474_v57, %v22229_v2  ;;  %v2044_v6 = vand.u32 4294901760, %v2043_v31  ;;  %v22231_v8 = vand.u32 4294901760, %v19480_v42  ;;  %v22234_v2 = vld [vmem:[#allocation19_spill] sm:$0xff] }
 0x2c1   :  { %22225 = vst [vmem:[#allocation113_spill] sm:$0xff] %v19523_v14  ;;  %22226 = vst [vmem:[#allocation114_spill] sm:$0xff] %v19525_v21  ;;  %v2056_v9 = vand.u32 4294901760, %v2055_v59  ;;  %v22236_v59 = vand.u32 4294901760, %v19509_v34  ;;  %v22308_v61 = vand.u32 4294901760, %v19323_v28  ;;  %v22309_v12 = vand.u32 4294901760, %v19328_v18 }
 0x2c2   :  { %15222 = vmatpush1.bf16.msra.mxu1 %v22227_v0  ;;  %15414 = vmatpush1.bf16.msra.mxu0 %v19487_v26  ;;  %v2049_v47 = vsub.f32 %v19469_v56, %v22228_v16  ;;  %v2067_v19 = vsub.f32 %v19480_v42, %v22231_v8  ;;  %v22232_v16 = vand.u32 4294901760, %v19485_v46  ;;  %v19545_v0 = vpack.c.bf16 %v2038_v35, %v2026_v10 }
 0x2c3   :  { %15224 = vmatprep.subr.bf16.mxu1 %v22230_v40  ;;  %15416 = vmatprep.subr.bf16.mxu0 %v19489_v37  ;;  %v2062_v25 = vand.u32 4294901760, %v2061_v30  ;;  %v22235_v37 = vand.u32 4294901760, %v19504_v1  ;;  %v2085_v8 = vsub.f32 %v19509_v34, %v22236_v59  ;;  %v22237_v40 = vld [vmem:[#allocation21_spill] sm:$0xff]  ;;  %v19557_v35 = vpack.c.bf16 %v2056_v9, %v2044_v6  ;;  %v22248_v9 = vld [vmem:[#allocation36_spill] sm:$0xff] }
 0x2c4   :  { %v2079_v26 = vsub.f32 %v19485_v46, %v22232_v16  ;;  %22233 = vst [vmem:[#allocation115_spill] sm:$0xff] %v19545_v0  ;;  %v2050_v7 = vand.u32 4294901760, %v2049_v47  ;;  %v2068_v10 = vand.u32 4294901760, %v2067_v19  ;;  %v22249_v19 = vld [vmem:[#allocation37_spill] sm:$0xff]  ;;  %v19709_v17 = vpack.c.bf16 %v22309_v12, %v22308_v61  ;;  %v22320_v61 = vld [vmem:[#allocation42_spill] sm:$0xff] }
 0x2c5   :  { %v2073_v31 = vsub.f32 %v19504_v1, %v22235_v37  ;;  %22238 = vst [vmem:[#allocation116_spill] sm:$0xff] %v19557_v35  ;;  %v2086_v37 = vand.u32 4294901760, %v2085_v8  ;;  %v19585_v8 = vpack.c.bf16 %v19328_v18, %v19323_v28  ;;  %v22317_v12 = vand.u32 4294901760, %v19345_v60 }
 0x2c6   :  { %15226 = vmatpush1.bf16.msra.mxu1 %v22234_v2  ;;  %15418 = vmatpush1.bf16.msra.mxu0 %v19523_v14  ;;  %v2080_v16 = vand.u32 4294901760, %v2079_v26  ;;  %v22239_v2 = vld [vmem:[#allocation23_spill] sm:$0xff]  ;;  %v19561_v30 = vpack.c.bf16 %v2062_v25, %v2050_v7  ;;  %v22241_v14 = vld [vmem:[#allocation25_spill] sm:$0xff]  ;;  %v22318_v28 = vand.u32 4294901760, %v19356_v63 }
 0x2c7   :  { %15228 = vmatprep.subr.bf16.mxu1 %v22237_v40  ;;  %15420 = vmatprep.subr.bf16.mxu0 %v19525_v21  ;;  %v2074_v47 = vand.u32 4294901760, %v2073_v31  ;;  %v22243_v40 = vld [vmem:[#allocation27_spill] sm:$0xff]  ;;  %v22245_v26 = vld [vmem:[#allocation29_spill] sm:$0xff]  ;;  %22251 = vst [vmem:[#allocation120_spill] sm:$0xff] %v19585_v8  ;;  %v22307_v21 = vld [vmem:[#allocation88_spill] sm:$0xff] }
 0x2c8   :  { %22240 = vst [vmem:[#allocation117_spill] sm:$0xff] %v19561_v30  ;;  %v19565_v59 = vpack.c.bf16 %v2080_v16, %v2068_v10  ;;  %v22246_v25 = vld [vmem:[#allocation31_spill] sm:$0xff]  ;;  %v22247_v7 = vld [vmem:[#allocation33_spill] sm:$0xff]  ;;  %v19591_v10 = vpack.c.bf16 %v19340_v33, %v19335_v43  ;;  %v19599_v16 = vpack.c.bf16 %v19356_v63, %v19345_v60  ;;  %v19727_v18 = vpack.c.bf16 %v22318_v28, %v22317_v12 }
 0x2c9   :  { %v19569_v6 = vpack.c.bf16 %v2086_v37, %v2074_v47  ;;  %v22250_v31 = vld [vmem:[#allocation43_spill] sm:$0xff]  ;;  %v19605_v47 = vpack.c.bf16 %v19366_v52, %v19361_v49  ;;  %v19613_v37 = vpack.c.bf16 %v19382_v13, %v19377_v20  ;;  %v22325_v60 = vand.u32 4294901760, %v19377_v20  ;;  %v22328_v12 = vld [vmem:[#allocation45_spill] sm:$0xff] }
 0x2ca   :  { %15230 = vmatpush1.bf16.msra.mxu1 %v22239_v2  ;;  %15422 = vmatpush1.bf16.msra.mxu0 %v19545_v0  ;;  %22242 = vst [vmem:[#allocation118_spill] sm:$0xff] %v19565_v59  ;;  %22252 = vst [vmem:[#allocation121_spill] sm:$0xff] %v19591_v10  ;;  %v22306_v2 = vld [vmem:[#allocation34_spill] sm:$0xff]  ;;  %v22326_v63 = vand.u32 4294901760, %v19382_v13  ;;  %v22333_v20 = vand.u32 4294901760, %v19427_v41  ;;  %v22334_v13 = vand.u32 4294901760, %v19432_v32 }
 0x2cb   :  { %15232 = vmatprep.subr.bf16.mxu1 %v22241_v14  ;;  %15424 = vmatprep.subr.bf16.mxu0 %v19557_v35  ;;  %22244 = vst [vmem:[#allocation119_spill] sm:$0xff] %v19569_v6  ;;  %22253 = vst [vmem:[#allocation122_spill] sm:$0xff] %v19599_v16  ;;  %v22303_v35 = vld [vmem:[#allocation85_spill] sm:$0xff] }
 0x2cc   :  { %22254 = vst [vmem:[#allocation123_spill] sm:$0xff] %v19605_v47  ;;  %22255 = vst [vmem:[#allocation124_spill] sm:$0xff] %v19613_v37  ;;  %v22304_v14 = vand.u32 4294901760, %v22303_v35  ;;  %v22313_v35 = vand.u32 4294901760, %v19340_v33  ;;  %v22321_v33 = vand.u32 4294901760, %v19361_v49  ;;  %v22329_v49 = vand.u32 4294901760, %v19387_v29 }
 0x2ce   :  { %15234 = vmatpush1.bf16.msra.mxu1 %v22243_v40  ;;  %15426 = vmatpush1.bf16.msra.mxu0 %v19561_v30  ;;  %v22301_v30 = vld [vmem:[#allocation84_spill] sm:$0xff] }
 0x2cf   :  { %15236 = vmatprep.subr.bf16.mxu1 %v22245_v26  ;;  %15428 = vmatprep.subr.bf16.mxu0 %v19565_v59  ;;  %v22299_v59 = vld [vmem:[#allocation32_spill] sm:$0xff]  ;;  %v22300_v26 = vld [vmem:[#allocation87_spill] sm:$0xff]  ;;  %v22302_v40 = vand.u32 4294901760, %v22301_v30  ;;  %v22312_v30 = vand.u32 4294901760, %v19335_v43  ;;  %v22322_v43 = vand.u32 4294901760, %v19366_v52  ;;  %v22330_v52 = vand.u32 4294901760, %v19392_v11 }
 0x2d1   :  { %v19701_v0 = vpack.c.bf16 %v22304_v14, %v22302_v40  ;;  %v19717_v14 = vpack.c.bf16 %v22313_v35, %v22312_v30  ;;  %v22315_v40 = vld [vmem:[#allocation109_spill] sm:$0xff]  ;;  %v19735_v30 = vpack.c.bf16 %v22322_v43, %v22321_v33  ;;  %v22324_v35 = vld [vmem:[#allocation44_spill] sm:$0xff]  ;;  %v19753_v28 = vpack.c.bf16 %v22330_v52, %v22329_v49  ;;  %v22332_v33 = vld [vmem:[#allocation46_spill] sm:$0xff] }
 0x2d2   :  { %15238 = vmatpush1.bf16.msra.mxu1 %v22246_v25  ;;  %15430 = vmatpush1.bf16.msra.mxu0 %v19569_v6  ;;  %v22297_v6 = vld [vmem:[#allocation30_spill] sm:$0xff]  ;;  %v19761_v43 = vpack.c.bf16 %v22334_v13, %v22333_v20  ;;  %v22340_v49 = vld [vmem:[#allocation48_spill] sm:$0xff]  ;;  %v22344_v20 = vld [vmem:[#allocation49_spill] sm:$0xff] }
 0x2d3   :  { %15240 = vmatprep.subr.bf16.mxu1 %v22247_v7  ;;  %15432 = vmatprep.subr.bf16.mxu0 %v19285_v44  ;;  %v22295_v44 = vld [vmem:[#allocation28_spill] sm:$0xff]  ;;  %v22296_v7 = vld [vmem:[#allocation83_spill] sm:$0xff]  ;;  %v22298_v25 = vld [vmem:[#allocation86_spill] sm:$0xff] }
 0x2d6   :  { %15242 = vmatpush1.bf16.msra.mxu1 %v22248_v9  ;;  %15434 = vmatpush1.bf16.msra.mxu0 %v19291_v55  ;;  %v22293_v55 = vld [vmem:[#allocation26_spill] sm:$0xff]  ;;  %v22294_v9 = vld [vmem:[#allocation81_spill] sm:$0xff] }
 0x2d7   :  { %15244 = vmatprep.subr.bf16.mxu1 %v22249_v19  ;;  %15436 = vmatprep.subr.bf16.mxu0 %v19296_v45  ;;  %v22291_v45 = vld [vmem:[#allocation24_spill] sm:$0xff] }
 0x2d8   :  { %v22292_v19 = vld [vmem:[#allocation80_spill] sm:$0xff] }
 0x2da   :  { %15246 = vmatpush1.bf16.msra.mxu1 %v22250_v31  ;;  %15438 = vmatpush1.bf16.msra.mxu0 %v19302_v22  ;;  %v22289_v22 = vld [vmem:[#allocation22_spill] sm:$0xff]  ;;  %v22290_v31 = vld [vmem:[#allocation79_spill] sm:$0xff] }
 0x2db   :  { %15248 = vmatprep.subr.bf16.mxu1 %v18796_v54  ;;  %15440 = vmatprep.subr.bf16.mxu0 %v19300_v58  ;;  %v22287_v58 = vld [vmem:[#allocation20_spill] sm:$0xff]  ;;  %v22288_v54 = vld [vmem:[#allocation78_spill] sm:$0xff] }
 0x2dd   :  { %1315 = vmatmul.mubr.f32.vlgmr.msra.gmra.mrb[2].mxu1 %v19404_v4  ;;  %2170 = vmatmul.mubr.f32.vlgmr.msra.gmra.mrb[2].mxu0 %v19404_v4 }
 0x2de   :  { %15250 = vmatpush1.bf16.msra.mxu1 %v18803_v3  ;;  %15442 = vmatpush1.bf16.msra.mxu0 %v19585_v8  ;;  %v22285_v8 = vld [vmem:[#allocation18_spill] sm:$0xff]  ;;  %v22286_v3 = vld [vmem:[#allocation77_spill] sm:$0xff] }
 0x2df   :  { %15252 = vmatprep.subr.bf16.mxu1 %v18894_v36  ;;  %15444 = vmatprep.subr.bf16.mxu0 %v19591_v10  ;;  %v19619_v10 = vpack.c.bf16 %v19392_v11, %v19387_v29  ;;  %v22284_v36 = vld [vmem:[#allocation76_spill] sm:$0xff]  ;;  %v22337_v29 = vand.u32 4294901760, %v19437_v53  ;;  %v22338_v11 = vand.u32 4294901760, %v19445_v48 }
 0x2e0   :  { %1449 = vmatprep.mubr.f32.mxu1 %v22057_v51  ;;  %2304 = vmatprep.mubr.f32.mxu0 %v22057_v51 }
 0x2e1   :  { %22256 = vst [vmem:[#allocation125_spill] sm:$0xff] %v19619_v10 }
 0x2e2   :  { %15254 = vmatpush1.bf16.msra.mxu1 %v18906_v24  ;;  %15446 = vmatpush1.bf16.msra.mxu0 %v19599_v16  ;;  %v19625_v24 = vpack.c.bf16 %v19432_v32, %v19427_v41  ;;  %v22283_v16 = vld [vmem:[#allocation15_spill] sm:$0xff]  ;;  %v22341_v41 = vand.u32 4294901760, %v19469_v56  ;;  %v22342_v32 = vand.u32 4294901760, %v19474_v57 }
 0x2e3   :  { %15256 = vmatprep.subr.bf16.mxu1 %v18912_v23  ;;  %15448 = vmatprep.subr.bf16.mxu0 %v19605_v47  ;;  %v19631_v23 = vpack.c.bf16 %v19445_v48, %v19437_v53  ;;  %v22282_v47 = vld [vmem:[#allocation75_spill] sm:$0xff]  ;;  %v22345_v53 = vand.u32 4294901760, %v19480_v42  ;;  %v22346_v48 = vand.u32 4294901760, %v19485_v46 }
 0x2e4   :  { %22257 = vst [vmem:[#allocation126_spill] sm:$0xff] %v19625_v24  ;;  %v19777_v52 = vpack.c.bf16 %v22342_v32, %v22341_v41  ;;  %v22352_v41 = vld [vmem:[#allocation51_spill] sm:$0xff]  ;;  %v22353_v32 = vld [vmem:[#allocation90_spill] sm:$0xff] }
 0x2e5   :  { %22258 = vst [vmem:[#allocation127_spill] sm:$0xff] %v19631_v23  ;;  %v19785_v13 = vpack.c.bf16 %v22346_v48, %v22345_v53  ;;  %v22358_v48 = vld [vmem:[#allocation52_spill] sm:$0xff] }
 0x2e6   :  { %15258 = vmatpush1.bf16.msra.mxu1 %v18919_v27  ;;  %15450 = vmatpush1.bf16.msra.mxu0 %v19613_v37  ;;  %v19637_v27 = vpack.c.bf16 %v19474_v57, %v19469_v56  ;;  %v22264_v37 = vld [vmem:[#allocation66_spill] sm:$0xff]  ;;  %v22349_v56 = vand.u32 4294901760, %v19504_v1  ;;  %v22350_v57 = vand.u32 4294901760, %v19509_v34 }
 0x2e7   :  { %15260 = vmatprep.subr.bf16.mxu1 %v18924_v39  ;;  %15452 = vmatprep.subr.bf16.mxu0 %v19619_v10  ;;  %v19643_v39 = vpack.c.bf16 %v19485_v46, %v19480_v42  ;;  %v22261_v10 = vld [vmem:[#allocation64_spill] sm:$0xff]  ;;  %v22354_v42 = vand.u32 4294901760, %v22353_v32 }
 0x2e8   :  { %22259 = vst [vmem:[#allocation128_spill] sm:$0xff] %v19637_v27 }
 0x2e9   :  { %22260 = vst [vmem:[#allocation129_spill] sm:$0xff] %v19643_v39 }
 0x2ea   :  { %15262 = vmatpush1.bf16.msra.mxu1 %v18931_v50  ;;  %15454 = vmatpush1.bf16.msra.mxu0 %v19625_v24  ;;  %v19649_v50 = vpack.c.bf16 %v19509_v34, %v19504_v1  ;;  %v22263_v24 = vld [vmem:[#allocation65_spill] sm:$0xff] }
 0x2eb   :  { %15264 = vmatprep.subr.bf16.mxu1 %v18936_v62  ;;  %15456 = vmatprep.subr.bf16.mxu0 %v19631_v23  ;;  %v22265_v23 = vld [vmem:[#allocation67_spill] sm:$0xff]  ;;  %v22266_v62 = vld [vmem:[#allocation68_spill] sm:$0xff] }
 0x2ec   :  { %22262 = vst [vmem:[#allocation130_spill] sm:$0xff] %v19649_v50 }
 0x2ee   :  { %15266 = vmatpush1.bf16.msra.mxu1 %v22261_v10  ;;  %15458 = vmatpush1.bf16.msra.mxu0 %v19637_v27  ;;  %v22267_v27 = vld [vmem:[#allocation69_spill] sm:$0xff]  ;;  %v22268_v10 = vld [vmem:[#allocation35_spill] sm:$0xff] }
 0x2ef   :  { %15268 = vmatprep.subr.bf16.mxu1 %v22263_v24  ;;  %15460 = vmatprep.subr.bf16.mxu0 %v19643_v39  ;;  %v22269_v24 = vld [vmem:[#allocation106_spill] sm:$0xff] }
 0x2f0   :  { %v22270_v39 = vld [vmem:[#allocation6_spill] sm:$0xff] }
 0x2f1   :  { %22305 = vst [vmem:[#allocation6_spill] sm:$0xff] %v19701_v0 }
 0x2f2   :  { %15270 = vmatpush1.bf16.msra.mxu1 %v22264_v37  ;;  %15462 = vmatpush1.bf16.msra.mxu0 %v19649_v50  ;;  %v22271_v37 = vld [vmem:[#allocation70_spill] sm:$0xff]  ;;  %v22272_v50 = vld [vmem:[#allocation108_spill] sm:$0xff] }
 0x2f3   :  { %15272 = vmatprep.subr.bf16.mxu1 %v22265_v23  ;;  %15464 = vmatprep.subr.bf16.mxu0 %v19306_v38  ;;  %v22273_v38 = vld [vmem:[#allocation7_spill] sm:$0xff]  ;;  %v22280_v23 = vld [vmem:[#allocation74_spill] sm:$0xff]  ;;  %22310 = vst [vmem:[#allocation70_spill] sm:$0xff] %v19709_v17  ;;  %22314 = vst [vmem:[#allocation108_spill] sm:$0xff] %v19717_v14 }
 0x2f4   :  { %22319 = vst [vmem:[#allocation7_spill] sm:$0xff] %v19727_v18  ;;  %22347 = vst [vmem:[#allocation74_spill] sm:$0xff] %v19785_v13 }
 0x2f6   :  { %15274 = vmatpush1.bf16.msra.mxu1 %v22266_v62  ;;  %15466 = vmatpush1.bf16.msra.mxu0 %v19310_v15  ;;  %v22274_v62 = vld [vmem:[#allocation71_spill] sm:$0xff]  ;;  %v22275_v15 = vld [vmem:[#allocation8_spill] sm:$0xff] }
 0x2f7   :  { %15276 = vmatprep.subr.bf16.mxu1 %v22267_v27  ;;  %15468 = vmatprep.subr.bf16.mxu0 %v19314_v5  ;;  %v22276_v27 = vld [vmem:[#allocation72_spill] sm:$0xff]  ;;  %v22279_v5 = vld [vmem:[#allocation13_spill] sm:$0xff]  ;;  %22323 = vst [vmem:[#allocation71_spill] sm:$0xff] %v19735_v30 }
 0x2f8   :  { %22331 = vst [vmem:[#allocation72_spill] sm:$0xff] %v19753_v28  ;;  %22343 = vst [vmem:[#allocation13_spill] sm:$0xff] %v19777_v52 }
 0x2fa   :  { %15278 = vmatpush1.bf16.msra.mxu1 %v22268_v10  ;;  %15470 = vmatpush1.bf16.msra.mxu0 %v22269_v24  ;;  %v22277_v24 = vld [vmem:[#allocation9_spill] sm:$0xff] }
 0x2fb   :  { %15280 = vmatprep.subr.bf16.mxu1 %v22270_v39  ;;  %15472 = vmatprep.subr.bf16.mxu0 %v22271_v37  ;;  %v22278_v10 = vld [vmem:[#allocation73_spill] sm:$0xff]  ;;  %22335 = vst [vmem:[#allocation9_spill] sm:$0xff] %v19761_v43 }
 0x2fd   :  { %1452 = vmatmul.mubr.f32.vlgmr.msra.gmra.mrb[2].mxu1 %v22272_v50  ;;  %2307 = vmatmul.mubr.f32.vlgmr.msra.gmra.mrb[2].mxu0 %v22272_v50  ;;  %v22281_v50 = vld [vmem:[#allocation14_spill] sm:$0xff] }
 0x2fe   :  { %15282 = vmatpush1.bf16.msra.mxu1 %v22273_v38  ;;  %15474 = vmatpush1.bf16.msra.mxu0 %v22274_v62 }
 0x2ff   :  { %15284 = vmatprep.subr.bf16.mxu1 %v22275_v15  ;;  %15476 = vmatprep.subr.bf16.mxu0 %v22276_v27 }
 0x300   :  { %1554 = vmatprep.mubr.f32.mxu1 %v22057_v51  ;;  %2409 = vmatprep.mubr.f32.mxu0 %v22057_v51 }
 0x302   :  { %15286 = vmatpush1.bf16.msra.mxu1 %v22277_v24  ;;  %15478 = vmatpush1.bf16.msra.mxu0 %v22278_v10 }
 0x303   :  { %15288 = vmatprep.subr.bf16.mxu1 %v22279_v5  ;;  %15480 = vmatprep.subr.bf16.mxu0 %v22280_v23 }
 0x306   :  { %15290 = vmatpush1.bf16.msra.mxu1 %v22281_v50  ;;  %15482 = vmatpush1.bf16.msra.mxu0 %v22282_v47 }
 0x307   :  { %15292 = vmatprep.subr.bf16.mxu1 %v22283_v16  ;;  %15484 = vmatprep.subr.bf16.mxu0 %v22284_v36 }
 0x30a   :  { %15294 = vmatpush1.bf16.msra.mxu1 %v22285_v8  ;;  %15486 = vmatpush1.bf16.msra.mxu0 %v22286_v3 }
 0x30b   :  { %15296 = vmatprep.subr.bf16.mxu1 %v22287_v58  ;;  %15488 = vmatprep.subr.bf16.mxu0 %v22288_v54 }
 0x30e   :  { %15298 = vmatpush1.bf16.msra.mxu1 %v22289_v22  ;;  %15490 = vmatpush1.bf16.msra.mxu0 %v22290_v31 }
 0x30f   :  { %15300 = vmatprep.subr.bf16.mxu1 %v22291_v45  ;;  %15492 = vmatprep.subr.bf16.mxu0 %v22292_v19 }
 0x312   :  { %15302 = vmatpush1.bf16.msra.mxu1 %v22293_v55  ;;  %15494 = vmatpush1.bf16.msra.mxu0 %v22294_v9 }
 0x313   :  { %15304 = vmatprep.subr.bf16.mxu1 %v22295_v44  ;;  %15496 = vmatprep.subr.bf16.mxu0 %v22296_v7 }
 0x316   :  { %15306 = vmatpush1.bf16.msra.mxu1 %v22297_v6  ;;  %15498 = vmatpush1.bf16.msra.mxu0 %v22298_v25  ;;  %v22311_v25 = vld [vmem:[#allocation40_spill] sm:$0xff] }
 0x317   :  { %15308 = vmatprep.subr.bf16.mxu1 %v22299_v59  ;;  %15500 = vmatprep.subr.bf16.mxu0 %v22300_v26 }
 0x31a   :  { %15310 = vmatpush1.bf16.msra.mxu1 %v22306_v2  ;;  %15502 = vmatpush1.bf16.msra.mxu0 %v22307_v21  ;;  %v22316_v21 = vld [vmem:[#allocation41_spill] sm:$0xff] }
 0x31b   :  { %15312 = vmatprep.subr.bf16.mxu1 %v22311_v25  ;;  %15504 = vmatprep.subr.bf16.mxu0 %v19701_v0 }
 0x31d   :  { %1558 = vmatmul.mubr.f32.vlgmr.msra.gmra.mrb[2].mxu1 %v22315_v40  ;;  %2413 = vmatmul.mubr.f32.vlgmr.msra.gmra.mrb[2].mxu0 %v22315_v40  ;;  %v19745_v40 = vpack.c.bf16 %v22326_v63, %v22325_v60  ;;  %v22336_v60 = vld [vmem:[#allocation47_spill] sm:$0xff]  ;;  %v19769_v63 = vpack.c.bf16 %v22338_v11, %v22337_v29  ;;  %v22348_v29 = vld [vmem:[#allocation50_spill] sm:$0xff]  ;;  %v19793_v11 = vpack.c.bf16 %v22350_v57, %v22349_v56  ;;  %v22364_v57 = vld [vmem:[#allocation53_spill] sm:$0xff] }
 0x31e   :  { %15314 = vmatpush1.bf16.msra.mxu1 %v22316_v21  ;;  %15506 = vmatpush1.bf16.msra.mxu0 %v19709_v17 }
 0x31f   :  { %15316 = vmatprep.subr.bf16.mxu1 %v22320_v61  ;;  %15508 = vmatprep.subr.bf16.mxu0 %v19717_v14  ;;  %22327 = vst [vmem:[#allocation8_spill] sm:$0xff] %v19745_v40  ;;  %22339 = vst [vmem:[#allocation73_spill] sm:$0xff] %v19769_v63 }
 0x320   :  { %1724 = vmatprep.mubr.f32.mxu1 %v22057_v51  ;;  %2579 = vmatprep.mubr.f32.mxu0 %v22057_v51  ;;  %22351 = vst [vmem:[#allocation14_spill] sm:$0xff] %v19793_v11 }
 0x322   :  { %15318 = vmatpush1.bf16.msra.mxu1 %v22324_v35  ;;  %15510 = vmatpush1.bf16.msra.mxu0 %v19727_v18 }
 0x323   :  { %15320 = vmatprep.subr.bf16.mxu1 %v22328_v12  ;;  %15512 = vmatprep.subr.bf16.mxu0 %v19735_v30 }
 0x326   :  { %15322 = vmatpush1.bf16.msra.mxu1 %v22332_v33  ;;  %15514 = vmatpush1.bf16.msra.mxu0 %v19745_v40 }
 0x327   :  { %15324 = vmatprep.subr.bf16.mxu1 %v22336_v60  ;;  %15516 = vmatprep.subr.bf16.mxu0 %v19753_v28 }
 0x32a   :  { %15326 = vmatpush1.bf16.msra.mxu1 %v22340_v49  ;;  %15518 = vmatpush1.bf16.msra.mxu0 %v19761_v43 }
 0x32b   :  { %15328 = vmatprep.subr.bf16.mxu1 %v22344_v20  ;;  %15520 = vmatprep.subr.bf16.mxu0 %v19769_v63  ;;  %v22355_v63 = vld [vmem:[#allocation91_spill] sm:$0xff] }
 0x32c   :  { %v22356_v46 = vand.u32 4294901760, %v22355_v63 }
 0x32e   :  { %15330 = vmatpush1.bf16.msra.mxu1 %v22348_v29  ;;  %15522 = vmatpush1.bf16.msra.mxu0 %v19777_v52  ;;  %v19801_v53 = vpack.c.bf16 %v22356_v46, %v22354_v42  ;;  %v22359_v52 = vld [vmem:[#allocation92_spill] sm:$0xff]  ;;  %v22361_v29 = vld [vmem:[#allocation93_spill] sm:$0xff]  ;;  %v22370_v46 = vld [vmem:[#allocation54_spill] sm:$0xff] }
 0x32f   :  { %15332 = vmatprep.subr.bf16.mxu1 %v22352_v41  ;;  %15524 = vmatprep.subr.bf16.mxu0 %v19785_v13  ;;  %v22360_v1 = vand.u32 4294901760, %v22359_v52  ;;  %v22362_v34 = vand.u32 4294901760, %v22361_v29  ;;  %v22365_v13 = vld [vmem:[#allocation94_spill] sm:$0xff]  ;;  %v22367_v41 = vld [vmem:[#allocation95_spill] sm:$0xff] }
 0x330   :  { %22357 = vst [vmem:[#allocation75_spill] sm:$0xff] %v19801_v53  ;;  %v22366_v32 = vand.u32 4294901760, %v22365_v13  ;;  %v22368_v63 = vand.u32 4294901760, %v22367_v41  ;;  %v22378_v13 = vld [vmem:[#allocation86_spill] sm:$0xff]  ;;  %v22381_v41 = vld [vmem:[#allocation89_spill] sm:$0xff] }
 0x331   :  { %v19809_v56 = vpack.c.bf16 %v22362_v34, %v22360_v1  ;;  %v22376_v34 = vld [vmem:[#allocation56_spill] sm:$0xff] }
 0x332   :  { %15334 = vmatpush1.bf16.msra.mxu1 %v22358_v48  ;;  %15526 = vmatpush1.bf16.msra.mxu0 %v19793_v11  ;;  %v19817_v42 = vpack.c.bf16 %v22368_v63, %v22366_v32  ;;  %v22371_v11 = vld [vmem:[#allocation96_spill] sm:$0xff]  ;;  %v22373_v48 = vld [vmem:[#allocation97_spill] sm:$0xff] }
 0x333   :  { %22363 = vst [vmem:[#allocation15_spill] sm:$0xff] %v19809_v56  ;;  %15336 = vmatprep.subr.bf16.mxu1 %v22364_v57  ;;  %15528 = vmatprep.subr.bf16.mxu0 %v19801_v53  ;;  %v22372_v52 = vand.u32 4294901760, %v22371_v11  ;;  %v22374_v29 = vand.u32 4294901760, %v22373_v48  ;;  %v22377_v53 = vld [vmem:[#allocation57_spill] sm:$0xff]  ;;  %v22379_v11 = vld [vmem:[#allocation88_spill] sm:$0xff]  ;;  %v2725_v48 = vlaneseq }
 0x334   :  { %22369 = vst [vmem:[#allocation76_spill] sm:$0xff] %v19817_v42 }
 0x335   :  { %v19825_v1 = vpack.c.bf16 %v22374_v29, %v22372_v52  ;;  %v2726_v32 = vshrl.u32 %v2725_v48, 7  ;;  %v36_v52 = vld [vmem:[%s21640_s2] sm:$0x3] }
 0x336   :  { %15338 = vmatpush1.bf16.msra.mxu1 %v22370_v46  ;;  %15530 = vmatpush1.bf16.msra.mxu0 %v19809_v56 }
 0x337   :  { %22375 = vst [vmem:[#allocation18_spill] sm:$0xff] %v19825_v1  ;;  %15340 = vmatprep.subr.bf16.mxu1 %v22376_v34  ;;  %15532 = vmatprep.subr.bf16.mxu0 %v19817_v42  ;;  %v2727_v63 = vsub.s32 0, %v2726_v32 }
 0x339   :  { %v19908_v29 = vrot.slane %v36_v52, %v2727_v63 }
 0x33a   :  { %15342 = vmatpush1.bf16.msra.mxu1 %v22377_v53  ;;  %15534 = vmatpush1.bf16.msra.mxu0 %v19825_v1  ;;  %v14809_v1 = vld.sshfl [vmem:[%s21638_s0 + $0x4] sm:$0x33 pattern:$0x76325410]  ;;  %v2731_v53 = vsub.s32 1, %v2726_v32 }
 0x33b   :  { %15344 = vmatprep.subr.bf16.mxu1 %v22270_v39  ;;  %15536 = vmatprep.subr.bf16.mxu0 %v22271_v37  ;;  %22382 = vst [vmem:[#allocation77_spill] sm:$0xff] %v19908_v29  ;;  %v2701_v46 = vcombine.high %v14809_v1, %v14809_v1 }
 0x33c   :  { %v19914_v57 = vrot.slane %v36_v52, %v2731_v53 }
 0x33d   :  { %1726 = vmatmul.mubr.f32.vlgmr.msra.gmra.mrb[2].mxu1 %v19404_v4  ;;  %2581 = vmatmul.mubr.f32.vlgmr.msra.gmra.mrb[2].mxu0 %v19404_v4 }
 0x33e   :  { %15346 = vmatpush1.bf16.msra.mxu1 %v22273_v38  ;;  %15538 = vmatpush1.bf16.msra.mxu0 %v22274_v62 }
 0x33f   :  { %15348 = vmatprep.subr.bf16.mxu1 %v22275_v15  ;;  %15540 = vmatprep.subr.bf16.mxu0 %v22276_v27 }
 0x340   :  { %1828 = vmatprep.mubr.f32.mxu1 %v22057_v51  ;;  %2683 = vmatprep.mubr.f32.mxu0 %v22057_v51 }
 0x342   :  { %15350 = vmatpush1.bf16.msra.mxu1 %v22277_v24  ;;  %15542 = vmatpush1.bf16.msra.mxu0 %v22278_v10 }
 0x343   :  { %15352 = vmatprep.subr.bf16.mxu1 %v22279_v5  ;;  %15544 = vmatprep.subr.bf16.mxu0 %v22280_v23 }
 0x346   :  { %15354 = vmatpush1.bf16.msra.mxu1 %v22281_v50  ;;  %15546 = vmatpush1.bf16.msra.mxu0 %v22282_v47 }
 0x347   :  { %15356 = vmatprep.subr.bf16.mxu1 %v22283_v16  ;;  %15548 = vmatprep.subr.bf16.mxu0 %v22284_v36 }
 0x34a   :  { %15358 = vmatpush1.bf16.msra.mxu1 %v22285_v8  ;;  %15550 = vmatpush1.bf16.msra.mxu0 %v22286_v3 }
 0x34b   :  { %15360 = vmatprep.subr.bf16.mxu1 %v22287_v58  ;;  %15552 = vmatprep.subr.bf16.mxu0 %v22288_v54 }
 0x34e   :  { %15362 = vmatpush1.bf16.msra.mxu1 %v22289_v22  ;;  %15554 = vmatpush1.bf16.msra.mxu0 %v22290_v31 }
 0x34f   :  { %15364 = vmatprep.subr.bf16.mxu1 %v22291_v45  ;;  %15556 = vmatprep.subr.bf16.mxu0 %v22292_v19 }
 0x352   :  { %15366 = vmatpush1.bf16.msra.mxu1 %v22293_v55  ;;  %15558 = vmatpush1.bf16.msra.mxu0 %v22294_v9 }
 0x353   :  { %15368 = vmatprep.subr.bf16.mxu1 %v22295_v44  ;;  %15560 = vmatprep.subr.bf16.mxu0 %v22296_v7 }
 0x356   :  { %15370 = vmatpush1.bf16.msra.mxu1 %v22297_v6  ;;  %15562 = vmatpush1.bf16.msra.mxu0 %v22378_v13 }
 0x357   :  { %15372 = vmatprep.subr.bf16.mxu1 %v22299_v59  ;;  %15564 = vmatprep.subr.bf16.mxu0 %v22300_v26 }
 0x35a   :  { %15374 = vmatpush1.bf16.msra.mxu1 %v22306_v2  ;;  %15566 = vmatpush1.bf16.msra.mxu0 %v22379_v11 }
 0x35b   :  { %15568 = vmatprep.subr.bf16.mxu1 %v22270_v39  ;;  %15760 = vmatprep.subr.bf16.mxu0 %v22271_v37 }
 0x35d   :  { %1830 = vmatmul.mubr.f32.vlgmr.msra.gmra.mrb[2].mxu1 %v19404_v4  ;;  %2685 = vmatmul.mubr.f32.vlgmr.msra.gmra.mrb[2].mxu0 %v19404_v4  ;;  %v22380_v4 = vld [vmem:[#allocation10_spill] sm:$0xff] }
 0x35e   :  { %15570 = vmatpush1.bf16.msra.mxu1 %v22273_v38  ;;  %15762 = vmatpush1.bf16.msra.mxu0 %v22274_v62 }
 0x35f   :  { %15572 = vmatprep.subr.bf16.mxu1 %v22275_v15  ;;  %15764 = vmatprep.subr.bf16.mxu0 %v22276_v27 }
 0x360   :  { %2856 = vmatprep.mubr.f32.mxu1 %v22057_v51  ;;  %3711 = vmatprep.mubr.f32.mxu0 %v22057_v51 }
 0x362   :  { %15574 = vmatpush1.bf16.msra.mxu1 %v22277_v24  ;;  %15766 = vmatpush1.bf16.msra.mxu0 %v22278_v10 }
 0x363   :  { %15576 = vmatprep.subr.bf16.mxu1 %v22279_v5  ;;  %15768 = vmatprep.subr.bf16.mxu0 %v22280_v23 }
 0x366   :  { %15578 = vmatpush1.bf16.msra.mxu1 %v22281_v50  ;;  %15770 = vmatpush1.bf16.msra.mxu0 %v22282_v47 }
 0x367   :  { %15580 = vmatprep.subr.bf16.mxu1 %v22283_v16  ;;  %15772 = vmatprep.subr.bf16.mxu0 %v22284_v36 }
 0x36a   :  { %15582 = vmatpush1.bf16.msra.mxu1 %v22285_v8  ;;  %15774 = vmatpush1.bf16.msra.mxu0 %v22286_v3 }
 0x36b   :  { %15584 = vmatprep.subr.bf16.mxu1 %v22287_v58  ;;  %15776 = vmatprep.subr.bf16.mxu0 %v22288_v54 }
 0x36e   :  { %15586 = vmatpush1.bf16.msra.mxu1 %v22289_v22  ;;  %15778 = vmatpush1.bf16.msra.mxu0 %v22290_v31 }
 0x36f   :  { %15588 = vmatprep.subr.bf16.mxu1 %v22291_v45  ;;  %15780 = vmatprep.subr.bf16.mxu0 %v22292_v19 }
 0x372   :  { %15590 = vmatpush1.bf16.msra.mxu1 %v22293_v55  ;;  %15782 = vmatpush1.bf16.msra.mxu0 %v22294_v9 }
 0x373   :  { %15592 = vmatprep.subr.bf16.mxu1 %v22295_v44  ;;  %15784 = vmatprep.subr.bf16.mxu0 %v22296_v7 }
 0x376   :  { %15594 = vmatpush1.bf16.msra.mxu1 %v22297_v6  ;;  %15786 = vmatpush1.bf16.msra.mxu0 %v22378_v13 }
 0x377   :  { %15596 = vmatprep.subr.bf16.mxu1 %v22299_v59  ;;  %15788 = vmatprep.subr.bf16.mxu0 %v22300_v26 }
 0x37a   :  { %15598 = vmatpush1.bf16.msra.mxu1 %v22306_v2  ;;  %15790 = vmatpush1.bf16.msra.mxu0 %v22379_v11 }
 0x37b   :  { %15600 = vmatprep.subr.bf16.mxu1 %v22380_v4  ;;  %15792 = vmatprep.subr.bf16.mxu0 %v22381_v41 }
 0x430   :  { %v1831_v42 = vpop.f32.mrb[2].mxu1  ;;  %v2686_v34 = vpop.f32.mrb[2].mxu0 }
 0x431   :  { %v2704_v56 = vadd.f32 %v14809_v1, %v1831_v42  ;;  %v2735_v4 = vadd.f32 %v19908_v29, %v2686_v34  ;;  %v1833_v41 = vpop.f32.mrb[3].mxu1  ;;  %v2688_v48 = vpop.f32.mrb[3].mxu0 }
 0x432   :  { %v2705_v63 = vadd.f32 %v2701_v46, %v1833_v41  ;;  %v2736_v49 = vadd.f32 %v19914_v57, %v2688_v48 }
 0x433   :  { %v2706_v20 = vmul.f32 0.5, %v2704_v56  ;;  %v2737_v43 = vmul.f32 0.5, %v2735_v4 }
 0x435   :  { %18320 = vtanh.f32 %v2706_v20  ;;  %v2707_v20 = vmul.f32 0.5, %v2705_v63 }
 0x436   :  { %18322 = vtanh.f32 %v2737_v43  ;;  %v22383_v43 = vld [vmem:[#allocation82_spill] sm:$0xff] }
 0x437   :  { %18324 = vtanh.f32 %v2705_v63 }
 0x438   :  { %18326 = vtanh.f32 %v2736_v49 }
 0x439   :  { %18328 = vtanh.f32 %v2707_v20 }
 0x43f   :  { %v18321_v32 = vpop.eup %18320 }
 0x440   :  { %v18323_v28 = vpop.eup %18322  ;;  %v2710_v60 = vadd.f32 1.0, %v18321_v32  ;;  %v2738_v32 = vmul.f32 0.5, %v2736_v49 }
 0x441   :  { %v2741_v42 = vadd.f32 1.0, %v18323_v28  ;;  %v18325_v34 = vpop.eup %18324 }
 0x442   :  { %v2712_v40 = vmul.f32 0.5, %v2710_v60  ;;  %v18327_v1 = vpop.eup %18326 }
 0x443   :  { %v2743_v29 = vmul.f32 0.5, %v2741_v42  ;;  %v18329_v28 = vpop.eup %18328 }
 0x444   :  { %v2716_v33 = vmul.f32 %v18325_v34, %v2712_v40  ;;  %v2715_v56 = vmul.f32 %v2712_v40, %v22383_v43  ;;  %v2711_v60 = vadd.f32 1.0, %v18329_v28 }
 0x445   :  { %v2747_v53 = vmul.f32 %v18327_v1, %v2743_v29  ;;  %v2746_v42 = vmul.f32 0.0, %v2743_v29 }
 0x446   :  { %2718 = vrot.lane.b32.xlu1 %v2716_v33, %s18468_s9  ;;  %v2713_v41 = vmul.f32 0.5, %v2711_v60 }
 0x44a   :  { %2749 = vrot.lane.b32.xlu1 %v2747_v53, %s18468_s9 }
 0x4b8   :  { %v2719_v46 = vpop.permute.xlu1 %2718 }
 0x4b9   :  { %v19920_v4 = vadd.f32 %v2719_v46, %v2715_v56 }
 0x4bb   :  { %18330 = vtanh.f32 %v19920_v4 }
 0x4bc   :  { %v2750_v33 = vpop.permute.xlu1 %2749  ;;  %18332 = vtanh.f32 %v2738_v32  ;;  %v22387_v32 = vld [vmem:[#allocation110_spill] sm:$0xff] }
 0x4bd   :  { %v19924_v63 = vadd.f32 %v2750_v33, %v2746_v42  ;;  %v22388_v33 = vld [vmem:[#allocation16_spill] sm:$0xff]  ;;  %v22389_v42 = vld [vmem:[#allocation111_spill] sm:$0xff] }
 0x4bf   :  { %18334 = vtanh.f32 %v19924_v63 }
 0x4c5   :  { %v18331_v52 = vpop.eup %18330 }
 0x4c6   :  { %v2723_v48 = vmul.f32 %v18331_v52, %v2713_v41  ;;  %v18333_v40 = vpop.eup %18332  ;;  %v22384_v41 = vld [vmem:[#allocation11_spill] sm:$0xff] }
 0x4c7   :  { %v2742_v34 = vadd.f32 1.0, %v18333_v40  ;;  %v22385_v52 = vld [vmem:[#allocation107_spill] sm:$0xff]  ;;  %v22390_v40 = vld [vmem:[#allocation17_spill] sm:$0xff] }
 0x4c8   :  { %2756 = vrot.lane.b32.xlu0 %v2723_v48, %s18468_s9  ;;  %v22386_v48 = vld [vmem:[#allocation12_spill] sm:$0xff] }
 0x4c9   :  { %v18335_v1 = vpop.eup %18334  ;;  %v2744_v53 = vmul.f32 0.5, %v2742_v34  ;;  %v22391_v34 = vld [vmem:[#allocation112_spill] sm:$0xff] }
 0x4cb   :  { %v2754_v20 = vmul.f32 %v18335_v1, %v2744_v53  ;;  %v22392_v1 = vld [vmem:[#allocation19_spill] sm:$0xff]  ;;  %v22393_v53 = vld [vmem:[#allocation113_spill] sm:$0xff] }
 0x53a   :  { %v2757_v43 = vpop.permute.xlu0 %2756 }
 0x53b   :  { %v2759_v56 = vsel %vm979_vm0, %v2757_v43, %v2754_v20  ;;  %v22394_v20 = vld [vmem:[#allocation21_spill] sm:$0xff]  ;;  %v22395_v43 = vld [vmem:[#allocation114_spill] sm:$0xff] }
 0x53c   :  { %v19928_v46 = vand.u32 4294901760, %v2759_v56 }
 0x53e   :  { %v19931_v28 = vsub.f32 %v2759_v56, %v19928_v46  ;;  %v22396_v56 = vld [vmem:[#allocation23_spill] sm:$0xff] }
 0x540   :  { %v19934_v49 = vand.u32 4294901760, %v19931_v28 }
 0x542   :  { %v2860_v29 = vsub.f32 %v19931_v28, %v19934_v49 }
 0x544   :  { %v2861_v60 = vand.u32 4294901760, %v2860_v29  ;;  %v22397_v29 = vld [vmem:[#allocation115_spill] sm:$0xff] }
 0x546   :  { %2862 = vmatmul.mubr.f32.vlgmr.msra.gmra.mrb[4].mxu1 %v2861_v60  ;;  %3717 = vmatmul.mubr.f32.vlgmr.msra.gmra.mrb[4].mxu0 %v2861_v60  ;;  %v22398_v60 = vld [vmem:[#allocation25_spill] sm:$0xff] }
 0x547   :  { %15602 = vmatpush1.bf16.msra.mxu1 %v22384_v41  ;;  %15794 = vmatpush1.bf16.msra.mxu0 %v22385_v52 }
 0x548   :  { %15604 = vmatprep.subr.bf16.mxu1 %v22386_v48  ;;  %15796 = vmatprep.subr.bf16.mxu0 %v22387_v32 }
 0x549   :  { %3092 = vmatprep.mubr.f32.mxu1 %v22057_v51  ;;  %3947 = vmatprep.mubr.f32.mxu0 %v22057_v51 }
 0x54b   :  { %15606 = vmatpush1.bf16.msra.mxu1 %v22388_v33  ;;  %15798 = vmatpush1.bf16.msra.mxu0 %v22389_v42  ;;  %v22399_v33 = vld [vmem:[#allocation116_spill] sm:$0xff]  ;;  %v22400_v42 = vld [vmem:[#allocation27_spill] sm:$0xff] }
 0x54c   :  { %15608 = vmatprep.subr.bf16.mxu1 %v22390_v40  ;;  %15800 = vmatprep.subr.bf16.mxu0 %v22391_v34  ;;  %v22401_v40 = vld [vmem:[#allocation117_spill] sm:$0xff] }
 0x54d   :  { %v22402_v34 = vld [vmem:[#allocation29_spill] sm:$0xff] }
 0x54f   :  { %15610 = vmatpush1.bf16.msra.mxu1 %v22392_v1  ;;  %15802 = vmatpush1.bf16.msra.mxu0 %v22393_v53  ;;  %v22403_v1 = vld [vmem:[#allocation118_spill] sm:$0xff]  ;;  %v22404_v53 = vld [vmem:[#allocation31_spill] sm:$0xff] }
 0x550   :  { %15612 = vmatprep.subr.bf16.mxu1 %v22394_v20  ;;  %15804 = vmatprep.subr.bf16.mxu0 %v22395_v43  ;;  %v22405_v20 = vld [vmem:[#allocation119_spill] sm:$0xff]  ;;  %v22406_v43 = vld [vmem:[#allocation33_spill] sm:$0xff] }
 0x553   :  { %15614 = vmatpush1.bf16.msra.mxu1 %v22396_v56  ;;  %15806 = vmatpush1.bf16.msra.mxu0 %v22397_v29  ;;  %v22407_v56 = vld [vmem:[#allocation98_spill] sm:$0xff]  ;;  %v22408_v29 = vld [vmem:[#allocation36_spill] sm:$0xff] }
 0x554   :  { %15616 = vmatprep.subr.bf16.mxu1 %v22398_v60  ;;  %15808 = vmatprep.subr.bf16.mxu0 %v22399_v33  ;;  %v22409_v60 = vld [vmem:[#allocation99_spill] sm:$0xff]  ;;  %v22410_v33 = vld [vmem:[#allocation37_spill] sm:$0xff] }
 0x557   :  { %15618 = vmatpush1.bf16.msra.mxu1 %v22400_v42  ;;  %15810 = vmatpush1.bf16.msra.mxu0 %v22401_v40  ;;  %v22411_v42 = vld [vmem:[#allocation100_spill] sm:$0xff]  ;;  %v22412_v40 = vld [vmem:[#allocation43_spill] sm:$0xff] }
 0x558   :  { %15620 = vmatprep.subr.bf16.mxu1 %v22402_v34  ;;  %15812 = vmatprep.subr.bf16.mxu0 %v22403_v1  ;;  %v22413_v34 = vld [vmem:[#allocation102_spill] sm:$0xff] }
 0x559   :  { %v22414_v1 = vld [vmem:[#allocation38_spill] sm:$0xff] }
 0x55b   :  { %15622 = vmatpush1.bf16.msra.mxu1 %v22404_v53  ;;  %15814 = vmatpush1.bf16.msra.mxu0 %v22405_v20  ;;  %v22415_v53 = vld [vmem:[#allocation101_spill] sm:$0xff]  ;;  %v22430_v20 = vld [vmem:[#allocation63_spill] sm:$0xff] }
 0x55c   :  { %15624 = vmatprep.subr.bf16.mxu1 %v22406_v43  ;;  %15816 = vmatprep.subr.bf16.mxu0 %v22407_v56  ;;  %v22416_v56 = vld [vmem:[#allocation39_spill] sm:$0xff]  ;;  %v22429_v43 = vld [vmem:[#allocation126_spill] sm:$0xff] }
 0x55f   :  { %15626 = vmatpush1.bf16.msra.mxu1 %v22408_v29  ;;  %15818 = vmatpush1.bf16.msra.mxu0 %v22409_v60  ;;  %v22417_v29 = vld [vmem:[#allocation120_spill] sm:$0xff]  ;;  %v22418_v60 = vld [vmem:[#allocation55_spill] sm:$0xff] }
 0x560   :  { %15628 = vmatprep.subr.bf16.mxu1 %v22410_v33  ;;  %15820 = vmatprep.subr.bf16.mxu0 %v22411_v42  ;;  %v22419_v33 = vld [vmem:[#allocation121_spill] sm:$0xff]  ;;  %v22424_v42 = vld [vmem:[#allocation60_spill] sm:$0xff] }
 0x563   :  { %15630 = vmatpush1.bf16.msra.mxu1 %v22412_v40  ;;  %15822 = vmatpush1.bf16.msra.mxu0 %v22413_v34  ;;  %v22420_v34 = vld [vmem:[#allocation58_spill] sm:$0xff]  ;;  %v22423_v40 = vld [vmem:[#allocation123_spill] sm:$0xff] }
 0x564   :  { %15632 = vmatprep.subr.bf16.mxu1 %v22414_v1  ;;  %15824 = vmatprep.subr.bf16.mxu0 %v22415_v53  ;;  %v22421_v1 = vld [vmem:[#allocation122_spill] sm:$0xff]  ;;  %v22422_v53 = vld [vmem:[#allocation59_spill] sm:$0xff] }
 0x566   :  { %3094 = vmatmul.mubr.f32.vlgmr.msra.gmra.mrb[4].mxu1 %v19928_v46  ;;  %3949 = vmatmul.mubr.f32.vlgmr.msra.gmra.mrb[4].mxu0 %v19928_v46 }
 0x567   :  { %15634 = vmatpush1.bf16.msra.mxu1 %v22416_v56  ;;  %15826 = vmatpush1.bf16.msra.mxu0 %v22417_v29  ;;  %v22425_v56 = vld [vmem:[#allocation124_spill] sm:$0xff]  ;;  %v22426_v29 = vld [vmem:[#allocation61_spill] sm:$0xff] }
 0x568   :  { %15636 = vmatprep.subr.bf16.mxu1 %v22418_v60  ;;  %15828 = vmatprep.subr.bf16.mxu0 %v22419_v33  ;;  %v22427_v60 = vld [vmem:[#allocation125_spill] sm:$0xff]  ;;  %v22428_v33 = vld [vmem:[#allocation62_spill] sm:$0xff] }
 0x569   :  { %3228 = vmatprep.mubr.f32.mxu1 %v22057_v51  ;;  %4083 = vmatprep.mubr.f32.mxu0 %v22057_v51 }
 0x56b   :  { %15638 = vmatpush1.bf16.msra.mxu1 %v22420_v34  ;;  %15830 = vmatpush1.bf16.msra.mxu0 %v22421_v1  ;;  %v22431_v34 = vld [vmem:[#allocation127_spill] sm:$0xff]  ;;  %v22432_v1 = vld [vmem:[#allocation64_spill] sm:$0xff] }
 0x56c   :  { %15640 = vmatprep.subr.bf16.mxu1 %v22422_v53  ;;  %15832 = vmatprep.subr.bf16.mxu0 %v22423_v40  ;;  %v22433_v53 = vld [vmem:[#allocation128_spill] sm:$0xff]  ;;  %v22434_v40 = vld [vmem:[#allocation65_spill] sm:$0xff] }
 0x56f   :  { %15642 = vmatpush1.bf16.msra.mxu1 %v22424_v42  ;;  %15834 = vmatpush1.bf16.msra.mxu0 %v22425_v56  ;;  %v22435_v42 = vld [vmem:[#allocation129_spill] sm:$0xff]  ;;  %v22436_v56 = vld [vmem:[#allocation66_spill] sm:$0xff] }
 0x570   :  { %15644 = vmatprep.subr.bf16.mxu1 %v22426_v29  ;;  %15836 = vmatprep.subr.bf16.mxu0 %v22427_v60  ;;  %v22437_v29 = vld [vmem:[#allocation130_spill] sm:$0xff]  ;;  %v22438_v60 = vld [vmem:[#allocation67_spill] sm:$0xff] }
 0x573   :  { %15646 = vmatpush1.bf16.msra.mxu1 %v22428_v33  ;;  %15838 = vmatpush1.bf16.msra.mxu0 %v22429_v43  ;;  %v22439_v33 = vld [vmem:[#allocation103_spill] sm:$0xff]  ;;  %v22440_v43 = vld [vmem:[#allocation68_spill] sm:$0xff] }
 0x574   :  { %15648 = vmatprep.subr.bf16.mxu1 %v22430_v20  ;;  %15840 = vmatprep.subr.bf16.mxu0 %v22431_v34  ;;  %v22441_v20 = vld [vmem:[#allocation104_spill] sm:$0xff]  ;;  %v22442_v34 = vld [vmem:[#allocation69_spill] sm:$0xff] }
 0x577   :  { %15650 = vmatpush1.bf16.msra.mxu1 %v22432_v1  ;;  %15842 = vmatpush1.bf16.msra.mxu0 %v22433_v53  ;;  %v22443_v1 = vld [vmem:[#allocation105_spill] sm:$0xff]  ;;  %v22444_v53 = vld [vmem:[#allocation35_spill] sm:$0xff] }
 0x578   :  { %15652 = vmatprep.subr.bf16.mxu1 %v22434_v40  ;;  %15844 = vmatprep.subr.bf16.mxu0 %v22435_v42  ;;  %v22445_v40 = vld [vmem:[#allocation106_spill] sm:$0xff] }
 0x57b   :  { %15654 = vmatpush1.bf16.msra.mxu1 %v22436_v56  ;;  %15846 = vmatpush1.bf16.msra.mxu0 %v22437_v29 }
 0x57c   :  { %15656 = vmatprep.subr.bf16.mxu1 %v22438_v60  ;;  %15848 = vmatprep.subr.bf16.mxu0 %v22439_v33 }
 0x57f   :  { %15658 = vmatpush1.bf16.msra.mxu1 %v22440_v43  ;;  %15850 = vmatpush1.bf16.msra.mxu0 %v22441_v20 }
 0x580   :  { %15660 = vmatprep.subr.bf16.mxu1 %v22442_v34  ;;  %15852 = vmatprep.subr.bf16.mxu0 %v22443_v1 }
 0x583   :  { %15662 = vmatpush1.bf16.msra.mxu1 %v22444_v53  ;;  %15854 = vmatpush1.bf16.msra.mxu0 %v22445_v40 }
 0x584   :  { %15664 = vmatprep.subr.bf16.mxu1 %v22270_v39  ;;  %15856 = vmatprep.subr.bf16.mxu0 %v22271_v37 }
 0x586   :  { %3231 = vmatmul.mubr.f32.vlgmr.msra.gmra.mrb[4].mxu1 %v19931_v28  ;;  %4086 = vmatmul.mubr.f32.vlgmr.msra.gmra.mrb[4].mxu0 %v19931_v28  ;;  %v22446_v28 = vld [vmem:[#allocation46_spill] sm:$0xff] }
 0x587   :  { %15666 = vmatpush1.bf16.msra.mxu1 %v22273_v38  ;;  %15858 = vmatpush1.bf16.msra.mxu0 %v22274_v62 }
 0x588   :  { %15668 = vmatprep.subr.bf16.mxu1 %v22275_v15  ;;  %15860 = vmatprep.subr.bf16.mxu0 %v22276_v27 }
 0x589   :  { %3333 = vmatprep.mubr.f32.mxu1 %v22057_v51  ;;  %4188 = vmatprep.mubr.f32.mxu0 %v22057_v51 }
 0x58b   :  { %15670 = vmatpush1.bf16.msra.mxu1 %v22277_v24  ;;  %15862 = vmatpush1.bf16.msra.mxu0 %v22278_v10 }
 0x58c   :  { %15672 = vmatprep.subr.bf16.mxu1 %v22279_v5  ;;  %15864 = vmatprep.subr.bf16.mxu0 %v22280_v23 }
 0x58f   :  { %15674 = vmatpush1.bf16.msra.mxu1 %v22281_v50  ;;  %15866 = vmatpush1.bf16.msra.mxu0 %v22282_v47 }
 0x590   :  { %15676 = vmatprep.subr.bf16.mxu1 %v22283_v16  ;;  %15868 = vmatprep.subr.bf16.mxu0 %v22284_v36 }
 0x593   :  { %15678 = vmatpush1.bf16.msra.mxu1 %v22285_v8  ;;  %15870 = vmatpush1.bf16.msra.mxu0 %v22286_v3 }
 0x594   :  { %15680 = vmatprep.subr.bf16.mxu1 %v22287_v58  ;;  %15872 = vmatprep.subr.bf16.mxu0 %v22288_v54 }
 0x597   :  { %15682 = vmatpush1.bf16.msra.mxu1 %v22289_v22  ;;  %15874 = vmatpush1.bf16.msra.mxu0 %v22290_v31 }
 0x598   :  { %15684 = vmatprep.subr.bf16.mxu1 %v22291_v45  ;;  %15876 = vmatprep.subr.bf16.mxu0 %v22292_v19 }
 0x59b   :  { %15686 = vmatpush1.bf16.msra.mxu1 %v22293_v55  ;;  %15878 = vmatpush1.bf16.msra.mxu0 %v22294_v9 }
 0x59c   :  { %15688 = vmatprep.subr.bf16.mxu1 %v22295_v44  ;;  %15880 = vmatprep.subr.bf16.mxu0 %v22296_v7 }
 0x59f   :  { %15690 = vmatpush1.bf16.msra.mxu1 %v22297_v6  ;;  %15882 = vmatpush1.bf16.msra.mxu0 %v22378_v13 }
 0x5a0   :  { %15692 = vmatprep.subr.bf16.mxu1 %v22299_v59  ;;  %15884 = vmatprep.subr.bf16.mxu0 %v22300_v26 }
 0x5a3   :  { %15694 = vmatpush1.bf16.msra.mxu1 %v22306_v2  ;;  %15886 = vmatpush1.bf16.msra.mxu0 %v22379_v11 }
 0x5a4   :  { %15696 = vmatprep.subr.bf16.mxu1 %v22311_v25  ;;  %15888 = vmatprep.subr.bf16.mxu0 %v19701_v0  ;;  %v22452_v0 = vld [vmem:[#allocation49_spill] sm:$0xff] }
 0x5a6   :  { %3337 = vmatmul.mubr.f32.vlgmr.msra.gmra.mrb[4].mxu1 %v19934_v49  ;;  %4192 = vmatmul.mubr.f32.vlgmr.msra.gmra.mrb[4].mxu0 %v19934_v49  ;;  %v22447_v49 = vld [vmem:[#allocation8_spill] sm:$0xff] }
 0x5a7   :  { %15698 = vmatpush1.bf16.msra.mxu1 %v22316_v21  ;;  %15890 = vmatpush1.bf16.msra.mxu0 %v19709_v17  ;;  %v22448_v17 = vld [vmem:[#allocation47_spill] sm:$0xff]  ;;  %v22451_v21 = vld [vmem:[#allocation9_spill] sm:$0xff] }
 0x5a8   :  { %15700 = vmatprep.subr.bf16.mxu1 %v22320_v61  ;;  %15892 = vmatprep.subr.bf16.mxu0 %v19717_v14  ;;  %v22449_v61 = vld [vmem:[#allocation72_spill] sm:$0xff] }
 0x5a9   :  { %3503 = vmatprep.mubr.f32.mxu1 %v22057_v51  ;;  %4358 = vmatprep.mubr.f32.mxu0 %v22057_v51  ;;  %v22450_v14 = vld [vmem:[#allocation48_spill] sm:$0xff] }
 0x5ab   :  { %15702 = vmatpush1.bf16.msra.mxu1 %v22324_v35  ;;  %15894 = vmatpush1.bf16.msra.mxu0 %v19727_v18  ;;  %v22453_v35 = vld [vmem:[#allocation73_spill] sm:$0xff]  ;;  %v22454_v18 = vld [vmem:[#allocation50_spill] sm:$0xff] }
 0x5ac   :  { %15704 = vmatprep.subr.bf16.mxu1 %v22328_v12  ;;  %15896 = vmatprep.subr.bf16.mxu0 %v19735_v30  ;;  %v22455_v12 = vld [vmem:[#allocation13_spill] sm:$0xff]  ;;  %v22456_v30 = vld [vmem:[#allocation51_spill] sm:$0xff] }
 0x5af   :  { %15706 = vmatpush1.bf16.msra.mxu1 %v22446_v28  ;;  %15898 = vmatpush1.bf16.msra.mxu0 %v22447_v49  ;;  %v22457_v28 = vld [vmem:[#allocation74_spill] sm:$0xff]  ;;  %v22458_v49 = vld [vmem:[#allocation52_spill] sm:$0xff] }
 0x5b0   :  { %15708 = vmatprep.subr.bf16.mxu1 %v22448_v17  ;;  %15900 = vmatprep.subr.bf16.mxu0 %v22449_v61  ;;  %v22459_v17 = vld [vmem:[#allocation14_spill] sm:$0xff]  ;;  %v22460_v61 = vld [vmem:[#allocation53_spill] sm:$0xff] }
 0x5b3   :  { %15710 = vmatpush1.bf16.msra.mxu1 %v22450_v14  ;;  %15902 = vmatpush1.bf16.msra.mxu0 %v22451_v21  ;;  %v22461_v14 = vld [vmem:[#allocation75_spill] sm:$0xff]  ;;  %v22462_v21 = vld [vmem:[#allocation54_spill] sm:$0xff] }
 0x5b4   :  { %15712 = vmatprep.subr.bf16.mxu1 %v22452_v0  ;;  %15904 = vmatprep.subr.bf16.mxu0 %v22453_v35  ;;  %v22463_v0 = vld [vmem:[#allocation15_spill] sm:$0xff]  ;;  %v22464_v35 = vld [vmem:[#allocation56_spill] sm:$0xff] }
 0x5b7   :  { %15714 = vmatpush1.bf16.msra.mxu1 %v22454_v18  ;;  %15906 = vmatpush1.bf16.msra.mxu0 %v22455_v12  ;;  %v22465_v18 = vld [vmem:[#allocation76_spill] sm:$0xff]  ;;  %v22466_v12 = vld [vmem:[#allocation57_spill] sm:$0xff] }
 0x5b8   :  { %15716 = vmatprep.subr.bf16.mxu1 %v22456_v30  ;;  %15908 = vmatprep.subr.bf16.mxu0 %v22457_v28  ;;  %v22467_v30 = vld [vmem:[#allocation18_spill] sm:$0xff] }
 0x5bb   :  { %15718 = vmatpush1.bf16.msra.mxu1 %v22458_v49  ;;  %15910 = vmatpush1.bf16.msra.mxu0 %v22459_v17 }
 0x5bc   :  { %15720 = vmatprep.subr.bf16.mxu1 %v22460_v61  ;;  %15912 = vmatprep.subr.bf16.mxu0 %v22461_v14 }
 0x5bf   :  { %15722 = vmatpush1.bf16.msra.mxu1 %v22462_v21  ;;  %15914 = vmatpush1.bf16.msra.mxu0 %v22463_v0  ;;  %v22470_v21 = vld [vmem:[#allocation77_spill] sm:$0xff] }
 0x5c0   :  { %15724 = vmatprep.subr.bf16.mxu1 %v22464_v35  ;;  %15916 = vmatprep.subr.bf16.mxu0 %v22465_v18 }
 0x5c3   :  { %15726 = vmatpush1.bf16.msra.mxu1 %v22466_v12  ;;  %15918 = vmatpush1.bf16.msra.mxu0 %v22467_v30  ;;  %v22469_v30 = vld [vmem:[#allocation89_spill] sm:$0xff]  ;;  %v14811_v12 = vld.sshfl [vmem:[%s21638_s0 + $0x8] sm:$0x33 pattern:$0x76325410] }
 0x5c4   :  { %15728 = vmatprep.subr.bf16.mxu1 %v22270_v39  ;;  %15920 = vmatprep.subr.bf16.mxu0 %v22271_v37  ;;  %v4480_v17 = vcombine.high %v14811_v12, %v14811_v12 }
 0x5c6   :  { %3505 = vmatmul.mubr.f32.vlgmr.msra.gmra.mrb[4].mxu1 %v19928_v46  ;;  %4360 = vmatmul.mubr.f32.vlgmr.msra.gmra.mrb[4].mxu0 %v19928_v46 }
 0x5c7   :  { %15730 = vmatpush1.bf16.msra.mxu1 %v22273_v38  ;;  %15922 = vmatpush1.bf16.msra.mxu0 %v22274_v62 }
 0x5c8   :  { %15732 = vmatprep.subr.bf16.mxu1 %v22275_v15  ;;  %15924 = vmatprep.subr.bf16.mxu0 %v22276_v27 }
 0x5c9   :  { %3607 = vmatprep.mubr.f32.mxu1 %v22057_v51  ;;  %4462 = vmatprep.mubr.f32.mxu0 %v22057_v51 }
 0x5cb   :  { %15734 = vmatpush1.bf16.msra.mxu1 %v22277_v24  ;;  %15926 = vmatpush1.bf16.msra.mxu0 %v22278_v10 }
 0x5cc   :  { %15736 = vmatprep.subr.bf16.mxu1 %v22279_v5  ;;  %15928 = vmatprep.subr.bf16.mxu0 %v22280_v23 }
 0x5cf   :  { %15738 = vmatpush1.bf16.msra.mxu1 %v22281_v50  ;;  %15930 = vmatpush1.bf16.msra.mxu0 %v22282_v47 }
 0x5d0   :  { %15740 = vmatprep.subr.bf16.mxu1 %v22283_v16  ;;  %15932 = vmatprep.subr.bf16.mxu0 %v22284_v36 }
 0x5d3   :  { %15742 = vmatpush1.bf16.msra.mxu1 %v22285_v8  ;;  %15934 = vmatpush1.bf16.msra.mxu0 %v22286_v3 }
 0x5d4   :  { %15744 = vmatprep.subr.bf16.mxu1 %v22287_v58  ;;  %15936 = vmatprep.subr.bf16.mxu0 %v22288_v54 }
 0x5d7   :  { %15746 = vmatpush1.bf16.msra.mxu1 %v22289_v22  ;;  %15938 = vmatpush1.bf16.msra.mxu0 %v22290_v31 }
 0x5d8   :  { %15748 = vmatprep.subr.bf16.mxu1 %v22291_v45  ;;  %15940 = vmatprep.subr.bf16.mxu0 %v22292_v19 }
 0x5db   :  { %15750 = vmatpush1.bf16.msra.mxu1 %v22293_v55  ;;  %15942 = vmatpush1.bf16.msra.mxu0 %v22294_v9 }
 0x5dc   :  { %15752 = vmatprep.subr.bf16.mxu1 %v22295_v44  ;;  %15944 = vmatprep.subr.bf16.mxu0 %v22296_v7 }
 0x5df   :  { %15754 = vmatpush1.bf16.msra.mxu1 %v22297_v6  ;;  %15946 = vmatpush1.bf16.msra.mxu0 %v22378_v13 }
 0x5e0   :  { %15756 = vmatprep.subr.bf16.mxu1 %v22299_v59  ;;  %15948 = vmatprep.subr.bf16.mxu0 %v22300_v26 }
 0x5e3   :  { %15758 = vmatpush1.bf16.msra.mxu1 %v22306_v2  ;;  %15950 = vmatpush1.bf16.msra.mxu0 %v22379_v11 }
 0x5e4   :  { %15952 = vmatprep.subr.bf16.mxu1 %v22270_v39  ;;  %16144 = vmatprep.subr.bf16.mxu0 %v22271_v37 }
 0x5e6   :  { %3609 = vmatmul.mubr.f32.vlgmr.msra.gmra.mrb[4].mxu1 %v19928_v46  ;;  %4464 = vmatmul.mubr.f32.vlgmr.msra.gmra.mrb[4].mxu0 %v19928_v46  ;;  %v22468_v46 = vld [vmem:[#allocation10_spill] sm:$0xff] }
 0x5e7   :  { %15954 = vmatpush1.bf16.msra.mxu1 %v22273_v38  ;;  %16146 = vmatpush1.bf16.msra.mxu0 %v22274_v62 }
 0x5e8   :  { %15956 = vmatprep.subr.bf16.mxu1 %v22275_v15  ;;  %16148 = vmatprep.subr.bf16.mxu0 %v22276_v27 }
 0x5e9   :  { %4624 = vmatprep.mubr.f32.mxu1 %v22057_v51  ;;  %5479 = vmatprep.mubr.f32.mxu0 %v22057_v51 }
 0x5eb   :  { %15958 = vmatpush1.bf16.msra.mxu1 %v22277_v24  ;;  %16150 = vmatpush1.bf16.msra.mxu0 %v22278_v10 }
 0x5ec   :  { %15960 = vmatprep.subr.bf16.mxu1 %v22279_v5  ;;  %16152 = vmatprep.subr.bf16.mxu0 %v22280_v23 }
 0x5ef   :  { %15962 = vmatpush1.bf16.msra.mxu1 %v22281_v50  ;;  %16154 = vmatpush1.bf16.msra.mxu0 %v22282_v47 }
 0x5f0   :  { %15964 = vmatprep.subr.bf16.mxu1 %v22283_v16  ;;  %16156 = vmatprep.subr.bf16.mxu0 %v22284_v36 }
 0x5f3   :  { %15966 = vmatpush1.bf16.msra.mxu1 %v22285_v8  ;;  %16158 = vmatpush1.bf16.msra.mxu0 %v22286_v3 }
 0x5f4   :  { %15968 = vmatprep.subr.bf16.mxu1 %v22287_v58  ;;  %16160 = vmatprep.subr.bf16.mxu0 %v22288_v54 }
 0x5f7   :  { %15970 = vmatpush1.bf16.msra.mxu1 %v22289_v22  ;;  %16162 = vmatpush1.bf16.msra.mxu0 %v22290_v31 }
 0x5f8   :  { %15972 = vmatprep.subr.bf16.mxu1 %v22291_v45  ;;  %16164 = vmatprep.subr.bf16.mxu0 %v22292_v19 }
 0x5fb   :  { %15974 = vmatpush1.bf16.msra.mxu1 %v22293_v55  ;;  %16166 = vmatpush1.bf16.msra.mxu0 %v22294_v9 }
 0x5fc   :  { %15976 = vmatprep.subr.bf16.mxu1 %v22295_v44  ;;  %16168 = vmatprep.subr.bf16.mxu0 %v22296_v7 }
 0x5ff   :  { %15978 = vmatpush1.bf16.msra.mxu1 %v22297_v6  ;;  %16170 = vmatpush1.bf16.msra.mxu0 %v22378_v13 }
 0x600   :  { %15980 = vmatprep.subr.bf16.mxu1 %v22299_v59  ;;  %16172 = vmatprep.subr.bf16.mxu0 %v22300_v26 }
 0x603   :  { %15982 = vmatpush1.bf16.msra.mxu1 %v22306_v2  ;;  %16174 = vmatpush1.bf16.msra.mxu0 %v22379_v11 }
 0x604   :  { %15984 = vmatprep.subr.bf16.mxu1 %v22468_v46  ;;  %16176 = vmatprep.subr.bf16.mxu0 %v22469_v30 }
 0x6b9   :  { %v3610_v18 = vpop.f32.mrb[4].mxu1  ;;  %v4465_v35 = vpop.f32.mrb[4].mxu0 }
 0x6ba   :  { %v4483_v0 = vadd.f32 %v14811_v12, %v3610_v18  ;;  %v4503_v14 = vadd.f32 %v4465_v35, %v22470_v21  ;;  %v3612_v61 = vpop.f32.mrb[5].mxu1  ;;  %v4467_v49 = vpop.f32.mrb[5].mxu0 }
 0x6bb   :  { %v4484_v11 = vadd.f32 %v4480_v17, %v3612_v61  ;;  %v4504_v46 = vadd.f32 %v4467_v49, %v19914_v57 }
 0x6bc   :  { %v4485_v28 = vmul.f32 0.5, %v4483_v0  ;;  %v4505_v25 = vmul.f32 0.5, %v4503_v14 }
 0x6bd   :  { %v4486_v17 = vmul.f32 0.5, %v4484_v11 }
 0x6be   :  { %18336 = vtanh.f32 %v4485_v28  ;;  %v4506_v28 = vmul.f32 0.5, %v4504_v46 }
 0x6bf   :  { %18338 = vtanh.f32 %v4505_v25 }
 0x6c0   :  { %18340 = vtanh.f32 %v4484_v11 }
 0x6c1   :  { %18342 = vtanh.f32 %v4504_v46 }
 0x6c2   :  { %18344 = vtanh.f32 %v4486_v17 }
 0x6c8   :  { %v18337_v30 = vpop.eup %18336 }
 0x6c9   :  { %v18339_v2 = vpop.eup %18338  ;;  %v4489_v26 = vadd.f32 1.0, %v18337_v30 }
 0x6ca   :  { %v4509_v59 = vadd.f32 1.0, %v18339_v2  ;;  %v18341_v18 = vpop.eup %18340 }
 0x6cb   :  { %v4491_v13 = vmul.f32 0.5, %v4489_v26  ;;  %v18343_v35 = vpop.eup %18342 }
 0x6cc   :  { %v4511_v6 = vmul.f32 0.5, %v4509_v59  ;;  %v18345_v2 = vpop.eup %18344 }
 0x6cd   :  { %v4495_v21 = vmul.f32 %v18341_v18, %v4491_v13  ;;  %v4494_v0 = vmul.f32 %v4491_v13, %v19920_v4  ;;  %v4490_v26 = vadd.f32 1.0, %v18345_v2 }
 0x6ce   :  { %v4515_v12 = vmul.f32 %v18343_v35, %v4511_v6  ;;  %v4514_v11 = vmul.f32 %v4511_v6, %v19924_v63 }
 0x6cf   :  { %4497 = vrot.lane.b32.xlu1 %v4495_v21, %s18468_s9  ;;  %v4492_v61 = vmul.f32 0.5, %v4490_v26  ;;  %v22471_v26 = vld [vmem:[#allocation16_spill] sm:$0xff] }
 0x6d0   :  { %4517 = vrot.lane.b32.xlu0 %v4515_v12, %s18468_s9 }
 0x741   :  { %v4498_v25 = vpop.permute.xlu1 %4497 }
 0x742   :  { %v20160_v14 = vadd.f32 %v4498_v25, %v4494_v0  ;;  %v4518_v21 = vpop.permute.xlu0 %4517 }
 0x743   :  { %v20165_v49 = vadd.f32 %v4518_v21, %v4514_v11  ;;  %v22476_v21 = vld [vmem:[#allocation113_spill] sm:$0xff] }
 0x744   :  { %18346 = vtanh.f32 %v20160_v14  ;;  %v22477_v11 = vld [vmem:[#allocation21_spill] sm:$0xff] }
 0x745   :  { %18348 = vtanh.f32 %v4506_v28  ;;  %v22475_v28 = vld [vmem:[#allocation19_spill] sm:$0xff] }
 0x746   :  { %18350 = vtanh.f32 %v20165_v49 }
 0x74e   :  { %v18347_v59 = vpop.eup %18346 }
 0x74f   :  { %v4502_v30 = vmul.f32 %v18347_v59, %v4492_v61  ;;  %v18349_v13 = vpop.eup %18348  ;;  %v22472_v61 = vld [vmem:[#allocation111_spill] sm:$0xff]  ;;  %v22473_v59 = vld [vmem:[#allocation17_spill] sm:$0xff] }
 0x750   :  { %v4510_v4 = vadd.f32 1.0, %v18349_v13  ;;  %v18351_v18 = vpop.eup %18350  ;;  %v22478_v13 = vld [vmem:[#allocation114_spill] sm:$0xff] }
 0x751   :  { %4524 = vrot.lane.b32.xlu1 %v4502_v30, %s18468_s9  ;;  %v22474_v30 = vld [vmem:[#allocation112_spill] sm:$0xff] }
 0x752   :  { %v4512_v35 = vmul.f32 0.5, %v4510_v4  ;;  %v22479_v4 = vld [vmem:[#allocation23_spill] sm:$0xff] }
 0x754   :  { %v4522_v12 = vmul.f32 %v18351_v18, %v4512_v35  ;;  %v22480_v18 = vld [vmem:[#allocation115_spill] sm:$0xff]  ;;  %v22481_v35 = vld [vmem:[#allocation25_spill] sm:$0xff] }
 0x7c3   :  { %v4525_v17 = vpop.permute.xlu1 %4524 }
 0x7c4   :  { %v4527_v0 = vsel %vm979_vm0, %v4525_v17, %v4522_v12  ;;  %v22482_v12 = vld [vmem:[#allocation116_spill] sm:$0xff]  ;;  %v22483_v17 = vld [vmem:[#allocation27_spill] sm:$0xff] }
 0x7c5   :  { %v20169_v25 = vand.u32 4294901760, %v4527_v0 }
 0x7c7   :  { %v20172_v46 = vsub.f32 %v4527_v0, %v20169_v25  ;;  %v22484_v0 = vld [vmem:[#allocation117_spill] sm:$0xff] }
 0x7c9   :  { %v20175_v2 = vand.u32 4294901760, %v20172_v46 }
 0x7cb   :  { %v4628_v6 = vsub.f32 %v20172_v46, %v20175_v2 }
 0x7cd   :  { %v4629_v63 = vand.u32 4294901760, %v4628_v6  ;;  %v22485_v6 = vld [vmem:[#allocation29_spill] sm:$0xff] }
 0x7cf   :  { %4630 = vmatmul.mubr.f32.vlgmr.msra.gmra.mrb[6].mxu1 %v4629_v63  ;;  %5485 = vmatmul.mubr.f32.vlgmr.msra.gmra.mrb[6].mxu0 %v4629_v63  ;;  %v22486_v63 = vld [vmem:[#allocation118_spill] sm:$0xff] }
 0x7d0   :  { %15986 = vmatpush1.bf16.msra.mxu1 %v22384_v41  ;;  %16178 = vmatpush1.bf16.msra.mxu0 %v22385_v52 }
 0x7d1   :  { %15988 = vmatprep.subr.bf16.mxu1 %v22386_v48  ;;  %16180 = vmatprep.subr.bf16.mxu0 %v22387_v32 }
 0x7d2   :  { %4860 = vmatprep.mubr.f32.mxu1 %v22057_v51  ;;  %5715 = vmatprep.mubr.f32.mxu0 %v22057_v51 }
 0x7d4   :  { %15990 = vmatpush1.bf16.msra.mxu1 %v22471_v26  ;;  %16182 = vmatpush1.bf16.msra.mxu0 %v22472_v61 }
 0x7d5   :  { %15992 = vmatprep.subr.bf16.mxu1 %v22473_v59  ;;  %16184 = vmatprep.subr.bf16.mxu0 %v22474_v30 }
 0x7d8   :  { %15994 = vmatpush1.bf16.msra.mxu1 %v22475_v28  ;;  %16186 = vmatpush1.bf16.msra.mxu0 %v22476_v21  ;;  %v22487_v21 = vld [vmem:[#allocation31_spill] sm:$0xff] }
 0x7d9   :  { %15996 = vmatprep.subr.bf16.mxu1 %v22477_v11  ;;  %16188 = vmatprep.subr.bf16.mxu0 %v22478_v13  ;;  %v22488_v11 = vld [vmem:[#allocation119_spill] sm:$0xff]  ;;  %v22489_v13 = vld [vmem:[#allocation33_spill] sm:$0xff] }
 0x7dc   :  { %15998 = vmatpush1.bf16.msra.mxu1 %v22479_v4  ;;  %16190 = vmatpush1.bf16.msra.mxu0 %v22480_v18  ;;  %v22490_v4 = vld [vmem:[#allocation98_spill] sm:$0xff]  ;;  %v22491_v18 = vld [vmem:[#allocation36_spill] sm:$0xff] }
 0x7dd   :  { %16000 = vmatprep.subr.bf16.mxu1 %v22481_v35  ;;  %16192 = vmatprep.subr.bf16.mxu0 %v22482_v12  ;;  %v22492_v35 = vld [vmem:[#allocation99_spill] sm:$0xff]  ;;  %v22493_v12 = vld [vmem:[#allocation37_spill] sm:$0xff] }
 0x7e0   :  { %16002 = vmatpush1.bf16.msra.mxu1 %v22483_v17  ;;  %16194 = vmatpush1.bf16.msra.mxu0 %v22484_v0  ;;  %v22494_v17 = vld [vmem:[#allocation100_spill] sm:$0xff]  ;;  %v22495_v0 = vld [vmem:[#allocation43_spill] sm:$0xff] }
 0x7e1   :  { %16004 = vmatprep.subr.bf16.mxu1 %v22485_v6  ;;  %16196 = vmatprep.subr.bf16.mxu0 %v22486_v63  ;;  %v22496_v6 = vld [vmem:[#allocation102_spill] sm:$0xff] }
 0x7e2   :  { %v22497_v63 = vld [vmem:[#allocation38_spill] sm:$0xff] }
 0x7e4   :  { %16006 = vmatpush1.bf16.msra.mxu1 %v22487_v21  ;;  %16198 = vmatpush1.bf16.msra.mxu0 %v22488_v11  ;;  %v22498_v21 = vld [vmem:[#allocation101_spill] sm:$0xff]  ;;  %v22513_v11 = vld [vmem:[#allocation63_spill] sm:$0xff] }
 0x7e5   :  { %16008 = vmatprep.subr.bf16.mxu1 %v22489_v13  ;;  %16200 = vmatprep.subr.bf16.mxu0 %v22490_v4  ;;  %v22499_v4 = vld [vmem:[#allocation39_spill] sm:$0xff]  ;;  %v22512_v13 = vld [vmem:[#allocation126_spill] sm:$0xff] }
 0x7e8   :  { %16010 = vmatpush1.bf16.msra.mxu1 %v22491_v18  ;;  %16202 = vmatpush1.bf16.msra.mxu0 %v22492_v35  ;;  %v22500_v18 = vld [vmem:[#allocation120_spill] sm:$0xff]  ;;  %v22501_v35 = vld [vmem:[#allocation55_spill] sm:$0xff] }
 0x7e9   :  { %16012 = vmatprep.subr.bf16.mxu1 %v22493_v12  ;;  %16204 = vmatprep.subr.bf16.mxu0 %v22494_v17  ;;  %v22502_v12 = vld [vmem:[#allocation121_spill] sm:$0xff]  ;;  %v22507_v17 = vld [vmem:[#allocation60_spill] sm:$0xff] }
 0x7ec   :  { %16014 = vmatpush1.bf16.msra.mxu1 %v22495_v0  ;;  %16206 = vmatpush1.bf16.msra.mxu0 %v22496_v6  ;;  %v22503_v6 = vld [vmem:[#allocation58_spill] sm:$0xff]  ;;  %v22506_v0 = vld [vmem:[#allocation123_spill] sm:$0xff] }
 0x7ed   :  { %16016 = vmatprep.subr.bf16.mxu1 %v22497_v63  ;;  %16208 = vmatprep.subr.bf16.mxu0 %v22498_v21  ;;  %v22504_v63 = vld [vmem:[#allocation122_spill] sm:$0xff]  ;;  %v22505_v21 = vld [vmem:[#allocation59_spill] sm:$0xff] }
 0x7ef   :  { %4862 = vmatmul.mubr.f32.vlgmr.msra.gmra.mrb[6].mxu1 %v20169_v25  ;;  %5717 = vmatmul.mubr.f32.vlgmr.msra.gmra.mrb[6].mxu0 %v20169_v25 }
 0x7f0   :  { %16018 = vmatpush1.bf16.msra.mxu1 %v22499_v4  ;;  %16210 = vmatpush1.bf16.msra.mxu0 %v22500_v18  ;;  %v22508_v4 = vld [vmem:[#allocation124_spill] sm:$0xff]  ;;  %v22509_v18 = vld [vmem:[#allocation61_spill] sm:$0xff] }
 0x7f1   :  { %16020 = vmatprep.subr.bf16.mxu1 %v22501_v35  ;;  %16212 = vmatprep.subr.bf16.mxu0 %v22502_v12  ;;  %v22510_v35 = vld [vmem:[#allocation125_spill] sm:$0xff]  ;;  %v22511_v12 = vld [vmem:[#allocation62_spill] sm:$0xff] }
 0x7f2   :  { %4996 = vmatprep.mubr.f32.mxu1 %v22057_v51  ;;  %5851 = vmatprep.mubr.f32.mxu0 %v22057_v51 }
 0x7f4   :  { %16022 = vmatpush1.bf16.msra.mxu1 %v22503_v6  ;;  %16214 = vmatpush1.bf16.msra.mxu0 %v22504_v63  ;;  %v22514_v6 = vld [vmem:[#allocation127_spill] sm:$0xff]  ;;  %v22515_v63 = vld [vmem:[#allocation64_spill] sm:$0xff] }
 0x7f5   :  { %16024 = vmatprep.subr.bf16.mxu1 %v22505_v21  ;;  %16216 = vmatprep.subr.bf16.mxu0 %v22506_v0  ;;  %v22516_v21 = vld [vmem:[#allocation128_spill] sm:$0xff]  ;;  %v22517_v0 = vld [vmem:[#allocation65_spill] sm:$0xff] }
 0x7f8   :  { %16026 = vmatpush1.bf16.msra.mxu1 %v22507_v17  ;;  %16218 = vmatpush1.bf16.msra.mxu0 %v22508_v4 }
 0x7f9   :  { %16028 = vmatprep.subr.bf16.mxu1 %v22509_v18  ;;  %16220 = vmatprep.subr.bf16.mxu0 %v22510_v35 }
 0x7fc   :  { %16030 = vmatpush1.bf16.msra.mxu1 %v22511_v12  ;;  %16222 = vmatpush1.bf16.msra.mxu0 %v22512_v13 }
 0x7fd   :  { %16032 = vmatprep.subr.bf16.mxu1 %v22513_v11  ;;  %16224 = vmatprep.subr.bf16.mxu0 %v22514_v6  ;;  %v22540_v6 = vld [vmem:[#allocation49_spill] sm:$0xff] }
 0x800   :  { %16034 = vmatpush1.bf16.msra.mxu1 %v22515_v63  ;;  %16226 = vmatpush1.bf16.msra.mxu0 %v22516_v21  ;;  %v22533_v21 = vld [vmem:[#allocation71_spill] sm:$0xff]  ;;  %v22539_v63 = vld [vmem:[#allocation9_spill] sm:$0xff] }
 0x801   :  { %16036 = vmatprep.subr.bf16.mxu1 %v22517_v0  ;;  %16228 = vmatprep.subr.bf16.mxu0 %v22435_v42  ;;  %v22529_v42 = vld [vmem:[#allocation108_spill] sm:$0xff] }
 0x802   :  { %v22530_v0 = vld [vmem:[#allocation44_spill] sm:$0xff] }
 0x804   :  { %16038 = vmatpush1.bf16.msra.mxu1 %v22436_v56  ;;  %16230 = vmatpush1.bf16.msra.mxu0 %v22437_v29  ;;  %v22527_v29 = vld [vmem:[#allocation70_spill] sm:$0xff] }
 0x805   :  { %16040 = vmatprep.subr.bf16.mxu1 %v22438_v60  ;;  %16232 = vmatprep.subr.bf16.mxu0 %v22439_v33  ;;  %v22525_v33 = vld [vmem:[#allocation6_spill] sm:$0xff]  ;;  %v22526_v60 = vld [vmem:[#allocation41_spill] sm:$0xff] }
 0x806   :  { %v22528_v56 = vld [vmem:[#allocation42_spill] sm:$0xff] }
 0x808   :  { %16042 = vmatpush1.bf16.msra.mxu1 %v22440_v43  ;;  %16234 = vmatpush1.bf16.msra.mxu0 %v22441_v20  ;;  %v22523_v20 = vld [vmem:[#allocation88_spill] sm:$0xff] }
 0x809   :  { %16044 = vmatprep.subr.bf16.mxu1 %v22442_v34  ;;  %16236 = vmatprep.subr.bf16.mxu0 %v22443_v1  ;;  %v22521_v1 = vld [vmem:[#allocation87_spill] sm:$0xff]  ;;  %v22522_v34 = vld [vmem:[#allocation34_spill] sm:$0xff]  ;;  %v22524_v43 = vld [vmem:[#allocation40_spill] sm:$0xff] }
 0x80c   :  { %16046 = vmatpush1.bf16.msra.mxu1 %v22444_v53  ;;  %16238 = vmatpush1.bf16.msra.mxu0 %v22445_v40  ;;  %v22519_v40 = vld [vmem:[#allocation86_spill] sm:$0xff]  ;;  %v22520_v53 = vld [vmem:[#allocation32_spill] sm:$0xff] }
 0x80d   :  { %16048 = vmatprep.subr.bf16.mxu1 %v22270_v39  ;;  %16240 = vmatprep.subr.bf16.mxu0 %v22271_v37 }
 0x80f   :  { %4999 = vmatmul.mubr.f32.vlgmr.msra.gmra.mrb[6].mxu1 %v20172_v46  ;;  %5854 = vmatmul.mubr.f32.vlgmr.msra.gmra.mrb[6].mxu0 %v20172_v46  ;;  %v22518_v46 = vld [vmem:[#allocation30_spill] sm:$0xff] }
 0x810   :  { %16050 = vmatpush1.bf16.msra.mxu1 %v22273_v38  ;;  %16242 = vmatpush1.bf16.msra.mxu0 %v22274_v62 }
 0x811   :  { %16052 = vmatprep.subr.bf16.mxu1 %v22275_v15  ;;  %16244 = vmatprep.subr.bf16.mxu0 %v22276_v27 }
 0x812   :  { %5101 = vmatprep.mubr.f32.mxu1 %v22057_v51  ;;  %5956 = vmatprep.mubr.f32.mxu0 %v22057_v51 }
 0x814   :  { %16054 = vmatpush1.bf16.msra.mxu1 %v22277_v24  ;;  %16246 = vmatpush1.bf16.msra.mxu0 %v22278_v10 }
 0x815   :  { %16056 = vmatprep.subr.bf16.mxu1 %v22279_v5  ;;  %16248 = vmatprep.subr.bf16.mxu0 %v22280_v23 }
 0x818   :  { %16058 = vmatpush1.bf16.msra.mxu1 %v22281_v50  ;;  %16250 = vmatpush1.bf16.msra.mxu0 %v22282_v47 }
 0x819   :  { %16060 = vmatprep.subr.bf16.mxu1 %v22283_v16  ;;  %16252 = vmatprep.subr.bf16.mxu0 %v22284_v36 }
 0x81c   :  { %16062 = vmatpush1.bf16.msra.mxu1 %v22285_v8  ;;  %16254 = vmatpush1.bf16.msra.mxu0 %v22286_v3 }
 0x81d   :  { %16064 = vmatprep.subr.bf16.mxu1 %v22287_v58  ;;  %16256 = vmatprep.subr.bf16.mxu0 %v22288_v54 }
 0x820   :  { %16066 = vmatpush1.bf16.msra.mxu1 %v22289_v22  ;;  %16258 = vmatpush1.bf16.msra.mxu0 %v22290_v31 }
 0x821   :  { %16068 = vmatprep.subr.bf16.mxu1 %v22291_v45  ;;  %16260 = vmatprep.subr.bf16.mxu0 %v22292_v19 }
 0x824   :  { %16070 = vmatpush1.bf16.msra.mxu1 %v22293_v55  ;;  %16262 = vmatpush1.bf16.msra.mxu0 %v22294_v9 }
 0x825   :  { %16072 = vmatprep.subr.bf16.mxu1 %v22295_v44  ;;  %16264 = vmatprep.subr.bf16.mxu0 %v22296_v7 }
 0x828   :  { %16074 = vmatpush1.bf16.msra.mxu1 %v22518_v46  ;;  %16266 = vmatpush1.bf16.msra.mxu0 %v22519_v40 }
 0x829   :  { %16076 = vmatprep.subr.bf16.mxu1 %v22520_v53  ;;  %16268 = vmatprep.subr.bf16.mxu0 %v22521_v1 }
 0x82c   :  { %16078 = vmatpush1.bf16.msra.mxu1 %v22522_v34  ;;  %16270 = vmatpush1.bf16.msra.mxu0 %v22523_v20 }
 0x82d   :  { %16080 = vmatprep.subr.bf16.mxu1 %v22524_v43  ;;  %16272 = vmatprep.subr.bf16.mxu0 %v22525_v33  ;;  %v22531_v43 = vld [vmem:[#allocation7_spill] sm:$0xff]  ;;  %v22532_v33 = vld [vmem:[#allocation45_spill] sm:$0xff] }
 0x82f   :  { %5105 = vmatmul.mubr.f32.vlgmr.msra.gmra.mrb[6].mxu1 %v20175_v2  ;;  %5960 = vmatmul.mubr.f32.vlgmr.msra.gmra.mrb[6].mxu0 %v20175_v2  ;;  %v22534_v2 = vld [vmem:[#allocation46_spill] sm:$0xff] }
 0x830   :  { %16082 = vmatpush1.bf16.msra.mxu1 %v22526_v60  ;;  %16274 = vmatpush1.bf16.msra.mxu0 %v22527_v29  ;;  %v22535_v60 = vld [vmem:[#allocation8_spill] sm:$0xff]  ;;  %v22536_v29 = vld [vmem:[#allocation47_spill] sm:$0xff] }
 0x831   :  { %16084 = vmatprep.subr.bf16.mxu1 %v22528_v56  ;;  %16276 = vmatprep.subr.bf16.mxu0 %v22529_v42  ;;  %v22537_v56 = vld [vmem:[#allocation72_spill] sm:$0xff] }
 0x832   :  { %5271 = vmatprep.mubr.f32.mxu1 %v22057_v51  ;;  %6126 = vmatprep.mubr.f32.mxu0 %v22057_v51  ;;  %v22538_v42 = vld [vmem:[#allocation48_spill] sm:$0xff] }
 0x834   :  { %16086 = vmatpush1.bf16.msra.mxu1 %v22530_v0  ;;  %16278 = vmatpush1.bf16.msra.mxu0 %v22531_v43  ;;  %v22541_v0 = vld [vmem:[#allocation73_spill] sm:$0xff]  ;;  %v22542_v43 = vld [vmem:[#allocation50_spill] sm:$0xff] }
 0x835   :  { %16088 = vmatprep.subr.bf16.mxu1 %v22532_v33  ;;  %16280 = vmatprep.subr.bf16.mxu0 %v22533_v21  ;;  %v22543_v33 = vld [vmem:[#allocation13_spill] sm:$0xff]  ;;  %v22544_v21 = vld [vmem:[#allocation51_spill] sm:$0xff] }
 0x838   :  { %16090 = vmatpush1.bf16.msra.mxu1 %v22534_v2  ;;  %16282 = vmatpush1.bf16.msra.mxu0 %v22535_v60  ;;  %v22545_v2 = vld [vmem:[#allocation74_spill] sm:$0xff]  ;;  %v22546_v60 = vld [vmem:[#allocation52_spill] sm:$0xff] }
 0x839   :  { %16092 = vmatprep.subr.bf16.mxu1 %v22536_v29  ;;  %16284 = vmatprep.subr.bf16.mxu0 %v22537_v56  ;;  %v22547_v29 = vld [vmem:[#allocation14_spill] sm:$0xff]  ;;  %v22548_v56 = vld [vmem:[#allocation53_spill] sm:$0xff] }
 0x83c   :  { %16094 = vmatpush1.bf16.msra.mxu1 %v22538_v42  ;;  %16286 = vmatpush1.bf16.msra.mxu0 %v22539_v63  ;;  %v22549_v42 = vld [vmem:[#allocation75_spill] sm:$0xff]  ;;  %v22550_v63 = vld [vmem:[#allocation54_spill] sm:$0xff] }
 0x83d   :  { %16096 = vmatprep.subr.bf16.mxu1 %v22540_v6  ;;  %16288 = vmatprep.subr.bf16.mxu0 %v22541_v0  ;;  %v22551_v6 = vld [vmem:[#allocation15_spill] sm:$0xff]  ;;  %v22552_v0 = vld [vmem:[#allocation56_spill] sm:$0xff] }
 0x840   :  { %16098 = vmatpush1.bf16.msra.mxu1 %v22542_v43  ;;  %16290 = vmatpush1.bf16.msra.mxu0 %v22543_v33  ;;  %v22553_v43 = vld [vmem:[#allocation76_spill] sm:$0xff]  ;;  %v22554_v33 = vld [vmem:[#allocation57_spill] sm:$0xff] }
 0x841   :  { %16100 = vmatprep.subr.bf16.mxu1 %v22544_v21  ;;  %16292 = vmatprep.subr.bf16.mxu0 %v22545_v2  ;;  %v22555_v21 = vld [vmem:[#allocation18_spill] sm:$0xff] }
 0x844   :  { %16102 = vmatpush1.bf16.msra.mxu1 %v22546_v60  ;;  %16294 = vmatpush1.bf16.msra.mxu0 %v22547_v29 }
 0x845   :  { %16104 = vmatprep.subr.bf16.mxu1 %v22548_v56  ;;  %16296 = vmatprep.subr.bf16.mxu0 %v22549_v42 }
 0x848   :  { %16106 = vmatpush1.bf16.msra.mxu1 %v22550_v63  ;;  %16298 = vmatpush1.bf16.msra.mxu0 %v22551_v6  ;;  %v22558_v63 = vld [vmem:[#allocation77_spill] sm:$0xff] }
 0x849   :  { %16108 = vmatprep.subr.bf16.mxu1 %v22552_v0  ;;  %16300 = vmatprep.subr.bf16.mxu0 %v22553_v43 }
 0x84c   :  { %16110 = vmatpush1.bf16.msra.mxu1 %v22554_v33  ;;  %16302 = vmatpush1.bf16.msra.mxu0 %v22555_v21  ;;  %v22557_v21 = vld [vmem:[#allocation89_spill] sm:$0xff]  ;;  %v14813_v33 = vld.sshfl [vmem:[%s21638_s0 + $0xc] sm:$0x33 pattern:$0x76325410] }
 0x84d   :  { %16112 = vmatprep.subr.bf16.mxu1 %v22270_v39  ;;  %16304 = vmatprep.subr.bf16.mxu0 %v22271_v37  ;;  %v6248_v29 = vcombine.high %v14813_v33, %v14813_v33 }
 0x84f   :  { %5273 = vmatmul.mubr.f32.vlgmr.msra.gmra.mrb[6].mxu1 %v20169_v25  ;;  %6128 = vmatmul.mubr.f32.vlgmr.msra.gmra.mrb[6].mxu0 %v20169_v25 }
 0x850   :  { %16114 = vmatpush1.bf16.msra.mxu1 %v22273_v38  ;;  %16306 = vmatpush1.bf16.msra.mxu0 %v22274_v62 }
 0x851   :  { %16116 = vmatprep.subr.bf16.mxu1 %v22275_v15  ;;  %16308 = vmatprep.subr.bf16.mxu0 %v22276_v27 }
 0x852   :  { %5375 = vmatprep.mubr.f32.mxu1 %v22057_v51  ;;  %6230 = vmatprep.mubr.f32.mxu0 %v22057_v51 }
 0x854   :  { %16118 = vmatpush1.bf16.msra.mxu1 %v22277_v24  ;;  %16310 = vmatpush1.bf16.msra.mxu0 %v22278_v10 }
 0x855   :  { %16120 = vmatprep.subr.bf16.mxu1 %v22279_v5  ;;  %16312 = vmatprep.subr.bf16.mxu0 %v22280_v23 }
 0x858   :  { %16122 = vmatpush1.bf16.msra.mxu1 %v22281_v50  ;;  %16314 = vmatpush1.bf16.msra.mxu0 %v22282_v47 }
 0x859   :  { %16124 = vmatprep.subr.bf16.mxu1 %v22283_v16  ;;  %16316 = vmatprep.subr.bf16.mxu0 %v22284_v36 }
 0x85c   :  { %16126 = vmatpush1.bf16.msra.mxu1 %v22285_v8  ;;  %16318 = vmatpush1.bf16.msra.mxu0 %v22286_v3 }
 0x85d   :  { %16128 = vmatprep.subr.bf16.mxu1 %v22287_v58  ;;  %16320 = vmatprep.subr.bf16.mxu0 %v22288_v54 }
 0x860   :  { %16130 = vmatpush1.bf16.msra.mxu1 %v22289_v22  ;;  %16322 = vmatpush1.bf16.msra.mxu0 %v22290_v31 }
 0x861   :  { %16132 = vmatprep.subr.bf16.mxu1 %v22291_v45  ;;  %16324 = vmatprep.subr.bf16.mxu0 %v22292_v19 }
 0x864   :  { %16134 = vmatpush1.bf16.msra.mxu1 %v22293_v55  ;;  %16326 = vmatpush1.bf16.msra.mxu0 %v22294_v9 }
 0x865   :  { %16136 = vmatprep.subr.bf16.mxu1 %v22295_v44  ;;  %16328 = vmatprep.subr.bf16.mxu0 %v22296_v7 }
 0x868   :  { %16138 = vmatpush1.bf16.msra.mxu1 %v22518_v46  ;;  %16330 = vmatpush1.bf16.msra.mxu0 %v22519_v40 }
 0x869   :  { %16140 = vmatprep.subr.bf16.mxu1 %v22520_v53  ;;  %16332 = vmatprep.subr.bf16.mxu0 %v22521_v1 }
 0x86c   :  { %16142 = vmatpush1.bf16.msra.mxu1 %v22522_v34  ;;  %16334 = vmatpush1.bf16.msra.mxu0 %v22523_v20 }
 0x86d   :  { %16336 = vmatprep.subr.bf16.mxu1 %v22270_v39  ;;  %16528 = vmatprep.subr.bf16.mxu0 %v22271_v37 }
 0x86f   :  { %5377 = vmatmul.mubr.f32.vlgmr.msra.gmra.mrb[6].mxu1 %v20169_v25  ;;  %6232 = vmatmul.mubr.f32.vlgmr.msra.gmra.mrb[6].mxu0 %v20169_v25  ;;  %v22556_v25 = vld [vmem:[#allocation10_spill] sm:$0xff] }
 0x870   :  { %16338 = vmatpush1.bf16.msra.mxu1 %v22273_v38  ;;  %16530 = vmatpush1.bf16.msra.mxu0 %v22274_v62 }
 0x871   :  { %16340 = vmatprep.subr.bf16.mxu1 %v22275_v15  ;;  %16532 = vmatprep.subr.bf16.mxu0 %v22276_v27 }
 0x872   :  { %6392 = vmatprep.mubr.f32.mxu1 %v22057_v51  ;;  %7247 = vmatprep.mubr.f32.mxu0 %v22057_v51 }
 0x874   :  { %16342 = vmatpush1.bf16.msra.mxu1 %v22277_v24  ;;  %16534 = vmatpush1.bf16.msra.mxu0 %v22278_v10 }
 0x875   :  { %16344 = vmatprep.subr.bf16.mxu1 %v22279_v5  ;;  %16536 = vmatprep.subr.bf16.mxu0 %v22280_v23 }
 0x878   :  { %16346 = vmatpush1.bf16.msra.mxu1 %v22281_v50  ;;  %16538 = vmatpush1.bf16.msra.mxu0 %v22282_v47 }
 0x879   :  { %16348 = vmatprep.subr.bf16.mxu1 %v22283_v16  ;;  %16540 = vmatprep.subr.bf16.mxu0 %v22284_v36 }
 0x87c   :  { %16350 = vmatpush1.bf16.msra.mxu1 %v22285_v8  ;;  %16542 = vmatpush1.bf16.msra.mxu0 %v22286_v3 }
 0x87d   :  { %16352 = vmatprep.subr.bf16.mxu1 %v22287_v58  ;;  %16544 = vmatprep.subr.bf16.mxu0 %v22288_v54 }
 0x880   :  { %16354 = vmatpush1.bf16.msra.mxu1 %v22289_v22  ;;  %16546 = vmatpush1.bf16.msra.mxu0 %v22290_v31 }
 0x881   :  { %16356 = vmatprep.subr.bf16.mxu1 %v22291_v45  ;;  %16548 = vmatprep.subr.bf16.mxu0 %v22292_v19 }
 0x884   :  { %16358 = vmatpush1.bf16.msra.mxu1 %v22293_v55  ;;  %16550 = vmatpush1.bf16.msra.mxu0 %v22294_v9 }
 0x885   :  { %16360 = vmatprep.subr.bf16.mxu1 %v22295_v44  ;;  %16552 = vmatprep.subr.bf16.mxu0 %v22296_v7 }
 0x888   :  { %16362 = vmatpush1.bf16.msra.mxu1 %v22518_v46  ;;  %16554 = vmatpush1.bf16.msra.mxu0 %v22519_v40 }
 0x889   :  { %16364 = vmatprep.subr.bf16.mxu1 %v22520_v53  ;;  %16556 = vmatprep.subr.bf16.mxu0 %v22521_v1 }
 0x88c   :  { %16366 = vmatpush1.bf16.msra.mxu1 %v22522_v34  ;;  %16558 = vmatpush1.bf16.msra.mxu0 %v22523_v20 }
 0x88d   :  { %16368 = vmatprep.subr.bf16.mxu1 %v22556_v25  ;;  %16560 = vmatprep.subr.bf16.mxu0 %v22557_v21 }
 0x942   :  { %v5378_v43 = vpop.f32.mrb[6].mxu1  ;;  %v6233_v0 = vpop.f32.mrb[6].mxu0 }
 0x943   :  { %v6251_v6 = vadd.f32 %v14813_v33, %v5378_v43  ;;  %v6271_v42 = vadd.f32 %v6233_v0, %v22558_v63  ;;  %v5380_v56 = vpop.f32.mrb[7].mxu1  ;;  %v6235_v60 = vpop.f32.mrb[7].mxu0 }
 0x944   :  { %v6252_v20 = vadd.f32 %v6248_v29, %v5380_v56  ;;  %v6272_v25 = vadd.f32 %v6235_v60, %v19914_v57 }
 0x945   :  { %v6253_v2 = vmul.f32 0.5, %v6251_v6  ;;  %v6273_v34 = vmul.f32 0.5, %v6271_v42 }
 0x946   :  { %v6254_v42 = vmul.f32 0.5, %v6252_v20  ;;  %v6274_v6 = vmul.f32 0.5, %v6272_v25 }
 0x947   :  { %18352 = vtanh.f32 %v6253_v2 }
 0x948   :  { %18354 = vtanh.f32 %v6273_v34 }
 0x949   :  { %18356 = vtanh.f32 %v6252_v20 }
 0x94a   :  { %18358 = vtanh.f32 %v6272_v25 }
 0x94b   :  { %18360 = vtanh.f32 %v6254_v42 }
 0x951   :  { %v18353_v21 = vpop.eup %18352 }
 0x952   :  { %v18355_v1 = vpop.eup %18354  ;;  %v6257_v53 = vadd.f32 1.0, %v18353_v21 }
 0x953   :  { %v6277_v40 = vadd.f32 1.0, %v18355_v1  ;;  %v18357_v43 = vpop.eup %18356 }
 0x954   :  { %v6259_v46 = vmul.f32 0.5, %v6257_v53  ;;  %v18359_v0 = vpop.eup %18358 }
 0x955   :  { %v6279_v7 = vmul.f32 0.5, %v6277_v40  ;;  %v18361_v1 = vpop.eup %18360 }
 0x956   :  { %v6263_v63 = vmul.f32 %v18357_v43, %v6259_v46  ;;  %v6262_v34 = vmul.f32 %v6259_v46, %v20160_v14  ;;  %v6258_v53 = vadd.f32 1.0, %v18361_v1 }
 0x957   :  { %v6283_v33 = vmul.f32 %v18359_v0, %v6279_v7  ;;  %v6282_v20 = vmul.f32 %v6279_v7, %v20165_v49 }
 0x958   :  { %6265 = vrot.lane.b32.xlu0 %v6263_v63, %s18468_s9  ;;  %v6260_v60 = vmul.f32 0.5, %v6258_v53  ;;  %v22559_v53 = vld [vmem:[#allocation113_spill] sm:$0xff] }
 0x959   :  { %6285 = vrot.lane.b32.xlu1 %v6283_v33, %s18468_s9 }
 0x9ca   :  { %v6266_v56 = vpop.permute.xlu0 %6265 }
 0x9cb   :  { %v20401_v29 = vadd.f32 %v6266_v56, %v6262_v34  ;;  %v6286_v63 = vpop.permute.xlu1 %6285 }
 0x9cc   :  { %v20406_v2 = vadd.f32 %v6286_v63, %v6282_v20  ;;  %v22564_v63 = vld [vmem:[#allocation25_spill] sm:$0xff]  ;;  %v22565_v20 = vld [vmem:[#allocation116_spill] sm:$0xff] }
 0x9cd   :  { %18362 = vtanh.f32 %v20401_v29 }
 0x9ce   :  { %18364 = vtanh.f32 %v6274_v6  ;;  %v22563_v6 = vld [vmem:[#allocation115_spill] sm:$0xff] }
 0x9cf   :  { %18366 = vtanh.f32 %v20406_v2 }
 0x9d7   :  { %v18363_v40 = vpop.eup %18362 }
 0x9d8   :  { %v6270_v21 = vmul.f32 %v18363_v40, %v6260_v60  ;;  %v18365_v14 = vpop.eup %18364  ;;  %v22560_v60 = vld [vmem:[#allocation21_spill] sm:$0xff]  ;;  %v22561_v40 = vld [vmem:[#allocation114_spill] sm:$0xff] }
 0x9d9   :  { %v6278_v46 = vadd.f32 1.0, %v18365_v14  ;;  %v18367_v43 = vpop.eup %18366  ;;  %v22566_v14 = vld [vmem:[#allocation27_spill] sm:$0xff] }
 0x9da   :  { %6292 = vrot.lane.b32.xlu0 %v6270_v21, %s18468_s9  ;;  %v22562_v21 = vld [vmem:[#allocation23_spill] sm:$0xff] }
 0x9db   :  { %v6280_v0 = vmul.f32 0.5, %v6278_v46  ;;  %v22567_v46 = vld [vmem:[#allocation117_spill] sm:$0xff] }
 0x9dd   :  { %v6290_v33 = vmul.f32 %v18367_v43, %v6280_v0  ;;  %v22568_v43 = vld [vmem:[#allocation29_spill] sm:$0xff]  ;;  %v22569_v0 = vld [vmem:[#allocation118_spill] sm:$0xff] }
 0xa4c   :  { %v6293_v42 = vpop.permute.xlu0 %6292 }
 0xa4d   :  { %v6295_v34 = vsel %vm979_vm0, %v6293_v42, %v6290_v33  ;;  %v22570_v33 = vld [vmem:[#allocation31_spill] sm:$0xff] }
 0xa4e   :  { %v20410_v56 = vand.u32 4294901760, %v6295_v34  ;;  %v22571_v42 = vld [vmem:[#allocation119_spill] sm:$0xff] }
 0xa50   :  { %v20413_v25 = vsub.f32 %v6295_v34, %v20410_v56  ;;  %v22572_v34 = vld [vmem:[#allocation33_spill] sm:$0xff] }
 0xa52   :  { %v20416_v1 = vand.u32 4294901760, %v20413_v25 }
 0xa54   :  { %v6396_v7 = vsub.f32 %v20413_v25, %v20416_v1 }
 0xa56   :  { %v6397_v49 = vand.u32 4294901760, %v6396_v7  ;;  %v22573_v7 = vld [vmem:[#allocation98_spill] sm:$0xff] }
 0xa58   :  { %6398 = vmatmul.mubr.f32.vlgmr.msra.gmra.mrb[8].mxu1 %v6397_v49  ;;  %7253 = vmatmul.mubr.f32.vlgmr.msra.gmra.mrb[8].mxu0 %v6397_v49  ;;  %v22574_v49 = vld [vmem:[#allocation36_spill] sm:$0xff] }
 0xa59   :  { %16370 = vmatpush1.bf16.msra.mxu1 %v22384_v41  ;;  %16562 = vmatpush1.bf16.msra.mxu0 %v22385_v52 }
 0xa5a   :  { %16372 = vmatprep.subr.bf16.mxu1 %v22386_v48  ;;  %16564 = vmatprep.subr.bf16.mxu0 %v22387_v32 }
 0xa5b   :  { %6628 = vmatprep.mubr.f32.mxu1 %v22057_v51  ;;  %7483 = vmatprep.mubr.f32.mxu0 %v22057_v51 }
 0xa5d   :  { %16374 = vmatpush1.bf16.msra.mxu1 %v22471_v26  ;;  %16566 = vmatpush1.bf16.msra.mxu0 %v22472_v61 }
 0xa5e   :  { %16376 = vmatprep.subr.bf16.mxu1 %v22473_v59  ;;  %16568 = vmatprep.subr.bf16.mxu0 %v22474_v30 }
 0xa61   :  { %16378 = vmatpush1.bf16.msra.mxu1 %v22475_v28  ;;  %16570 = vmatpush1.bf16.msra.mxu0 %v22559_v53 }
 0xa62   :  { %16380 = vmatprep.subr.bf16.mxu1 %v22560_v60  ;;  %16572 = vmatprep.subr.bf16.mxu0 %v22561_v40 }
 0xa65   :  { %16382 = vmatpush1.bf16.msra.mxu1 %v22562_v21  ;;  %16574 = vmatpush1.bf16.msra.mxu0 %v22563_v6 }
 0xa66   :  { %16384 = vmatprep.subr.bf16.mxu1 %v22564_v63  ;;  %16576 = vmatprep.subr.bf16.mxu0 %v22565_v20  ;;  %v22575_v63 = vld [vmem:[#allocation99_spill] sm:$0xff]  ;;  %v22576_v20 = vld [vmem:[#allocation37_spill] sm:$0xff] }
 0xa69   :  { %16386 = vmatpush1.bf16.msra.mxu1 %v22566_v14  ;;  %16578 = vmatpush1.bf16.msra.mxu0 %v22567_v46  ;;  %v22577_v14 = vld [vmem:[#allocation100_spill] sm:$0xff]  ;;  %v22578_v46 = vld [vmem:[#allocation43_spill] sm:$0xff] }
 0xa6a   :  { %16388 = vmatprep.subr.bf16.mxu1 %v22568_v43  ;;  %16580 = vmatprep.subr.bf16.mxu0 %v22569_v0  ;;  %v22579_v43 = vld [vmem:[#allocation102_spill] sm:$0xff] }
 0xa6b   :  { %v22580_v0 = vld [vmem:[#allocation38_spill] sm:$0xff] }
 0xa6d   :  { %16390 = vmatpush1.bf16.msra.mxu1 %v22570_v33  ;;  %16582 = vmatpush1.bf16.msra.mxu0 %v22571_v42  ;;  %v22581_v33 = vld [vmem:[#allocation101_spill] sm:$0xff] }
 0xa6e   :  { %16392 = vmatprep.subr.bf16.mxu1 %v22572_v34  ;;  %16584 = vmatprep.subr.bf16.mxu0 %v22573_v7  ;;  %v22582_v7 = vld [vmem:[#allocation39_spill] sm:$0xff] }
 0xa71   :  { %16394 = vmatpush1.bf16.msra.mxu1 %v22574_v49  ;;  %16586 = vmatpush1.bf16.msra.mxu0 %v22575_v63  ;;  %v22583_v49 = vld [vmem:[#allocation120_spill] sm:$0xff]  ;;  %v22584_v63 = vld [vmem:[#allocation55_spill] sm:$0xff] }
 0xa72   :  { %16396 = vmatprep.subr.bf16.mxu1 %v22576_v20  ;;  %16588 = vmatprep.subr.bf16.mxu0 %v22577_v14  ;;  %v22585_v20 = vld [vmem:[#allocation121_spill] sm:$0xff] }
 0xa73   :  { %v22628_v14 = vld [vmem:[#allocation49_spill] sm:$0xff] }
 0xa75   :  { %16398 = vmatpush1.bf16.msra.mxu1 %v22578_v46  ;;  %16590 = vmatpush1.bf16.msra.mxu0 %v22579_v43  ;;  %v22586_v43 = vld [vmem:[#allocation58_spill] sm:$0xff]  ;;  %v22589_v46 = vld [vmem:[#allocation123_spill] sm:$0xff] }
 0xa76   :  { %16400 = vmatprep.subr.bf16.mxu1 %v22580_v0  ;;  %16592 = vmatprep.subr.bf16.mxu0 %v22581_v33  ;;  %v22587_v0 = vld [vmem:[#allocation122_spill] sm:$0xff]  ;;  %v22588_v33 = vld [vmem:[#allocation59_spill] sm:$0xff] }
 0xa78   :  { %6630 = vmatmul.mubr.f32.vlgmr.msra.gmra.mrb[8].mxu1 %v20410_v56  ;;  %7485 = vmatmul.mubr.f32.vlgmr.msra.gmra.mrb[8].mxu0 %v20410_v56 }
 0xa79   :  { %16402 = vmatpush1.bf16.msra.mxu1 %v22582_v7  ;;  %16594 = vmatpush1.bf16.msra.mxu0 %v22583_v49  ;;  %v22621_v49 = vld [vmem:[#allocation71_spill] sm:$0xff]  ;;  %v22627_v7 = vld [vmem:[#allocation9_spill] sm:$0xff] }
 0xa7a   :  { %16404 = vmatprep.subr.bf16.mxu1 %v22584_v63  ;;  %16596 = vmatprep.subr.bf16.mxu0 %v22585_v20  ;;  %v22617_v20 = vld [vmem:[#allocation108_spill] sm:$0xff] }
 0xa7b   :  { %6764 = vmatprep.mubr.f32.mxu1 %v22057_v51  ;;  %7619 = vmatprep.mubr.f32.mxu0 %v22057_v51  ;;  %v22618_v63 = vld [vmem:[#allocation44_spill] sm:$0xff] }
 0xa7d   :  { %16406 = vmatpush1.bf16.msra.mxu1 %v22586_v43  ;;  %16598 = vmatpush1.bf16.msra.mxu0 %v22587_v0  ;;  %v22590_v43 = vld [vmem:[#allocation127_spill] sm:$0xff]  ;;  %v22591_v0 = vld [vmem:[#allocation64_spill] sm:$0xff] }
 0xa7e   :  { %16408 = vmatprep.subr.bf16.mxu1 %v22588_v33  ;;  %16600 = vmatprep.subr.bf16.mxu0 %v22589_v46  ;;  %v22592_v33 = vld [vmem:[#allocation128_spill] sm:$0xff]  ;;  %v22593_v46 = vld [vmem:[#allocation65_spill] sm:$0xff] }
 0xa81   :  { %16410 = vmatpush1.bf16.msra.mxu1 %v22507_v17  ;;  %16602 = vmatpush1.bf16.msra.mxu0 %v22508_v4  ;;  %v22594_v17 = vld [vmem:[#allocation129_spill] sm:$0xff]  ;;  %v22595_v4 = vld [vmem:[#allocation66_spill] sm:$0xff] }
 0xa82   :  { %16412 = vmatprep.subr.bf16.mxu1 %v22509_v18  ;;  %16604 = vmatprep.subr.bf16.mxu0 %v22510_v35  ;;  %v22596_v18 = vld [vmem:[#allocation130_spill] sm:$0xff]  ;;  %v22597_v35 = vld [vmem:[#allocation67_spill] sm:$0xff] }
 0xa85   :  { %16414 = vmatpush1.bf16.msra.mxu1 %v22511_v12  ;;  %16606 = vmatpush1.bf16.msra.mxu0 %v22512_v13  ;;  %v22598_v12 = vld [vmem:[#allocation103_spill] sm:$0xff]  ;;  %v22599_v13 = vld [vmem:[#allocation68_spill] sm:$0xff] }
 0xa86   :  { %16416 = vmatprep.subr.bf16.mxu1 %v22513_v11  ;;  %16608 = vmatprep.subr.bf16.mxu0 %v22590_v43  ;;  %v22600_v11 = vld [vmem:[#allocation104_spill] sm:$0xff]  ;;  %v22601_v43 = vld [vmem:[#allocation69_spill] sm:$0xff] }
 0xa89   :  { %16418 = vmatpush1.bf16.msra.mxu1 %v22591_v0  ;;  %16610 = vmatpush1.bf16.msra.mxu0 %v22592_v33  ;;  %v22602_v0 = vld [vmem:[#allocation105_spill] sm:$0xff]  ;;  %v22603_v33 = vld [vmem:[#allocation35_spill] sm:$0xff] }
 0xa8a   :  { %16420 = vmatprep.subr.bf16.mxu1 %v22593_v46  ;;  %16612 = vmatprep.subr.bf16.mxu0 %v22594_v17  ;;  %v22604_v46 = vld [vmem:[#allocation106_spill] sm:$0xff] }
 0xa8b   :  { %v22616_v17 = vld [vmem:[#allocation42_spill] sm:$0xff] }
 0xa8d   :  { %16422 = vmatpush1.bf16.msra.mxu1 %v22595_v4  ;;  %16614 = vmatpush1.bf16.msra.mxu0 %v22596_v18  ;;  %v22614_v18 = vld [vmem:[#allocation41_spill] sm:$0xff]  ;;  %v22615_v4 = vld [vmem:[#allocation70_spill] sm:$0xff] }
 0xa8e   :  { %16424 = vmatprep.subr.bf16.mxu1 %v22597_v35  ;;  %16616 = vmatprep.subr.bf16.mxu0 %v22598_v12  ;;  %v22612_v12 = vld [vmem:[#allocation40_spill] sm:$0xff]  ;;  %v22613_v35 = vld [vmem:[#allocation6_spill] sm:$0xff] }
 0xa91   :  { %16426 = vmatpush1.bf16.msra.mxu1 %v22599_v13  ;;  %16618 = vmatpush1.bf16.msra.mxu0 %v22600_v11  ;;  %v22610_v11 = vld [vmem:[#allocation34_spill] sm:$0xff]  ;;  %v22611_v13 = vld [vmem:[#allocation88_spill] sm:$0xff] }
 0xa92   :  { %16428 = vmatprep.subr.bf16.mxu1 %v22601_v43  ;;  %16620 = vmatprep.subr.bf16.mxu0 %v22602_v0  ;;  %v22608_v0 = vld [vmem:[#allocation32_spill] sm:$0xff]  ;;  %v22609_v43 = vld [vmem:[#allocation87_spill] sm:$0xff] }
 0xa95   :  { %16430 = vmatpush1.bf16.msra.mxu1 %v22603_v33  ;;  %16622 = vmatpush1.bf16.msra.mxu0 %v22604_v46  ;;  %v22606_v46 = vld [vmem:[#allocation30_spill] sm:$0xff] }
 0xa96   :  { %16432 = vmatprep.subr.bf16.mxu1 %v22270_v39  ;;  %16624 = vmatprep.subr.bf16.mxu0 %v22271_v37  ;;  %v22607_v33 = vld [vmem:[#allocation86_spill] sm:$0xff] }
 0xa98   :  { %6767 = vmatmul.mubr.f32.vlgmr.msra.gmra.mrb[8].mxu1 %v20413_v25  ;;  %7622 = vmatmul.mubr.f32.vlgmr.msra.gmra.mrb[8].mxu0 %v20413_v25  ;;  %v22605_v25 = vld [vmem:[#allocation83_spill] sm:$0xff] }
 0xa99   :  { %16434 = vmatpush1.bf16.msra.mxu1 %v22273_v38  ;;  %16626 = vmatpush1.bf16.msra.mxu0 %v22274_v62 }
 0xa9a   :  { %16436 = vmatprep.subr.bf16.mxu1 %v22275_v15  ;;  %16628 = vmatprep.subr.bf16.mxu0 %v22276_v27 }
 0xa9b   :  { %6869 = vmatprep.mubr.f32.mxu1 %v22057_v51  ;;  %7724 = vmatprep.mubr.f32.mxu0 %v22057_v51 }
 0xa9d   :  { %16438 = vmatpush1.bf16.msra.mxu1 %v22277_v24  ;;  %16630 = vmatpush1.bf16.msra.mxu0 %v22278_v10 }
 0xa9e   :  { %16440 = vmatprep.subr.bf16.mxu1 %v22279_v5  ;;  %16632 = vmatprep.subr.bf16.mxu0 %v22280_v23 }
 0xaa1   :  { %16442 = vmatpush1.bf16.msra.mxu1 %v22281_v50  ;;  %16634 = vmatpush1.bf16.msra.mxu0 %v22282_v47 }
 0xaa2   :  { %16444 = vmatprep.subr.bf16.mxu1 %v22283_v16  ;;  %16636 = vmatprep.subr.bf16.mxu0 %v22284_v36 }
 0xaa5   :  { %16446 = vmatpush1.bf16.msra.mxu1 %v22285_v8  ;;  %16638 = vmatpush1.bf16.msra.mxu0 %v22286_v3 }
 0xaa6   :  { %16448 = vmatprep.subr.bf16.mxu1 %v22287_v58  ;;  %16640 = vmatprep.subr.bf16.mxu0 %v22288_v54 }
 0xaa9   :  { %16450 = vmatpush1.bf16.msra.mxu1 %v22289_v22  ;;  %16642 = vmatpush1.bf16.msra.mxu0 %v22290_v31 }
 0xaaa   :  { %16452 = vmatprep.subr.bf16.mxu1 %v22291_v45  ;;  %16644 = vmatprep.subr.bf16.mxu0 %v22292_v19 }
 0xaad   :  { %16454 = vmatpush1.bf16.msra.mxu1 %v22293_v55  ;;  %16646 = vmatpush1.bf16.msra.mxu0 %v22294_v9 }
 0xaae   :  { %16456 = vmatprep.subr.bf16.mxu1 %v22295_v44  ;;  %16648 = vmatprep.subr.bf16.mxu0 %v22605_v25 }
 0xab1   :  { %16458 = vmatpush1.bf16.msra.mxu1 %v22606_v46  ;;  %16650 = vmatpush1.bf16.msra.mxu0 %v22607_v33 }
 0xab2   :  { %16460 = vmatprep.subr.bf16.mxu1 %v22608_v0  ;;  %16652 = vmatprep.subr.bf16.mxu0 %v22609_v43 }
 0xab5   :  { %16462 = vmatpush1.bf16.msra.mxu1 %v22610_v11  ;;  %16654 = vmatpush1.bf16.msra.mxu0 %v22611_v13 }
 0xab6   :  { %16464 = vmatprep.subr.bf16.mxu1 %v22612_v12  ;;  %16656 = vmatprep.subr.bf16.mxu0 %v22613_v35  ;;  %v22619_v12 = vld [vmem:[#allocation7_spill] sm:$0xff]  ;;  %v22620_v35 = vld [vmem:[#allocation45_spill] sm:$0xff] }
 0xab8   :  { %6873 = vmatmul.mubr.f32.vlgmr.msra.gmra.mrb[8].mxu1 %v20416_v1  ;;  %7728 = vmatmul.mubr.f32.vlgmr.msra.gmra.mrb[8].mxu0 %v20416_v1  ;;  %v22622_v1 = vld [vmem:[#allocation46_spill] sm:$0xff] }
 0xab9   :  { %16466 = vmatpush1.bf16.msra.mxu1 %v22614_v18  ;;  %16658 = vmatpush1.bf16.msra.mxu0 %v22615_v4  ;;  %v22623_v18 = vld [vmem:[#allocation8_spill] sm:$0xff]  ;;  %v22624_v4 = vld [vmem:[#allocation47_spill] sm:$0xff] }
 0xaba   :  { %16468 = vmatprep.subr.bf16.mxu1 %v22616_v17  ;;  %16660 = vmatprep.subr.bf16.mxu0 %v22617_v20  ;;  %v22625_v17 = vld [vmem:[#allocation72_spill] sm:$0xff] }
 0xabb   :  { %7039 = vmatprep.mubr.f32.mxu1 %v22057_v51  ;;  %7894 = vmatprep.mubr.f32.mxu0 %v22057_v51  ;;  %v22626_v20 = vld [vmem:[#allocation48_spill] sm:$0xff] }
 0xabd   :  { %16470 = vmatpush1.bf16.msra.mxu1 %v22618_v63  ;;  %16662 = vmatpush1.bf16.msra.mxu0 %v22619_v12  ;;  %v22629_v63 = vld [vmem:[#allocation73_spill] sm:$0xff]  ;;  %v22630_v12 = vld [vmem:[#allocation50_spill] sm:$0xff] }
 0xabe   :  { %16472 = vmatprep.subr.bf16.mxu1 %v22620_v35  ;;  %16664 = vmatprep.subr.bf16.mxu0 %v22621_v49  ;;  %v22631_v35 = vld [vmem:[#allocation13_spill] sm:$0xff]  ;;  %v22632_v49 = vld [vmem:[#allocation51_spill] sm:$0xff] }
 0xac1   :  { %16474 = vmatpush1.bf16.msra.mxu1 %v22622_v1  ;;  %16666 = vmatpush1.bf16.msra.mxu0 %v22623_v18  ;;  %v22633_v1 = vld [vmem:[#allocation74_spill] sm:$0xff]  ;;  %v22634_v18 = vld [vmem:[#allocation52_spill] sm:$0xff] }
 0xac2   :  { %16476 = vmatprep.subr.bf16.mxu1 %v22624_v4  ;;  %16668 = vmatprep.subr.bf16.mxu0 %v22625_v17  ;;  %v22635_v4 = vld [vmem:[#allocation14_spill] sm:$0xff]  ;;  %v22636_v17 = vld [vmem:[#allocation53_spill] sm:$0xff] }
 0xac5   :  { %16478 = vmatpush1.bf16.msra.mxu1 %v22626_v20  ;;  %16670 = vmatpush1.bf16.msra.mxu0 %v22627_v7  ;;  %v22637_v20 = vld [vmem:[#allocation75_spill] sm:$0xff]  ;;  %v22638_v7 = vld [vmem:[#allocation54_spill] sm:$0xff] }
 0xac6   :  { %16480 = vmatprep.subr.bf16.mxu1 %v22628_v14  ;;  %16672 = vmatprep.subr.bf16.mxu0 %v22629_v63  ;;  %v22639_v14 = vld [vmem:[#allocation15_spill] sm:$0xff]  ;;  %v22640_v63 = vld [vmem:[#allocation56_spill] sm:$0xff] }
 0xac9   :  { %16482 = vmatpush1.bf16.msra.mxu1 %v22630_v12  ;;  %16674 = vmatpush1.bf16.msra.mxu0 %v22631_v35  ;;  %v22641_v12 = vld [vmem:[#allocation76_spill] sm:$0xff]  ;;  %v22642_v35 = vld [vmem:[#allocation57_spill] sm:$0xff] }
 0xaca   :  { %16484 = vmatprep.subr.bf16.mxu1 %v22632_v49  ;;  %16676 = vmatprep.subr.bf16.mxu0 %v22633_v1  ;;  %v22643_v49 = vld [vmem:[#allocation18_spill] sm:$0xff] }
 0xacd   :  { %16486 = vmatpush1.bf16.msra.mxu1 %v22634_v18  ;;  %16678 = vmatpush1.bf16.msra.mxu0 %v22635_v4 }
 0xace   :  { %16488 = vmatprep.subr.bf16.mxu1 %v22636_v17  ;;  %16680 = vmatprep.subr.bf16.mxu0 %v22637_v20 }
 0xad1   :  { %16490 = vmatpush1.bf16.msra.mxu1 %v22638_v7  ;;  %16682 = vmatpush1.bf16.msra.mxu0 %v22639_v14  ;;  %v22646_v7 = vld [vmem:[#allocation77_spill] sm:$0xff] }
 0xad2   :  { %16492 = vmatprep.subr.bf16.mxu1 %v22640_v63  ;;  %16684 = vmatprep.subr.bf16.mxu0 %v22641_v12 }
 0xad5   :  { %16494 = vmatpush1.bf16.msra.mxu1 %v22642_v35  ;;  %16686 = vmatpush1.bf16.msra.mxu0 %v22643_v49  ;;  %v22645_v49 = vld [vmem:[#allocation89_spill] sm:$0xff]  ;;  %v14815_v35 = vld.sshfl [vmem:[%s21638_s0 + $0x10] sm:$0x33 pattern:$0x76325410] }
 0xad6   :  { %16496 = vmatprep.subr.bf16.mxu1 %v22270_v39  ;;  %16688 = vmatprep.subr.bf16.mxu0 %v22271_v37  ;;  %v8016_v4 = vcombine.high %v14815_v35, %v14815_v35 }
 0xad8   :  { %7041 = vmatmul.mubr.f32.vlgmr.msra.gmra.mrb[8].mxu1 %v20410_v56  ;;  %7896 = vmatmul.mubr.f32.vlgmr.msra.gmra.mrb[8].mxu0 %v20410_v56 }
 0xad9   :  { %16498 = vmatpush1.bf16.msra.mxu1 %v22273_v38  ;;  %16690 = vmatpush1.bf16.msra.mxu0 %v22274_v62 }
 0xada   :  { %16500 = vmatprep.subr.bf16.mxu1 %v22275_v15  ;;  %16692 = vmatprep.subr.bf16.mxu0 %v22276_v27 }
 0xadb   :  { %7143 = vmatprep.mubr.f32.mxu1 %v22057_v51  ;;  %7998 = vmatprep.mubr.f32.mxu0 %v22057_v51 }
 0xadd   :  { %16502 = vmatpush1.bf16.msra.mxu1 %v22277_v24  ;;  %16694 = vmatpush1.bf16.msra.mxu0 %v22278_v10 }
 0xade   :  { %16504 = vmatprep.subr.bf16.mxu1 %v22279_v5  ;;  %16696 = vmatprep.subr.bf16.mxu0 %v22280_v23 }
 0xae1   :  { %16506 = vmatpush1.bf16.msra.mxu1 %v22281_v50  ;;  %16698 = vmatpush1.bf16.msra.mxu0 %v22282_v47 }
 0xae2   :  { %16508 = vmatprep.subr.bf16.mxu1 %v22283_v16  ;;  %16700 = vmatprep.subr.bf16.mxu0 %v22284_v36 }
 0xae5   :  { %16510 = vmatpush1.bf16.msra.mxu1 %v22285_v8  ;;  %16702 = vmatpush1.bf16.msra.mxu0 %v22286_v3 }
 0xae6   :  { %16512 = vmatprep.subr.bf16.mxu1 %v22287_v58  ;;  %16704 = vmatprep.subr.bf16.mxu0 %v22288_v54 }
 0xae9   :  { %16514 = vmatpush1.bf16.msra.mxu1 %v22289_v22  ;;  %16706 = vmatpush1.bf16.msra.mxu0 %v22290_v31 }
 0xaea   :  { %16516 = vmatprep.subr.bf16.mxu1 %v22291_v45  ;;  %16708 = vmatprep.subr.bf16.mxu0 %v22292_v19 }
 0xaed   :  { %16518 = vmatpush1.bf16.msra.mxu1 %v22293_v55  ;;  %16710 = vmatpush1.bf16.msra.mxu0 %v22294_v9 }
 0xaee   :  { %16520 = vmatprep.subr.bf16.mxu1 %v22295_v44  ;;  %16712 = vmatprep.subr.bf16.mxu0 %v22605_v25 }
 0xaf1   :  { %16522 = vmatpush1.bf16.msra.mxu1 %v22606_v46  ;;  %16714 = vmatpush1.bf16.msra.mxu0 %v22607_v33 }
 0xaf2   :  { %16524 = vmatprep.subr.bf16.mxu1 %v22608_v0  ;;  %16716 = vmatprep.subr.bf16.mxu0 %v22609_v43 }
 0xaf5   :  { %16526 = vmatpush1.bf16.msra.mxu1 %v22610_v11  ;;  %16718 = vmatpush1.bf16.msra.mxu0 %v22611_v13 }
 0xaf6   :  { %16720 = vmatprep.subr.bf16.mxu1 %v22270_v39  ;;  %16912 = vmatprep.subr.bf16.mxu0 %v22271_v37 }
 0xaf8   :  { %7145 = vmatmul.mubr.f32.vlgmr.msra.gmra.mrb[8].mxu1 %v20410_v56  ;;  %8000 = vmatmul.mubr.f32.vlgmr.msra.gmra.mrb[8].mxu0 %v20410_v56  ;;  %v22644_v56 = vld [vmem:[#allocation10_spill] sm:$0xff] }
 0xaf9   :  { %16722 = vmatpush1.bf16.msra.mxu1 %v22273_v38  ;;  %16914 = vmatpush1.bf16.msra.mxu0 %v22274_v62 }
 0xafa   :  { %16724 = vmatprep.subr.bf16.mxu1 %v22275_v15  ;;  %16916 = vmatprep.subr.bf16.mxu0 %v22276_v27 }
 0xafb   :  { %8160 = vmatprep.mubr.f32.mxu1 %v22057_v51  ;;  %9015 = vmatprep.mubr.f32.mxu0 %v22057_v51 }
 0xafd   :  { %16726 = vmatpush1.bf16.msra.mxu1 %v22277_v24  ;;  %16918 = vmatpush1.bf16.msra.mxu0 %v22278_v10 }
 0xafe   :  { %16728 = vmatprep.subr.bf16.mxu1 %v22279_v5  ;;  %16920 = vmatprep.subr.bf16.mxu0 %v22280_v23 }
 0xb01   :  { %16730 = vmatpush1.bf16.msra.mxu1 %v22281_v50  ;;  %16922 = vmatpush1.bf16.msra.mxu0 %v22282_v47 }
 0xb02   :  { %16732 = vmatprep.subr.bf16.mxu1 %v22283_v16  ;;  %16924 = vmatprep.subr.bf16.mxu0 %v22284_v36 }
 0xb05   :  { %16734 = vmatpush1.bf16.msra.mxu1 %v22285_v8  ;;  %16926 = vmatpush1.bf16.msra.mxu0 %v22286_v3 }
 0xb06   :  { %16736 = vmatprep.subr.bf16.mxu1 %v22287_v58  ;;  %16928 = vmatprep.subr.bf16.mxu0 %v22288_v54 }
 0xb09   :  { %16738 = vmatpush1.bf16.msra.mxu1 %v22289_v22  ;;  %16930 = vmatpush1.bf16.msra.mxu0 %v22290_v31 }
 0xb0a   :  { %16740 = vmatprep.subr.bf16.mxu1 %v22291_v45  ;;  %16932 = vmatprep.subr.bf16.mxu0 %v22292_v19 }
 0xb0d   :  { %16742 = vmatpush1.bf16.msra.mxu1 %v22293_v55  ;;  %16934 = vmatpush1.bf16.msra.mxu0 %v22294_v9 }
 0xb0e   :  { %16744 = vmatprep.subr.bf16.mxu1 %v22295_v44  ;;  %16936 = vmatprep.subr.bf16.mxu0 %v22605_v25 }
 0xb11   :  { %16746 = vmatpush1.bf16.msra.mxu1 %v22606_v46  ;;  %16938 = vmatpush1.bf16.msra.mxu0 %v22607_v33 }
 0xb12   :  { %16748 = vmatprep.subr.bf16.mxu1 %v22608_v0  ;;  %16940 = vmatprep.subr.bf16.mxu0 %v22609_v43 }
 0xb15   :  { %16750 = vmatpush1.bf16.msra.mxu1 %v22610_v11  ;;  %16942 = vmatpush1.bf16.msra.mxu0 %v22611_v13 }
 0xb16   :  { %16752 = vmatprep.subr.bf16.mxu1 %v22644_v56  ;;  %16944 = vmatprep.subr.bf16.mxu0 %v22645_v49 }
 0xbcb   :  { %v7146_v12 = vpop.f32.mrb[8].mxu1  ;;  %v8001_v63 = vpop.f32.mrb[8].mxu0 }
 0xbcc   :  { %v8019_v14 = vadd.f32 %v14815_v35, %v7146_v12  ;;  %v8039_v20 = vadd.f32 %v8001_v63, %v22646_v7  ;;  %v7148_v17 = vpop.f32.mrb[9].mxu1  ;;  %v8003_v18 = vpop.f32.mrb[9].mxu0 }
 0xbcd   :  { %v8020_v13 = vadd.f32 %v8016_v4, %v7148_v17  ;;  %v8040_v56 = vadd.f32 %v8003_v18, %v19914_v57 }
 0xbce   :  { %v8021_v1 = vmul.f32 0.5, %v8019_v14  ;;  %v8041_v11 = vmul.f32 0.5, %v8039_v20 }
 0xbcf   :  { %v8022_v4 = vmul.f32 0.5, %v8020_v13 }
 0xbd0   :  { %18368 = vtanh.f32 %v8021_v1 }
 0xbd1   :  { %18370 = vtanh.f32 %v8041_v11 }
 0xbd2   :  { %18372 = vtanh.f32 %v8020_v13 }
 0xbd3   :  { %18374 = vtanh.f32 %v8040_v56 }
 0xbd4   :  { %18376 = vtanh.f32 %v8022_v4 }
 0xbda   :  { %v18369_v49 = vpop.eup %18368 }
 0xbdb   :  { %v18371_v43 = vpop.eup %18370  ;;  %v8025_v0 = vadd.f32 1.0, %v18369_v49  ;;  %v8042_v49 = vmul.f32 0.5, %v8040_v56 }
 0xbdc   :  { %v8045_v33 = vadd.f32 1.0, %v18371_v43  ;;  %v18373_v12 = vpop.eup %18372 }
 0xbdd   :  { %v8027_v46 = vmul.f32 0.5, %v8025_v0  ;;  %v18375_v63 = vpop.eup %18374 }
 0xbde   :  { %v8047_v25 = vmul.f32 0.5, %v8045_v33  ;;  %v18377_v20 = vpop.eup %18376 }
 0xbdf   :  { %v8031_v7 = vmul.f32 %v18373_v12, %v8027_v46  ;;  %v8030_v11 = vmul.f32 %v8027_v46, %v20401_v29  ;;  %v8026_v14 = vadd.f32 1.0, %v18377_v20 }
 0xbe0   :  { %v8051_v35 = vmul.f32 %v18375_v63, %v8047_v25  ;;  %v8050_v13 = vmul.f32 %v8047_v25, %v20406_v2 }
 0xbe1   :  { %8033 = vrot.lane.b32.xlu1 %v8031_v7, %s18468_s9  ;;  %v8028_v43 = vmul.f32 0.5, %v8026_v14  ;;  %v22647_v14 = vld [vmem:[#allocation25_spill] sm:$0xff] }
 0xbe2   :  { %8053 = vrot.lane.b32.xlu0 %v8051_v35, %s18468_s9 }
 0xc53   :  { %v8034_v18 = vpop.permute.xlu1 %8033 }
 0xc54   :  { %v20642_v17 = vadd.f32 %v8034_v18, %v8030_v11  ;;  %v8054_v7 = vpop.permute.xlu0 %8053 }
 0xc55   :  { %v20647_v1 = vadd.f32 %v8054_v7, %v8050_v13  ;;  %v22652_v7 = vld [vmem:[#allocation118_spill] sm:$0xff]  ;;  %v22653_v13 = vld [vmem:[#allocation31_spill] sm:$0xff] }
 0xc56   :  { %18378 = vtanh.f32 %v20642_v17 }
 0xc57   :  { %18380 = vtanh.f32 %v8042_v49  ;;  %v22651_v49 = vld [vmem:[#allocation29_spill] sm:$0xff] }
 0xc58   :  { %18382 = vtanh.f32 %v20647_v1 }
 0xc60   :  { %v18379_v0 = vpop.eup %18378 }
 0xc61   :  { %v8038_v33 = vmul.f32 %v18379_v0, %v8028_v43  ;;  %v18381_v29 = vpop.eup %18380  ;;  %v22648_v43 = vld [vmem:[#allocation116_spill] sm:$0xff]  ;;  %v22649_v0 = vld [vmem:[#allocation27_spill] sm:$0xff] }
 0xc62   :  { %v8046_v46 = vadd.f32 1.0, %v18381_v29  ;;  %v18383_v12 = vpop.eup %18382  ;;  %v22654_v29 = vld [vmem:[#allocation98_spill] sm:$0xff] }
 0xc63   :  { %8060 = vrot.lane.b32.xlu1 %v8038_v33, %s18468_s9  ;;  %v22650_v33 = vld [vmem:[#allocation117_spill] sm:$0xff] }
 0xc64   :  { %v8048_v63 = vmul.f32 0.5, %v8046_v46  ;;  %v22655_v46 = vld [vmem:[#allocation36_spill] sm:$0xff] }
 0xc66   :  { %v8058_v35 = vmul.f32 %v18383_v12, %v8048_v63  ;;  %v22656_v12 = vld [vmem:[#allocation99_spill] sm:$0xff]  ;;  %v22657_v63 = vld [vmem:[#allocation37_spill] sm:$0xff] }
 0xcd5   :  { %v8061_v4 = vpop.permute.xlu1 %8060 }
 0xcd6   :  { %v8063_v11 = vsel %vm979_vm0, %v8061_v4, %v8058_v35  ;;  %v22658_v35 = vld [vmem:[#allocation100_spill] sm:$0xff]  ;;  %v22659_v4 = vld [vmem:[#allocation43_spill] sm:$0xff] }
 0xcd7   :  { %v20651_v18 = vand.u32 4294901760, %v8063_v11 }
 0xcd9   :  { %v20654_v56 = vsub.f32 %v8063_v11, %v20651_v18  ;;  %v22660_v11 = vld [vmem:[#allocation102_spill] sm:$0xff] }
 0xcdb   :  { %v20657_v20 = vand.u32 4294901760, %v20654_v56 }
 0xcdd   :  { %v8164_v2 = vsub.f32 %v20654_v56, %v20657_v20 }
 0xcdf   :  { %v8165_v25 = vand.u32 4294901760, %v8164_v2  ;;  %v22661_v2 = vld [vmem:[#allocation38_spill] sm:$0xff] }
 0xce1   :  { %8166 = vmatmul.mubr.f32.vlgmr.msra.gmra.mrb[10].mxu1 %v8165_v25  ;;  %9021 = vmatmul.mubr.f32.vlgmr.msra.gmra.mrb[10].mxu0 %v8165_v25  ;;  %v22662_v25 = vld [vmem:[#allocation101_spill] sm:$0xff] }
 0xce2   :  { %16754 = vmatpush1.bf16.msra.mxu1 %v22384_v41  ;;  %16946 = vmatpush1.bf16.msra.mxu0 %v22385_v52 }
 0xce3   :  { %16756 = vmatprep.subr.bf16.mxu1 %v22386_v48  ;;  %16948 = vmatprep.subr.bf16.mxu0 %v22387_v32 }
 0xce4   :  { %8396 = vmatprep.mubr.f32.mxu1 %v22057_v51  ;;  %9251 = vmatprep.mubr.f32.mxu0 %v22057_v51 }
 0xce6   :  { %16758 = vmatpush1.bf16.msra.mxu1 %v22471_v26  ;;  %16950 = vmatpush1.bf16.msra.mxu0 %v22472_v61 }
 0xce7   :  { %16760 = vmatprep.subr.bf16.mxu1 %v22473_v59  ;;  %16952 = vmatprep.subr.bf16.mxu0 %v22474_v30 }
 0xcea   :  { %16762 = vmatpush1.bf16.msra.mxu1 %v22475_v28  ;;  %16954 = vmatpush1.bf16.msra.mxu0 %v22559_v53 }
 0xceb   :  { %16764 = vmatprep.subr.bf16.mxu1 %v22560_v60  ;;  %16956 = vmatprep.subr.bf16.mxu0 %v22561_v40 }
 0xcee   :  { %16766 = vmatpush1.bf16.msra.mxu1 %v22562_v21  ;;  %16958 = vmatpush1.bf16.msra.mxu0 %v22563_v6 }
 0xcef   :  { %16768 = vmatprep.subr.bf16.mxu1 %v22647_v14  ;;  %16960 = vmatprep.subr.bf16.mxu0 %v22648_v43 }
 0xcf2   :  { %16770 = vmatpush1.bf16.msra.mxu1 %v22649_v0  ;;  %16962 = vmatpush1.bf16.msra.mxu0 %v22650_v33  ;;  %v22715_v33 = vld [vmem:[#allocation9_spill] sm:$0xff] }
 0xcf3   :  { %16772 = vmatprep.subr.bf16.mxu1 %v22651_v49  ;;  %16964 = vmatprep.subr.bf16.mxu0 %v22652_v7  ;;  %v22706_v7 = vld [vmem:[#allocation44_spill] sm:$0xff]  ;;  %v22709_v49 = vld [vmem:[#allocation71_spill] sm:$0xff]  ;;  %v22716_v0 = vld [vmem:[#allocation49_spill] sm:$0xff] }
 0xcf6   :  { %16774 = vmatpush1.bf16.msra.mxu1 %v22653_v13  ;;  %16966 = vmatpush1.bf16.msra.mxu0 %v22571_v42  ;;  %v22677_v42 = vld [vmem:[#allocation63_spill] sm:$0xff]  ;;  %v22705_v13 = vld [vmem:[#allocation108_spill] sm:$0xff] }
 0xcf7   :  { %16776 = vmatprep.subr.bf16.mxu1 %v22572_v34  ;;  %16968 = vmatprep.subr.bf16.mxu0 %v22654_v29  ;;  %v22663_v29 = vld [vmem:[#allocation39_spill] sm:$0xff]  ;;  %v22676_v34 = vld [vmem:[#allocation126_spill] sm:$0xff] }
 0xcfa   :  { %16778 = vmatpush1.bf16.msra.mxu1 %v22655_v46  ;;  %16970 = vmatpush1.bf16.msra.mxu0 %v22656_v12  ;;  %v22664_v46 = vld [vmem:[#allocation120_spill] sm:$0xff]  ;;  %v22665_v12 = vld [vmem:[#allocation55_spill] sm:$0xff] }
 0xcfb   :  { %16780 = vmatprep.subr.bf16.mxu1 %v22657_v63  ;;  %16972 = vmatprep.subr.bf16.mxu0 %v22658_v35  ;;  %v22666_v63 = vld [vmem:[#allocation121_spill] sm:$0xff]  ;;  %v22671_v35 = vld [vmem:[#allocation60_spill] sm:$0xff] }
 0xcfe   :  { %16782 = vmatpush1.bf16.msra.mxu1 %v22659_v4  ;;  %16974 = vmatpush1.bf16.msra.mxu0 %v22660_v11  ;;  %v22667_v11 = vld [vmem:[#allocation58_spill] sm:$0xff]  ;;  %v22670_v4 = vld [vmem:[#allocation123_spill] sm:$0xff] }
 0xcff   :  { %16784 = vmatprep.subr.bf16.mxu1 %v22661_v2  ;;  %16976 = vmatprep.subr.bf16.mxu0 %v22662_v25  ;;  %v22668_v2 = vld [vmem:[#allocation122_spill] sm:$0xff]  ;;  %v22669_v25 = vld [vmem:[#allocation59_spill] sm:$0xff] }
 0xd01   :  { %8398 = vmatmul.mubr.f32.vlgmr.msra.gmra.mrb[10].mxu1 %v20651_v18  ;;  %9253 = vmatmul.mubr.f32.vlgmr.msra.gmra.mrb[10].mxu0 %v20651_v18 }
 0xd02   :  { %16786 = vmatpush1.bf16.msra.mxu1 %v22663_v29  ;;  %16978 = vmatpush1.bf16.msra.mxu0 %v22664_v46  ;;  %v22672_v29 = vld [vmem:[#allocation124_spill] sm:$0xff]  ;;  %v22673_v46 = vld [vmem:[#allocation61_spill] sm:$0xff] }
 0xd03   :  { %16788 = vmatprep.subr.bf16.mxu1 %v22665_v12  ;;  %16980 = vmatprep.subr.bf16.mxu0 %v22666_v63  ;;  %v22674_v12 = vld [vmem:[#allocation125_spill] sm:$0xff]  ;;  %v22675_v63 = vld [vmem:[#allocation62_spill] sm:$0xff] }
 0xd04   :  { %8532 = vmatprep.mubr.f32.mxu1 %v22057_v51  ;;  %9387 = vmatprep.mubr.f32.mxu0 %v22057_v51 }
 0xd06   :  { %16790 = vmatpush1.bf16.msra.mxu1 %v22667_v11  ;;  %16982 = vmatpush1.bf16.msra.mxu0 %v22668_v2  ;;  %v22678_v11 = vld [vmem:[#allocation127_spill] sm:$0xff]  ;;  %v22679_v2 = vld [vmem:[#allocation64_spill] sm:$0xff] }
 0xd07   :  { %16792 = vmatprep.subr.bf16.mxu1 %v22669_v25  ;;  %16984 = vmatprep.subr.bf16.mxu0 %v22670_v4  ;;  %v22680_v25 = vld [vmem:[#allocation128_spill] sm:$0xff]  ;;  %v22681_v4 = vld [vmem:[#allocation65_spill] sm:$0xff] }
 0xd0a   :  { %16794 = vmatpush1.bf16.msra.mxu1 %v22671_v35  ;;  %16986 = vmatpush1.bf16.msra.mxu0 %v22672_v29  ;;  %v22682_v35 = vld [vmem:[#allocation129_spill] sm:$0xff]  ;;  %v22683_v29 = vld [vmem:[#allocation66_spill] sm:$0xff] }
 0xd0b   :  { %16796 = vmatprep.subr.bf16.mxu1 %v22673_v46  ;;  %16988 = vmatprep.subr.bf16.mxu0 %v22674_v12  ;;  %v22684_v46 = vld [vmem:[#allocation130_spill] sm:$0xff]  ;;  %v22685_v12 = vld [vmem:[#allocation67_spill] sm:$0xff] }
 0xd0e   :  { %16798 = vmatpush1.bf16.msra.mxu1 %v22675_v63  ;;  %16990 = vmatpush1.bf16.msra.mxu0 %v22676_v34  ;;  %v22686_v63 = vld [vmem:[#allocation103_spill] sm:$0xff]  ;;  %v22687_v34 = vld [vmem:[#allocation68_spill] sm:$0xff] }
 0xd0f   :  { %16800 = vmatprep.subr.bf16.mxu1 %v22677_v42  ;;  %16992 = vmatprep.subr.bf16.mxu0 %v22678_v11  ;;  %v22688_v42 = vld [vmem:[#allocation104_spill] sm:$0xff]  ;;  %v22689_v11 = vld [vmem:[#allocation69_spill] sm:$0xff] }
 0xd12   :  { %16802 = vmatpush1.bf16.msra.mxu1 %v22679_v2  ;;  %16994 = vmatpush1.bf16.msra.mxu0 %v22680_v25  ;;  %v22690_v2 = vld [vmem:[#allocation105_spill] sm:$0xff]  ;;  %v22691_v25 = vld [vmem:[#allocation35_spill] sm:$0xff] }
 0xd13   :  { %16804 = vmatprep.subr.bf16.mxu1 %v22681_v4  ;;  %16996 = vmatprep.subr.bf16.mxu0 %v22682_v35  ;;  %v22692_v4 = vld [vmem:[#allocation106_spill] sm:$0xff] }
 0xd14   :  { %v22704_v35 = vld [vmem:[#allocation42_spill] sm:$0xff] }
 0xd16   :  { %16806 = vmatpush1.bf16.msra.mxu1 %v22683_v29  ;;  %16998 = vmatpush1.bf16.msra.mxu0 %v22684_v46  ;;  %v22702_v46 = vld [vmem:[#allocation41_spill] sm:$0xff]  ;;  %v22703_v29 = vld [vmem:[#allocation70_spill] sm:$0xff] }
 0xd17   :  { %16808 = vmatprep.subr.bf16.mxu1 %v22685_v12  ;;  %17000 = vmatprep.subr.bf16.mxu0 %v22686_v63  ;;  %v22700_v63 = vld [vmem:[#allocation40_spill] sm:$0xff]  ;;  %v22701_v12 = vld [vmem:[#allocation6_spill] sm:$0xff] }
 0xd1a   :  { %16810 = vmatpush1.bf16.msra.mxu1 %v22687_v34  ;;  %17002 = vmatpush1.bf16.msra.mxu0 %v22688_v42  ;;  %v22698_v42 = vld [vmem:[#allocation34_spill] sm:$0xff]  ;;  %v22699_v34 = vld [vmem:[#allocation88_spill] sm:$0xff] }
 0xd1b   :  { %16812 = vmatprep.subr.bf16.mxu1 %v22689_v11  ;;  %17004 = vmatprep.subr.bf16.mxu0 %v22690_v2  ;;  %v22696_v2 = vld [vmem:[#allocation32_spill] sm:$0xff]  ;;  %v22697_v11 = vld [vmem:[#allocation87_spill] sm:$0xff] }
 0xd1e   :  { %16814 = vmatpush1.bf16.msra.mxu1 %v22691_v25  ;;  %17006 = vmatpush1.bf16.msra.mxu0 %v22692_v4  ;;  %v22694_v4 = vld [vmem:[#allocation30_spill] sm:$0xff] }
 0xd1f   :  { %16816 = vmatprep.subr.bf16.mxu1 %v22270_v39  ;;  %17008 = vmatprep.subr.bf16.mxu0 %v22271_v37  ;;  %v22695_v25 = vld [vmem:[#allocation86_spill] sm:$0xff] }
 0xd21   :  { %8535 = vmatmul.mubr.f32.vlgmr.msra.gmra.mrb[10].mxu1 %v20654_v56  ;;  %9390 = vmatmul.mubr.f32.vlgmr.msra.gmra.mrb[10].mxu0 %v20654_v56  ;;  %v22693_v56 = vld [vmem:[#allocation83_spill] sm:$0xff] }
 0xd22   :  { %16818 = vmatpush1.bf16.msra.mxu1 %v22273_v38  ;;  %17010 = vmatpush1.bf16.msra.mxu0 %v22274_v62 }
 0xd23   :  { %16820 = vmatprep.subr.bf16.mxu1 %v22275_v15  ;;  %17012 = vmatprep.subr.bf16.mxu0 %v22276_v27 }
 0xd24   :  { %8637 = vmatprep.mubr.f32.mxu1 %v22057_v51  ;;  %9492 = vmatprep.mubr.f32.mxu0 %v22057_v51 }
 0xd26   :  { %16822 = vmatpush1.bf16.msra.mxu1 %v22277_v24  ;;  %17014 = vmatpush1.bf16.msra.mxu0 %v22278_v10 }
 0xd27   :  { %16824 = vmatprep.subr.bf16.mxu1 %v22279_v5  ;;  %17016 = vmatprep.subr.bf16.mxu0 %v22280_v23 }
 0xd2a   :  { %16826 = vmatpush1.bf16.msra.mxu1 %v22281_v50  ;;  %17018 = vmatpush1.bf16.msra.mxu0 %v22282_v47 }
 0xd2b   :  { %16828 = vmatprep.subr.bf16.mxu1 %v22283_v16  ;;  %17020 = vmatprep.subr.bf16.mxu0 %v22284_v36 }
 0xd2e   :  { %16830 = vmatpush1.bf16.msra.mxu1 %v22285_v8  ;;  %17022 = vmatpush1.bf16.msra.mxu0 %v22286_v3 }
 0xd2f   :  { %16832 = vmatprep.subr.bf16.mxu1 %v22287_v58  ;;  %17024 = vmatprep.subr.bf16.mxu0 %v22288_v54 }
 0xd32   :  { %16834 = vmatpush1.bf16.msra.mxu1 %v22289_v22  ;;  %17026 = vmatpush1.bf16.msra.mxu0 %v22290_v31 }
 0xd33   :  { %16836 = vmatprep.subr.bf16.mxu1 %v22291_v45  ;;  %17028 = vmatprep.subr.bf16.mxu0 %v22292_v19 }
 0xd36   :  { %16838 = vmatpush1.bf16.msra.mxu1 %v22293_v55  ;;  %17030 = vmatpush1.bf16.msra.mxu0 %v22294_v9 }
 0xd37   :  { %16840 = vmatprep.subr.bf16.mxu1 %v22295_v44  ;;  %17032 = vmatprep.subr.bf16.mxu0 %v22693_v56 }
 0xd3a   :  { %16842 = vmatpush1.bf16.msra.mxu1 %v22694_v4  ;;  %17034 = vmatpush1.bf16.msra.mxu0 %v22695_v25 }
 0xd3b   :  { %16844 = vmatprep.subr.bf16.mxu1 %v22696_v2  ;;  %17036 = vmatprep.subr.bf16.mxu0 %v22697_v11 }
 0xd3e   :  { %16846 = vmatpush1.bf16.msra.mxu1 %v22698_v42  ;;  %17038 = vmatpush1.bf16.msra.mxu0 %v22699_v34 }
 0xd3f   :  { %16848 = vmatprep.subr.bf16.mxu1 %v22700_v63  ;;  %17040 = vmatprep.subr.bf16.mxu0 %v22701_v12  ;;  %v22707_v63 = vld [vmem:[#allocation7_spill] sm:$0xff]  ;;  %v22708_v12 = vld [vmem:[#allocation45_spill] sm:$0xff] }
 0xd41   :  { %8641 = vmatmul.mubr.f32.vlgmr.msra.gmra.mrb[10].mxu1 %v20657_v20  ;;  %9496 = vmatmul.mubr.f32.vlgmr.msra.gmra.mrb[10].mxu0 %v20657_v20  ;;  %v22710_v20 = vld [vmem:[#allocation46_spill] sm:$0xff] }
 0xd42   :  { %16850 = vmatpush1.bf16.msra.mxu1 %v22702_v46  ;;  %17042 = vmatpush1.bf16.msra.mxu0 %v22703_v29  ;;  %v22711_v46 = vld [vmem:[#allocation8_spill] sm:$0xff]  ;;  %v22712_v29 = vld [vmem:[#allocation47_spill] sm:$0xff] }
 0xd43   :  { %16852 = vmatprep.subr.bf16.mxu1 %v22704_v35  ;;  %17044 = vmatprep.subr.bf16.mxu0 %v22705_v13  ;;  %v22713_v35 = vld [vmem:[#allocation72_spill] sm:$0xff] }
 0xd44   :  { %8807 = vmatprep.mubr.f32.mxu1 %v22057_v51  ;;  %9662 = vmatprep.mubr.f32.mxu0 %v22057_v51  ;;  %v22714_v13 = vld [vmem:[#allocation48_spill] sm:$0xff] }
 0xd46   :  { %16854 = vmatpush1.bf16.msra.mxu1 %v22706_v7  ;;  %17046 = vmatpush1.bf16.msra.mxu0 %v22707_v63  ;;  %v22717_v7 = vld [vmem:[#allocation73_spill] sm:$0xff]  ;;  %v22718_v63 = vld [vmem:[#allocation50_spill] sm:$0xff] }
 0xd47   :  { %16856 = vmatprep.subr.bf16.mxu1 %v22708_v12  ;;  %17048 = vmatprep.subr.bf16.mxu0 %v22709_v49  ;;  %v22719_v12 = vld [vmem:[#allocation13_spill] sm:$0xff]  ;;  %v22720_v49 = vld [vmem:[#allocation51_spill] sm:$0xff] }
 0xd4a   :  { %16858 = vmatpush1.bf16.msra.mxu1 %v22710_v20  ;;  %17050 = vmatpush1.bf16.msra.mxu0 %v22711_v46  ;;  %v22721_v20 = vld [vmem:[#allocation74_spill] sm:$0xff]  ;;  %v22722_v46 = vld [vmem:[#allocation52_spill] sm:$0xff] }
 0xd4b   :  { %16860 = vmatprep.subr.bf16.mxu1 %v22712_v29  ;;  %17052 = vmatprep.subr.bf16.mxu0 %v22713_v35  ;;  %v22723_v29 = vld [vmem:[#allocation14_spill] sm:$0xff]  ;;  %v22724_v35 = vld [vmem:[#allocation53_spill] sm:$0xff] }
 0xd4e   :  { %16862 = vmatpush1.bf16.msra.mxu1 %v22714_v13  ;;  %17054 = vmatpush1.bf16.msra.mxu0 %v22715_v33  ;;  %v22725_v13 = vld [vmem:[#allocation75_spill] sm:$0xff]  ;;  %v22726_v33 = vld [vmem:[#allocation54_spill] sm:$0xff] }
 0xd4f   :  { %16864 = vmatprep.subr.bf16.mxu1 %v22716_v0  ;;  %17056 = vmatprep.subr.bf16.mxu0 %v22717_v7  ;;  %v22727_v0 = vld [vmem:[#allocation15_spill] sm:$0xff]  ;;  %v22728_v7 = vld [vmem:[#allocation56_spill] sm:$0xff] }
 0xd52   :  { %16866 = vmatpush1.bf16.msra.mxu1 %v22718_v63  ;;  %17058 = vmatpush1.bf16.msra.mxu0 %v22719_v12  ;;  %v22729_v63 = vld [vmem:[#allocation76_spill] sm:$0xff]  ;;  %v22730_v12 = vld [vmem:[#allocation57_spill] sm:$0xff] }
 0xd53   :  { %16868 = vmatprep.subr.bf16.mxu1 %v22720_v49  ;;  %17060 = vmatprep.subr.bf16.mxu0 %v22721_v20  ;;  %v22731_v49 = vld [vmem:[#allocation18_spill] sm:$0xff] }
 0xd56   :  { %16870 = vmatpush1.bf16.msra.mxu1 %v22722_v46  ;;  %17062 = vmatpush1.bf16.msra.mxu0 %v22723_v29 }
 0xd57   :  { %16872 = vmatprep.subr.bf16.mxu1 %v22724_v35  ;;  %17064 = vmatprep.subr.bf16.mxu0 %v22725_v13 }
 0xd5a   :  { %16874 = vmatpush1.bf16.msra.mxu1 %v22726_v33  ;;  %17066 = vmatpush1.bf16.msra.mxu0 %v22727_v0  ;;  %v22734_v33 = vld [vmem:[#allocation77_spill] sm:$0xff] }
 0xd5b   :  { %16876 = vmatprep.subr.bf16.mxu1 %v22728_v7  ;;  %17068 = vmatprep.subr.bf16.mxu0 %v22729_v63 }
 0xd5e   :  { %16878 = vmatpush1.bf16.msra.mxu1 %v22730_v12  ;;  %17070 = vmatpush1.bf16.msra.mxu0 %v22731_v49  ;;  %v22733_v49 = vld [vmem:[#allocation89_spill] sm:$0xff]  ;;  %v14817_v12 = vld.sshfl [vmem:[%s21638_s0 + $0x14] sm:$0x33 pattern:$0x76325410] }
 0xd5f   :  { %16880 = vmatprep.subr.bf16.mxu1 %v22270_v39  ;;  %17072 = vmatprep.subr.bf16.mxu0 %v22271_v37  ;;  %v9784_v29 = vcombine.high %v14817_v12, %v14817_v12 }
 0xd61   :  { %8809 = vmatmul.mubr.f32.vlgmr.msra.gmra.mrb[10].mxu1 %v20651_v18  ;;  %9664 = vmatmul.mubr.f32.vlgmr.msra.gmra.mrb[10].mxu0 %v20651_v18 }
 0xd62   :  { %16882 = vmatpush1.bf16.msra.mxu1 %v22273_v38  ;;  %17074 = vmatpush1.bf16.msra.mxu0 %v22274_v62 }
 0xd63   :  { %16884 = vmatprep.subr.bf16.mxu1 %v22275_v15  ;;  %17076 = vmatprep.subr.bf16.mxu0 %v22276_v27 }
 0xd64   :  { %8911 = vmatprep.mubr.f32.mxu1 %v22057_v51  ;;  %9766 = vmatprep.mubr.f32.mxu0 %v22057_v51 }
 0xd66   :  { %16886 = vmatpush1.bf16.msra.mxu1 %v22277_v24  ;;  %17078 = vmatpush1.bf16.msra.mxu0 %v22278_v10 }
 0xd67   :  { %16888 = vmatprep.subr.bf16.mxu1 %v22279_v5  ;;  %17080 = vmatprep.subr.bf16.mxu0 %v22280_v23 }
 0xd6a   :  { %16890 = vmatpush1.bf16.msra.mxu1 %v22281_v50  ;;  %17082 = vmatpush1.bf16.msra.mxu0 %v22282_v47 }
 0xd6b   :  { %16892 = vmatprep.subr.bf16.mxu1 %v22283_v16  ;;  %17084 = vmatprep.subr.bf16.mxu0 %v22284_v36 }
 0xd6e   :  { %16894 = vmatpush1.bf16.msra.mxu1 %v22285_v8  ;;  %17086 = vmatpush1.bf16.msra.mxu0 %v22286_v3 }
 0xd6f   :  { %16896 = vmatprep.subr.bf16.mxu1 %v22287_v58  ;;  %17088 = vmatprep.subr.bf16.mxu0 %v22288_v54 }
 0xd72   :  { %16898 = vmatpush1.bf16.msra.mxu1 %v22289_v22  ;;  %17090 = vmatpush1.bf16.msra.mxu0 %v22290_v31 }
 0xd73   :  { %16900 = vmatprep.subr.bf16.mxu1 %v22291_v45  ;;  %17092 = vmatprep.subr.bf16.mxu0 %v22292_v19 }
 0xd76   :  { %16902 = vmatpush1.bf16.msra.mxu1 %v22293_v55  ;;  %17094 = vmatpush1.bf16.msra.mxu0 %v22294_v9 }
 0xd77   :  { %16904 = vmatprep.subr.bf16.mxu1 %v22295_v44  ;;  %17096 = vmatprep.subr.bf16.mxu0 %v22693_v56 }
 0xd7a   :  { %16906 = vmatpush1.bf16.msra.mxu1 %v22694_v4  ;;  %17098 = vmatpush1.bf16.msra.mxu0 %v22695_v25 }
 0xd7b   :  { %16908 = vmatprep.subr.bf16.mxu1 %v22696_v2  ;;  %17100 = vmatprep.subr.bf16.mxu0 %v22697_v11 }
 0xd7e   :  { %16910 = vmatpush1.bf16.msra.mxu1 %v22698_v42  ;;  %17102 = vmatpush1.bf16.msra.mxu0 %v22699_v34 }
 0xd7f   :  { %17104 = vmatprep.subr.bf16.mxu1 %v22270_v39  ;;  %17296 = vmatprep.subr.bf16.mxu0 %v22271_v37 }
 0xd81   :  { %8913 = vmatmul.mubr.f32.vlgmr.msra.gmra.mrb[10].mxu1 %v20651_v18  ;;  %9768 = vmatmul.mubr.f32.vlgmr.msra.gmra.mrb[10].mxu0 %v20651_v18  ;;  %v22732_v18 = vld [vmem:[#allocation10_spill] sm:$0xff] }
 0xd82   :  { %17106 = vmatpush1.bf16.msra.mxu1 %v22273_v38  ;;  %17298 = vmatpush1.bf16.msra.mxu0 %v22274_v62 }
 0xd83   :  { %17108 = vmatprep.subr.bf16.mxu1 %v22275_v15  ;;  %17300 = vmatprep.subr.bf16.mxu0 %v22276_v27 }
 0xd84   :  { %9928 = vmatprep.mubr.f32.mxu1 %v22057_v51  ;;  %10783 = vmatprep.mubr.f32.mxu0 %v22057_v51 }
 0xd86   :  { %17110 = vmatpush1.bf16.msra.mxu1 %v22277_v24  ;;  %17302 = vmatpush1.bf16.msra.mxu0 %v22278_v10 }
 0xd87   :  { %17112 = vmatprep.subr.bf16.mxu1 %v22279_v5  ;;  %17304 = vmatprep.subr.bf16.mxu0 %v22280_v23 }
 0xd8a   :  { %17114 = vmatpush1.bf16.msra.mxu1 %v22281_v50  ;;  %17306 = vmatpush1.bf16.msra.mxu0 %v22282_v47 }
 0xd8b   :  { %17116 = vmatprep.subr.bf16.mxu1 %v22283_v16  ;;  %17308 = vmatprep.subr.bf16.mxu0 %v22284_v36 }
 0xd8e   :  { %17118 = vmatpush1.bf16.msra.mxu1 %v22285_v8  ;;  %17310 = vmatpush1.bf16.msra.mxu0 %v22286_v3 }
 0xd8f   :  { %17120 = vmatprep.subr.bf16.mxu1 %v22287_v58  ;;  %17312 = vmatprep.subr.bf16.mxu0 %v22288_v54 }
 0xd92   :  { %17122 = vmatpush1.bf16.msra.mxu1 %v22289_v22  ;;  %17314 = vmatpush1.bf16.msra.mxu0 %v22290_v31 }
 0xd93   :  { %17124 = vmatprep.subr.bf16.mxu1 %v22291_v45  ;;  %17316 = vmatprep.subr.bf16.mxu0 %v22292_v19 }
 0xd96   :  { %17126 = vmatpush1.bf16.msra.mxu1 %v22293_v55  ;;  %17318 = vmatpush1.bf16.msra.mxu0 %v22294_v9 }
 0xd97   :  { %17128 = vmatprep.subr.bf16.mxu1 %v22295_v44  ;;  %17320 = vmatprep.subr.bf16.mxu0 %v22693_v56 }
 0xd9a   :  { %17130 = vmatpush1.bf16.msra.mxu1 %v22694_v4  ;;  %17322 = vmatpush1.bf16.msra.mxu0 %v22695_v25 }
 0xd9b   :  { %17132 = vmatprep.subr.bf16.mxu1 %v22696_v2  ;;  %17324 = vmatprep.subr.bf16.mxu0 %v22697_v11 }
 0xd9e   :  { %17134 = vmatpush1.bf16.msra.mxu1 %v22698_v42  ;;  %17326 = vmatpush1.bf16.msra.mxu0 %v22699_v34 }
 0xd9f   :  { %17136 = vmatprep.subr.bf16.mxu1 %v22732_v18  ;;  %17328 = vmatprep.subr.bf16.mxu0 %v22733_v49 }
 0xe54   :  { %v8914_v63 = vpop.f32.mrb[10].mxu1  ;;  %v9769_v7 = vpop.f32.mrb[10].mxu0 }
 0xe55   :  { %v9787_v0 = vadd.f32 %v14817_v12, %v8914_v63  ;;  %v9807_v13 = vadd.f32 %v9769_v7, %v22734_v33  ;;  %v8916_v35 = vpop.f32.mrb[11].mxu1  ;;  %v9771_v46 = vpop.f32.mrb[11].mxu0 }
 0xe56   :  { %v9788_v34 = vadd.f32 %v9784_v29, %v8916_v35  ;;  %v9808_v18 = vadd.f32 %v9771_v46, %v19914_v57 }
 0xe57   :  { %v9789_v20 = vmul.f32 0.5, %v9787_v0  ;;  %v9809_v42 = vmul.f32 0.5, %v9807_v13 }
 0xe58   :  { %v9790_v0 = vmul.f32 0.5, %v9788_v34 }
 0xe59   :  { %18384 = vtanh.f32 %v9789_v20 }
 0xe5a   :  { %18386 = vtanh.f32 %v9809_v42 }
 0xe5b   :  { %18388 = vtanh.f32 %v9788_v34 }
 0xe5c   :  { %18390 = vtanh.f32 %v9808_v18 }
 0xe5d   :  { %18392 = vtanh.f32 %v9790_v0 }
 0xe63   :  { %v18385_v49 = vpop.eup %18384 }
 0xe64   :  { %v18387_v11 = vpop.eup %18386  ;;  %v9793_v2 = vadd.f32 1.0, %v18385_v49 }
 0xe65   :  { %v9813_v25 = vadd.f32 1.0, %v18387_v11  ;;  %v18389_v63 = vpop.eup %18388 }
 0xe66   :  { %v9795_v4 = vmul.f32 0.5, %v9793_v2  ;;  %v18391_v7 = vpop.eup %18390 }
 0xe67   :  { %v9815_v56 = vmul.f32 0.5, %v9813_v25  ;;  %v18393_v49 = vpop.eup %18392  ;;  %v9810_v25 = vmul.f32 0.5, %v9808_v18 }
 0xe68   :  { %v9799_v33 = vmul.f32 %v18389_v63, %v9795_v4  ;;  %v9798_v42 = vmul.f32 %v9795_v4, %v20642_v17  ;;  %v9794_v46 = vadd.f32 1.0, %v18393_v49 }
 0xe69   :  { %v9819_v12 = vmul.f32 %v18391_v7, %v9815_v56  ;;  %v9818_v34 = vmul.f32 %v9815_v56, %v20647_v1 }
 0xe6a   :  { %9801 = vrot.lane.b32.xlu0 %v9799_v33, %s18468_s9  ;;  %v9796_v35 = vmul.f32 0.5, %v9794_v46  ;;  %v22735_v46 = vld [vmem:[#allocation27_spill] sm:$0xff] }
 0xe6b   :  { %9821 = vrot.lane.b32.xlu1 %v9819_v12, %s18468_s9 }
 0xedc   :  { %v9802_v13 = vpop.permute.xlu0 %9801 }
 0xedd   :  { %v20883_v29 = vadd.f32 %v9802_v13, %v9798_v42  ;;  %v9822_v33 = vpop.permute.xlu1 %9821 }
 0xede   :  { %v20888_v20 = vadd.f32 %v9822_v33, %v9818_v34  ;;  %v22740_v33 = vld [vmem:[#allocation119_spill] sm:$0xff]  ;;  %v22741_v34 = vld [vmem:[#allocation33_spill] sm:$0xff] }
 0xedf   :  { %18394 = vtanh.f32 %v20883_v29 }
 0xee0   :  { %18396 = vtanh.f32 %v9810_v25  ;;  %v22739_v25 = vld [vmem:[#allocation31_spill] sm:$0xff] }
 0xee1   :  { %18398 = vtanh.f32 %v20888_v20 }
 0xee9   :  { %v18395_v11 = vpop.eup %18394 }
 0xeea   :  { %v9806_v2 = vmul.f32 %v18395_v11, %v9796_v35  ;;  %v18397_v17 = vpop.eup %18396  ;;  %v22736_v35 = vld [vmem:[#allocation117_spill] sm:$0xff] }
 0xeeb   :  { %v9814_v4 = vadd.f32 1.0, %v18397_v17  ;;  %v18399_v63 = vpop.eup %18398  ;;  %v22737_v11 = vld [vmem:[#allocation29_spill] sm:$0xff]  ;;  %v22742_v17 = vld [vmem:[#allocation98_spill] sm:$0xff] }
 0xeec   :  { %9828 = vrot.lane.b32.xlu0 %v9806_v2, %s18468_s9  ;;  %v22738_v2 = vld [vmem:[#allocation118_spill] sm:$0xff] }
 0xeed   :  { %v9816_v7 = vmul.f32 0.5, %v9814_v4  ;;  %v22743_v4 = vld [vmem:[#allocation36_spill] sm:$0xff] }
 0xeef   :  { %v9826_v12 = vmul.f32 %v18399_v63, %v9816_v7  ;;  %v22744_v63 = vld [vmem:[#allocation99_spill] sm:$0xff]  ;;  %v22745_v7 = vld [vmem:[#allocation37_spill] sm:$0xff] }
 0xf5e   :  { %v9829_v0 = vpop.permute.xlu0 %9828 }
 0xf5f   :  { %v9831_v42 = vsel %vm979_vm0, %v9829_v0, %v9826_v12  ;;  %v22746_v12 = vld [vmem:[#allocation100_spill] sm:$0xff]  ;;  %v22747_v0 = vld [vmem:[#allocation43_spill] sm:$0xff] }
 0xf60   :  { %v20892_v13 = vand.u32 4294901760, %v9831_v42 }
 0xf62   :  { %v20895_v18 = vsub.f32 %v9831_v42, %v20892_v13  ;;  %v22748_v42 = vld [vmem:[#allocation102_spill] sm:$0xff] }
 0xf64   :  { %v20898_v49 = vand.u32 4294901760, %v20895_v18 }
 0xf66   :  { %v9932_v1 = vsub.f32 %v20895_v18, %v20898_v49 }
 0xf68   :  { %v9933_v56 = vand.u32 4294901760, %v9932_v1  ;;  %v22749_v1 = vld [vmem:[#allocation38_spill] sm:$0xff] }
 0xf6a   :  { %9934 = vmatmul.mubr.f32.vlgmr.msra.gmra.mrb[12].mxu1 %v9933_v56  ;;  %10789 = vmatmul.mubr.f32.vlgmr.msra.gmra.mrb[12].mxu0 %v9933_v56  ;;  %v22750_v56 = vld [vmem:[#allocation101_spill] sm:$0xff] }
 0xf6b   :  { %17138 = vmatpush1.bf16.msra.mxu1 %v22384_v41  ;;  %17330 = vmatpush1.bf16.msra.mxu0 %v22385_v52 }
 0xf6c   :  { %17140 = vmatprep.subr.bf16.mxu1 %v22386_v48  ;;  %17332 = vmatprep.subr.bf16.mxu0 %v22387_v32 }
 0xf6d   :  { %10164 = vmatprep.mubr.f32.mxu1 %v22057_v51  ;;  %11019 = vmatprep.mubr.f32.mxu0 %v22057_v51 }
 0xf6f   :  { %17142 = vmatpush1.bf16.msra.mxu1 %v22471_v26  ;;  %17334 = vmatpush1.bf16.msra.mxu0 %v22472_v61 }
 0xf70   :  { %17144 = vmatprep.subr.bf16.mxu1 %v22473_v59  ;;  %17336 = vmatprep.subr.bf16.mxu0 %v22474_v30 }
 0xf73   :  { %17146 = vmatpush1.bf16.msra.mxu1 %v22475_v28  ;;  %17338 = vmatpush1.bf16.msra.mxu0 %v22559_v53 }
 0xf74   :  { %17148 = vmatprep.subr.bf16.mxu1 %v22560_v60  ;;  %17340 = vmatprep.subr.bf16.mxu0 %v22561_v40 }
 0xf77   :  { %17150 = vmatpush1.bf16.msra.mxu1 %v22562_v21  ;;  %17342 = vmatpush1.bf16.msra.mxu0 %v22563_v6 }
 0xf78   :  { %17152 = vmatprep.subr.bf16.mxu1 %v22647_v14  ;;  %17344 = vmatprep.subr.bf16.mxu0 %v22648_v43 }
 0xf7b   :  { %17154 = vmatpush1.bf16.msra.mxu1 %v22735_v46  ;;  %17346 = vmatpush1.bf16.msra.mxu0 %v22736_v35  ;;  %v22803_v35 = vld [vmem:[#allocation9_spill] sm:$0xff] }
 0xf7c   :  { %17156 = vmatprep.subr.bf16.mxu1 %v22737_v11  ;;  %17348 = vmatprep.subr.bf16.mxu0 %v22738_v2  ;;  %v22794_v2 = vld [vmem:[#allocation44_spill] sm:$0xff]  ;;  %v22797_v11 = vld [vmem:[#allocation71_spill] sm:$0xff]  ;;  %v22804_v46 = vld [vmem:[#allocation49_spill] sm:$0xff] }
 0xf7f   :  { %17158 = vmatpush1.bf16.msra.mxu1 %v22739_v25  ;;  %17350 = vmatpush1.bf16.msra.mxu0 %v22740_v33  ;;  %v22765_v33 = vld [vmem:[#allocation63_spill] sm:$0xff]  ;;  %v22793_v25 = vld [vmem:[#allocation108_spill] sm:$0xff] }
 0xf80   :  { %17160 = vmatprep.subr.bf16.mxu1 %v22741_v34  ;;  %17352 = vmatprep.subr.bf16.mxu0 %v22742_v17  ;;  %v22751_v17 = vld [vmem:[#allocation39_spill] sm:$0xff]  ;;  %v22764_v34 = vld [vmem:[#allocation126_spill] sm:$0xff] }
 0xf83   :  { %17162 = vmatpush1.bf16.msra.mxu1 %v22743_v4  ;;  %17354 = vmatpush1.bf16.msra.mxu0 %v22744_v63  ;;  %v22752_v4 = vld [vmem:[#allocation120_spill] sm:$0xff]  ;;  %v22753_v63 = vld [vmem:[#allocation55_spill] sm:$0xff] }
 0xf84   :  { %17164 = vmatprep.subr.bf16.mxu1 %v22745_v7  ;;  %17356 = vmatprep.subr.bf16.mxu0 %v22746_v12  ;;  %v22754_v7 = vld [vmem:[#allocation121_spill] sm:$0xff]  ;;  %v22759_v12 = vld [vmem:[#allocation60_spill] sm:$0xff] }
 0xf87   :  { %17166 = vmatpush1.bf16.msra.mxu1 %v22747_v0  ;;  %17358 = vmatpush1.bf16.msra.mxu0 %v22748_v42  ;;  %v22755_v42 = vld [vmem:[#allocation58_spill] sm:$0xff]  ;;  %v22758_v0 = vld [vmem:[#allocation123_spill] sm:$0xff] }
 0xf88   :  { %17168 = vmatprep.subr.bf16.mxu1 %v22749_v1  ;;  %17360 = vmatprep.subr.bf16.mxu0 %v22750_v56  ;;  %v22756_v1 = vld [vmem:[#allocation122_spill] sm:$0xff]  ;;  %v22757_v56 = vld [vmem:[#allocation59_spill] sm:$0xff] }
 0xf8a   :  { %10166 = vmatmul.mubr.f32.vlgmr.msra.gmra.mrb[12].mxu1 %v20892_v13  ;;  %11021 = vmatmul.mubr.f32.vlgmr.msra.gmra.mrb[12].mxu0 %v20892_v13 }
 0xf8b   :  { %17170 = vmatpush1.bf16.msra.mxu1 %v22751_v17  ;;  %17362 = vmatpush1.bf16.msra.mxu0 %v22752_v4  ;;  %v22760_v17 = vld [vmem:[#allocation124_spill] sm:$0xff]  ;;  %v22761_v4 = vld [vmem:[#allocation61_spill] sm:$0xff] }
 0xf8c   :  { %17172 = vmatprep.subr.bf16.mxu1 %v22753_v63  ;;  %17364 = vmatprep.subr.bf16.mxu0 %v22754_v7  ;;  %v22762_v63 = vld [vmem:[#allocation125_spill] sm:$0xff]  ;;  %v22763_v7 = vld [vmem:[#allocation62_spill] sm:$0xff] }
 0xf8d   :  { %10300 = vmatprep.mubr.f32.mxu1 %v22057_v51  ;;  %11155 = vmatprep.mubr.f32.mxu0 %v22057_v51 }
 0xf8f   :  { %17174 = vmatpush1.bf16.msra.mxu1 %v22755_v42  ;;  %17366 = vmatpush1.bf16.msra.mxu0 %v22756_v1  ;;  %v22766_v42 = vld [vmem:[#allocation127_spill] sm:$0xff]  ;;  %v22767_v1 = vld [vmem:[#allocation64_spill] sm:$0xff] }
 0xf90   :  { %17176 = vmatprep.subr.bf16.mxu1 %v22757_v56  ;;  %17368 = vmatprep.subr.bf16.mxu0 %v22758_v0  ;;  %v22768_v56 = vld [vmem:[#allocation128_spill] sm:$0xff]  ;;  %v22769_v0 = vld [vmem:[#allocation65_spill] sm:$0xff] }
 0xf93   :  { %17178 = vmatpush1.bf16.msra.mxu1 %v22759_v12  ;;  %17370 = vmatpush1.bf16.msra.mxu0 %v22760_v17  ;;  %v22770_v12 = vld [vmem:[#allocation129_spill] sm:$0xff]  ;;  %v22771_v17 = vld [vmem:[#allocation66_spill] sm:$0xff] }
 0xf94   :  { %17180 = vmatprep.subr.bf16.mxu1 %v22761_v4  ;;  %17372 = vmatprep.subr.bf16.mxu0 %v22762_v63  ;;  %v22772_v4 = vld [vmem:[#allocation130_spill] sm:$0xff]  ;;  %v22773_v63 = vld [vmem:[#allocation67_spill] sm:$0xff] }
 0xf97   :  { %17182 = vmatpush1.bf16.msra.mxu1 %v22763_v7  ;;  %17374 = vmatpush1.bf16.msra.mxu0 %v22764_v34  ;;  %v22774_v7 = vld [vmem:[#allocation103_spill] sm:$0xff]  ;;  %v22775_v34 = vld [vmem:[#allocation68_spill] sm:$0xff] }
 0xf98   :  { %17184 = vmatprep.subr.bf16.mxu1 %v22765_v33  ;;  %17376 = vmatprep.subr.bf16.mxu0 %v22766_v42  ;;  %v22776_v33 = vld [vmem:[#allocation104_spill] sm:$0xff]  ;;  %v22777_v42 = vld [vmem:[#allocation69_spill] sm:$0xff] }
 0xf9b   :  { %17186 = vmatpush1.bf16.msra.mxu1 %v22767_v1  ;;  %17378 = vmatpush1.bf16.msra.mxu0 %v22768_v56  ;;  %v22778_v1 = vld [vmem:[#allocation105_spill] sm:$0xff]  ;;  %v22779_v56 = vld [vmem:[#allocation35_spill] sm:$0xff] }
 0xf9c   :  { %17188 = vmatprep.subr.bf16.mxu1 %v22769_v0  ;;  %17380 = vmatprep.subr.bf16.mxu0 %v22770_v12  ;;  %v22780_v0 = vld [vmem:[#allocation106_spill] sm:$0xff] }
 0xf9d   :  { %v22792_v12 = vld [vmem:[#allocation42_spill] sm:$0xff] }
 0xf9f   :  { %17190 = vmatpush1.bf16.msra.mxu1 %v22771_v17  ;;  %17382 = vmatpush1.bf16.msra.mxu0 %v22772_v4  ;;  %v22790_v4 = vld [vmem:[#allocation41_spill] sm:$0xff]  ;;  %v22791_v17 = vld [vmem:[#allocation70_spill] sm:$0xff] }
 0xfa0   :  { %17192 = vmatprep.subr.bf16.mxu1 %v22773_v63  ;;  %17384 = vmatprep.subr.bf16.mxu0 %v22774_v7  ;;  %v22788_v7 = vld [vmem:[#allocation40_spill] sm:$0xff]  ;;  %v22789_v63 = vld [vmem:[#allocation6_spill] sm:$0xff] }
 0xfa3   :  { %17194 = vmatpush1.bf16.msra.mxu1 %v22775_v34  ;;  %17386 = vmatpush1.bf16.msra.mxu0 %v22776_v33  ;;  %v22786_v33 = vld [vmem:[#allocation34_spill] sm:$0xff]  ;;  %v22787_v34 = vld [vmem:[#allocation88_spill] sm:$0xff] }
 0xfa4   :  { %17196 = vmatprep.subr.bf16.mxu1 %v22777_v42  ;;  %17388 = vmatprep.subr.bf16.mxu0 %v22778_v1  ;;  %v22784_v1 = vld [vmem:[#allocation32_spill] sm:$0xff]  ;;  %v22785_v42 = vld [vmem:[#allocation87_spill] sm:$0xff] }
 0xfa7   :  { %17198 = vmatpush1.bf16.msra.mxu1 %v22779_v56  ;;  %17390 = vmatpush1.bf16.msra.mxu0 %v22780_v0  ;;  %v22782_v0 = vld [vmem:[#allocation30_spill] sm:$0xff] }
 0xfa8   :  { %17200 = vmatprep.subr.bf16.mxu1 %v22270_v39  ;;  %17392 = vmatprep.subr.bf16.mxu0 %v22271_v37  ;;  %v22783_v56 = vld [vmem:[#allocation86_spill] sm:$0xff] }
 0xfaa   :  { %10303 = vmatmul.mubr.f32.vlgmr.msra.gmra.mrb[12].mxu1 %v20895_v18  ;;  %11158 = vmatmul.mubr.f32.vlgmr.msra.gmra.mrb[12].mxu0 %v20895_v18  ;;  %v22781_v18 = vld [vmem:[#allocation83_spill] sm:$0xff] }
 0xfab   :  { %17202 = vmatpush1.bf16.msra.mxu1 %v22273_v38  ;;  %17394 = vmatpush1.bf16.msra.mxu0 %v22274_v62 }
 0xfac   :  { %17204 = vmatprep.subr.bf16.mxu1 %v22275_v15  ;;  %17396 = vmatprep.subr.bf16.mxu0 %v22276_v27 }
 0xfad   :  { %10405 = vmatprep.mubr.f32.mxu1 %v22057_v51  ;;  %11260 = vmatprep.mubr.f32.mxu0 %v22057_v51 }
 0xfaf   :  { %17206 = vmatpush1.bf16.msra.mxu1 %v22277_v24  ;;  %17398 = vmatpush1.bf16.msra.mxu0 %v22278_v10 }
 0xfb0   :  { %17208 = vmatprep.subr.bf16.mxu1 %v22279_v5  ;;  %17400 = vmatprep.subr.bf16.mxu0 %v22280_v23 }
 0xfb3   :  { %17210 = vmatpush1.bf16.msra.mxu1 %v22281_v50  ;;  %17402 = vmatpush1.bf16.msra.mxu0 %v22282_v47 }
 0xfb4   :  { %17212 = vmatprep.subr.bf16.mxu1 %v22283_v16  ;;  %17404 = vmatprep.subr.bf16.mxu0 %v22284_v36 }
 0xfb7   :  { %17214 = vmatpush1.bf16.msra.mxu1 %v22285_v8  ;;  %17406 = vmatpush1.bf16.msra.mxu0 %v22286_v3 }
 0xfb8   :  { %17216 = vmatprep.subr.bf16.mxu1 %v22287_v58  ;;  %17408 = vmatprep.subr.bf16.mxu0 %v22288_v54 }
 0xfbb   :  { %17218 = vmatpush1.bf16.msra.mxu1 %v22289_v22  ;;  %17410 = vmatpush1.bf16.msra.mxu0 %v22290_v31 }
 0xfbc   :  { %17220 = vmatprep.subr.bf16.mxu1 %v22291_v45  ;;  %17412 = vmatprep.subr.bf16.mxu0 %v22292_v19 }
 0xfbf   :  { %17222 = vmatpush1.bf16.msra.mxu1 %v22293_v55  ;;  %17414 = vmatpush1.bf16.msra.mxu0 %v22294_v9 }
 0xfc0   :  { %17224 = vmatprep.subr.bf16.mxu1 %v22295_v44  ;;  %17416 = vmatprep.subr.bf16.mxu0 %v22781_v18 }
 0xfc3   :  { %17226 = vmatpush1.bf16.msra.mxu1 %v22782_v0  ;;  %17418 = vmatpush1.bf16.msra.mxu0 %v22783_v56 }
 0xfc4   :  { %17228 = vmatprep.subr.bf16.mxu1 %v22784_v1  ;;  %17420 = vmatprep.subr.bf16.mxu0 %v22785_v42 }
 0xfc7   :  { %17230 = vmatpush1.bf16.msra.mxu1 %v22786_v33  ;;  %17422 = vmatpush1.bf16.msra.mxu0 %v22787_v34 }
 0xfc8   :  { %17232 = vmatprep.subr.bf16.mxu1 %v22788_v7  ;;  %17424 = vmatprep.subr.bf16.mxu0 %v22789_v63  ;;  %v22795_v7 = vld [vmem:[#allocation7_spill] sm:$0xff]  ;;  %v22796_v63 = vld [vmem:[#allocation45_spill] sm:$0xff] }
 0xfca   :  { %10409 = vmatmul.mubr.f32.vlgmr.msra.gmra.mrb[12].mxu1 %v20898_v49  ;;  %11264 = vmatmul.mubr.f32.vlgmr.msra.gmra.mrb[12].mxu0 %v20898_v49  ;;  %v22798_v49 = vld [vmem:[#allocation46_spill] sm:$0xff] }
 0xfcb   :  { %17234 = vmatpush1.bf16.msra.mxu1 %v22790_v4  ;;  %17426 = vmatpush1.bf16.msra.mxu0 %v22791_v17  ;;  %v22799_v4 = vld [vmem:[#allocation8_spill] sm:$0xff]  ;;  %v22800_v17 = vld [vmem:[#allocation47_spill] sm:$0xff] }
 0xfcc   :  { %17236 = vmatprep.subr.bf16.mxu1 %v22792_v12  ;;  %17428 = vmatprep.subr.bf16.mxu0 %v22793_v25  ;;  %v22801_v12 = vld [vmem:[#allocation72_spill] sm:$0xff] }
 0xfcd   :  { %10575 = vmatprep.mubr.f32.mxu1 %v22057_v51  ;;  %11430 = vmatprep.mubr.f32.mxu0 %v22057_v51  ;;  %v22802_v25 = vld [vmem:[#allocation48_spill] sm:$0xff] }
 0xfcf   :  { %17238 = vmatpush1.bf16.msra.mxu1 %v22794_v2  ;;  %17430 = vmatpush1.bf16.msra.mxu0 %v22795_v7  ;;  %v22805_v2 = vld [vmem:[#allocation73_spill] sm:$0xff]  ;;  %v22806_v7 = vld [vmem:[#allocation50_spill] sm:$0xff] }
 0xfd0   :  { %17240 = vmatprep.subr.bf16.mxu1 %v22796_v63  ;;  %17432 = vmatprep.subr.bf16.mxu0 %v22797_v11  ;;  %v22807_v63 = vld [vmem:[#allocation13_spill] sm:$0xff]  ;;  %v22808_v11 = vld [vmem:[#allocation51_spill] sm:$0xff] }
 0xfd3   :  { %17242 = vmatpush1.bf16.msra.mxu1 %v22798_v49  ;;  %17434 = vmatpush1.bf16.msra.mxu0 %v22799_v4  ;;  %v22809_v49 = vld [vmem:[#allocation74_spill] sm:$0xff]  ;;  %v22810_v4 = vld [vmem:[#allocation52_spill] sm:$0xff] }
 0xfd4   :  { %17244 = vmatprep.subr.bf16.mxu1 %v22800_v17  ;;  %17436 = vmatprep.subr.bf16.mxu0 %v22801_v12  ;;  %v22811_v17 = vld [vmem:[#allocation14_spill] sm:$0xff]  ;;  %v22812_v12 = vld [vmem:[#allocation53_spill] sm:$0xff] }
 0xfd7   :  { %17246 = vmatpush1.bf16.msra.mxu1 %v22802_v25  ;;  %17438 = vmatpush1.bf16.msra.mxu0 %v22803_v35  ;;  %v22813_v25 = vld [vmem:[#allocation75_spill] sm:$0xff]  ;;  %v22814_v35 = vld [vmem:[#allocation54_spill] sm:$0xff] }
 0xfd8   :  { %17248 = vmatprep.subr.bf16.mxu1 %v22804_v46  ;;  %17440 = vmatprep.subr.bf16.mxu0 %v22805_v2  ;;  %v22815_v46 = vld [vmem:[#allocation15_spill] sm:$0xff]  ;;  %v22816_v2 = vld [vmem:[#allocation56_spill] sm:$0xff] }
 0xfdb   :  { %17250 = vmatpush1.bf16.msra.mxu1 %v22806_v7  ;;  %17442 = vmatpush1.bf16.msra.mxu0 %v22807_v63  ;;  %v22817_v7 = vld [vmem:[#allocation76_spill] sm:$0xff]  ;;  %v22818_v63 = vld [vmem:[#allocation57_spill] sm:$0xff] }
 0xfdc   :  { %17252 = vmatprep.subr.bf16.mxu1 %v22808_v11  ;;  %17444 = vmatprep.subr.bf16.mxu0 %v22809_v49  ;;  %v22819_v11 = vld [vmem:[#allocation18_spill] sm:$0xff] }
 0xfdf   :  { %17254 = vmatpush1.bf16.msra.mxu1 %v22810_v4  ;;  %17446 = vmatpush1.bf16.msra.mxu0 %v22811_v17 }
 0xfe0   :  { %17256 = vmatprep.subr.bf16.mxu1 %v22812_v12  ;;  %17448 = vmatprep.subr.bf16.mxu0 %v22813_v25 }
 0xfe3   :  { %17258 = vmatpush1.bf16.msra.mxu1 %v22814_v35  ;;  %17450 = vmatpush1.bf16.msra.mxu0 %v22815_v46  ;;  %v22822_v35 = vld [vmem:[#allocation77_spill] sm:$0xff] }
 0xfe4   :  { %17260 = vmatprep.subr.bf16.mxu1 %v22816_v2  ;;  %17452 = vmatprep.subr.bf16.mxu0 %v22817_v7 }
 0xfe7   :  { %17262 = vmatpush1.bf16.msra.mxu1 %v22818_v63  ;;  %17454 = vmatpush1.bf16.msra.mxu0 %v22819_v11  ;;  %v22821_v11 = vld [vmem:[#allocation89_spill] sm:$0xff] }
 0xfe8   :  { %17264 = vmatprep.subr.bf16.mxu1 %v22270_v39  ;;  %17456 = vmatprep.subr.bf16.mxu0 %v22271_v37  ;;  %v14819_v63 = vld.sshfl [vmem:[%s21638_s0 + $0x18] sm:$0x33 pattern:$0x76325410] }
 0xfe9   :  { %v11552_v17 = vcombine.high %v14819_v63, %v14819_v63 }
 0xfea   :  { %10577 = vmatmul.mubr.f32.vlgmr.msra.gmra.mrb[12].mxu1 %v20892_v13  ;;  %11432 = vmatmul.mubr.f32.vlgmr.msra.gmra.mrb[12].mxu0 %v20892_v13 }
 0xfeb   :  { %17266 = vmatpush1.bf16.msra.mxu1 %v22273_v38  ;;  %17458 = vmatpush1.bf16.msra.mxu0 %v22274_v62 }
 0xfec   :  { %17268 = vmatprep.subr.bf16.mxu1 %v22275_v15  ;;  %17460 = vmatprep.subr.bf16.mxu0 %v22276_v27 }
 0xfed   :  { %10679 = vmatprep.mubr.f32.mxu1 %v22057_v51  ;;  %11534 = vmatprep.mubr.f32.mxu0 %v22057_v51 }
 0xfef   :  { %17270 = vmatpush1.bf16.msra.mxu1 %v22277_v24  ;;  %17462 = vmatpush1.bf16.msra.mxu0 %v22278_v10 }
 0xff0   :  { %17272 = vmatprep.subr.bf16.mxu1 %v22279_v5  ;;  %17464 = vmatprep.subr.bf16.mxu0 %v22280_v23 }
 0xff3   :  { %17274 = vmatpush1.bf16.msra.mxu1 %v22281_v50  ;;  %17466 = vmatpush1.bf16.msra.mxu0 %v22282_v47 }
 0xff4   :  { %17276 = vmatprep.subr.bf16.mxu1 %v22283_v16  ;;  %17468 = vmatprep.subr.bf16.mxu0 %v22284_v36 }
 0xff7   :  { %17278 = vmatpush1.bf16.msra.mxu1 %v22285_v8  ;;  %17470 = vmatpush1.bf16.msra.mxu0 %v22286_v3 }
 0xff8   :  { %17280 = vmatprep.subr.bf16.mxu1 %v22287_v58  ;;  %17472 = vmatprep.subr.bf16.mxu0 %v22288_v54 }
 0xffb   :  { %17282 = vmatpush1.bf16.msra.mxu1 %v22289_v22  ;;  %17474 = vmatpush1.bf16.msra.mxu0 %v22290_v31 }
 0xffc   :  { %17284 = vmatprep.subr.bf16.mxu1 %v22291_v45  ;;  %17476 = vmatprep.subr.bf16.mxu0 %v22292_v19 }
 0xfff   :  { %17286 = vmatpush1.bf16.msra.mxu1 %v22293_v55  ;;  %17478 = vmatpush1.bf16.msra.mxu0 %v22294_v9 }
0x1000   :  { %17288 = vmatprep.subr.bf16.mxu1 %v22295_v44  ;;  %17480 = vmatprep.subr.bf16.mxu0 %v22781_v18 }
0x1003   :  { %17290 = vmatpush1.bf16.msra.mxu1 %v22782_v0  ;;  %17482 = vmatpush1.bf16.msra.mxu0 %v22783_v56 }
0x1004   :  { %17292 = vmatprep.subr.bf16.mxu1 %v22784_v1  ;;  %17484 = vmatprep.subr.bf16.mxu0 %v22785_v42 }
0x1007   :  { %17294 = vmatpush1.bf16.msra.mxu1 %v22786_v33  ;;  %17486 = vmatpush1.bf16.msra.mxu0 %v22787_v34 }
0x1008   :  { %17488 = vmatprep.subr.bf16.mxu1 %v22270_v39  ;;  %17680 = vmatprep.subr.bf16.mxu0 %v22271_v37 }
0x100a   :  { %10681 = vmatmul.mubr.f32.vlgmr.msra.gmra.mrb[12].mxu1 %v20892_v13  ;;  %11536 = vmatmul.mubr.f32.vlgmr.msra.gmra.mrb[12].mxu0 %v20892_v13  ;;  %v22820_v13 = vld [vmem:[#allocation10_spill] sm:$0xff] }
0x100b   :  { %17490 = vmatpush1.bf16.msra.mxu1 %v22273_v38  ;;  %17682 = vmatpush1.bf16.msra.mxu0 %v22274_v62 }
0x100c   :  { %17492 = vmatprep.subr.bf16.mxu1 %v22275_v15  ;;  %17684 = vmatprep.subr.bf16.mxu0 %v22276_v27 }
0x100d   :  { %11696 = vmatprep.mubr.f32.mxu1 %v22057_v51  ;;  %12551 = vmatprep.mubr.f32.mxu0 %v22057_v51 }
0x100f   :  { %17494 = vmatpush1.bf16.msra.mxu1 %v22277_v24  ;;  %17686 = vmatpush1.bf16.msra.mxu0 %v22278_v10 }
0x1010   :  { %17496 = vmatprep.subr.bf16.mxu1 %v22279_v5  ;;  %17688 = vmatprep.subr.bf16.mxu0 %v22280_v23 }
0x1013   :  { %17498 = vmatpush1.bf16.msra.mxu1 %v22281_v50  ;;  %17690 = vmatpush1.bf16.msra.mxu0 %v22282_v47 }
0x1014   :  { %17500 = vmatprep.subr.bf16.mxu1 %v22283_v16  ;;  %17692 = vmatprep.subr.bf16.mxu0 %v22284_v36 }
0x1017   :  { %17502 = vmatpush1.bf16.msra.mxu1 %v22285_v8  ;;  %17694 = vmatpush1.bf16.msra.mxu0 %v22286_v3 }
0x1018   :  { %17504 = vmatprep.subr.bf16.mxu1 %v22287_v58  ;;  %17696 = vmatprep.subr.bf16.mxu0 %v22288_v54 }
0x101b   :  { %17506 = vmatpush1.bf16.msra.mxu1 %v22289_v22  ;;  %17698 = vmatpush1.bf16.msra.mxu0 %v22290_v31 }
0x101c   :  { %17508 = vmatprep.subr.bf16.mxu1 %v22291_v45  ;;  %17700 = vmatprep.subr.bf16.mxu0 %v22292_v19 }
0x101f   :  { %17510 = vmatpush1.bf16.msra.mxu1 %v22293_v55  ;;  %17702 = vmatpush1.bf16.msra.mxu0 %v22294_v9 }
0x1020   :  { %17512 = vmatprep.subr.bf16.mxu1 %v22295_v44  ;;  %17704 = vmatprep.subr.bf16.mxu0 %v22781_v18 }
0x1023   :  { %17514 = vmatpush1.bf16.msra.mxu1 %v22782_v0  ;;  %17706 = vmatpush1.bf16.msra.mxu0 %v22783_v56 }
0x1024   :  { %17516 = vmatprep.subr.bf16.mxu1 %v22784_v1  ;;  %17708 = vmatprep.subr.bf16.mxu0 %v22785_v42 }
0x1027   :  { %17518 = vmatpush1.bf16.msra.mxu1 %v22786_v33  ;;  %17710 = vmatpush1.bf16.msra.mxu0 %v22787_v34 }
0x1028   :  { %17520 = vmatprep.subr.bf16.mxu1 %v22820_v13  ;;  %17712 = vmatprep.subr.bf16.mxu0 %v22821_v11 }
0x10dd   :  { %v10682_v7 = vpop.f32.mrb[12].mxu1  ;;  %v11537_v2 = vpop.f32.mrb[12].mxu0 }
0x10de   :  { %v11555_v46 = vadd.f32 %v14819_v63, %v10682_v7  ;;  %v11575_v25 = vadd.f32 %v11537_v2, %v22822_v35  ;;  %v10684_v12 = vpop.f32.mrb[13].mxu1  ;;  %v11539_v4 = vpop.f32.mrb[13].mxu0 }
0x10df   :  { %v11556_v34 = vadd.f32 %v11552_v17, %v10684_v12  ;;  %v11576_v13 = vadd.f32 %v11539_v4, %v19914_v57 }
0x10e0   :  { %v11557_v49 = vmul.f32 0.5, %v11555_v46  ;;  %v11577_v33 = vmul.f32 0.5, %v11575_v25 }
0x10e1   :  { %v11558_v46 = vmul.f32 0.5, %v11556_v34 }
0x10e2   :  { %18400 = vtanh.f32 %v11557_v49 }
0x10e3   :  { %18402 = vtanh.f32 %v11577_v33 }
0x10e4   :  { %18404 = vtanh.f32 %v11556_v34 }
0x10e5   :  { %18406 = vtanh.f32 %v11576_v13 }
0x10e6   :  { %18408 = vtanh.f32 %v11558_v46 }
0x10ec   :  { %v18401_v11 = vpop.eup %18400 }
0x10ed   :  { %v18403_v42 = vpop.eup %18402  ;;  %v11561_v1 = vadd.f32 1.0, %v18401_v11 }
0x10ee   :  { %v11581_v56 = vadd.f32 1.0, %v18403_v42  ;;  %v18405_v7 = vpop.eup %18404 }
0x10ef   :  { %v11563_v0 = vmul.f32 0.5, %v11561_v1  ;;  %v18407_v2 = vpop.eup %18406 }
0x10f0   :  { %v11583_v18 = vmul.f32 0.5, %v11581_v56  ;;  %v18409_v11 = vpop.eup %18408  ;;  %v11578_v56 = vmul.f32 0.5, %v11576_v13 }
0x10f1   :  { %v11567_v35 = vmul.f32 %v18405_v7, %v11563_v0  ;;  %v11566_v25 = vmul.f32 %v11563_v0, %v20883_v29  ;;  %v11562_v4 = vadd.f32 1.0, %v18409_v11 }
0x10f2   :  { %v11587_v63 = vmul.f32 %v18407_v2, %v11583_v18  ;;  %v11586_v34 = vmul.f32 %v11583_v18, %v20888_v20 }
0x10f3   :  { %11569 = vrot.lane.b32.xlu1 %v11567_v35, %s18468_s9  ;;  %v11564_v12 = vmul.f32 0.5, %v11562_v4  ;;  %v22829_v4 = vld [vmem:[#allocation33_spill] sm:$0xff] }
0x10f4   :  { %11589 = vrot.lane.b32.xlu0 %v11587_v63, %s18468_s9 }
0x1165   :  { %v11570_v33 = vpop.permute.xlu1 %11569 }
0x1166   :  { %v21124_v17 = vadd.f32 %v11570_v33, %v11566_v25  ;;  %v11590_v35 = vpop.permute.xlu0 %11589 }
0x1167   :  { %v21129_v49 = vadd.f32 %v11590_v35, %v11586_v34  ;;  %v22836_v35 = vld [vmem:[#allocation102_spill] sm:$0xff] }
0x1168   :  { %18410 = vtanh.f32 %v21124_v17  ;;  %v22837_v34 = vld [vmem:[#allocation38_spill] sm:$0xff] }
0x1169   :  { %18412 = vtanh.f32 %v11578_v56  ;;  %v22835_v56 = vld [vmem:[#allocation43_spill] sm:$0xff] }
0x116a   :  { %18414 = vtanh.f32 %v21129_v49 }
0x1172   :  { %v18411_v42 = vpop.eup %18410 }
0x1173   :  { %v11574_v1 = vmul.f32 %v18411_v42, %v11564_v12  ;;  %v18413_v29 = vpop.eup %18412  ;;  %v22831_v12 = vld [vmem:[#allocation36_spill] sm:$0xff]  ;;  %v22833_v42 = vld [vmem:[#allocation37_spill] sm:$0xff] }
0x1174   :  { %v11582_v0 = vadd.f32 1.0, %v18413_v29  ;;  %v18415_v7 = vpop.eup %18414  ;;  %v22838_v29 = vld [vmem:[#allocation101_spill] sm:$0xff] }
0x1175   :  { %11596 = vrot.lane.b32.xlu1 %v11574_v1, %s18468_s9  ;;  %v22834_v1 = vld [vmem:[#allocation100_spill] sm:$0xff] }
0x1176   :  { %v11584_v2 = vmul.f32 0.5, %v11582_v0  ;;  %v22839_v0 = vld [vmem:[#allocation39_spill] sm:$0xff] }
0x1178   :  { %v11594_v63 = vmul.f32 %v18415_v7, %v11584_v2  ;;  %v22840_v7 = vld [vmem:[#allocation120_spill] sm:$0xff]  ;;  %v22841_v2 = vld [vmem:[#allocation55_spill] sm:$0xff] }
0x11e7   :  { %v11597_v46 = vpop.permute.xlu1 %11596 }
0x11e8   :  { %v11599_v25 = vsel %vm979_vm0, %v11597_v46, %v11594_v63  ;;  %v22842_v63 = vld [vmem:[#allocation121_spill] sm:$0xff]  ;;  %v22843_v46 = vld [vmem:[#allocation58_spill] sm:$0xff] }
0x11e9   :  { %v21133_v33 = vand.u32 4294901760, %v11599_v25 }
0x11eb   :  { %v21136_v13 = vsub.f32 %v11599_v25, %v21133_v33  ;;  %v22844_v25 = vld [vmem:[#allocation122_spill] sm:$0xff] }
0x11ed   :  { %v21139_v11 = vand.u32 4294901760, %v21136_v13 }
0x11ef   :  { %v11700_v20 = vsub.f32 %v21136_v13, %v21139_v11 }
0x11f1   :  { %v11701_v18 = vand.u32 4294901760, %v11700_v20  ;;  %v22845_v20 = vld [vmem:[#allocation59_spill] sm:$0xff] }
0x11f3   :  { %11702 = vmatmul.mubr.f32.vlgmr.msra.gmra.mrb[14].mxu1 %v11701_v18  ;;  %12557 = vmatmul.mubr.f32.vlgmr.msra.gmra.mrb[14].mxu0 %v11701_v18  ;;  %v22846_v18 = vld [vmem:[#allocation123_spill] sm:$0xff] }
0x11f4   :  { %17522 = vmatpush1.bf16.msra.mxu1 %v22384_v41  ;;  %17714 = vmatpush1.bf16.msra.mxu0 %v22385_v52  ;;  %v22823_v41 = vld [vmem:[#allocation27_spill] sm:$0xff] }
0x11f5   :  { %17524 = vmatprep.subr.bf16.mxu1 %v22386_v48  ;;  %17716 = vmatprep.subr.bf16.mxu0 %v22387_v32  ;;  %v22824_v48 = vld [vmem:[#allocation117_spill] sm:$0xff] }
0x11f6   :  { %11932 = vmatprep.mubr.f32.mxu1 %v22057_v51  ;;  %12787 = vmatprep.mubr.f32.mxu0 %v22057_v51 }
0x11f8   :  { %17526 = vmatpush1.bf16.msra.mxu1 %v22471_v26  ;;  %17718 = vmatpush1.bf16.msra.mxu0 %v22472_v61  ;;  %v22825_v26 = vld [vmem:[#allocation29_spill] sm:$0xff] }
0x11f9   :  { %17528 = vmatprep.subr.bf16.mxu1 %v22473_v59  ;;  %17720 = vmatprep.subr.bf16.mxu0 %v22474_v30  ;;  %v22826_v59 = vld [vmem:[#allocation118_spill] sm:$0xff] }
0x11fc   :  { %17530 = vmatpush1.bf16.msra.mxu1 %v22475_v28  ;;  %17722 = vmatpush1.bf16.msra.mxu0 %v22559_v53  ;;  %v22827_v28 = vld [vmem:[#allocation31_spill] sm:$0xff] }
0x11fd   :  { %17532 = vmatprep.subr.bf16.mxu1 %v22560_v60  ;;  %17724 = vmatprep.subr.bf16.mxu0 %v22561_v40  ;;  %v22828_v60 = vld [vmem:[#allocation119_spill] sm:$0xff] }
0x1200   :  { %17534 = vmatpush1.bf16.msra.mxu1 %v22562_v21  ;;  %17726 = vmatpush1.bf16.msra.mxu0 %v22563_v6  ;;  %v22830_v21 = vld [vmem:[#allocation98_spill] sm:$0xff] }
0x1201   :  { %17536 = vmatprep.subr.bf16.mxu1 %v22647_v14  ;;  %17728 = vmatprep.subr.bf16.mxu0 %v22648_v43  ;;  %v22832_v14 = vld [vmem:[#allocation99_spill] sm:$0xff] }
0x1204   :  { %17538 = vmatpush1.bf16.msra.mxu1 %v22823_v41  ;;  %17730 = vmatpush1.bf16.msra.mxu0 %v22824_v48  ;;  %v22847_v41 = vld [vmem:[#allocation60_spill] sm:$0xff] }
0x1205   :  { %17540 = vmatprep.subr.bf16.mxu1 %v22825_v26  ;;  %17732 = vmatprep.subr.bf16.mxu0 %v22826_v59  ;;  %v22848_v26 = vld [vmem:[#allocation124_spill] sm:$0xff] }
0x1208   :  { %17542 = vmatpush1.bf16.msra.mxu1 %v22827_v28  ;;  %17734 = vmatpush1.bf16.msra.mxu0 %v22828_v60  ;;  %v22849_v28 = vld [vmem:[#allocation61_spill] sm:$0xff] }
0x1209   :  { %17544 = vmatprep.subr.bf16.mxu1 %v22829_v4  ;;  %17736 = vmatprep.subr.bf16.mxu0 %v22830_v21  ;;  %v22850_v4 = vld [vmem:[#allocation125_spill] sm:$0xff] }
0x120c   :  { %17546 = vmatpush1.bf16.msra.mxu1 %v22831_v12  ;;  %17738 = vmatpush1.bf16.msra.mxu0 %v22832_v14  ;;  %v22851_v12 = vld [vmem:[#allocation62_spill] sm:$0xff] }
0x120d   :  { %17548 = vmatprep.subr.bf16.mxu1 %v22833_v42  ;;  %17740 = vmatprep.subr.bf16.mxu0 %v22834_v1  ;;  %v22852_v42 = vld [vmem:[#allocation126_spill] sm:$0xff] }
0x1210   :  { %17550 = vmatpush1.bf16.msra.mxu1 %v22835_v56  ;;  %17742 = vmatpush1.bf16.msra.mxu0 %v22836_v35  ;;  %v22853_v56 = vld [vmem:[#allocation63_spill] sm:$0xff] }
0x1211   :  { %17552 = vmatprep.subr.bf16.mxu1 %v22837_v34  ;;  %17744 = vmatprep.subr.bf16.mxu0 %v22838_v29  ;;  %v22854_v34 = vld [vmem:[#allocation127_spill] sm:$0xff] }
0x1213   :  { %11934 = vmatmul.mubr.f32.vlgmr.msra.gmra.mrb[14].mxu1 %v21133_v33  ;;  %12789 = vmatmul.mubr.f32.vlgmr.msra.gmra.mrb[14].mxu0 %v21133_v33 }
0x1214   :  { %17554 = vmatpush1.bf16.msra.mxu1 %v22839_v0  ;;  %17746 = vmatpush1.bf16.msra.mxu0 %v22840_v7  ;;  %v22855_v0 = vld [vmem:[#allocation64_spill] sm:$0xff]  ;;  %v22892_v7 = vld [vmem:[#allocation49_spill] sm:$0xff] }
0x1215   :  { %17556 = vmatprep.subr.bf16.mxu1 %v22841_v2  ;;  %17748 = vmatprep.subr.bf16.mxu0 %v22842_v63  ;;  %v22856_v2 = vld [vmem:[#allocation128_spill] sm:$0xff]  ;;  %v22891_v63 = vld [vmem:[#allocation9_spill] sm:$0xff] }
0x1216   :  { %12068 = vmatprep.mubr.f32.mxu1 %v22057_v51  ;;  %12923 = vmatprep.mubr.f32.mxu0 %v22057_v51 }
0x1218   :  { %17558 = vmatpush1.bf16.msra.mxu1 %v22843_v46  ;;  %17750 = vmatpush1.bf16.msra.mxu0 %v22844_v25  ;;  %v22857_v46 = vld [vmem:[#allocation65_spill] sm:$0xff]  ;;  %v22885_v25 = vld [vmem:[#allocation71_spill] sm:$0xff] }
0x1219   :  { %17560 = vmatprep.subr.bf16.mxu1 %v22845_v20  ;;  %17752 = vmatprep.subr.bf16.mxu0 %v22846_v18  ;;  %v22858_v20 = vld [vmem:[#allocation129_spill] sm:$0xff]  ;;  %v22882_v18 = vld [vmem:[#allocation44_spill] sm:$0xff] }
0x121c   :  { %17562 = vmatpush1.bf16.msra.mxu1 %v22847_v41  ;;  %17754 = vmatpush1.bf16.msra.mxu0 %v22848_v26  ;;  %v22859_v41 = vld [vmem:[#allocation66_spill] sm:$0xff]  ;;  %v22881_v26 = vld [vmem:[#allocation108_spill] sm:$0xff] }
0x121d   :  { %17564 = vmatprep.subr.bf16.mxu1 %v22849_v28  ;;  %17756 = vmatprep.subr.bf16.mxu0 %v22850_v4  ;;  %v22860_v28 = vld [vmem:[#allocation130_spill] sm:$0xff]  ;;  %v22861_v4 = vld [vmem:[#allocation67_spill] sm:$0xff] }
0x1220   :  { %17566 = vmatpush1.bf16.msra.mxu1 %v22851_v12  ;;  %17758 = vmatpush1.bf16.msra.mxu0 %v22852_v42  ;;  %v22862_v12 = vld [vmem:[#allocation103_spill] sm:$0xff]  ;;  %v22863_v42 = vld [vmem:[#allocation68_spill] sm:$0xff] }
0x1221   :  { %17568 = vmatprep.subr.bf16.mxu1 %v22853_v56  ;;  %17760 = vmatprep.subr.bf16.mxu0 %v22854_v34  ;;  %v22864_v56 = vld [vmem:[#allocation104_spill] sm:$0xff]  ;;  %v22865_v34 = vld [vmem:[#allocation69_spill] sm:$0xff] }
0x1224   :  { %17570 = vmatpush1.bf16.msra.mxu1 %v22855_v0  ;;  %17762 = vmatpush1.bf16.msra.mxu0 %v22856_v2  ;;  %v22866_v0 = vld [vmem:[#allocation105_spill] sm:$0xff]  ;;  %v22867_v2 = vld [vmem:[#allocation35_spill] sm:$0xff] }
0x1225   :  { %17572 = vmatprep.subr.bf16.mxu1 %v22857_v46  ;;  %17764 = vmatprep.subr.bf16.mxu0 %v22858_v20  ;;  %v22868_v46 = vld [vmem:[#allocation106_spill] sm:$0xff] }
0x1226   :  { %v22880_v20 = vld [vmem:[#allocation42_spill] sm:$0xff] }
0x1228   :  { %17574 = vmatpush1.bf16.msra.mxu1 %v22859_v41  ;;  %17766 = vmatpush1.bf16.msra.mxu0 %v22860_v28  ;;  %v22874_v41 = vld [vmem:[#allocation34_spill] sm:$0xff] }
0x1229   :  { %17576 = vmatprep.subr.bf16.mxu1 %v22861_v4  ;;  %17768 = vmatprep.subr.bf16.mxu0 %v22862_v12  ;;  %v22870_v4 = vld [vmem:[#allocation30_spill] sm:$0xff]  ;;  %v22878_v12 = vld [vmem:[#allocation41_spill] sm:$0xff] }
0x122a   :  { %v22879_v28 = vld [vmem:[#allocation70_spill] sm:$0xff] }
0x122c   :  { %17578 = vmatpush1.bf16.msra.mxu1 %v22863_v42  ;;  %17770 = vmatpush1.bf16.msra.mxu0 %v22864_v56  ;;  %v22871_v42 = vld [vmem:[#allocation86_spill] sm:$0xff] }
0x122d   :  { %17580 = vmatprep.subr.bf16.mxu1 %v22865_v34  ;;  %17772 = vmatprep.subr.bf16.mxu0 %v22866_v0  ;;  %v22872_v34 = vld [vmem:[#allocation32_spill] sm:$0xff]  ;;  %v22877_v56 = vld [vmem:[#allocation6_spill] sm:$0xff] }
0x122e   :  { %v22876_v0 = vld [vmem:[#allocation40_spill] sm:$0xff] }
0x1230   :  { %17582 = vmatpush1.bf16.msra.mxu1 %v22867_v2  ;;  %17774 = vmatpush1.bf16.msra.mxu0 %v22868_v46  ;;  %v22873_v2 = vld [vmem:[#allocation87_spill] sm:$0xff]  ;;  %v22875_v46 = vld [vmem:[#allocation88_spill] sm:$0xff] }
0x1231   :  { %17584 = vmatprep.subr.bf16.mxu1 %v22270_v39  ;;  %17776 = vmatprep.subr.bf16.mxu0 %v22271_v37 }
0x1233   :  { %12071 = vmatmul.mubr.f32.vlgmr.msra.gmra.mrb[14].mxu1 %v21136_v13  ;;  %12926 = vmatmul.mubr.f32.vlgmr.msra.gmra.mrb[14].mxu0 %v21136_v13  ;;  %v22869_v13 = vld [vmem:[#allocation83_spill] sm:$0xff] }
0x1234   :  { %17586 = vmatpush1.bf16.msra.mxu1 %v22273_v38  ;;  %17778 = vmatpush1.bf16.msra.mxu0 %v22274_v62 }
0x1235   :  { %17588 = vmatprep.subr.bf16.mxu1 %v22275_v15  ;;  %17780 = vmatprep.subr.bf16.mxu0 %v22276_v27 }
0x1236   :  { %12173 = vmatprep.mubr.f32.mxu1 %v22057_v51  ;;  %13028 = vmatprep.mubr.f32.mxu0 %v22057_v51 }
0x1238   :  { %17590 = vmatpush1.bf16.msra.mxu1 %v22277_v24  ;;  %17782 = vmatpush1.bf16.msra.mxu0 %v22278_v10 }
0x1239   :  { %17592 = vmatprep.subr.bf16.mxu1 %v22279_v5  ;;  %17784 = vmatprep.subr.bf16.mxu0 %v22280_v23 }
0x123c   :  { %17594 = vmatpush1.bf16.msra.mxu1 %v22281_v50  ;;  %17786 = vmatpush1.bf16.msra.mxu0 %v22282_v47 }
0x123d   :  { %17596 = vmatprep.subr.bf16.mxu1 %v22283_v16  ;;  %17788 = vmatprep.subr.bf16.mxu0 %v22284_v36 }
0x1240   :  { %17598 = vmatpush1.bf16.msra.mxu1 %v22285_v8  ;;  %17790 = vmatpush1.bf16.msra.mxu0 %v22286_v3 }
0x1241   :  { %17600 = vmatprep.subr.bf16.mxu1 %v22287_v58  ;;  %17792 = vmatprep.subr.bf16.mxu0 %v22288_v54 }
0x1244   :  { %17602 = vmatpush1.bf16.msra.mxu1 %v22289_v22  ;;  %17794 = vmatpush1.bf16.msra.mxu0 %v22290_v31 }
0x1245   :  { %17604 = vmatprep.subr.bf16.mxu1 %v22291_v45  ;;  %17796 = vmatprep.subr.bf16.mxu0 %v22292_v19 }
0x1248   :  { %17606 = vmatpush1.bf16.msra.mxu1 %v22293_v55  ;;  %17798 = vmatpush1.bf16.msra.mxu0 %v22294_v9 }
0x1249   :  { %17608 = vmatprep.subr.bf16.mxu1 %v22295_v44  ;;  %17800 = vmatprep.subr.bf16.mxu0 %v22869_v13 }
0x124c   :  { %17610 = vmatpush1.bf16.msra.mxu1 %v22870_v4  ;;  %17802 = vmatpush1.bf16.msra.mxu0 %v22871_v42 }
0x124d   :  { %17612 = vmatprep.subr.bf16.mxu1 %v22872_v34  ;;  %17804 = vmatprep.subr.bf16.mxu0 %v22873_v2 }
0x1250   :  { %17614 = vmatpush1.bf16.msra.mxu1 %v22874_v41  ;;  %17806 = vmatpush1.bf16.msra.mxu0 %v22875_v46 }
0x1251   :  { %17616 = vmatprep.subr.bf16.mxu1 %v22876_v0  ;;  %17808 = vmatprep.subr.bf16.mxu0 %v22877_v56  ;;  %v22883_v0 = vld [vmem:[#allocation7_spill] sm:$0xff]  ;;  %v22884_v56 = vld [vmem:[#allocation45_spill] sm:$0xff] }
0x1253   :  { %12177 = vmatmul.mubr.f32.vlgmr.msra.gmra.mrb[14].mxu1 %v21139_v11  ;;  %13032 = vmatmul.mubr.f32.vlgmr.msra.gmra.mrb[14].mxu0 %v21139_v11  ;;  %v22886_v11 = vld [vmem:[#allocation46_spill] sm:$0xff] }
0x1254   :  { %17618 = vmatpush1.bf16.msra.mxu1 %v22878_v12  ;;  %17810 = vmatpush1.bf16.msra.mxu0 %v22879_v28  ;;  %v22887_v12 = vld [vmem:[#allocation8_spill] sm:$0xff]  ;;  %v22888_v28 = vld [vmem:[#allocation47_spill] sm:$0xff] }
0x1255   :  { %17620 = vmatprep.subr.bf16.mxu1 %v22880_v20  ;;  %17812 = vmatprep.subr.bf16.mxu0 %v22881_v26  ;;  %v22889_v20 = vld [vmem:[#allocation72_spill] sm:$0xff] }
0x1256   :  { %12343 = vmatprep.mubr.f32.mxu1 %v22057_v51  ;;  %13198 = vmatprep.mubr.f32.mxu0 %v22057_v51  ;;  %v22890_v26 = vld [vmem:[#allocation48_spill] sm:$0xff] }
0x1258   :  { %17622 = vmatpush1.bf16.msra.mxu1 %v22882_v18  ;;  %17814 = vmatpush1.bf16.msra.mxu0 %v22883_v0  ;;  %v22893_v18 = vld [vmem:[#allocation73_spill] sm:$0xff]  ;;  %v22894_v0 = vld [vmem:[#allocation50_spill] sm:$0xff] }
0x1259   :  { %17624 = vmatprep.subr.bf16.mxu1 %v22884_v56  ;;  %17816 = vmatprep.subr.bf16.mxu0 %v22885_v25  ;;  %v22895_v56 = vld [vmem:[#allocation13_spill] sm:$0xff]  ;;  %v22896_v25 = vld [vmem:[#allocation51_spill] sm:$0xff] }
0x125c   :  { %17626 = vmatpush1.bf16.msra.mxu1 %v22886_v11  ;;  %17818 = vmatpush1.bf16.msra.mxu0 %v22887_v12  ;;  %v22897_v11 = vld [vmem:[#allocation74_spill] sm:$0xff]  ;;  %v22898_v12 = vld [vmem:[#allocation52_spill] sm:$0xff] }
0x125d   :  { %17628 = vmatprep.subr.bf16.mxu1 %v22888_v28  ;;  %17820 = vmatprep.subr.bf16.mxu0 %v22889_v20  ;;  %v22899_v28 = vld [vmem:[#allocation14_spill] sm:$0xff]  ;;  %v22900_v20 = vld [vmem:[#allocation53_spill] sm:$0xff] }
0x1260   :  { %17630 = vmatpush1.bf16.msra.mxu1 %v22890_v26  ;;  %17822 = vmatpush1.bf16.msra.mxu0 %v22891_v63  ;;  %v22901_v26 = vld [vmem:[#allocation75_spill] sm:$0xff]  ;;  %v22902_v63 = vld [vmem:[#allocation54_spill] sm:$0xff] }
0x1261   :  { %17632 = vmatprep.subr.bf16.mxu1 %v22892_v7  ;;  %17824 = vmatprep.subr.bf16.mxu0 %v22893_v18  ;;  %v22903_v7 = vld [vmem:[#allocation15_spill] sm:$0xff]  ;;  %v22904_v18 = vld [vmem:[#allocation56_spill] sm:$0xff] }
0x1264   :  { %17634 = vmatpush1.bf16.msra.mxu1 %v22894_v0  ;;  %17826 = vmatpush1.bf16.msra.mxu0 %v22895_v56  ;;  %v22905_v0 = vld [vmem:[#allocation76_spill] sm:$0xff]  ;;  %v22906_v56 = vld [vmem:[#allocation57_spill] sm:$0xff] }
0x1265   :  { %17636 = vmatprep.subr.bf16.mxu1 %v22896_v25  ;;  %17828 = vmatprep.subr.bf16.mxu0 %v22897_v11  ;;  %v22907_v25 = vld [vmem:[#allocation18_spill] sm:$0xff] }
0x1268   :  { %17638 = vmatpush1.bf16.msra.mxu1 %v22898_v12  ;;  %17830 = vmatpush1.bf16.msra.mxu0 %v22899_v28 }
0x1269   :  { %17640 = vmatprep.subr.bf16.mxu1 %v22900_v20  ;;  %17832 = vmatprep.subr.bf16.mxu0 %v22901_v26 }
0x126c   :  { %17642 = vmatpush1.bf16.msra.mxu1 %v22902_v63  ;;  %17834 = vmatpush1.bf16.msra.mxu0 %v22903_v7 }
0x126d   :  { %17644 = vmatprep.subr.bf16.mxu1 %v22904_v18  ;;  %17836 = vmatprep.subr.bf16.mxu0 %v22905_v0 }
0x1270   :  { %17646 = vmatpush1.bf16.msra.mxu1 %v22906_v56  ;;  %17838 = vmatpush1.bf16.msra.mxu0 %v22907_v25 }
0x1271   :  { %17648 = vmatprep.subr.bf16.mxu1 %v22270_v39  ;;  %17840 = vmatprep.subr.bf16.mxu0 %v22271_v37  ;;  %v14821_v39 = vld.sshfl [vmem:[%s21638_s0 + $0x1c] sm:$0x33 pattern:$0x76325410] }
0x1273   :  { %12345 = vmatmul.mubr.f32.vlgmr.msra.gmra.mrb[14].mxu1 %v21133_v33  ;;  %13200 = vmatmul.mubr.f32.vlgmr.msra.gmra.mrb[14].mxu0 %v21133_v33 }
0x1274   :  { %17650 = vmatpush1.bf16.msra.mxu1 %v22273_v38  ;;  %17842 = vmatpush1.bf16.msra.mxu0 %v22274_v62 }
0x1275   :  { %17652 = vmatprep.subr.bf16.mxu1 %v22275_v15  ;;  %17844 = vmatprep.subr.bf16.mxu0 %v22276_v27  ;;  %v13320_v15 = vcombine.high %v14821_v39, %v14821_v39 }
0x1276   :  { %12447 = vmatprep.mubr.f32.mxu1 %v22057_v51  ;;  %13302 = vmatprep.mubr.f32.mxu0 %v22057_v51 }
0x1278   :  { %17654 = vmatpush1.bf16.msra.mxu1 %v22277_v24  ;;  %17846 = vmatpush1.bf16.msra.mxu0 %v22278_v10  ;;  %v22908_v24 = vld [vmem:[#allocation89_spill] sm:$0xff] }
0x1279   :  { %17656 = vmatprep.subr.bf16.mxu1 %v22279_v5  ;;  %17848 = vmatprep.subr.bf16.mxu0 %v22280_v23 }
0x127c   :  { %17658 = vmatpush1.bf16.msra.mxu1 %v22281_v50  ;;  %17850 = vmatpush1.bf16.msra.mxu0 %v22282_v47 }
0x127d   :  { %17660 = vmatprep.subr.bf16.mxu1 %v22283_v16  ;;  %17852 = vmatprep.subr.bf16.mxu0 %v22284_v36 }
0x1280   :  { %17662 = vmatpush1.bf16.msra.mxu1 %v22285_v8  ;;  %17854 = vmatpush1.bf16.msra.mxu0 %v22286_v3 }
0x1281   :  { %17664 = vmatprep.subr.bf16.mxu1 %v22287_v58  ;;  %17856 = vmatprep.subr.bf16.mxu0 %v22288_v54  ;;  %v22909_v58 = vld [vmem:[#allocation77_spill] sm:$0xff] }
0x1284   :  { %17666 = vmatpush1.bf16.msra.mxu1 %v22289_v22  ;;  %17858 = vmatpush1.bf16.msra.mxu0 %v22290_v31 }
0x1285   :  { %17668 = vmatprep.subr.bf16.mxu1 %v22291_v45  ;;  %17860 = vmatprep.subr.bf16.mxu0 %v22292_v19 }
0x1288   :  { %17670 = vmatpush1.bf16.msra.mxu1 %v22293_v55  ;;  %17862 = vmatpush1.bf16.msra.mxu0 %v22294_v9 }
0x1289   :  { %17672 = vmatprep.subr.bf16.mxu1 %v22295_v44  ;;  %17864 = vmatprep.subr.bf16.mxu0 %v22869_v13 }
0x128c   :  { %17674 = vmatpush1.bf16.msra.mxu1 %v22870_v4  ;;  %17866 = vmatpush1.bf16.msra.mxu0 %v22871_v42 }
0x128d   :  { %17676 = vmatprep.subr.bf16.mxu1 %v22872_v34  ;;  %17868 = vmatprep.subr.bf16.mxu0 %v22873_v2 }
0x1290   :  { %17678 = vmatpush1.bf16.msra.mxu1 %v22874_v41  ;;  %17870 = vmatpush1.bf16.msra.mxu0 %v22875_v46 }
0x1291   :  { %17872 = vmatprep.subr.bf16.mxu1 %v22271_v37 }
0x1293   :  { %12449 = vmatmul.mubr.f32.vlgmr.msra.gmra.mrb[14].mxu1 %v21133_v33  ;;  %13304 = vmatmul.mubr.f32.vlgmr.msra.gmra.mrb[14].mxu0 %v21133_v33 }
0x1294   :  { %17874 = vmatpush1.bf16.msra.mxu1 %v22274_v62  ;;  %13464 = vmatprep.mubr.f32.mxu1 %v22057_v51 }
0x1295   :  { %17876 = vmatprep.subr.bf16.mxu1 %v22276_v27  ;;  %14912 = vmatprep.mubr.msk.f32.mxu0 %vm18470_vm1, %v22057_v51 }
0x1298   :  { %17878 = vmatpush1.bf16.msra.mxu1 %v22278_v10 }
0x1299   :  { %17880 = vmatprep.subr.bf16.mxu1 %v22280_v23 }
0x129c   :  { %17882 = vmatpush1.bf16.msra.mxu1 %v22282_v47 }
0x129d   :  { %17884 = vmatprep.subr.bf16.mxu1 %v22284_v36 }
0x12a0   :  { %17886 = vmatpush1.bf16.msra.mxu1 %v22286_v3 }
0x12a1   :  { %17888 = vmatprep.subr.bf16.mxu1 %v22288_v54 }
0x12a4   :  { %17890 = vmatpush1.bf16.msra.mxu1 %v22290_v31 }
0x12a5   :  { %17892 = vmatprep.subr.bf16.mxu1 %v22292_v19 }
0x12a8   :  { %17894 = vmatpush1.bf16.msra.mxu1 %v22294_v9 }
0x12a9   :  { %17896 = vmatprep.subr.bf16.mxu1 %v22869_v13 }
0x12ac   :  { %17898 = vmatpush1.bf16.msra.mxu1 %v22871_v42 }
0x12ad   :  { %17900 = vmatprep.subr.bf16.mxu1 %v22873_v2 }
0x12b0   :  { %17902 = vmatpush1.bf16.msra.mxu1 %v22875_v46 }
0x12b1   :  { %17904 = vmatprep.subr.bf16.mxu1 %v22908_v24 }
0x1366   :  { %v12450_v44 = vpop.f32.mrb[14].mxu1  ;;  %v13305_v55 = vpop.f32.mrb[14].mxu0 }
0x1367   :  { %v13323_v45 = vadd.f32 %v14821_v39, %v12450_v44  ;;  %v13343_v22 = vadd.f32 %v13305_v55, %v22909_v58  ;;  %v12452_v38 = vpop.f32.mrb[15].mxu1  ;;  %v13307_v5 = vpop.f32.mrb[15].mxu0 }
0x1368   :  { %v13324_v50 = vadd.f32 %v13320_v15, %v12452_v38  ;;  %v13344_v33 = vadd.f32 %v13307_v5, %v19914_v57 }
0x1369   :  { %v13325_v8 = vmul.f32 0.5, %v13323_v45  ;;  %v13345_v16 = vmul.f32 0.5, %v13343_v22 }
0x136a   :  { %v13326_v44 = vmul.f32 0.5, %v13324_v50 }
0x136b   :  { %18416 = vtanh.f32 %v13325_v8 }
0x136c   :  { %18418 = vtanh.f32 %v13345_v16 }
0x136d   :  { %18420 = vtanh.f32 %v13324_v50 }
0x136e   :  { %18422 = vtanh.f32 %v13344_v33 }
0x136f   :  { %18424 = vtanh.f32 %v13326_v44 }
0x1375   :  { %v18417_v63 = vpop.eup %18416 }
0x1376   :  { %v18419_v4 = vpop.eup %18418  ;;  %v13329_v34 = vadd.f32 1.0, %v18417_v63  ;;  %v13346_v63 = vmul.f32 0.5, %v13344_v33 }
0x1377   :  { %v13349_v41 = vadd.f32 1.0, %v18419_v4  ;;  %v18421_v20 = vpop.eup %18420 }
0x1378   :  { %v13331_v12 = vmul.f32 0.5, %v13329_v34  ;;  %v18423_v56 = vpop.eup %18422 }
0x1379   :  { %v13351_v18 = vmul.f32 0.5, %v13349_v41  ;;  %v18425_v38 = vpop.eup %18424 }
0x137a   :  { %v13335_v24 = vmul.f32 %v18421_v20, %v13331_v12  ;;  %v13334_v55 = vmul.f32 %v13331_v12, %v21124_v17  ;;  %v13330_v15 = vadd.f32 1.0, %v18425_v38  ;;  %v22928_v38 = vld [vmem:[#allocation7_spill] sm:$0xff] }
0x137b   :  { %v13355_v39 = vmul.f32 %v18423_v56, %v13351_v18  ;;  %v13354_v34 = vmul.f32 %v13351_v18, %v21129_v49  ;;  %v22918_v49 = vld [vmem:[#allocation128_spill] sm:$0xff] }
0x137c   :  { %13337 = vrot.lane.b32.xlu0 %v13335_v24, %s18468_s9  ;;  %v13332_v5 = vmul.f32 0.5, %v13330_v15  ;;  %v22927_v18 = vld [vmem:[#allocation108_spill] sm:$0xff]  ;;  %v22929_v15 = vld [vmem:[#allocation71_spill] sm:$0xff] }
0x137d   :  { %13357 = vrot.lane.b32.xlu1 %v13355_v39, %s18468_s9 }
0x13ee   :  { %v13338_v45 = vpop.permute.xlu0 %13337 }
0x13ef   :  { %v13340_v22 = vadd.f32 %v13338_v45, %v13334_v55  ;;  %v13358_v4 = vpop.permute.xlu1 %13357 }
0x13f0   :  { %v21349_v41 = vadd.f32 %v13358_v4, %v13354_v34  ;;  %v22934_v4 = vld [vmem:[#allocation13_spill] sm:$0xff] }
0x13f1   :  { %18426 = vtanh.f32 %v13340_v22  ;;  %v21492_v34 = vld [vmem:[%s21641_s3 + $0x38] sm:$0xff] }
0x13f2   :  { %18428 = vtanh.f32 %v13346_v63  ;;  %v22933_v63 = vld [vmem:[#allocation73_spill] sm:$0xff] }
0x13f3   :  { %18430 = vtanh.f32 %v21349_v41 }
0x13fb   :  { %v18427_v8 = vpop.eup %18426 }
0x13fc   :  { %v13342_v16 = vmul.f32 %v18427_v8, %v13332_v5  ;;  %v18429_v17 = vpop.eup %18428  ;;  %v22930_v5 = vld [vmem:[#allocation8_spill] sm:$0xff] }
0x13fd   :  { %v13350_v50 = vadd.f32 1.0, %v18429_v17  ;;  %v18431_v12 = vpop.eup %18430  ;;  %v22931_v8 = vld [vmem:[#allocation72_spill] sm:$0xff] }
0x13fe   :  { %13364 = vrot.lane.b32.xlu0 %v13342_v16, %s18468_s9  ;;  %v22932_v16 = vld [vmem:[#allocation9_spill] sm:$0xff] }
0x13ff   :  { %v13352_v20 = vmul.f32 0.5, %v13350_v50 }
0x1401   :  { %v13362_v56 = vmul.f32 %v18431_v12, %v13352_v20 }
0x1470   :  { %v13365_v24 = vpop.permute.xlu0 %13364 }
0x1471   :  { %v13367_v39 = vsel %vm979_vm0, %v13365_v24, %v13362_v56 }
0x1472   :  { %v21353_v44 = vand.u32 4294901760, %v13367_v39 }
0x1474   :  { %v13466_v33 = vsub.f32 %v13367_v39, %v21353_v44 }
0x1476   :  { %v13467_v55 = vand.u32 4294901760, %v13466_v33 }
0x1478   :  { %v13468_v45 = vsub.f32 %v13466_v33, %v13467_v55 }
0x147a   :  { %v13469_v22 = vand.u32 4294901760, %v13468_v45 }
0x147c   :  { %13470 = vmatmul.mubr.f32.vlgmr.msra.gmra.mrb[16].mxu1 %v13469_v22  ;;  %v14285_v22 = vand.u32 4294901760, %v21492_v34 }
0x147d   :  { %17906 = vmatpush1.bf16.msra.mxu1 %v22385_v52  ;;  %13700 = vmatprep.mubr.f32.mxu1 %v22057_v51  ;;  %v22910_v52 = vld [vmem:[#allocation120_spill] sm:$0xff] }
0x147e   :  { %17908 = vmatprep.subr.bf16.mxu1 %v22387_v32  ;;  %v22911_v32 = vld [vmem:[#allocation121_spill] sm:$0xff] }
0x1481   :  { %17910 = vmatpush1.bf16.msra.mxu1 %v22472_v61  ;;  %v22912_v61 = vld [vmem:[#allocation122_spill] sm:$0xff] }
0x1482   :  { %17912 = vmatprep.subr.bf16.mxu1 %v22474_v30  ;;  %v22913_v30 = vld [vmem:[#allocation123_spill] sm:$0xff] }
0x1485   :  { %17914 = vmatpush1.bf16.msra.mxu1 %v22559_v53  ;;  %v22914_v53 = vld [vmem:[#allocation124_spill] sm:$0xff] }
0x1486   :  { %17916 = vmatprep.subr.bf16.mxu1 %v22561_v40  ;;  %v22915_v40 = vld [vmem:[#allocation125_spill] sm:$0xff] }
0x1489   :  { %17918 = vmatpush1.bf16.msra.mxu1 %v22563_v6  ;;  %v22916_v6 = vld [vmem:[#allocation126_spill] sm:$0xff] }
0x148a   :  { %17920 = vmatprep.subr.bf16.mxu1 %v22648_v43  ;;  %v22917_v43 = vld [vmem:[#allocation127_spill] sm:$0xff] }
0x148d   :  { %17922 = vmatpush1.bf16.msra.mxu1 %v22824_v48  ;;  %v22919_v48 = vld [vmem:[#allocation129_spill] sm:$0xff] }
0x148e   :  { %17924 = vmatprep.subr.bf16.mxu1 %v22826_v59  ;;  %v22920_v59 = vld [vmem:[#allocation130_spill] sm:$0xff] }
0x1491   :  { %17926 = vmatpush1.bf16.msra.mxu1 %v22828_v60  ;;  %v22921_v60 = vld [vmem:[#allocation103_spill] sm:$0xff] }
0x1492   :  { %17928 = vmatprep.subr.bf16.mxu1 %v22830_v21  ;;  %v22922_v21 = vld [vmem:[#allocation104_spill] sm:$0xff] }
0x1495   :  { %17930 = vmatpush1.bf16.msra.mxu1 %v22832_v14  ;;  %v22923_v14 = vld [vmem:[#allocation105_spill] sm:$0xff] }
0x1496   :  { %17932 = vmatprep.subr.bf16.mxu1 %v22834_v1  ;;  %v22924_v1 = vld [vmem:[#allocation106_spill] sm:$0xff] }
0x1499   :  { %17934 = vmatpush1.bf16.msra.mxu1 %v22836_v35  ;;  %v22925_v35 = vld [vmem:[#allocation6_spill] sm:$0xff] }
0x149a   :  { %17936 = vmatprep.subr.bf16.mxu1 %v22838_v29  ;;  %v22926_v29 = vld [vmem:[#allocation70_spill] sm:$0xff] }
0x149c   :  { %13702 = vmatmul.mubr.f32.vlgmr.msra.gmra.mrb[16].mxu1 %v21353_v44 }
0x149d   :  { %17938 = vmatpush1.bf16.msra.mxu1 %v22910_v52  ;;  %13836 = vmatprep.mubr.f32.mxu1 %v22057_v51 }
0x149e   :  { %17940 = vmatprep.subr.bf16.mxu1 %v22911_v32 }
0x14a1   :  { %17942 = vmatpush1.bf16.msra.mxu1 %v22912_v61 }
0x14a2   :  { %17944 = vmatprep.subr.bf16.mxu1 %v22913_v30 }
0x14a5   :  { %17946 = vmatpush1.bf16.msra.mxu1 %v22914_v53 }
0x14a6   :  { %17948 = vmatprep.subr.bf16.mxu1 %v22915_v40 }
0x14a9   :  { %17950 = vmatpush1.bf16.msra.mxu1 %v22916_v6 }
0x14aa   :  { %17952 = vmatprep.subr.bf16.mxu1 %v22917_v43  ;;  %v21541_v43 = vsub.f32 %v21492_v34, %v14285_v22 }
0x14ad   :  { %17954 = vmatpush1.bf16.msra.mxu1 %v22918_v49 }
0x14ae   :  { %17956 = vmatprep.subr.bf16.mxu1 %v22919_v48 }
0x14b1   :  { %17958 = vmatpush1.bf16.msra.mxu1 %v22920_v59 }
0x14b2   :  { %17960 = vmatprep.subr.bf16.mxu1 %v22921_v60 }
0x14b5   :  { %17962 = vmatpush1.bf16.msra.mxu1 %v22922_v21 }
0x14b6   :  { %17964 = vmatprep.subr.bf16.mxu1 %v22923_v14 }
0x14b9   :  { %17966 = vmatpush1.bf16.msra.mxu1 %v22924_v1 }
0x14ba   :  { %17968 = vmatprep.subr.bf16.mxu1 %v22271_v37 }
0x14bc   :  { %13839 = vmatmul.mubr.f32.vlgmr.msra.gmra.mrb[16].mxu1 %v13466_v33 }
0x14bd   :  { %17970 = vmatpush1.bf16.msra.mxu1 %v22274_v62  ;;  %13941 = vmatprep.mubr.f32.mxu1 %v22057_v51 }
0x14be   :  { %17972 = vmatprep.subr.bf16.mxu1 %v22276_v27 }
0x14c1   :  { %17974 = vmatpush1.bf16.msra.mxu1 %v22278_v10 }
0x14c2   :  { %17976 = vmatprep.subr.bf16.mxu1 %v22280_v23 }
0x14c5   :  { %17978 = vmatpush1.bf16.msra.mxu1 %v22282_v47 }
0x14c6   :  { %17980 = vmatprep.subr.bf16.mxu1 %v22284_v36 }
0x14c9   :  { %17982 = vmatpush1.bf16.msra.mxu1 %v22286_v3 }
0x14ca   :  { %17984 = vmatprep.subr.bf16.mxu1 %v22288_v54 }
0x14cd   :  { %17986 = vmatpush1.bf16.msra.mxu1 %v22290_v31 }
0x14ce   :  { %17988 = vmatprep.subr.bf16.mxu1 %v22292_v19 }
0x14d1   :  { %17990 = vmatpush1.bf16.msra.mxu1 %v22294_v9 }
0x14d2   :  { %17992 = vmatprep.subr.bf16.mxu1 %v22869_v13 }
0x14d5   :  { %17994 = vmatpush1.bf16.msra.mxu1 %v22871_v42 }
0x14d6   :  { %17996 = vmatprep.subr.bf16.mxu1 %v22873_v2 }
0x14d9   :  { %17998 = vmatpush1.bf16.msra.mxu1 %v22875_v46 }
0x14da   :  { %18000 = vmatprep.subr.bf16.mxu1 %v22925_v35  ;;  %v14398_v35 = vand.u32 4294901760, %v21541_v43 }
0x14dc   :  { %13945 = vmatmul.mubr.f32.vlgmr.msra.gmra.mrb[16].mxu1 %v13467_v55 }
0x14dd   :  { %18002 = vmatpush1.bf16.msra.mxu1 %v22926_v29  ;;  %14111 = vmatprep.mubr.f32.mxu1 %v22057_v51 }
0x14de   :  { %18004 = vmatprep.subr.bf16.mxu1 %v22927_v18 }
0x14e1   :  { %18006 = vmatpush1.bf16.msra.mxu1 %v22928_v38 }
0x14e2   :  { %18008 = vmatprep.subr.bf16.mxu1 %v22929_v15 }
0x14e5   :  { %18010 = vmatpush1.bf16.msra.mxu1 %v22930_v5 }
0x14e6   :  { %18012 = vmatprep.subr.bf16.mxu1 %v22931_v8 }
0x14e9   :  { %18014 = vmatpush1.bf16.msra.mxu1 %v22932_v16  ;;  %v14399_v16 = vsub.f32 %v21541_v43, %v14398_v35 }
0x14ea   :  { %18016 = vmatprep.subr.bf16.mxu1 %v22933_v63 }
0x14ed   :  { %18018 = vmatpush1.bf16.msra.mxu1 %v22934_v4 }
0x14ee   :  { %18020 = vmatprep.subr.bf16.mxu1 %v22897_v11 }
0x14f1   :  { %18022 = vmatpush1.bf16.msra.mxu1 %v22899_v28  ;;  %v21474_v28 = vld [vmem:[%s21641_s3 + $0x20] sm:$0xff] }
0x14f2   :  { %18024 = vmatprep.subr.bf16.mxu1 %v22901_v26  ;;  %v21479_v26 = vld [vmem:[%s21641_s3 + $0x28] sm:$0xff] }
0x14f5   :  { %18026 = vmatpush1.bf16.msra.mxu1 %v22903_v7 }
0x14f6   :  { %18028 = vmatprep.subr.bf16.mxu1 %v22905_v0  ;;  %v14276_v0 = vand.u32 4294901760, %v21474_v28 }
0x14f8   :  { %v21511_v24 = vsub.f32 %v21474_v28, %v14276_v0 }
0x14f9   :  { %18030 = vmatpush1.bf16.msra.mxu1 %v22907_v25  ;;  %v14279_v25 = vand.u32 4294901760, %v21479_v26 }
0x14fa   :  { %18032 = vmatprep.subr.bf16.mxu1 %v22271_v37  ;;  %v14244_v37 = vld [vmem:[%s21641_s3 + $0x8] sm:$0xff]  ;;  %v14377_v32 = vand.u32 4294901760, %v21511_v24 }
0x14fb   :  { %v21516_v39 = vsub.f32 %v21479_v26, %v14279_v25 }
0x14fc   :  { %14113 = vmatmul.mubr.f32.vlgmr.msra.gmra.mrb[16].mxu1 %v21353_v44  ;;  %v14378_v48 = vsub.f32 %v21511_v24, %v14377_v32 }
0x14fd   :  { %18034 = vmatpush1.bf16.msra.mxu1 %v22274_v62  ;;  %14215 = vmatprep.mubr.f32.mxu1 %v22057_v51  ;;  %v14384_v61 = vand.u32 4294901760, %v21516_v39 }
0x14fe   :  { %18036 = vmatprep.subr.bf16.mxu1 %v22276_v27  ;;  %v14379_v38 = vand.u32 4294901760, %v14378_v48 }
0x14ff   :  { %v14385_v59 = vsub.f32 %v21516_v39, %v14384_v61 }
0x1501   :  { %18038 = vmatpush1.bf16.msra.mxu1 %v22278_v10  ;;  %v14386_v5 = vand.u32 4294901760, %v14385_v59 }
0x1502   :  { %18040 = vmatprep.subr.bf16.mxu1 %v22280_v23 }
0x1503   :  { %v18082_v63 = vpack.c.bf16 %v14386_v5, %v14379_v38 }
0x1505   :  { %18042 = vmatpush1.bf16.msra.mxu1 %v22282_v47  ;;  %v14243_v47 = vld [vmem:[%s21641_s3] sm:$0xff] }
0x1506   :  { %18044 = vmatprep.subr.bf16.mxu1 %v22284_v36 }
0x1509   :  { %18046 = vmatpush1.bf16.msra.mxu1 %v22286_v3 }
0x150a   :  { %18048 = vmatprep.subr.bf16.mxu1 %v22288_v54 }
0x150d   :  { %18050 = vmatpush1.bf16.msra.mxu1 %v22290_v31 }
0x150e   :  { %18052 = vmatprep.subr.bf16.mxu1 %v22292_v19 }
0x1511   :  { %18054 = vmatpush1.bf16.msra.mxu1 %v22294_v9 }
0x1512   :  { %18056 = vmatprep.subr.bf16.mxu1 %v22869_v13  ;;  %v14264_v13 = vand.u32 4294901760, %v14243_v47 }
0x1514   :  { %v21494_v17 = vsub.f32 %v14243_v47, %v14264_v13 }
0x1515   :  { %18058 = vmatpush1.bf16.msra.mxu1 %v22871_v42  ;;  %v14267_v42 = vand.u32 4294901760, %v14244_v37 }
0x1516   :  { %18060 = vmatprep.subr.bf16.mxu1 %v22873_v2  ;;  %v21467_v2 = vld [vmem:[%s21641_s3 + $0x18] sm:$0xff]  ;;  %v14349_v33 = vand.u32 4294901760, %v21494_v17 }
0x1517   :  { %v14273_v7 = vand.u32 4294901760, %v21467_v2  ;;  %v21496_v50 = vsub.f32 %v14244_v37, %v14267_v42  ;;  %v21503_v20 = vpack.c.bf16 %v14267_v42, %v14264_v13 }
0x1518   :  { %v14350_v53 = vsub.f32 %v21494_v17, %v14349_v33 }
0x1519   :  { %18062 = vmatpush1.bf16.msra.mxu1 %v22875_v46  ;;  %v18469_v46 = vmov 0.0|0.0   ;;  %v21506_v56 = vsub.f32 %v21467_v2, %v14273_v7  ;;  %v14356_v55 = vand.u32 4294901760, %v21496_v50  ;;  %v18088_v2 = vpack.c.bf16 %v21496_v50, %v21494_v17 }
0x151a   :  { %18075 = vmatprep.subr.bf16.mxu0 %v18469_v46  ;;  %18063 = vmatprep.subr.bf16.mxu1 %v18469_v46  ;;  %v14351_v21 = vand.u32 4294901760, %v14350_v53  ;;  %v18118_v17 = vpack.c.bf16 %v14384_v61, %v14377_v32 }
0x151b   :  { %v14370_v52 = vand.u32 4294901760, %v21506_v56  ;;  %v14357_v40 = vsub.f32 %v21496_v50, %v14356_v55 }
0x151c   :  { %14217 = vmatmul.mubr.f32.vlgmr.msra.gmra.mrb[16].mxu1 %v21353_v44 }
0x151d   :  { %18065 = vmatpush3.bf16.msra.mxu1 %v21503_v20  ;;  %v14371_v49 = vsub.f32 %v21506_v56, %v14370_v52  ;;  %v14358_v14 = vand.u32 4294901760, %v14357_v40  ;;  %14893 = vmatprep.mubr.msk.f32.mxu1 %vm18470_vm1, %v22057_v51 }
0x151e   :  { %18066 = vmatprep.subr.bf16.mxu1 %v18469_v46 }
0x151f   :  { %v14372_v29 = vand.u32 4294901760, %v14371_v49  ;;  %v18076_v18 = vpack.c.bf16 %v14358_v14, %v14351_v21 }
0x1521   :  { %18077 = vmatpush3.bf16.msra.mxu0 %v18076_v18 }
0x1522   :  { %18078 = vmatprep.subr.bf16.mxu0 %v18469_v46 }
0x15ef   :  { %v14218_v36 = vpop.f32.mrb[16].mxu1 }
0x15f0   :  { %v14223_v3 = vadd.f32 %v14218_v36, %v22909_v58  ;;  %v14220_v54 = vpop.f32.mrb[17].mxu1  ;;  %v21487_v58 = vld [vmem:[%s21641_s3 + $0x30] sm:$0xff]  ;;  %v14400_v36 = vand.u32 4294901760, %v14399_v16 }
0x15f1   :  { %v21445_v27 = vadd.f32 %v14220_v54, %v19914_v57  ;;  %v21461_v57 = vld [vmem:[%s21641_s3 + $0x10] sm:$0xff]  ;;  %v14282_v44 = vand.u32 4294901760, %v21487_v58 }
0x15f2   :  { %v14225_v23 = vmul.f32 0.5, %v14223_v3  ;;  %v14270_v11 = vand.u32 4294901760, %v21461_v57 }
0x15f3   :  { %v21529_v30 = vsub.f32 %v21487_v58, %v14282_v44  ;;  %v14226_v54 = vmul.f32 0.5, %v21445_v27 }
0x15f4   :  { %18432 = vtanh.f32 %v14225_v23  ;;  %v21501_v12 = vsub.f32 %v21461_v57, %v14270_v11 }
0x15f5   :  { %18434 = vtanh.f32 %v21445_v27  ;;  %v14391_v60 = vand.u32 4294901760, %v21529_v30  ;;  %v18097_v34 = vpack.c.bf16 %v21541_v43, %v21529_v30 }
0x15f6   :  { %v14363_v45 = vand.u32 4294901760, %v21501_v12  ;;  %18436 = vtanh.f32 %v14226_v54  ;;  %v18091_v26 = vpack.c.bf16 %v21506_v56, %v21501_v12 }
0x15f7   :  { %v14392_v8 = vsub.f32 %v21529_v30, %v14391_v60  ;;  %v18121_v50 = vpack.c.bf16 %v14398_v35, %v14391_v60 }
0x15f8   :  { %v14364_v6 = vsub.f32 %v21501_v12, %v14363_v45 }
0x15f9   :  { %v14393_v4 = vand.u32 4294901760, %v14392_v8 }
0x15fa   :  { %v14365_v1 = vand.u32 4294901760, %v14364_v6 }
0x15fb   :  { %v18085_v3 = vpack.c.bf16 %v14400_v36, %v14393_v4 }
0x15fc   :  { %v18079_v15 = vpack.c.bf16 %v14372_v29, %v14365_v1 }
0x15fe   :  { %v18433_v62 = vpop.eup %18432  ;;  %18080 = vmatpush3.bf16.msra.mxu0 %v18079_v15 }
0x15ff   :  { %v14229_v9 = vadd.f32 1.0, %v18433_v62  ;;  %v18435_v31 = vpop.eup %18434  ;;  %18081 = vmatprep.subr.bf16.mxu0 %v18469_v46 }
0x1601   :  { %v21448_v19 = vmul.f32 0.5, %v14229_v9 }
0x1602   :  { %18083 = vmatpush3.bf16.msra.mxu0 %v18082_v63 }
0x1603   :  { %v14235_v10 = vmul.f32 %v18435_v31, %v21448_v19  ;;  %18084 = vmatprep.subr.bf16.mxu0 %v18469_v46  ;;  %v14234_v23 = vmul.f32 %v21448_v19, %v21349_v41  ;;  %v18437_v31 = vpop.eup %18436  ;;  %v18070_v41 = vpack.c.bf16 %v14279_v25, %v14276_v0  ;;  %v18073_v19 = vpack.c.bf16 %v14285_v22, %v14282_v44 }
0x1604   :  { %v14230_v47 = vadd.f32 1.0, %v18437_v31  ;;  %v18094_v25 = vpack.c.bf16 %v21516_v39, %v21511_v24  ;;  %v18112_v44 = vpack.c.bf16 %v14356_v55, %v14349_v33  ;;  %v18115_v22 = vpack.c.bf16 %v14370_v52, %v14363_v45  ;;  %v14822_v24 = vld [vmem:[#allocation2] ss:$0 sm:$0xff] }
0x1605   :  { %14237 = vrot.lane.b32.xlu1 %v14235_v10, %s18468_s9  ;;  %v21569_v10 = vpack.c.bf16 %v14273_v7, %v14270_v11 }
0x1606   :  { %18086 = vmatpush3.bf16.msra.mxu0 %v18085_v3  ;;  %v14232_v27 = vmul.f32 0.5, %v14230_v47 }
0x1607   :  { %18087 = vmatprep.subr.bf16.mxu0 %v18469_v46  ;;  %18068 = vmatpush3.bf16.msra.mxu1 %v21569_v10 }
0x1608   :  { %18069 = vmatprep.subr.bf16.mxu1 %v18469_v46 }
0x160b   :  { %18071 = vmatpush3.bf16.msra.mxu1 %v18070_v41 }
0x160c   :  { %18072 = vmatprep.subr.bf16.mxu1 %v18469_v46 }
0x160f   :  { %18074 = vmatpush3.bf16.msra.mxu1 %v18073_v19 }
0x1677   :  { %v14238_v62 = vpop.permute.xlu1 %14237 }
0x1678   :  { %v14240_v9 = vadd.f32 %v14238_v62, %v14234_v23 }
0x167a   :  { %18438 = vtanh.f32 %v14240_v9 }
0x1684   :  { %v18439_v37 = vpop.eup %18438 }
0x1685   :  { %v14242_v57 = vmul.f32 %v18439_v37, %v14232_v27 }
0x1687   :  { %14259 = vrot.lane.b32.xlu0 %v14242_v57, %s18468_s9 }
0x16f9   :  { %v14260_v13 = vpop.permute.xlu0 %14259 }
0x16fa   :  { %v14261_v42 = vsel %vm979_vm0, %v14260_v13, 0 }
0x16fb   :  { %v14336_v11 = vand.u32 4294901760, %v14261_v42 }
0x16fd   :  { %v14337_v28 = vsub.f32 %v14261_v42, %v14336_v11  ;;  %14913 = vmatmul.mubr.f32.vlgmr.msra.gmra.mrb[16].mxu0 %v14336_v11 }
0x16fe   :  { %18089 = vmatpush3.bf16.msra.mxu0 %v18088_v2  ;;  %14931 = vmatprep.mubr.msk.f32.mxu0 %vm18470_vm1, %v22057_v51 }
0x16ff   :  { %v14338_v7 = vand.u32 4294901760, %v14337_v28  ;;  %18090 = vmatprep.subr.bf16.mxu0 %v18469_v46 }
0x1701   :  { %v14339_v0 = vsub.f32 %v14337_v28, %v14338_v7 }
0x1702   :  { %18092 = vmatpush3.bf16.msra.mxu0 %v18091_v26 }
0x1703   :  { %v14340_v58 = vand.u32 4294901760, %v14339_v0  ;;  %18093 = vmatprep.subr.bf16.mxu0 %v18469_v46 }
0x1705   :  { %14894 = vmatmul.mubr.f32.vlgmr.msra.gmra.mrb[18].mxu1 %v14340_v58 }
0x1706   :  { %18095 = vmatpush3.bf16.msra.mxu0 %v18094_v25 }
0x1707   :  { %18096 = vmatprep.subr.bf16.mxu0 %v18469_v46 }
0x170a   :  { %18098 = vmatpush3.bf16.msra.mxu0 %v18097_v34 }
0x170b   :  { %18099 = vmatprep.subr.bf16.mxu0 %v18469_v46 }
0x170d   :  { %14932 = vmatmul.mubr.f32.vlgmr.msra.gmra.mrb[16].mxu0 %v14337_v28 }
0x170e   :  { %18101 = vmatpush3.bf16.msra.mxu0 %v21503_v20  ;;  %14950 = vmatprep.mubr.msk.f32.mxu0 %vm18470_vm1, %v22057_v51 }
0x170f   :  { %18102 = vmatprep.subr.bf16.mxu0 %v18469_v46 }
0x1712   :  { %18104 = vmatpush3.bf16.msra.mxu0 %v21569_v10 }
0x1713   :  { %18105 = vmatprep.subr.bf16.mxu0 %v18469_v46 }
0x1716   :  { %18107 = vmatpush3.bf16.msra.mxu0 %v18070_v41 }
0x1717   :  { %18108 = vmatprep.subr.bf16.mxu0 %v18469_v46 }
0x171a   :  { %18110 = vmatpush3.bf16.msra.mxu0 %v18073_v19 }
0x171b   :  { %18111 = vmatprep.subr.bf16.mxu0 %v18469_v46 }
0x171d   :  { %14951 = vmatmul.mubr.f32.vlgmr.msra.gmra.mrb[16].mxu0 %v14338_v7 }
0x171e   :  { %18113 = vmatpush3.bf16.msra.mxu0 %v18112_v44  ;;  %14969 = vmatprep.mubr.msk.f32.mxu0 %vm18470_vm1, %v22057_v51 }
0x171f   :  { %18114 = vmatprep.subr.bf16.mxu0 %v18469_v46 }
0x1722   :  { %18116 = vmatpush3.bf16.msra.mxu0 %v18115_v22 }
0x1723   :  { %18117 = vmatprep.subr.bf16.mxu0 %v18469_v46 }
0x1726   :  { %18119 = vmatpush3.bf16.msra.mxu0 %v18118_v17 }
0x1727   :  { %18120 = vmatprep.subr.bf16.mxu0 %v18469_v46 }
0x172a   :  { %18122 = vmatpush3.bf16.msra.mxu0 %v18121_v50 }
0x172b   :  { %18123 = vmatprep.subr.bf16.mxu0 %v18469_v46 }
0x172d   :  { %14970 = vmatmul.mubr.f32.vlgmr.msra.gmra.mrb[16].mxu0 %v14336_v11 }
0x172e   :  { %18125 = vmatpush3.bf16.msra.mxu0 %v21503_v20  ;;  %14988 = vmatprep.mubr.msk.f32.mxu0 %vm18470_vm1, %v22057_v51 }
0x172f   :  { %18126 = vmatprep.subr.bf16.mxu0 %v18469_v46 }
0x1732   :  { %18128 = vmatpush3.bf16.msra.mxu0 %v21569_v10 }
0x1733   :  { %18129 = vmatprep.subr.bf16.mxu0 %v18469_v46 }
0x1736   :  { %18131 = vmatpush3.bf16.msra.mxu0 %v18070_v41 }
0x1737   :  { %18132 = vmatprep.subr.bf16.mxu0 %v18469_v46 }
0x173a   :  { %18134 = vmatpush3.bf16.msra.mxu0 %v18073_v19 }
0x173d   :  { %14989 = vmatmul.mubr.f32.vlgmr.msra.gmra.mrb[16].mxu0 %v14336_v11 }
0x17d8   :  { %v14342_v12 = vpop.f32.mrb[18].mxu1 }
0x17d9   :  { %v14895_v56 = vpop.f32.mrb[19].mxu1  ;;  %v14343_v39 = vadd.f32 %v14822_v24, %v14342_v12 }
0x1810   :  { %v14796_v33 = vpop.f32.mrb[16].mxu0 }
0x1811   :  { %v18138_v20 = vadd.f32 %v14796_v33, %v14343_v39  ;;  %v14990_v55 = vpop.f32.mrb[17].mxu0 }
0x1813   :  { %14801 = vst.msk [vmem:[%s21643_s5] sm:$0x3] %vm14800_vm2, %v18138_v20 }
0x1814   :  { %14806 = vsyncpa [#allocation4], 1 }

</bundles_post_ra>
